<compile_context>
chip_gen: v6e
topology: v6e:2x2x1
jax: 0.10.0
libtpu: 0.0.40
codegen_flags: <defaults>
</compile_context>

<pallas_src>
import functools

import jax
import jax.numpy as jnp
from jax.experimental import pallas as pl
from jax.experimental.pallas import tpu as pltpu


def _convnet_kernel(*refs, H, W, cins, couts, c_out, c_out_s,
                    apply_sigmoid, res_out):
    """Whole ConvNet forward for one image (one grid step per batch element).

    refs (in order):
      x_ref  (1, C0, H*W)             lane-dense NCHW slab of the input, f32
      w_i    (3, 3*cins[i], couts[i]) bf16 weights, BN scale folded, kw in K
      b_i    (1, couts[i])            f32 folded bias
      o_ref  (1, c_out, H*W)          lane-dense NCHW-slab output
      s_i    (H+2, W, 3*cins[i])      bf16 strip scratch (zero halo, kw-shifted)
    """
    HW = H * W
    n_conv = len(cins)

    it = iter(refs)
    x_ref = next(it)
    wb = [(next(it), next(it)) for _ in range(n_conv)]
    o_ref = next(it)
    strips = [next(it) for _ in range(n_conv)]

    def stage(s_ref, y, cin):
        """Stage y (H, W, cin) into strip s (H+2, W, 3*cin) such that
        s[r, w, kw*cin + c] = ypad[r, w + kw, c] (ypad = 1-px zero pad of y).
        Only the halo is zeroed; the interior is fully overwritten below."""
        y = y.astype(s_ref.dtype)                        # single f32->bf16 cast
        zrow = jnp.zeros((1, W, 3 * cin), s_ref.dtype)
        zcol = jnp.zeros((H, 1, cin), s_ref.dtype)
        s_ref[0:1, :, :] = zrow                          # top padded row
        s_ref[H + 1:H + 2, :, :] = zrow                  # bottom padded row
        s_ref[1:H + 1, 0:1, 0:cin] = zcol                # kw=0 stale left col
        s_ref[1:H + 1, W - 1:W, 2 * cin:3 * cin] = zcol  # kw=2 stale right col
        s_ref[1:H + 1, 1:W, 0:cin] = y[:, 0:W - 1, :]            # kw = 0
        s_ref[1:H + 1, 0:W, cin:2 * cin] = y                     # kw = 1
        s_ref[1:H + 1, 0:W - 1, 2 * cin:3 * cin] = y[:, 1:W, :]  # kw = 2

    def conv3x3(s_ref, w_ref, b_ref, cin):
        """3x3 conv = 3 MXU matmuls (one per kh), K = 3*cin, f32 accumulate.
        The bias rides on the kh=0 result (no zeros materialization).
        NOTE: the kh slice of s_ref only moves whole (W, 3*cin) planes, so the
        reshape below is copy-free when W is a multiple of the sublane tile."""
        acc = jnp.dot(s_ref[0:H, :, :].reshape(HW, 3 * cin), w_ref[0, :, :],
                      preferred_element_type=jnp.float32) + b_ref[...]
        for kh in (1, 2):
            acc = acc + jnp.dot(s_ref[kh:kh + H, :, :].reshape(HW, 3 * cin),
                                w_ref[kh, :, :],
                                preferred_element_type=jnp.float32)
        return acc

    # Input arrives once as a (C0, HW) slab; build the (H, W, C0) staging view
    # with one tiny cross-lane transpose (C0 is small) and reuse the slab for
    # the residual subtraction at the end.
    x_cm = x_ref[0, :, :]                                     # (C0, HW) f32
    stage(strips[0], jnp.transpose(x_cm).reshape(H, W, cins[0]), cins[0])
    # TODO(synk): v5e micro-opt — for layer 0 (cin=3) fold kh into the
    # contraction too (one K=27 matmul instead of three K=9 matmuls).

    for i in range(n_conv):
        w_ref, b_ref = wb[i]
        y = conv3x3(strips[i], w_ref, b_ref, cins[i])
        if i < n_conv - 1:
            # hidden block: conv (+ folded eval-mode BN) -> ReLU -> next strip
            y = jnp.maximum(y, 0.0)
            stage(strips[i + 1], y.reshape(H, W, couts[i]), couts[i])
        else:
            # Slice the 128-lane padded output down to a sublane multiple
            # BEFORE the XLU transpose (small transpose instead of 128 lanes).
            y = y[:, :c_out_s]
            if apply_sigmoid:
                y = jax.nn.sigmoid(y)
            y_cm = jnp.transpose(y)[:c_out, :]                # (c_out, HW)
            if res_out:
                y_cm = x_cm[:c_out, :] - y_cm                 # x - model(x)
            o_ref[0, :, :] = y_cm.astype(o_ref.dtype)


def convnet_forward(x_nchw, params, *, res_out=True, need_sigmoid=False):
    """ConvNet forward. x_nchw: (N, C, H, W) float32, as in PyTorch.

    # TODO(synk): BatchNorm2d is evaluated with running stats at module
    # defaults (mean=0, var=1, gamma=1, beta=0); training-mode batch
    # statistics are not implemented.
    """
    eps = 1e-5
    N, C0, H, W = x_nchw.shape
    HW = H * W
    n_conv = len(params)
    c_out = params[-1][0].shape[-1]
    if res_out and c_out != C0:
        raise ValueError("res_out=True requires ch_out == ch_in")

    # Single input view: lane-dense NCHW slab (free reshape). The NHWC staging
    # view is built in-kernel -> no HBM transpose, no duplicate per-step DMA.
    x_ncs = x_nchw.reshape(N, C0, HW)

    # Fold eval-mode BN into hidden conv weights/biases, fold kw into the
    # contraction ((3,3,Cin,Cout) -> (3, 3*Cin, Cout)), pad the final Cout to
    # a full 128-lane tile (MXU-aligned result, sliced back in-kernel before
    # the transpose), and cast weights to bf16 for the MXU.
    LANE, SUB = 128, 8
    c_out_p = max(LANE, ((c_out + LANE - 1) // LANE) * LANE)
    c_out_s = min(c_out_p, ((c_out + SUB - 1) // SUB) * SUB)
    w_list, b_list, cins, couts = [], [], [], []
    cin = C0
    for i, (w, b) in enumerate(params):
        cout = w.shape[-1]
        if i < n_conv - 1:  # conv -> BN(eval) -> ReLU block
            gamma = jnp.ones((cout,), jnp.float32)
            beta = jnp.zeros((cout,), jnp.float32)
            mean = jnp.zeros((cout,), jnp.float32)
            var = jnp.ones((cout,), jnp.float32)
            scale = gamma / jnp.sqrt(var + eps)
            wf = w * scale[None, None, None, :]
            bf = beta + scale * (b - mean)
            cp = cout
        else:               # final conv (no BN): pad Cout to full lanes
            cp = c_out_p
            wf = jnp.pad(w, ((0, 0), (0, 0), (0, 0), (0, cp - cout)))
            bf = jnp.pad(b, ((0, cp - cout),))
        w_list.append(wf.reshape(3, 3 * cin, cp).astype(jnp.bfloat16))
        b_list.append(bf.reshape(1, cp).astype(jnp.float32))
        cins.append(cin)
        couts.append(cp)
        cin = cout

    kernel = functools.partial(
        _convnet_kernel, H=H, W=W, cins=tuple(cins), couts=tuple(couts),
        c_out=c_out, c_out_s=c_out_s, apply_sigmoid=need_sigmoid,
        res_out=res_out)

    in_specs = [pl.BlockSpec((1, C0, HW), lambda n: (n, 0, 0))]
    args = [x_ncs]
    for wf, bf in zip(w_list, b_list):
        in_specs.append(pl.BlockSpec(wf.shape, lambda n: (0, 0, 0)))
        in_specs.append(pl.BlockSpec(bf.shape, lambda n: (0, 0)))
        args.extend([wf, bf])

    # bf16 per-layer strip scratch, VMEM-resident for the whole network.
    scratch_shapes = [pltpu.VMEM((H + 2, W, 3 * c), jnp.bfloat16) for c in cins]

    # Derive the VMEM limit from the actual footprint (strips + double-
    # buffered weight/bias/x/out blocks) and the chip's capacity.
    strip_bytes = sum((H + 2) * W * 3 * c * 2 for c in cins)
    wb_bytes = sum(w.size * w.dtype.itemsize + b.size * b.dtype.itemsize
                   for w, b in zip(w_list, b_list))
    io_bytes = (C0 * HW + c_out * HW) * 4
    footprint = strip_bytes + 2 * (wb_bytes + io_bytes)
    try:
        vmem_cap = int(pltpu.get_tpu_info().vmem_capacity_bytes)
    except Exception:
        vmem_cap = 64 * 1024 * 1024            # conservative (v7x per-TC)
    vmem_limit = int(min(vmem_cap * 3 // 4,
                         max(16 * 1024 * 1024, 2 * footprint)))

    # TODO(synk): for large images (e.g. >=128x128 on v7x with 64 MiB VMEM),
    # add a second "parallel" row-strip grid axis with a 2-row halo so strips
    # fit and both v7x TensorCores stay busy at N==1; at 16x16 the working set
    # is < 1 MiB so the batch-only grid is fine.
    out_slab = pl.pallas_call(
        kernel,
        out_shape=jax.ShapeDtypeStruct((N, c_out, HW), x_nchw.dtype),
        grid=(N,),
        in_specs=in_specs,
        out_specs=pl.BlockSpec((1, c_out, HW), lambda n: (n, 0, 0)),
        scratch_shapes=scratch_shapes,
        compiler_params=pltpu.CompilerParams(
            dimension_semantics=("parallel",),
            vmem_limit_bytes=vmem_limit),
    )(*args)
    return out_slab.reshape(N, c_out, H, W)


def init_convnet_params(key, ch_in, ch_out, num_channels):
    """PyTorch Conv2d default init (uniform +-1/sqrt(fan_in)). Returns a list
    of (w[3,3,Cin,Cout], b[Cout]). BN params are at defaults (gamma=1, beta=0,
    running_mean=0, running_var=1)."""
    layers = []
    cin = ch_in
    for c in list(num_channels) + [ch_out]:
        key, k1, k2 = jax.random.split(key, 3)
        bound = 1.0 / (cin * 9) ** 0.5
        w = jax.random.uniform(k1, (3, 3, cin, c), jnp.float32, -bound, bound)
        b = jax.random.uniform(k2, (c,), jnp.float32, -bound, bound)
        layers.append((w, b))
        cin = c
    return layers


def _reference_forward(x_nchw, params, *, res_out=True, need_sigmoid=False):
    """Plain-JAX reference (lax.conv, f32) for correctness checking."""
    eps = 1e-5
    y = x_nchw

    def conv(z, w, b):
        return jax.lax.conv_general_dilated(
            z, w, window_strides=(1, 1), padding="SAME",
            dimension_numbers=("NCHW", "HWIO", "NCHW")) + b[None, :, None, None]

    h = y
    for (w, b) in params[:-1]:
        h = conv(h, w, b)
        h = h / jnp.sqrt(1.0 + eps)  # eval-mode BN, gamma=1, beta=0
        h = jnp.maximum(h, 0.0)
    w, b = params[-1]
    h = conv(h, w, b)
    if need_sigmoid:
        h = jax.nn.sigmoid(h)
    return y - h if res_out else h


if __name__ == "__main__":
    key = jax.random.PRNGKey(0)
    k_x, k_p = jax.random.split(key)

    ch_in, ch_out = 3, 3
    num_channels = [64, 128]          # module defaults
    N, H, W = 2, 16, 16               # small spatial for the demo

    x = jax.random.normal(k_x, (N, ch_in, H, W), jnp.float32)
    params = init_convnet_params(k_p, ch_in, ch_out, num_channels)

    out = convnet_forward(x, params, res_out=True, need_sigmoid=False)
    out = jax.block_until_ready(out)

    assert out.shape == (N, ch_out, H, W), out.shape
    assert bool(jnp.all(jnp.isfinite(out)))

    ref = _reference_forward(x, params, res_out=True, need_sigmoid=False)
    ref = jax.block_until_ready(ref)
    max_err = float(jnp.max(jnp.abs(out - ref)))
    # bf16 MXU inputs with f32 accumulation -> ~1e-2 abs error vs f32 ref.
    assert bool(jnp.allclose(out, ref, atol=3e-2, rtol=3e-2)), max_err

    print("KERNEL_OK")
</pallas_src>

<mosaic_0001>
module attributes {stable_mosaic.version = 11 : i64} {
  func.func @_convnet_kernel(%arg0: i32, %arg1: memref<1x3x256xf32, #tpu.memory_space<vmem>>, %arg2: memref<3x9x64xbf16, #tpu.memory_space<vmem>>, %arg3: memref<1x64xf32, #tpu.memory_space<vmem>>, %arg4: memref<3x192x128xbf16, #tpu.memory_space<vmem>>, %arg5: memref<1x128xf32, #tpu.memory_space<vmem>>, %arg6: memref<3x384x128xbf16, #tpu.memory_space<vmem>>, %arg7: memref<1x128xf32, #tpu.memory_space<vmem>>, %arg8: memref<1x3x256xf32, #tpu.memory_space<vmem>>, %arg9: memref<18x16x9xbf16, #tpu.memory_space<vmem>>, %arg10: memref<18x16x192xbf16, #tpu.memory_space<vmem>>, %arg11: memref<18x16x384xbf16, #tpu.memory_space<vmem>>) attributes {dimension_semantics = [#tpu.dimension_semantics<parallel>], iteration_bounds = array<i64: 2>, scalar_prefetch = 0 : i64, scratch_operands = 3 : i64, tpu.core_type = #tpu.core_type<tc>, window_params = [{transform_indices = @transform_0, window_bounds = array<i64: 1, 3, 256>}, {pipeline_mode = #tpu.pipeline_mode<synchronous>, transform_indices = @transform_1, window_bounds = array<i64: 3, 9, 64>}, {pipeline_mode = #tpu.pipeline_mode<synchronous>, transform_indices = @transform_2, window_bounds = array<i64: 1, 64>}, {pipeline_mode = #tpu.pipeline_mode<synchronous>, transform_indices = @transform_3, window_bounds = array<i64: 3, 192, 128>}, {pipeline_mode = #tpu.pipeline_mode<synchronous>, transform_indices = @transform_4, window_bounds = array<i64: 1, 128>}, {pipeline_mode = #tpu.pipeline_mode<synchronous>, transform_indices = @transform_5, window_bounds = array<i64: 3, 384, 128>}, {pipeline_mode = #tpu.pipeline_mode<synchronous>, transform_indices = @transform_6, window_bounds = array<i64: 1, 128>}, {transform_indices = @transform_7, window_bounds = array<i64: 1, 3, 256>}]} {
    %c0 = arith.constant 0 : index
    %c0_0 = arith.constant 0 : index
    %c0_1 = arith.constant 0 : index
    %0 = vector.load %arg1[%c0, %c0_0, %c0_1] : memref<1x3x256xf32, #tpu.memory_space<vmem>>, vector<1x3x256xf32>
    %1 = vector.shape_cast %0 : vector<1x3x256xf32> to vector<3x256xf32>
    %2 = tpu.transpose %1, [1, 0] : vector<3x256xf32> -> vector<256x3xf32>
    %3 = vector.shape_cast %2 : vector<256x3xf32> to vector<16x16x3xf32>
    %4 = arith.truncf %3 : vector<16x16x3xf32> to vector<16x16x3xbf16>
    %cst = arith.constant 0.000000e+00 : bf16
    %5 = vector.broadcast %cst : bf16 to vector<1x16x9xbf16>
    %cst_2 = arith.constant 0.000000e+00 : bf16
    %6 = vector.broadcast %cst_2 : bf16 to vector<16x1x3xbf16>
    %c0_3 = arith.constant 0 : index
    %c0_4 = arith.constant 0 : index
    %c0_5 = arith.constant 0 : index
    %7 = vector.load %arg9[%c0_3, %c0_4, %c0_5] : memref<18x16x9xbf16, #tpu.memory_space<vmem>>, vector<1x16x9xbf16>
    tpu.vector_store %arg9[%c0_3, %c0_4, %c0_5], %5 {strides = array<i32>} : memref<18x16x9xbf16, #tpu.memory_space<vmem>>, vector<1x16x9xbf16>,
    %c17 = arith.constant 17 : index
    %c0_6 = arith.constant 0 : index
    %c0_7 = arith.constant 0 : index
    %8 = vector.load %arg9[%c17, %c0_6, %c0_7] : memref<18x16x9xbf16, #tpu.memory_space<vmem>>, vector<1x16x9xbf16>
    tpu.vector_store %arg9[%c17, %c0_6, %c0_7], %5 {strides = array<i32>} : memref<18x16x9xbf16, #tpu.memory_space<vmem>>, vector<1x16x9xbf16>,
    %c1 = arith.constant 1 : index
    %c0_8 = arith.constant 0 : index
    %c0_9 = arith.constant 0 : index
    %9 = vector.load %arg9[%c1, %c0_8, %c0_9] : memref<18x16x9xbf16, #tpu.memory_space<vmem>>, vector<16x1x3xbf16>
    tpu.vector_store %arg9[%c1, %c0_8, %c0_9], %6 {strides = array<i32>} : memref<18x16x9xbf16, #tpu.memory_space<vmem>>, vector<16x1x3xbf16>,
    %c1_10 = arith.constant 1 : index
    %c15 = arith.constant 15 : index
    %c6 = arith.constant 6 : index
    %10 = vector.load %arg9[%c1_10, %c15, %c6] : memref<18x16x9xbf16, #tpu.memory_space<vmem>>, vector<16x1x3xbf16>
    tpu.vector_store %arg9[%c1_10, %c15, %c6], %6 {strides = array<i32>} : memref<18x16x9xbf16, #tpu.memory_space<vmem>>, vector<16x1x3xbf16>,
    %11 = vector.extract_strided_slice %4 {offsets = [0, 0, 0], sizes = [16, 15, 3], strides = [1, 1, 1]} : vector<16x16x3xbf16> to vector<16x15x3xbf16>
    %c1_11 = arith.constant 1 : index
    %c1_12 = arith.constant 1 : index
    %c0_13 = arith.constant 0 : index
    %12 = vector.load %arg9[%c1_11, %c1_12, %c0_13] : memref<18x16x9xbf16, #tpu.memory_space<vmem>>, vector<16x15x3xbf16>
    tpu.vector_store %arg9[%c1_11, %c1_12, %c0_13], %11 {strides = array<i32>} : memref<18x16x9xbf16, #tpu.memory_space<vmem>>, vector<16x15x3xbf16>,
    %c1_14 = arith.constant 1 : index
    %c0_15 = arith.constant 0 : index
    %c3 = arith.constant 3 : index
    %13 = vector.load %arg9[%c1_14, %c0_15, %c3] : memref<18x16x9xbf16, #tpu.memory_space<vmem>>, vector<16x16x3xbf16>
    tpu.vector_store %arg9[%c1_14, %c0_15, %c3], %4 {strides = array<i32>} : memref<18x16x9xbf16, #tpu.memory_space<vmem>>, vector<16x16x3xbf16>,
    %14 = vector.extract_strided_slice %4 {offsets = [0, 1, 0], sizes = [16, 15, 3], strides = [1, 1, 1]} : vector<16x16x3xbf16> to vector<16x15x3xbf16>
    %c1_16 = arith.constant 1 : index
    %c0_17 = arith.constant 0 : index
    %c6_18 = arith.constant 6 : index
    %15 = vector.load %arg9[%c1_16, %c0_17, %c6_18] : memref<18x16x9xbf16, #tpu.memory_space<vmem>>, vector<16x15x3xbf16>
    tpu.vector_store %arg9[%c1_16, %c0_17, %c6_18], %14 {strides = array<i32>} : memref<18x16x9xbf16, #tpu.memory_space<vmem>>, vector<16x15x3xbf16>,
    %c0_19 = arith.constant 0 : index
    %c0_20 = arith.constant 0 : index
    %c0_21 = arith.constant 0 : index
    %16 = vector.load %arg9[%c0_19, %c0_20, %c0_21] : memref<18x16x9xbf16, #tpu.memory_space<vmem>>, vector<16x16x9xbf16>
    %17 = vector.shape_cast %16 : vector<16x16x9xbf16> to vector<256x9xbf16>
    %c0_22 = arith.constant 0 : index
    %c0_23 = arith.constant 0 : index
    %c0_24 = arith.constant 0 : index
    %18 = vector.load %arg2[%c0_22, %c0_23, %c0_24] : memref<3x9x64xbf16, #tpu.memory_space<vmem>>, vector<1x9x64xbf16>
    %19 = vector.shape_cast %18 : vector<1x9x64xbf16> to vector<9x64xbf16>
    %cst_25 = arith.constant dense<0.000000e+00> : vector<256x64xf32>
    %20 = tpu.matmul %17, %19, %cst_25 {dimension_numbers = #tpu.dot_dimension_numbers<[1], [0], [0], [1], [0, 0, 1, 1], [], []>} : vector<256x9xbf16>, vector<9x64xbf16>, vector<256x64xf32> -> vector<256x64xf32>
    %c0_26 = arith.constant 0 : index
    %c0_27 = arith.constant 0 : index
    %21 = vector.load %arg3[%c0_26, %c0_27] : memref<1x64xf32, #tpu.memory_space<vmem>>, vector<1x64xf32>
    %22 = vector.broadcast %21 : vector<1x64xf32> to vector<256x64xf32>
    %23 = arith.addf %20, %22 : vector<256x64xf32>
    %c1_28 = arith.constant 1 : index
    %c0_29 = arith.constant 0 : index
    %c0_30 = arith.constant 0 : index
    %24 = vector.load %arg9[%c1_28, %c0_29, %c0_30] : memref<18x16x9xbf16, #tpu.memory_space<vmem>>, vector<16x16x9xbf16>
    %25 = vector.shape_cast %24 : vector<16x16x9xbf16> to vector<256x9xbf16>
    %c1_31 = arith.constant 1 : index
    %c0_32 = arith.constant 0 : index
    %c0_33 = arith.constant 0 : index
    %26 = vector.load %arg2[%c1_31, %c0_32, %c0_33] : memref<3x9x64xbf16, #tpu.memory_space<vmem>>, vector<1x9x64xbf16>
    %27 = vector.shape_cast %26 : vector<1x9x64xbf16> to vector<9x64xbf16>
    %cst_34 = arith.constant dense<0.000000e+00> : vector<256x64xf32>
    %28 = tpu.matmul %25, %27, %cst_34 {dimension_numbers = #tpu.dot_dimension_numbers<[1], [0], [0], [1], [0, 0, 1, 1], [], []>} : vector<256x9xbf16>, vector<9x64xbf16>, vector<256x64xf32> -> vector<256x64xf32>
    %29 = arith.addf %23, %28 : vector<256x64xf32>
    %c2 = arith.constant 2 : index
    %c0_35 = arith.constant 0 : index
    %c0_36 = arith.constant 0 : index
    %30 = vector.load %arg9[%c2, %c0_35, %c0_36] : memref<18x16x9xbf16, #tpu.memory_space<vmem>>, vector<16x16x9xbf16>
    %31 = vector.shape_cast %30 : vector<16x16x9xbf16> to vector<256x9xbf16>
    %c2_37 = arith.constant 2 : index
    %c0_38 = arith.constant 0 : index
    %c0_39 = arith.constant 0 : index
    %32 = vector.load %arg2[%c2_37, %c0_38, %c0_39] : memref<3x9x64xbf16, #tpu.memory_space<vmem>>, vector<1x9x64xbf16>
    %33 = vector.shape_cast %32 : vector<1x9x64xbf16> to vector<9x64xbf16>
    %cst_40 = arith.constant dense<0.000000e+00> : vector<256x64xf32>
    %34 = tpu.matmul %31, %33, %cst_40 {dimension_numbers = #tpu.dot_dimension_numbers<[1], [0], [0], [1], [0, 0, 1, 1], [], []>} : vector<256x9xbf16>, vector<9x64xbf16>, vector<256x64xf32> -> vector<256x64xf32>
    %35 = arith.addf %29, %34 : vector<256x64xf32>
    %cst_41 = arith.constant 0.000000e+00 : f32
    %36 = vector.broadcast %cst_41 : f32 to vector<256x64xf32>
    %37 = arith.maximumf %35, %36 : vector<256x64xf32>
    %38 = vector.shape_cast %37 : vector<256x64xf32> to vector<16x16x64xf32>
    %39 = arith.truncf %38 : vector<16x16x64xf32> to vector<16x16x64xbf16>
    %cst_42 = arith.constant 0.000000e+00 : bf16
    %40 = vector.broadcast %cst_42 : bf16 to vector<1x16x192xbf16>
    %cst_43 = arith.constant 0.000000e+00 : bf16
    %41 = vector.broadcast %cst_43 : bf16 to vector<16x1x64xbf16>
    %c0_44 = arith.constant 0 : index
    %c0_45 = arith.constant 0 : index
    %c0_46 = arith.constant 0 : index
    %42 = vector.load %arg10[%c0_44, %c0_45, %c0_46] : memref<18x16x192xbf16, #tpu.memory_space<vmem>>, vector<1x16x192xbf16>
    tpu.vector_store %arg10[%c0_44, %c0_45, %c0_46], %40 {strides = array<i32>} : memref<18x16x192xbf16, #tpu.memory_space<vmem>>, vector<1x16x192xbf16>,
    %c17_47 = arith.constant 17 : index
    %c0_48 = arith.constant 0 : index
    %c0_49 = arith.constant 0 : index
    %43 = vector.load %arg10[%c17_47, %c0_48, %c0_49] : memref<18x16x192xbf16, #tpu.memory_space<vmem>>, vector<1x16x192xbf16>
    tpu.vector_store %arg10[%c17_47, %c0_48, %c0_49], %40 {strides = array<i32>} : memref<18x16x192xbf16, #tpu.memory_space<vmem>>, vector<1x16x192xbf16>,
    %c1_50 = arith.constant 1 : index
    %c0_51 = arith.constant 0 : index
    %c0_52 = arith.constant 0 : index
    %44 = vector.load %arg10[%c1_50, %c0_51, %c0_52] : memref<18x16x192xbf16, #tpu.memory_space<vmem>>, vector<16x1x64xbf16>
    tpu.vector_store %arg10[%c1_50, %c0_51, %c0_52], %41 {strides = array<i32>} : memref<18x16x192xbf16, #tpu.memory_space<vmem>>, vector<16x1x64xbf16>,
    %c1_53 = arith.constant 1 : index
    %c15_54 = arith.constant 15 : index
    %c128 = arith.constant 128 : index
    %45 = vector.load %arg10[%c1_53, %c15_54, %c128] : memref<18x16x192xbf16, #tpu.memory_space<vmem>>, vector<16x1x64xbf16>
    tpu.vector_store %arg10[%c1_53, %c15_54, %c128], %41 {strides = array<i32>} : memref<18x16x192xbf16, #tpu.memory_space<vmem>>, vector<16x1x64xbf16>,
    %46 = vector.extract_strided_slice %39 {offsets = [0, 0, 0], sizes = [16, 15, 64], strides = [1, 1, 1]} : vector<16x16x64xbf16> to vector<16x15x64xbf16>
    %c1_55 = arith.constant 1 : index
    %c1_56 = arith.constant 1 : index
    %c0_57 = arith.constant 0 : index
    %47 = vector.load %arg10[%c1_55, %c1_56, %c0_57] : memref<18x16x192xbf16, #tpu.memory_space<vmem>>, vector<16x15x64xbf16>
    tpu.vector_store %arg10[%c1_55, %c1_56, %c0_57], %46 {strides = array<i32>} : memref<18x16x192xbf16, #tpu.memory_space<vmem>>, vector<16x15x64xbf16>,
    %c1_58 = arith.constant 1 : index
    %c0_59 = arith.constant 0 : index
    %c64 = arith.constant 64 : index
    %48 = vector.load %arg10[%c1_58, %c0_59, %c64] : memref<18x16x192xbf16, #tpu.memory_space<vmem>>, vector<16x16x64xbf16>
    tpu.vector_store %arg10[%c1_58, %c0_59, %c64], %39 {strides = array<i32>} : memref<18x16x192xbf16, #tpu.memory_space<vmem>>, vector<16x16x64xbf16>,
    %49 = vector.extract_strided_slice %39 {offsets = [0, 1, 0], sizes = [16, 15, 64], strides = [1, 1, 1]} : vector<16x16x64xbf16> to vector<16x15x64xbf16>
    %c1_60 = arith.constant 1 : index
    %c0_61 = arith.constant 0 : index
    %c128_62 = arith.constant 128 : index
    %50 = vector.load %arg10[%c1_60, %c0_61, %c128_62] : memref<18x16x192xbf16, #tpu.memory_space<vmem>>, vector<16x15x64xbf16>
    tpu.vector_store %arg10[%c1_60, %c0_61, %c128_62], %49 {strides = array<i32>} : memref<18x16x192xbf16, #tpu.memory_space<vmem>>, vector<16x15x64xbf16>,
    %c0_63 = arith.constant 0 : index
    %c0_64 = arith.constant 0 : index
    %c0_65 = arith.constant 0 : index
    %51 = vector.load %arg10[%c0_63, %c0_64, %c0_65] : memref<18x16x192xbf16, #tpu.memory_space<vmem>>, vector<16x16x192xbf16>
    %52 = vector.shape_cast %51 : vector<16x16x192xbf16> to vector<256x192xbf16>
    %c0_66 = arith.constant 0 : index
    %c0_67 = arith.constant 0 : index
    %c0_68 = arith.constant 0 : index
    %53 = vector.load %arg4[%c0_66, %c0_67, %c0_68] : memref<3x192x128xbf16, #tpu.memory_space<vmem>>, vector<1x192x128xbf16>
    %54 = vector.shape_cast %53 : vector<1x192x128xbf16> to vector<192x128xbf16>
    %cst_69 = arith.constant dense<0.000000e+00> : vector<256x128xf32>
    %55 = tpu.matmul %52, %54, %cst_69 {dimension_numbers = #tpu.dot_dimension_numbers<[1], [0], [0], [1], [0, 0, 1, 1], [], []>} : vector<256x192xbf16>, vector<192x128xbf16>, vector<256x128xf32> -> vector<256x128xf32>
    %c0_70 = arith.constant 0 : index
    %c0_71 = arith.constant 0 : index
    %56 = vector.load %arg5[%c0_70, %c0_71] : memref<1x128xf32, #tpu.memory_space<vmem>>, vector<1x128xf32>
    %57 = vector.broadcast %56 : vector<1x128xf32> to vector<256x128xf32>
    %58 = arith.addf %55, %57 : vector<256x128xf32>
    %c1_72 = arith.constant 1 : index
    %c0_73 = arith.constant 0 : index
    %c0_74 = arith.constant 0 : index
    %59 = vector.load %arg10[%c1_72, %c0_73, %c0_74] : memref<18x16x192xbf16, #tpu.memory_space<vmem>>, vector<16x16x192xbf16>
    %60 = vector.shape_cast %59 : vector<16x16x192xbf16> to vector<256x192xbf16>
    %c1_75 = arith.constant 1 : index
    %c0_76 = arith.constant 0 : index
    %c0_77 = arith.constant 0 : index
    %61 = vector.load %arg4[%c1_75, %c0_76, %c0_77] : memref<3x192x128xbf16, #tpu.memory_space<vmem>>, vector<1x192x128xbf16>
    %62 = vector.shape_cast %61 : vector<1x192x128xbf16> to vector<192x128xbf16>
    %cst_78 = arith.constant dense<0.000000e+00> : vector<256x128xf32>
    %63 = tpu.matmul %60, %62, %cst_78 {dimension_numbers = #tpu.dot_dimension_numbers<[1], [0], [0], [1], [0, 0, 1, 1], [], []>} : vector<256x192xbf16>, vector<192x128xbf16>, vector<256x128xf32> -> vector<256x128xf32>
    %64 = arith.addf %58, %63 : vector<256x128xf32>
    %c2_79 = arith.constant 2 : index
    %c0_80 = arith.constant 0 : index
    %c0_81 = arith.constant 0 : index
    %65 = vector.load %arg10[%c2_79, %c0_80, %c0_81] : memref<18x16x192xbf16, #tpu.memory_space<vmem>>, vector<16x16x192xbf16>
    %66 = vector.shape_cast %65 : vector<16x16x192xbf16> to vector<256x192xbf16>
    %c2_82 = arith.constant 2 : index
    %c0_83 = arith.constant 0 : index
    %c0_84 = arith.constant 0 : index
    %67 = vector.load %arg4[%c2_82, %c0_83, %c0_84] : memref<3x192x128xbf16, #tpu.memory_space<vmem>>, vector<1x192x128xbf16>
    %68 = vector.shape_cast %67 : vector<1x192x128xbf16> to vector<192x128xbf16>
    %cst_85 = arith.constant dense<0.000000e+00> : vector<256x128xf32>
    %69 = tpu.matmul %66, %68, %cst_85 {dimension_numbers = #tpu.dot_dimension_numbers<[1], [0], [0], [1], [0, 0, 1, 1], [], []>} : vector<256x192xbf16>, vector<192x128xbf16>, vector<256x128xf32> -> vector<256x128xf32>
    %70 = arith.addf %64, %69 : vector<256x128xf32>
    %cst_86 = arith.constant 0.000000e+00 : f32
    %71 = vector.broadcast %cst_86 : f32 to vector<256x128xf32>
    %72 = arith.maximumf %70, %71 : vector<256x128xf32>
    %73 = vector.shape_cast %72 : vector<256x128xf32> to vector<16x16x128xf32>
    %74 = arith.truncf %73 : vector<16x16x128xf32> to vector<16x16x128xbf16>
    %cst_87 = arith.constant 0.000000e+00 : bf16
    %75 = vector.broadcast %cst_87 : bf16 to vector<1x16x384xbf16>
    %cst_88 = arith.constant 0.000000e+00 : bf16
    %76 = vector.broadcast %cst_88 : bf16 to vector<16x1x128xbf16>
    %c0_89 = arith.constant 0 : index
    %c0_90 = arith.constant 0 : index
    %c0_91 = arith.constant 0 : index
    %77 = vector.load %arg11[%c0_89, %c0_90, %c0_91] : memref<18x16x384xbf16, #tpu.memory_space<vmem>>, vector<1x16x384xbf16>
    tpu.vector_store %arg11[%c0_89, %c0_90, %c0_91], %75 {strides = array<i32>} : memref<18x16x384xbf16, #tpu.memory_space<vmem>>, vector<1x16x384xbf16>,
    %c17_92 = arith.constant 17 : index
    %c0_93 = arith.constant 0 : index
    %c0_94 = arith.constant 0 : index
    %78 = vector.load %arg11[%c17_92, %c0_93, %c0_94] : memref<18x16x384xbf16, #tpu.memory_space<vmem>>, vector<1x16x384xbf16>
    tpu.vector_store %arg11[%c17_92, %c0_93, %c0_94], %75 {strides = array<i32>} : memref<18x16x384xbf16, #tpu.memory_space<vmem>>, vector<1x16x384xbf16>,
    %c1_95 = arith.constant 1 : index
    %c0_96 = arith.constant 0 : index
    %c0_97 = arith.constant 0 : index
    %79 = vector.load %arg11[%c1_95, %c0_96, %c0_97] : memref<18x16x384xbf16, #tpu.memory_space<vmem>>, vector<16x1x128xbf16>
    tpu.vector_store %arg11[%c1_95, %c0_96, %c0_97], %76 {strides = array<i32>} : memref<18x16x384xbf16, #tpu.memory_space<vmem>>, vector<16x1x128xbf16>,
    %c1_98 = arith.constant 1 : index
    %c15_99 = arith.constant 15 : index
    %c256 = arith.constant 256 : index
    %80 = vector.load %arg11[%c1_98, %c15_99, %c256] : memref<18x16x384xbf16, #tpu.memory_space<vmem>>, vector<16x1x128xbf16>
    tpu.vector_store %arg11[%c1_98, %c15_99, %c256], %76 {strides = array<i32>} : memref<18x16x384xbf16, #tpu.memory_space<vmem>>, vector<16x1x128xbf16>,
    %81 = vector.extract_strided_slice %74 {offsets = [0, 0, 0], sizes = [16, 15, 128], strides = [1, 1, 1]} : vector<16x16x128xbf16> to vector<16x15x128xbf16>
    %c1_100 = arith.constant 1 : index
    %c1_101 = arith.constant 1 : index
    %c0_102 = arith.constant 0 : index
    %82 = vector.load %arg11[%c1_100, %c1_101, %c0_102] : memref<18x16x384xbf16, #tpu.memory_space<vmem>>, vector<16x15x128xbf16>
    tpu.vector_store %arg11[%c1_100, %c1_101, %c0_102], %81 {strides = array<i32>} : memref<18x16x384xbf16, #tpu.memory_space<vmem>>, vector<16x15x128xbf16>,
    %c1_103 = arith.constant 1 : index
    %c0_104 = arith.constant 0 : index
    %c128_105 = arith.constant 128 : index
    %83 = vector.load %arg11[%c1_103, %c0_104, %c128_105] : memref<18x16x384xbf16, #tpu.memory_space<vmem>>, vector<16x16x128xbf16>
    tpu.vector_store %arg11[%c1_103, %c0_104, %c128_105], %74 {strides = array<i32>} : memref<18x16x384xbf16, #tpu.memory_space<vmem>>, vector<16x16x128xbf16>,
    %84 = vector.extract_strided_slice %74 {offsets = [0, 1, 0], sizes = [16, 15, 128], strides = [1, 1, 1]} : vector<16x16x128xbf16> to vector<16x15x128xbf16>
    %c1_106 = arith.constant 1 : index
    %c0_107 = arith.constant 0 : index
    %c256_108 = arith.constant 256 : index
    %85 = vector.load %arg11[%c1_106, %c0_107, %c256_108] : memref<18x16x384xbf16, #tpu.memory_space<vmem>>, vector<16x15x128xbf16>
    tpu.vector_store %arg11[%c1_106, %c0_107, %c256_108], %84 {strides = array<i32>} : memref<18x16x384xbf16, #tpu.memory_space<vmem>>, vector<16x15x128xbf16>,
    %c0_109 = arith.constant 0 : index
    %c0_110 = arith.constant 0 : index
    %c0_111 = arith.constant 0 : index
    %86 = vector.load %arg11[%c0_109, %c0_110, %c0_111] : memref<18x16x384xbf16, #tpu.memory_space<vmem>>, vector<16x16x384xbf16>
    %87 = vector.shape_cast %86 : vector<16x16x384xbf16> to vector<256x384xbf16>
    %c0_112 = arith.constant 0 : index
    %c0_113 = arith.constant 0 : index
    %c0_114 = arith.constant 0 : index
    %88 = vector.load %arg6[%c0_112, %c0_113, %c0_114] : memref<3x384x128xbf16, #tpu.memory_space<vmem>>, vector<1x384x128xbf16>
    %89 = vector.shape_cast %88 : vector<1x384x128xbf16> to vector<384x128xbf16>
    %cst_115 = arith.constant dense<0.000000e+00> : vector<256x128xf32>
    %90 = tpu.matmul %87, %89, %cst_115 {dimension_numbers = #tpu.dot_dimension_numbers<[1], [0], [0], [1], [0, 0, 1, 1], [], []>} : vector<256x384xbf16>, vector<384x128xbf16>, vector<256x128xf32> -> vector<256x128xf32>
    %c0_116 = arith.constant 0 : index
    %c0_117 = arith.constant 0 : index
    %91 = vector.load %arg7[%c0_116, %c0_117] : memref<1x128xf32, #tpu.memory_space<vmem>>, vector<1x128xf32>
    %92 = vector.broadcast %91 : vector<1x128xf32> to vector<256x128xf32>
    %93 = arith.addf %90, %92 : vector<256x128xf32>
    %c1_118 = arith.constant 1 : index
    %c0_119 = arith.constant 0 : index
    %c0_120 = arith.constant 0 : index
    %94 = vector.load %arg11[%c1_118, %c0_119, %c0_120] : memref<18x16x384xbf16, #tpu.memory_space<vmem>>, vector<16x16x384xbf16>
    %95 = vector.shape_cast %94 : vector<16x16x384xbf16> to vector<256x384xbf16>
    %c1_121 = arith.constant 1 : index
    %c0_122 = arith.constant 0 : index
    %c0_123 = arith.constant 0 : index
    %96 = vector.load %arg6[%c1_121, %c0_122, %c0_123] : memref<3x384x128xbf16, #tpu.memory_space<vmem>>, vector<1x384x128xbf16>
    %97 = vector.shape_cast %96 : vector<1x384x128xbf16> to vector<384x128xbf16>
    %cst_124 = arith.constant dense<0.000000e+00> : vector<256x128xf32>
    %98 = tpu.matmul %95, %97, %cst_124 {dimension_numbers = #tpu.dot_dimension_numbers<[1], [0], [0], [1], [0, 0, 1, 1], [], []>} : vector<256x384xbf16>, vector<384x128xbf16>, vector<256x128xf32> -> vector<256x128xf32>
    %99 = arith.addf %93, %98 : vector<256x128xf32>
    %c2_125 = arith.constant 2 : index
    %c0_126 = arith.constant 0 : index
    %c0_127 = arith.constant 0 : index
    %100 = vector.load %arg11[%c2_125, %c0_126, %c0_127] : memref<18x16x384xbf16, #tpu.memory_space<vmem>>, vector<16x16x384xbf16>
    %101 = vector.shape_cast %100 : vector<16x16x384xbf16> to vector<256x384xbf16>
    %c2_128 = arith.constant 2 : index
    %c0_129 = arith.constant 0 : index
    %c0_130 = arith.constant 0 : index
    %102 = vector.load %arg6[%c2_128, %c0_129, %c0_130] : memref<3x384x128xbf16, #tpu.memory_space<vmem>>, vector<1x384x128xbf16>
    %103 = vector.shape_cast %102 : vector<1x384x128xbf16> to vector<384x128xbf16>
    %cst_131 = arith.constant dense<0.000000e+00> : vector<256x128xf32>
    %104 = tpu.matmul %101, %103, %cst_131 {dimension_numbers = #tpu.dot_dimension_numbers<[1], [0], [0], [1], [0, 0, 1, 1], [], []>} : vector<256x384xbf16>, vector<384x128xbf16>, vector<256x128xf32> -> vector<256x128xf32>
    %105 = arith.addf %99, %104 : vector<256x128xf32>
    %106 = vector.extract_strided_slice %105 {offsets = [0, 0], sizes = [256, 8], strides = [1, 1]} : vector<256x128xf32> to vector<256x8xf32>
    %107 = tpu.transpose %106, [1, 0] : vector<256x8xf32> -> vector<8x256xf32>
    %108 = vector.extract_strided_slice %107 {offsets = [0, 0], sizes = [3, 256], strides = [1, 1]} : vector<8x256xf32> to vector<3x256xf32>
    %109 = arith.subf %1, %108 : vector<3x256xf32>
    %c0_132 = arith.constant 0 : index
    %c0_133 = arith.constant 0 : index
    %c0_134 = arith.constant 0 : index
    %110 = vector.load %arg8[%c0_132, %c0_133, %c0_134] : memref<1x3x256xf32, #tpu.memory_space<vmem>>, vector<1x3x256xf32>
    %111 = vector.shape_cast %110 : vector<1x3x256xf32> to vector<3x256xf32>
    %112 = vector.shape_cast %109 : vector<3x256xf32> to vector<1x3x256xf32>
    tpu.vector_store %arg8[%c0_132, %c0_133, %c0_134], %112 {strides = array<i32>} : memref<1x3x256xf32, #tpu.memory_space<vmem>>, vector<1x3x256xf32>,
    return
  }
  func.func @transform_0(%arg0: i32) -> (i32, i32, i32) {
    %c0_i32 = arith.constant 0 : i32
    %c0_i32_0 = arith.constant 0 : i32
    %c0_i32_1 = arith.constant 0 : i32
    return %arg0, %c0_i32, %c0_i32_0 : i32, i32, i32
  }
  func.func @transform_1(%arg0: i32) -> (i32, i32, i32) {
    %c0_i32 = arith.constant 0 : i32
    %c0_i32_0 = arith.constant 0 : i32
    %c0_i32_1 = arith.constant 0 : i32
    %c0_i32_2 = arith.constant 0 : i32
    return %c0_i32, %c0_i32_0, %c0_i32_1 : i32, i32, i32
  }
  func.func @transform_2(%arg0: i32) -> (i32, i32) {
    %c0_i32 = arith.constant 0 : i32
    %c0_i32_0 = arith.constant 0 : i32
    %c0_i32_1 = arith.constant 0 : i32
    return %c0_i32, %c0_i32_0 : i32, i32
  }
  func.func @transform_3(%arg0: i32) -> (i32, i32, i32) {
    %c0_i32 = arith.constant 0 : i32
    %c0_i32_0 = arith.constant 0 : i32
    %c0_i32_1 = arith.constant 0 : i32
    %c0_i32_2 = arith.constant 0 : i32
    return %c0_i32, %c0_i32_0, %c0_i32_1 : i32, i32, i32
  }
  func.func @transform_4(%arg0: i32) -> (i32, i32) {
    %c0_i32 = arith.constant 0 : i32
    %c0_i32_0 = arith.constant 0 : i32
    %c0_i32_1 = arith.constant 0 : i32
    return %c0_i32, %c0_i32_0 : i32, i32
  }
  func.func @transform_5(%arg0: i32) -> (i32, i32, i32) {
    %c0_i32 = arith.constant 0 : i32
    %c0_i32_0 = arith.constant 0 : i32
    %c0_i32_1 = arith.constant 0 : i32
    %c0_i32_2 = arith.constant 0 : i32
    return %c0_i32, %c0_i32_0, %c0_i32_1 : i32, i32, i32
  }
  func.func @transform_6(%arg0: i32) -> (i32, i32) {
    %c0_i32 = arith.constant 0 : i32
    %c0_i32_0 = arith.constant 0 : i32
    %c0_i32_1 = arith.constant 0 : i32
    return %c0_i32, %c0_i32_0 : i32, i32
  }
  func.func @transform_7(%arg0: i32) -> (i32, i32, i32) {
    %c0_i32 = arith.constant 0 : i32
    %c0_i32_0 = arith.constant 0 : i32
    %c0_i32_1 = arith.constant 0 : i32
    return %arg0, %c0_i32, %c0_i32_0 : i32, i32, i32
  }
}

</mosaic_0001>

<bundles_post_ra>
// kernel: tpu_custom_call.1
= control target key start
LH: loop header
LB: loop body
LE: loop exit
PB: predicated region body
PF: predicated region fallthrough
CT: control target
= control target key end

     0   :  { %12 = vsyncpa [#allocation6], 0  ;;  %s13583_s0 = inlined_call_operand.vmem [shape: f32[2,3,256], index: 0, kind: input, shape index: {}]   ;;  %s13584_s1 = inlined_call_operand.vmem [shape: bf16[3,9,64], index: 1, kind: input, shape index: {}]   ;;  %s13585_s2 = inlined_call_operand.vmem [shape: f32[1,64], index: 2, kind: input, shape index: {}]   ;;  %s13586_s3 = inlined_call_operand.hbm [shape: bf16[3,192,128], index: 3, kind: input, shape index: {}]   ;;  %s13587_s4 = inlined_call_operand.vmem [shape: f32[1,128], index: 4, kind: input, shape index: {}]   ;;  %s13588_s5 = inlined_call_operand.hbm [shape: bf16[3,384,128], index: 5, kind: input, shape index: {}]   ;;  %s13589_s6 = inlined_call_operand.vmem [shape: f32[1,128], index: 6, kind: input, shape index: {}]   ;;  %s13590_s7 = inlined_call_operand.vmem [shape: f32[2,3,256], index: 7, kind: output, shape index: {}]  }
   0x1   :  { %13 = vsyncpa [#allocation8], 0  ;;  %s10558_s24 = smov 0  }
   0x2 LB: > { %s10564_s25 = sadd.s32 4294967295, %s10507_s24   ;;  %p8553_p0 = scmp.ge.s32.totalorder %s10507_s24, 1  ;;  %s10507_s24 = sphi %s10558_s24, %s19_s24  }
   0x3   : > { %p202_p1 = scmp.lt.s32.totalorder %s10507_s24, 3  ;;  %s10509_s26 = smov [#allocation5]  }
   0x4   : > { %s220_s27 = sshll.u32 %s10509_s26, 4  ;;  %p9982_p3 = scmp.eq.s32.totalorder %s10564_s25, 0  ;;  %s221_s27 = int_to_ptr.vmem [resolvable:$true] %s220_s27 }
   0x5   : > { %p10568_p2 = pnand %p8553_p0, %p202_p1  ;;  %s10510_s29 = smov [#allocation7]  }
   0x6   : > { %s236_s30 = sshll.u32 %s10510_s29, 4  ;;  %s10452_s9 = scalar_lea.vmem %s221_s27, 4608  ;;  %s237_s30 = int_to_ptr.vmem [resolvable:$true] %s236_s30 }
   0x7   : > { %p9975_p4 = pneg %p10568_p2  ;;  %p10453_p7 = scmp.ne.s32.totalorder %s221_s27, %s10452_s9 }
   0x8   : > { %p10460_p10 = scmp.lt.s32.totalorder %s221_s27, %s221_s27  ;;  %p10461_p11 = scmp.lt.s32.totalorder %s10452_s9, %s10452_s9 }
   0x9   : > { %p10577_p5 = pnand %p9982_p3, %p9975_p4 }
   0xa   : > { %p10462_p12 = por %p10461_p11, %p10460_p10 }
   0xb   : > { %p10443_p6 = pneg %p10577_p5 }
   0xd   : > { %p10455_p8 = pnand %p10453_p7, %p10443_p6 }
   0xf   : > { %p10456_p9 = pneg %p10455_p8 }
  0x11   : > { %p10463_p13 = pnand %p10462_p12, %p10456_p9 }
  0x13   : > { %10466 = shalt.err (!%p10463_p13)
}
  0x14   : > { %s10511_s10 = smov 64   ;;  %s10512_s11 = smov 4  }
  0x15   : > { %9978 = dma.hbm_to_vmem [thread:$0]  (!%p10577_p5), %s13586_s3, 4608, %s221_s27, [#allocation6], %s10511_s10, %s10511_s10, %s10512_s11  }
  0x16   : > { %s10478_s14 = scalar_lea.vmem %s237_s30, 9216  ;;  %p10486_p7 = scmp.lt.s32.totalorder %s237_s30, %s237_s30 }
  0x17   : > { %p10479_p0 = scmp.ne.s32.totalorder %s237_s30, %s10478_s14  ;;  %p10487_p8 = scmp.lt.s32.totalorder %s10478_s14, %s10478_s14 }
  0x19   : > { %p10481_p1 = pnand %p10479_p0, %p10443_p6  ;;  %p10488_p10 = por %p10487_p8, %p10486_p7 }
  0x1b   : > { %p10482_p4 = pneg %p10481_p1 }
  0x1d   : > { %p10489_p9 = pnand %p10488_p10, %p10482_p4 }
  0x1f   : > { %10492 = shalt.err (!%p10489_p9)
}
  0x20   : > { %9981 = dma.hbm_to_vmem [thread:$0]  (!%p10577_p5), %s13588_s5, 9216, %s237_s30, [#allocation8], %s10511_s10, %s10511_s10, %s10512_s11  }
  0x21   : > { %263 = sbr.rel (%p10568_p2) target bundleno = 1761 (0x6e1), region = 48 }
  0x26   : > { %10498 = dma.done.wait (%p9982_p3), [#allocation6], 4608  }
  0x27   : > { %10500 = vsyncadd (%p9982_p3), [#allocation6], 4294962688 }
  0x28   : > { %10502 = dma.done.wait (%p9982_p3), [#allocation8], 9216  }
  0x29   : > { %10504 = vsyncadd (%p9982_p3), [#allocation8], 4294958080  ;;  %p299_p6 = scmp.lt.s32.totalorder %s10564_s25, 1  ;;  %vm401_vm0 = vcmask 16384   ;;  %vm402_vm1 = vsmask.f32 256 }
  0x2a   : > { %vm10623_vm2 = vmand %vm401_vm0, %vm402_vm1  ;;  %v404_v3 = vld [vmem:[#allocation2 + $0x8] sm:$0x1]  ;;  %v407_v8 = vld [vmem:[#allocation2 + $0x10] sm:$0x1]  ;;  %vm452_vm3 = vcmask 68659   ;;  %vm873_vm6 = vcmask 19456  }
  0x2b   : > { %s13709_s25 = smov (!%p299_p6, %s10564_s25), 1  ;;  %v428_v4 = vld [vmem:[#allocation2 + $0x48] sm:$0x1]  ;;  %v405_v6 = vsel %vm10623_vm2, 0, %v404_v3  ;;  %v408_v9 = vsel %vm10623_vm2, 0, %v407_v8  ;;  %s10513_s21 = smov 3  }
  0x2c   : > { %s9164_s17 = sshll.u32 %s13709_s25, 3  ;;  %v429_v7 = vsel %vm10623_vm2, 0, %v428_v4  ;;  %406 = vst [vmem:[#allocation2 + $0x8] sm:$0x1] %v405_v6  ;;  %409 = vst [vmem:[#allocation2 + $0x10] sm:$0x1] %v408_v9 }
  0x2d   : > { %s10619_s20 = scalar_lea.vmem %s13583_s0, %s9164_s17  ;;  %430 = vst [vmem:[#allocation2 + $0x48] sm:$0x1] %v429_v7  ;;  %v431_v10 = vld [vmem:[#allocation2 + $0x50] sm:$0x1]  ;;  %v410_v12 = vld [vmem:[#allocation2 + $0x18] sm:$0x1]  ;;  %s308_s18 = scalar_lea.vmem %s13590_s7, %s9164_s17 }
  0x2e   : > { %v310_v0 = vld [vmem:[%s10619_s20] sm:$0x77]  ;;  %v432_v11 = vsel %vm10623_vm2, 0, %v431_v10  ;;  %v411_v13 = vsel %vm10623_vm2, 0, %v410_v12  ;;  %v434_v14 = vld [vmem:[#allocation2 + $0x58] sm:$0x1] }
  0x2f   : > { %v312_v1 = vcombine.high %v310_v0, %v310_v0  ;;  %433 = vst [vmem:[#allocation2 + $0x50] sm:$0x1] %v432_v11  ;;  %412 = vst [vmem:[#allocation2 + $0x18] sm:$0x1] %v411_v13  ;;  %v435_v15 = vsel %vm10623_vm2, 0, %v434_v14  ;;  %s10514_s22 = smov 6  }
  0x30   : > { %436 = vst [vmem:[#allocation2 + $0x58] sm:$0x1] %v435_v15  ;;  %vm453_vm4 = vsmask.f32 7950  ;;  %v455_v17 = vld [vmem:[#allocation2 + $0xc] sm:$0x8] }
  0x31   : > { %v10004_v5 = vpack.i.bf16 %v312_v1, %v310_v0  ;;  %vm10640_vm5 = vmand %vm452_vm3, %vm453_vm4  ;;  %v479_v18 = vld [vmem:[#allocation2 + $0x4c] sm:$0x8]  ;;  %v413_v21 = vld [vmem:[#allocation2 + $0x20] sm:$0x1]  ;;  %vm874_vm7 = vsmask.f32 7938 }
  0x32   : > { %v456_v19 = vsel %vm10640_vm5, 0, %v455_v17  ;;  %v480_v20 = vsel %vm10640_vm5, 0, %v479_v18  ;;  %v425_v22 = vld [vmem:[#allocation2 + $0x40] sm:$0x1]  ;;  %v414_v23 = vsel %vm10623_vm2, 0, %v413_v21  ;;  %vm10684_vm8 = vmand %vm873_vm6, %vm874_vm7  ;;  %vm1555_vm14 = vcmask 1043456  }
  0x33   : > { %10005 = vxpose.xlu0.b32.start.end [1/1] (short) %v10004_v5, 128  ;;  %457 = vst [vmem:[#allocation2 + $0xc] sm:$0x8] %v456_v19  ;;  %481 = vst [vmem:[#allocation2 + $0x4c] sm:$0x8] %v480_v20  ;;  %v426_v24 = vsel %vm10623_vm2, 0, %v425_v22  ;;  %vm1556_vm15 = vcmask 1044480  }
  0x34   : > { %415 = vst [vmem:[#allocation2 + $0x20] sm:$0x1] %v414_v23  ;;  %427 = vst [vmem:[#allocation2 + $0x40] sm:$0x1] %v426_v24  ;;  %v458_v25 = vld [vmem:[#allocation2 + $0x14] sm:$0x8] }
  0x35   : > { %v459_v26 = vsel %vm10640_vm5, 0, %v458_v25  ;;  %v482_v27 = vld [vmem:[#allocation2 + $0x54] sm:$0x8]  ;;  %v437_v29 = vld [vmem:[#allocation2 + $0x60] sm:$0x1]  ;;  %vm2500_vm0 = vcmask 523268  }
  0x36   : > { %460 = vst [vmem:[#allocation2 + $0x14] sm:$0x8] %v459_v26  ;;  %v483_v28 = vsel %vm10640_vm5, 0, %v482_v27  ;;  %v438_v30 = vsel %vm10623_vm2, 0, %v437_v29  ;;  %v416_v31 = vld [vmem:[#allocation2 + $0x28] sm:$0x1]  ;;  %vm2501_vm3 = vmor %vm2500_vm0, %vm1555_vm14 }
  0x37   : > { %484 = vst [vmem:[#allocation2 + $0x54] sm:$0x8] %v483_v28  ;;  %439 = vst [vmem:[#allocation2 + $0x60] sm:$0x1] %v438_v30  ;;  %v417_v32 = vsel %vm10623_vm2, 0, %v416_v31  ;;  %vm2558_vm0 = vcmask 519171  }
  0x38   : > { %418 = vst [vmem:[#allocation2 + $0x28] sm:$0x1] %v417_v32  ;;  %v485_v33 = vld [vmem:[#allocation2 + $0x5c] sm:$0x8]  ;;  %v443_v37 = vld [vmem:[#allocation2 + $0x70] sm:$0x1] }
  0x39   : > { %v486_v34 = vsel %vm10640_vm5, 0, %v485_v33  ;;  %v461_v35 = vld [vmem:[#allocation2 + $0x1c] sm:$0x8]  ;;  %v419_v38 = vld [vmem:[#allocation2 + $0x30] sm:$0x1]  ;;  %v444_v39 = vsel %vm10623_vm2, 0, %v443_v37 }
  0x3a   : > { %487 = vst [vmem:[#allocation2 + $0x5c] sm:$0x8] %v486_v34  ;;  %v462_v36 = vsel %vm10640_vm5, 0, %v461_v35  ;;  %v420_v40 = vsel %vm10623_vm2, 0, %v419_v38  ;;  %445 = vst [vmem:[#allocation2 + $0x70] sm:$0x1] %v444_v39 }
  0x3b   : > { %463 = vst [vmem:[#allocation2 + $0x1c] sm:$0x8] %v462_v36  ;;  %421 = vst [vmem:[#allocation2 + $0x30] sm:$0x1] %v420_v40  ;;  %v446_v41 = vld [vmem:[#allocation2 + $0x78] sm:$0x1] }
  0x3c   : > { %v422_v42 = vld [vmem:[#allocation2 + $0x38] sm:$0x1]  ;;  %v447_v43 = vsel %vm10623_vm2, 0, %v446_v41  ;;  %v464_v45 = vld [vmem:[#allocation2 + $0x24] sm:$0x8]  ;;  %s10517_s10 = smov 64  }
  0x3d   : > { %v423_v44 = vsel %vm10623_vm2, 0, %v422_v42  ;;  %v488_v46 = vld [vmem:[#allocation2 + $0x64] sm:$0x8]  ;;  %448 = vst [vmem:[#allocation2 + $0x78] sm:$0x1] %v447_v43  ;;  %v465_v47 = vsel %vm10640_vm5, 0, %v464_v45 }
  0x3e   : > { %424 = vst [vmem:[#allocation2 + $0x38] sm:$0x1] %v423_v44  ;;  %v489_v48 = vsel %vm10640_vm5, 0, %v488_v46  ;;  %466 = vst [vmem:[#allocation2 + $0x24] sm:$0x8] %v465_v47 }
  0x3f   : > { %490 = vst [vmem:[#allocation2 + $0x64] sm:$0x8] %v489_v48  ;;  %v440_v49 = vld [vmem:[#allocation2 + $0x68] sm:$0x1]  ;;  %vm1070_vm9 = vsmask.f32 3328 }
  0x40   : > { %v441_v50 = vsel %vm10623_vm2, 0, %v440_v49  ;;  %v876_v3 = vld [vmem:[#allocation2 + $0x8] sm:$0xf]  ;;  %vm583_vm10 = vsmask.f32 4368 }
  0x41   : > { %442 = vst [vmem:[#allocation2 + $0x68] sm:$0x1] %v441_v50  ;;  %v909_v10 = vld [vmem:[#allocation2 + $0x48] sm:$0xf]  ;;  %vm1071_vm11 = vsmask.f32 7440  ;;  %vm10702_vm12 = vmor %vm402_vm1, %vm583_vm10 }
  0x42   : > { %vm10711_vm13 = vmor %vm1070_vm9, %vm1071_vm11  ;;  %v881_v39 = vld [vmem:[#allocation2 + $0x10] sm:$0xf]  ;;  %vm394_vm10 = vcmask 68608   ;;  %vm1506_vm11 = vcmask 72704  }
  0xaf   : > { %v10006_v51 = vpop.trf.xlu0 }
  0xb0   : > { %v10007_v52 = vunpack.i.l.bf16 %v10006_v51  ;;  %v10010_v53 = vunpack.i.h.bf16 %v10006_v51 }
  0xb2   : > { %v9166_v54 = vpack.c.bf16 %v10007_v52, %v10007_v52  ;;  %v10678_v55 = vpack.c.bf16 %v10010_v53, %v10010_v53 }
  0xb3   : > { %v10011_v56 = vpop.trf.xlu0 }
  0xb4   : > { %941 = vrot.lane.b32.xlu1 %v9166_v54, %s10513_s21  ;;  %v586_v57 = vshrl.u32 %v9166_v54, 16  ;;  %v589_v58 = vshll.u32 %v9166_v54, 16  ;;  %v714_v59 = vshrl.u32 %v10678_v55, 16  ;;  %v10012_v60 = vunpack.i.l.bf16 %v10011_v56 }
  0xb5   : > { %v10015_v61 = vunpack.i.h.bf16 %v10011_v56  ;;  %v717_v6 = vshll.u32 %v10678_v55, 16 }
  0xb6   : > { %v588_v62 = vrot.slane %v586_v57, 7  ;;  %v1073_v63 = vrot.slane %v586_v57, 4  ;;  %v1074_v0 = vrot.slane %v589_v58, 5  ;;  %v716_v5 = vrot.slane %v714_v59, 7 }
  0xb7   : > { %v10016_v4 = vpop.trf.xlu0  ;;  %v9167_v7 = vpack.c.bf16 %v10012_v60, %v10012_v60  ;;  %v9183_v8 = vpack.c.bf16 %v10015_v61, %v10015_v61 }
  0xb8   : > { %v591_v9 = vor.u32 %v589_v58, %v588_v62  ;;  %973 = vrot.lane.b32.xlu1 %v10678_v55, %s10513_s21  ;;  %v719_v11 = vor.u32 %v717_v6, %v716_v5  ;;  %v10017_v12 = vunpack.i.l.bf16 %v10016_v4  ;;  %v1075_v15 = vor.u32 %v1074_v0, %v1073_v63 }
  0xb9   : > { %943 = vrot.lane.b32.xlu0 %v9167_v7, %s10513_s21  ;;  %v597_v14 = vshll.u32 %v9167_v7, 16  ;;  %v722_v17 = vshrl.u32 %v9183_v8, 16  ;;  %v594_v21 = vshrl.u32 %v9167_v7, 16  ;;  %v720_v22 = vrot.slane %v716_v5, 4  ;;  %v913_v5 = vld [vmem:[#allocation2 + $0x50] sm:$0xf] }
  0xba   : > { %v877_v13 = vsel %vm10684_vm8, %v591_v9, %v876_v3  ;;  %v910_v18 = vsel %vm10684_vm8, %v719_v11, %v909_v10  ;;  %v9168_v20 = vpack.c.bf16 %v10017_v12, %v10017_v12  ;;  %v725_v26 = vshll.u32 %v9183_v8, 16 }
  0xbb   : > { %878 = vst [vmem:[#allocation2 + $0x8] sm:$0xf] %v877_v13  ;;  %v10021_v19 = vpop.trf.xlu0  ;;  %911 = vst [vmem:[#allocation2 + $0x48] sm:$0xf] %v910_v18  ;;  %v724_v25 = vrot.slane %v722_v17, 7  ;;  %v1076_v27 = vrot.slane %v1075_v15, 4  ;;  %v10020_v37 = vunpack.i.h.bf16 %v10016_v4 }
  0xbc   : > { %975 = vrot.lane.b32.xlu1 %v9183_v8, %s10513_s21  ;;  %v602_v23 = vshrl.u32 %v9168_v20, 16  ;;  %v605_v24 = vshll.u32 %v9168_v20, 16  ;;  %v1077_v28 = vrot.slane %v597_v14, 5  ;;  %v10022_v29 = vunpack.i.l.bf16 %v10021_v19 }
  0xbd   : > { %v596_v31 = vrot.slane %v594_v21, 7  ;;  %v727_v35 = vor.u32 %v725_v26, %v724_v25  ;;  %v1151_v36 = vrot.slane %v722_v17, 4  ;;  %v592_v38 = vrot.slane %v588_v62, 4 }
  0xbe   : > { %v10708_v33 = vrot.slane %v602_v23, 7  ;;  %v10717_v42 = vrot.slane %v725_v26, 5  ;;  %v1079_v44 = vrot.slane %v594_v21, 4  ;;  %v1078_v45 = vsel %vm10711_vm13, %v1076_v27, %v1077_v28 }
  0xbf   : > { %v10706_v32 = vpop.trf.xlu0  ;;  %v599_v40 = vor.u32 %v597_v14, %v596_v31  ;;  %v728_v43 = vsel %vm10702_vm12, %v720_v22, %v727_v35  ;;  %v10725_v47 = vpack.c.bf16 %v10020_v37, %v10020_v37  ;;  %v10025_v48 = vunpack.i.h.bf16 %v10021_v19 }
  0xc0   : > { %945 = vrot.lane.b32.xlu1 %v9168_v20, %s10513_s21  ;;  %v607_v41 = vor.u32 %v605_v24, %v10708_v33  ;;  %912 = vst.msk [vmem:[#allocation2 + $0x4c] sm:$0xf] %vm873_vm6, %v728_v43  ;;  %v10732_v51 = vpack.c.bf16 %v10022_v29, %v10022_v29  ;;  %v1152_v52 = vor.u32 %v1151_v36, %v10717_v42  ;;  %v10027_v53 = vunpack.i.l.bf16 %v10706_v32  ;;  %v885_v20 = vld [vmem:[#allocation2 + $0x18] sm:$0xf] }
  0xc1   : > { %v600_v46 = vsel %vm10702_vm12, %v592_v38, %v599_v40  ;;  %v730_v56 = vshrl.u32 %v10725_v47, 16  ;;  %v1080_v57 = vor.u32 %v1079_v44, %v1077_v28  ;;  %v733_v58 = vshll.u32 %v10725_v47, 16 }
  0xc2   : > { %v882_v49 = vsel %vm10684_vm8, %v607_v41, %v881_v39  ;;  %880 = vst.msk [vmem:[#allocation2 + $0xc] sm:$0xf] %vm873_vm6, %v600_v46  ;;  %v9185_v60 = vpack.c.bf16 %v10025_v48, %v10025_v48  ;;  %v10741_v61 = vpack.c.bf16 %v10027_v53, %v10027_v53  ;;  %v1082_v0 = vrot.slane %v602_v23, 4 }
  0xc3   : > { %v10730_v50 = vpop.trf.xlu0  ;;  %883 = vst [vmem:[#allocation2 + $0x10] sm:$0xf] %v882_v49  ;;  %v732_v63 = vrot.slane %v730_v56, 7  ;;  %v1083_v3 = vrot.slane %v605_v24, 5  ;;  %v1153_v11 = vrot.slane %v1152_v52, 4  ;;  %v1081_v13 = vrot.slane %v1080_v57, 4 }
  0xc4   : > { %1217 = vrot.lane.b32.xlu1 %v1078_v45, %s10514_s22  ;;  %v10035_v54 = vunpack.i.h.bf16 %v10730_v50  ;;  %v738_v7 = vshrl.u32 %v9185_v60, 16  ;;  %v741_v8 = vshll.u32 %v9185_v60, 16  ;;  %v618_v9 = vshrl.u32 %v10741_v61, 16 }
  0xc5   : > { %v621_v10 = vshll.u32 %v10741_v61, 16  ;;  %v735_v12 = vor.u32 %v733_v58, %v732_v63  ;;  %v736_v14 = vrot.slane %v732_v63, 4  ;;  %v1084_v21 = vor.u32 %v1083_v3, %v1082_v0 }
  0xc6   : > { %v10743_v62 = vpack.c.bf16 %v10035_v54, %v10035_v54  ;;  %v740_v15 = vrot.slane %v738_v7, 7  ;;  %v10759_v17 = vrot.slane %v618_v9, 7  ;;  %v1160_v19 = vrot.slane %v738_v7, 4 }
  0xc7   : > { %v10747_v4 = vpop.trf.xlu0  ;;  %v914_v18 = vsel %vm10684_vm8, %v735_v12, %v913_v5  ;;  %v610_v22 = vshrl.u32 %v10732_v51, 16  ;;  %v613_v26 = vshll.u32 %v10732_v51, 16  ;;  %v608_v27 = vrot.slane %v10708_v33, 4 }
  0xc8   : > { %983 = vrot.lane.b32.xlu0 %v10743_v62, %s10513_s21  ;;  %947 = vrot.lane.b32.xlu1 %v10732_v51, %s10513_s21  ;;  %915 = vst [vmem:[#allocation2 + $0x50] sm:$0xf] %v914_v18  ;;  %v743_v24 = vor.u32 %v741_v8, %v740_v15  ;;  %v623_v25 = vor.u32 %v621_v10, %v10759_v17  ;;  %v10773_v28 = vrot.slane %v741_v8, 5  ;;  %v1085_v38 = vrot.slane %v1084_v21, 4  ;;  %v917_v18 = vld [vmem:[#allocation2 + $0x58] sm:$0xf] }
  0xc9   : > { %v10779_v35 = vrot.slane %v613_v26, 5  ;;  %v612_v36 = vrot.slane %v610_v22, 7  ;;  %v10032_v33 = vunpack.i.l.bf16 %v10730_v50  ;;  %v754_v39 = vshrl.u32 %v10743_v62, 16 }
  0xca   : > { %v744_v29 = vsel %vm10702_vm12, %v736_v14, %v743_v24  ;;  %v886_v31 = vsel %vm10684_vm8, %v623_v25, %v885_v20  ;;  %v1161_v37 = vor.u32 %v1160_v19, %v10773_v28  ;;  %v757_v43 = vshll.u32 %v10743_v62, 16 }
  0xcb   : > { %v10764_v23 = vpop.trf.xlu0  ;;  %887 = vst [vmem:[#allocation2 + $0x18] sm:$0xf] %v886_v31  ;;  %916 = vst.msk [vmem:[#allocation2 + $0x54] sm:$0xf] %vm873_vm6, %v744_v29  ;;  %v615_v41 = vor.u32 %v613_v26, %v612_v36  ;;  %v10030_v44 = vunpack.i.h.bf16 %v10706_v32  ;;  %v10037_v45 = vunpack.i.l.bf16 %v10747_v4  ;;  %v1169_v49 = vrot.slane %v754_v39, 4 }
  0xcc   : > { %1251 = vrot.lane.b32.xlu0 %v1153_v11, %s10514_s22  ;;  %1219 = vrot.lane.b32.xlu1 %v1081_v13, %s10514_s22  ;;  %v10795_v48 = vrot.slane %v757_v43, 5  ;;  %v1162_v50 = vrot.slane %v1161_v37, 4  ;;  %v756_v51 = vrot.slane %v754_v39, 7  ;;  %v1087_v54 = vsel %vm10711_vm13, %v1085_v38, %v10779_v35 }
  0xcd   : > { %v616_v46 = vsel %vm10702_vm12, %v608_v27, %v615_v41  ;;  %v10797_v52 = vpack.c.bf16 %v10030_v44, %v10030_v44  ;;  %v10799_v53 = vpack.c.bf16 %v10037_v45, %v10037_v45  ;;  %v10807_v57 = vpack.c.bf16 %v10032_v33, %v10032_v33 }
  0xce   : > { %884 = vst.msk [vmem:[#allocation2 + $0x14] sm:$0xf] %vm873_vm6, %v616_v46  ;;  %v1145_v62 = vrot.slane %v714_v59, 4  ;;  %v1088_v3 = vrot.slane %v610_v22, 4  ;;  %v1146_v5 = vrot.slane %v717_v6, 5  ;;  %v759_v59 = vor.u32 %v757_v43, %v756_v51 }
  0xcf   : > { %v10785_v40 = vpop.trf.xlu0  ;;  %v746_v0 = vshrl.u32 %v10797_v52, 16  ;;  %v749_v7 = vshll.u32 %v10797_v52, 16  ;;  %v634_v8 = vshrl.u32 %v10799_v53, 16  ;;  %v637_v13 = vshll.u32 %v10799_v53, 16  ;;  %v889_v22 = vld [vmem:[#allocation2 + $0x20] sm:$0xf] }
  0xd0   : > { %977 = vrot.lane.b32.xlu0 %v10725_v47, %s10513_s21  ;;  %979 = vrot.lane.b32.xlu1 %v9185_v60, %s10513_s21  ;;  %v1170_v60 = vor.u32 %v1169_v49, %v10795_v48  ;;  %v629_v6 = vshll.u32 %v10807_v57, 16  ;;  %v626_v19 = vshrl.u32 %v10807_v57, 16  ;;  %v624_v24 = vrot.slane %v10759_v17, 4 }
  0xd1   : > { %v748_v12 = vrot.slane %v746_v0, 7  ;;  %v10830_v55 = vrot.slane %v634_v8, 7  ;;  %v1089_v25 = vor.u32 %v1088_v3, %v10779_v35  ;;  %v1147_v27 = vor.u32 %v1146_v5, %v1145_v62 }
  0xd2   : > { %v1171_v15 = vrot.slane %v1170_v60, 4  ;;  %v628_v36 = vrot.slane %v626_v19, 7  ;;  %v10040_v35 = vunpack.i.h.bf16 %v10747_v4  ;;  %v10045_v38 = vunpack.i.h.bf16 %v10764_v23 }
  0xd3   : > { %v10802_v32 = vpop.trf.xlu0  ;;  %v751_v20 = vor.u32 %v749_v7, %v748_v12  ;;  %v752_v21 = vrot.slane %v748_v12, 4  ;;  %v639_v26 = vor.u32 %v637_v13, %v10830_v55  ;;  %v10047_v43 = vunpack.i.l.bf16 %v10785_v40  ;;  %v921_v12 = vld [vmem:[#allocation2 + $0x60] sm:$0xf] }
  0xd4   : > { %1255 = vrot.lane.b32.xlu0 %v1162_v50, %s10514_s22  ;;  %949 = vrot.lane.b32.xlu1 %v10741_v61, %s10513_s21  ;;  %v10055_v63 = vunpack.i.h.bf16 %v10802_v32  ;;  %v631_v33 = vor.u32 %v629_v6, %v628_v36  ;;  %v10862_v39 = vpack.c.bf16 %v10040_v35, %v10040_v35  ;;  %v10864_v41 = vpack.c.bf16 %v10045_v38, %v10045_v38 }
  0xd5   : > { %v760_v29 = vsel %vm10702_vm12, %v752_v21, %v759_v59  ;;  %v918_v31 = vsel %vm10684_vm8, %v751_v20, %v917_v18  ;;  %v890_v17 = vsel %vm10684_vm8, %v639_v26, %v889_v22  ;;  %v1090_v4 = vrot.slane %v1089_v25, 4 }
  0xd6   : > { %v10821_v11 = vpack.c.bf16 %v10055_v63, %v10055_v63  ;;  %919 = vst [vmem:[#allocation2 + $0x58] sm:$0xf] %v918_v31  ;;  %920 = vst.msk [vmem:[#allocation2 + $0x5c] sm:$0xf] %vm873_vm6, %v760_v29  ;;  %v1148_v44 = vrot.slane %v1147_v27, 4  ;;  %v10042_v45 = vunpack.i.l.bf16 %v10764_v23  ;;  %v632_v46 = vsel %vm10702_vm12, %v624_v24, %v631_v33 }
  0xd7   : > { %v10826_v14 = vpop.trf.xlu0  ;;  %891 = vst [vmem:[#allocation2 + $0x20] sm:$0xf] %v890_v17  ;;  %v13594_v50 = vshrl.u32 %v10862_v39, 16  ;;  %v13592_v51 = vshll.u32 %v10862_v39, 16  ;;  %v773_v60 = vshll.u32 %v10864_v41, 16  ;;  %v10878_v62 = vpack.c.bf16 %v10047_v43, %v10047_v43 }
  0xd8   : > { %1221 = vrot.lane.b32.xlu1 %v1087_v54, %s10514_s22  ;;  %991 = vrot.lane.b32.xlu0 %v10821_v11, %s10513_s21  ;;  %v770_v54 = vshrl.u32 %v10864_v41, 16  ;;  %888 = vst.msk [vmem:[#allocation2 + $0x1c] sm:$0xf] %vm873_vm6, %v632_v46  ;;  %v1091_v23 = vrot.slane %v618_v9, 4  ;;  %v1150_v5 = vsel %vm10711_vm13, %v1148_v44, %v10717_v42  ;;  %v1092_v59 = vrot.slane %v621_v10, 5 }
  0xd9   : > { %v764_v63 = vrot.slane %v13594_v50, 7  ;;  %v653_v18 = vshll.u32 %v10878_v62, 16  ;;  %v10893_v21 = vpack.c.bf16 %v10042_v45, %v10042_v45  ;;  %v893_v27 = vld [vmem:[#allocation2 + $0x28] sm:$0xf]  ;;  %v1095_v17 = vrot.slane %v629_v6, 5 }
  0xda   : > { %v772_v3 = vrot.slane %v770_v54, 7  ;;  %v1093_v36 = vor.u32 %v1092_v59, %v1091_v23  ;;  %v1100_v45 = vrot.slane %v634_v8, 4  ;;  %v1101_v23 = vrot.slane %v637_v13, 5 }
  0xdb   : > { %v10850_v37 = vpop.trf.xlu0  ;;  %v767_v9 = vor.u32 %v13592_v51, %v764_v63  ;;  %v768_v22 = vrot.slane %v764_v63, 4  ;;  %v642_v35 = vshrl.u32 %v10893_v21, 16  ;;  %v645_v44 = vshll.u32 %v10893_v21, 16 }
  0xdc   : > { %951 = vrot.lane.b32.xlu1 %v10807_v57, %s10513_s21  ;;  %1259 = vrot.lane.b32.xlu0 %v1171_v15, %s10514_s22  ;;  %v650_v15 = vshrl.u32 %v10878_v62, 16  ;;  %v775_v24 = vor.u32 %v773_v60, %v772_v3  ;;  %v1094_v59 = vrot.slane %v1093_v36, 4 }
  0xdd   : > { %v922_v61 = vsel %vm10684_vm8, %v767_v9, %v921_v12  ;;  %v644_v63 = vrot.slane %v642_v35, 7  ;;  %v1097_v12 = vrot.slane %v626_v19, 4  ;;  %v1102_v19 = vor.u32 %v1101_v23, %v1100_v45 }
  0xde   : > { %v10901_v42 = vrot.slane %v650_v15, 7  ;;  %v776_v10 = vsel %vm10702_vm12, %v768_v22, %v775_v24  ;;  %923 = vst [vmem:[#allocation2 + $0x60] sm:$0xf] %v922_v61  ;;  %v1178_v24 = vrot.slane %v770_v54, 4  ;;  %v1154_v23 = vrot.slane %v730_v56, 4 }
  0xdf   : > { %v10870_v49 = vpop.trf.xlu0  ;;  %924 = vst.msk [vmem:[#allocation2 + $0x64] sm:$0xf] %vm873_vm6, %v776_v10  ;;  %v905_v10 = vld [vmem:[#allocation2 + $0x40] sm:$0xf]  ;;  %v1098_v45 = vor.u32 %v1097_v12, %v1095_v17  ;;  %v10986_v12 = vrot.slane %v1102_v19, 4  ;;  %v10052_v56 = vunpack.i.l.bf16 %v10802_v32 }
  0xe0   : > { %1223 = vrot.lane.b32.xlu1 %v1090_v4, %s10514_s22  ;;  %v655_v29 = vor.u32 %v653_v18, %v10901_v42 }
  0xe2   : > { %v894_v4 = vsel %vm10684_vm8, %v655_v29, %v893_v27  ;;  %v10961_v29 = vrot.slane %v773_v60, 5 }
  0xe3   : > { %v10891_v20 = vpop.trf.xlu0  ;;  %895 = vst [vmem:[#allocation2 + $0x28] sm:$0xf] %v894_v4 }
  0xe4   : > { %v10072_v25 = vunpack.i.l.bf16 %v10891_v20  ;;  %1249 = vrot.lane.b32.xlu1 %v1150_v5, %s10514_s22  ;;  %v640_v5 = vrot.slane %v10830_v55, 4  ;;  %v1179_v60 = vor.u32 %v1178_v24, %v10961_v29 }
  0xe6   : > { %v10907_v26 = vpack.c.bf16 %v10072_v25, %v10072_v25  ;;  %v647_v25 = vor.u32 %v645_v44, %v644_v63  ;;  %v1155_v63 = vrot.slane %v733_v58, 5  ;;  %v1099_v58 = vrot.slane %v1098_v45, 4 }
  0xe7   : > { %v10913_v31 = vpop.trf.xlu0 }
  0xe8   : > { %981 = vrot.lane.b32.xlu1 %v10797_v52, %s10513_s21  ;;  %v10077_v38 = vunpack.i.l.bf16 %v10913_v31  ;;  %v690_v33 = vshrl.u32 %v10907_v26, 16  ;;  %v693_v43 = vshll.u32 %v10907_v26, 16  ;;  %v648_v36 = vsel %vm10702_vm12, %v640_v5, %v647_v25 }
  0xe9   : > { %892 = vst.msk [vmem:[#allocation2 + $0x24] sm:$0xf] %vm873_vm6, %v648_v36 }
  0xea   : > { %v10928_v6 = vpack.c.bf16 %v10077_v38, %v10077_v38  ;;  %v1133_v46 = vrot.slane %v690_v33, 4  ;;  %v10941_v8 = vrot.slane %v693_v43, 5 }
  0xeb   : > { %v10936_v3 = vpop.trf.xlu0 }
  0xec   : > { %v10082_v9 = vunpack.i.l.bf16 %v10936_v3  ;;  %953 = vrot.lane.b32.xlu1 %v10799_v53, %s10513_s21  ;;  %v698_v13 = vshrl.u32 %v10928_v6, 16  ;;  %969 = vrot.lane.b32.xlu0 %v10928_v6, %s10513_s21  ;;  %v701_v55 = vshll.u32 %v10928_v6, 16  ;;  %v1134_v22 = vor.u32 %v1133_v46, %v10941_v8 }
  0xed   : > { %v1096_v53 = vsel %vm10711_vm13, %v1094_v59, %v1095_v17  ;;  %v10974_v46 = vrot.slane %v645_v44, 5  ;;  %v10060_v44 = vunpack.i.h.bf16 %v10826_v14 }
  0xee   : > { %v10953_v61 = vpack.c.bf16 %v10082_v9, %v10082_v9  ;;  %v10957_v57 = vrot.slane %v698_v13, 7  ;;  %v1135_v27 = vrot.slane %v1134_v22, 4  ;;  %v1156_v9 = vor.u32 %v1155_v63, %v1154_v23 }
  0xef   : > { %v10057_v22 = vunpack.i.l.bf16 %v10826_v14  ;;  %v10996_v25 = vpack.c.bf16 %v10060_v44, %v10060_v44  ;;  %v1105_v14 = vsel %vm10711_vm13, %v10986_v12, %v10974_v46  ;;  %v1106_v23 = vrot.slane %v642_v35, 4  ;;  %v925_v12 = vld [vmem:[#allocation2 + $0x68] sm:$0xf] }
  0xf0   : > { %v703_v54 = vor.u32 %v701_v55, %v10957_v57  ;;  %1225 = vrot.lane.b32.xlu1 %v1096_v53, %s10514_s22  ;;  %v706_v38 = vshrl.u32 %v10953_v61, 16  ;;  %v709_v4 = vshll.u32 %v10953_v61, 16  ;;  %1243 = vrot.lane.b32.xlu0 %v1135_v27, %s10514_s22  ;;  %v10994_v24 = vrot.slane %v1156_v9, 4 }
  0xf1   : > { %v10998_v19 = vpack.c.bf16 %v10057_v22, %v10057_v22  ;;  %v1180_v53 = vrot.slane %v1179_v60, 4  ;;  %v13591_v36 = vshrl.u32 %v10996_v25, 16  ;;  %v11014_v60 = vpack.c.bf16 %v10052_v56, %v10052_v56  ;;  %v897_v56 = vld [vmem:[#allocation2 + $0x30] sm:$0xf] }
  0xf2   : > { %v906_v5 = vsel %vm10684_vm8, %v703_v54, %v905_v10  ;;  %v10984_v17 = vrot.slane %v709_v4, 5  ;;  %v1142_v59 = vrot.slane %v706_v38, 4  ;;  %v13593_v54 = vshll.u32 %v10996_v25, 16 }
  0xf3   : > { %907 = vst [vmem:[#allocation2 + $0x40] sm:$0xf] %v906_v5  ;;  %v666_v45 = vshrl.u32 %v10998_v19, 16  ;;  %v786_v63 = vshrl.u32 %v10821_v11, 16  ;;  %v13595_v5 = vshll.u32 %v10998_v19, 16  ;;  %v11022_v9 = vrot.slane %v13591_v36, 7 }
  0xf4   : > { %955 = vrot.lane.b32.xlu1 %v10893_v21, %s10513_s21  ;;  %v1143_v47 = vor.u32 %v1142_v59, %v10984_v17  ;;  %v929_v59 = vld [vmem:[#allocation2 + $0x70] sm:$0xf]  ;;  %v10070_v22 = vunpack.i.h.bf16 %v10870_v49  ;;  %v789_v21 = vshll.u32 %v10821_v11, 16  ;;  %v692_v27 = vrot.slane %v690_v33, 7 }
  0xf5   : > { %v11026_v44 = vrot.slane %v666_v45, 7  ;;  %v1187_v35 = vrot.slane %v786_v63, 4  ;;  %v10075_v36 = vunpack.i.h.bf16 %v10891_v20  ;;  %v799_v51 = vor.u32 %v13593_v54, %v11022_v9 }
  0xf6   : > { %v1144_v10 = vrot.slane %v1143_v47, 4  ;;  %v10067_v47 = vunpack.i.l.bf16 %v10870_v49  ;;  %v708_v49 = vrot.slane %v706_v38, 7  ;;  %v11049_v33 = vrot.slane %v789_v21, 5 }
  0xf7   : > { %v671_v11 = vor.u32 %v13595_v5, %v11026_v44  ;;  %v930_v20 = vsel %vm10684_vm8, %v799_v51, %v929_v59  ;;  %v11055_v50 = vpack.c.bf16 %v10070_v22, %v10070_v22 }
  0xf8   : > { %1247 = vrot.lane.b32.xlu0 %v1144_v10, %s10514_s22  ;;  %1227 = vrot.lane.b32.xlu1 %v1099_v58, %s10514_s22  ;;  %v1109_v58 = vrot.slane %v650_v15, 4  ;;  %v1110_v10 = vrot.slane %v653_v18, 5  ;;  %v1107_v15 = vor.u32 %v1106_v23, %v10974_v46  ;;  %v788_v18 = vrot.slane %v786_v63, 7  ;;  %931 = vst [vmem:[#allocation2 + $0x70] sm:$0xf] %v930_v20 }
  0xf9   : > { %v898_v54 = vsel %vm10684_vm8, %v671_v11, %v897_v56  ;;  %v11057_v38 = vpack.c.bf16 %v10067_v47, %v10067_v47  ;;  %v1188_v5 = vor.u32 %v1187_v35, %v11049_v33  ;;  %v10062_v23 = vunpack.i.l.bf16 %v10850_v37  ;;  %v933_v11 = vld [vmem:[#allocation2 + $0x78] sm:$0xf] }
  0xfa   : > { %899 = vst [vmem:[#allocation2 + $0x30] sm:$0xf] %v898_v54  ;;  %v658_v63 = vshrl.u32 %v11014_v60, 16  ;;  %v13604_v32 = vshrl.u32 %v11055_v50, 16  ;;  %v13603_v51 = vshll.u32 %v11055_v50, 16  ;;  %v704_v47 = vrot.slane %v10957_v57, 4 }
  0xfb   : > { %v13597_v59 = vshrl.u32 %v11057_v38, 16  ;;  %v13596_v22 = vshll.u32 %v11057_v38, 16  ;;  %v711_v35 = vor.u32 %v709_v4, %v708_v49  ;;  %v11072_v54 = vpack.c.bf16 %v10075_v36, %v10075_v36 }
  0xfc   : > { %985 = vrot.lane.b32.xlu0 %v10862_v39, %s10513_s21  ;;  %987 = vrot.lane.b32.xlu1 %v10864_v41, %s10513_s21  ;;  %v1111_v41 = vor.u32 %v1110_v10, %v1109_v58  ;;  %v661_v56 = vshll.u32 %v11014_v60, 16  ;;  %v11077_v58 = vor.u32 %v693_v43, %v692_v27  ;;  %v11079_v10 = vor.u32 %v789_v21, %v788_v18  ;;  %v901_v43 = vld [vmem:[#allocation2 + $0x38] sm:$0xf] }
  0xfd   : > { %v11083_v57 = vrot.slane %v13604_v32, 7  ;;  %v11087_v4 = vrot.slane %v13597_v59, 7  ;;  %v11093_v36 = vpack.c.bf16 %v10062_v23, %v10062_v23  ;;  %v660_v49 = vrot.slane %v658_v63, 7 }
  0xfe   : > { %v1108_v27 = vrot.slane %v1107_v15, 4  ;;  %v1189_v21 = vrot.slane %v1188_v5, 4  ;;  %v11114_v15 = vrot.slane %v658_v63, 4  ;;  %v818_v46 = vshrl.u32 %v11072_v54, 16 }
  0xff   : > { %v815_v18 = vor.u32 %v13603_v51, %v11083_v57  ;;  %v687_v20 = vor.u32 %v13596_v22, %v11087_v4  ;;  %v677_v23 = vshll.u32 %v11093_v36, 16  ;;  %v13598_v63 = vshrl.u32 %v11093_v36, 16 }
 0x100   : > { %1263 = vrot.lane.b32.xlu0 %v1180_v53, %s10514_s22  ;;  %957 = vrot.lane.b32.xlu1 %v10878_v62, %s10513_s21  ;;  %v11089_v62 = vrot.slane %v1111_v41, 4  ;;  %v11091_v53 = vrot.slane %v661_v56, 5  ;;  %v11103_v41 = vsel %vm10702_vm12, %v704_v47, %v711_v35  ;;  %v821_v59 = vshll.u32 %v11072_v54, 16 }
 0x101   : > { %v934_v47 = vsel %vm10684_vm8, %v815_v18, %v933_v11  ;;  %v902_v35 = vsel %vm10684_vm8, %v687_v20, %v901_v43  ;;  %v1205_v5 = vrot.slane %v818_v46, 4  ;;  %v10085_v11 = vunpack.i.h.bf16 %v10936_v3 }
 0x102   : > { %935 = vst [vmem:[#allocation2 + $0x78] sm:$0xf] %v934_v47  ;;  %903 = vst [vmem:[#allocation2 + $0x38] sm:$0xf] %v902_v35  ;;  %v1163_v43 = vrot.slane %v746_v0, 4  ;;  %v1164_v18 = vrot.slane %v749_v7, 5 }
 0x103   : > { %v1136_v3 = vrot.slane %v698_v13, 4  ;;  %v1137_v0 = vrot.slane %v701_v55, 5  ;;  %v11149_v52 = vpack.c.bf16 %v10085_v11, %v10085_v11  ;;  %v676_v20 = vrot.slane %v13598_v63, 7 }
 0x104   : > { %1229 = vrot.lane.b32.xlu1 %v1105_v14, %s10514_s22  ;;  %999 = vrot.lane.b32.xlu0 %v11072_v54, %s10513_s21  ;;  %v11127_v14 = vor.u32 %v661_v56, %v660_v49  ;;  %v11143_v49 = vrot.slane %v821_v59, 5  ;;  %v1165_v7 = vor.u32 %v1164_v18, %v1163_v43  ;;  %v820_v47 = vrot.slane %v818_v46, 7 }
 0x105   : > { %v1138_v35 = vor.u32 %v1137_v0, %v1136_v3  ;;  %v13600_v56 = vmov 0   ;;  %v13602_v46 = vshrl.u32 %v11149_v52, 16  ;;  %v10516_v18 = vmov 65535  }
 0x106   : > { %4979 = vst [vmem:[#allocation4] sm:$0xff] %v13600_v56  ;;  %4980 = vst [vmem:[#allocation4 + $0x8] sm:$0xf] %v13600_v56  ;;  %v1206_v6 = vor.u32 %v1205_v5, %v11143_v49  ;;  %v11165_v13 = vrot.slane %v1165_v7, 4  ;;  %v1557_v3 = vsel %vm1555_vm14, 4294967295, %v10516_v18  ;;  %v10050_v0 = vunpack.i.h.bf16 %v10785_v40 }
 0x107   : > { %4982 = vst [vmem:[#allocation4 + $0x14] sm:$0xf] %v13600_v56  ;;  %4985 = vst [vmem:[#allocation4 + $0x1a0] sm:$0xf] %v13600_v56  ;;  %v11170_v55 = vrot.slane %v1138_v35, 4  ;;  %v1214_v18 = vrot.slane %v13602_v46, 4  ;;  %v13620_v40 = vsel %vm10711_vm13, %v10994_v24, %v10773_v28 }
 0x108   : > { %959 = vrot.lane.b32.xlu1 %v11014_v60, %s10513_s21  ;;  %1267 = vrot.lane.b32.xlu0 %v1189_v21, %s10514_s22  ;;  %v10065_v60 = vunpack.i.h.bf16 %v10850_v37  ;;  %v11154_v21 = vrot.slane %v666_v45, 4  ;;  %4987 = vst [vmem:[#allocation4 + $0x1ac] sm:$0xf] %v13600_v56  ;;  %v10087_v45 = vld [vmem:[%s13584_s1] sm:$0x1f]   ;;  %2502 = vst.msk [vmem:[#allocation3] sm:$0xff] %vm2501_vm3, %v13600_v56 }
 0x109   : > { %2503 = vst.msk [vmem:[#allocation3 + $0x8] sm:$0xff] %vm2501_vm3, %v13600_v56  ;;  %2505 = vst.msk [vmem:[#allocation3 + $0x110] sm:$0xff] %vm2501_vm3, %v13600_v56  ;;  %v491_v7 = vld [vmem:[#allocation2 + $0x6c] sm:$0x8]  ;;  %v11201_v43 = vsel %vm1556_vm15, %v1557_v3, 0  ;;  %v11216_v3 = vpack.c.bf16 %v10050_v0, %v10050_v0  ;;  %v13621_v5 = vshrl.u32 %v10862_v39, 16 }
 0x10a   : > { %v11181_v11 = vpack.c.bf16 %v10065_v60, %v10065_v60  ;;  %2506 = vst.msk [vmem:[#allocation3 + $0x118] sm:$0xff] %vm2501_vm3, %v13600_v56  ;;  %v1207_v60 = vrot.slane %v1206_v6, 4  ;;  %v1560_v6 = vand.u32 %v10087_v45, %v11201_v43  ;;  %v10091_v46 = vld [vmem:[%s13584_s1 + $0x8] sm:$0x1f]   ;;  %v688_v28 = vrot.slane %v11087_v4, 4  ;;  %vm11598_vm3 = vmand %vm2558_vm0, %vm453_vm4 }
 0x10b   : > { %395 = vst.msk [vmem:[#allocation2] sm:$0xf] %vm394_vm10, %v13600_v56  ;;  %396 = vst.msk [vmem:[#allocation2 + $0x4] sm:$0xf] %vm394_vm10, %v13600_v56  ;;  %v1172_v63 = vrot.slane %v13621_v5, 4  ;;  %v492_v24 = vsel %vm10640_vm5, 0, %v491_v7  ;;  %v679_v4 = vor.u32 %v677_v23, %v676_v20  ;;  %v823_v7 = vor.u32 %v821_v59, %v820_v47 }
 0x10c   : > { %1231 = vrot.lane.b32.xlu1 %v1108_v27, %s10514_s22  ;;  %993 = vrot.lane.b32.xlu0 %v10996_v25, %s10513_s21  ;;  %v13599_v27 = vshll.u32 %v11149_v52, 16  ;;  %398 = vst.msk [vmem:[#allocation2 + $0x88] sm:$0xf] %vm394_vm10, %v13600_v56  ;;  %399 = vst.msk [vmem:[#allocation2 + $0x8c] sm:$0xf] %vm394_vm10, %v13600_v56  ;;  %v805_v45 = vshll.u32 %v11181_v11, 16 }
 0x10d   : > { %9721 = vmatprep.subr.bf16.mxu0 %v1560_v6  ;;  %v13607_v0 = vshrl.u32 %v11216_v3, 16  ;;  %v13606_v5 = vshll.u32 %v11216_v3, 16  ;;  %493 = vst [vmem:[#allocation2 + $0x6c] sm:$0x8] %v492_v24  ;;  %v13624_v37 = vshll.u32 %v10996_v25, 16  ;;  %vm3692_vm10 = vcmask 523264  }
 0x10e   : > { %v11196_v35 = vrot.slane %v13599_v27, 5  ;;  %v13622_v27 = vshll.u32 %v10862_v39, 16  ;;  %9722 = vmatpush3.bf16.msra.mxu0 %v1560_v6  ;;  %v467_v47 = vld [vmem:[#allocation2 + $0x2c] sm:$0x8]  ;;  %v470_v24 = vld [vmem:[#allocation2 + $0x34] sm:$0x8] }
 0x10f   : > { %v11244_v22 = vrot.slane %v13624_v37, 5  ;;  %v780_v54 = vrot.slane %v13607_v0, 7  ;;  %v13626_v37 = vshll.u32 %v10998_v19, 16  ;;  %v471_v2 = vsel %vm10640_vm5, 0, %v470_v24 }
 0x110   : > { %1253 = vrot.lane.b32.xlu1 %v13620_v40, %s10514_s22  ;;  %997 = vrot.lane.b32.xlu0 %v11055_v50, %s10513_s21  ;;  %v1173_v56 = vrot.slane %v13622_v27, 5  ;;  %v13605_v40 = vshrl.u32 %v11181_v11, 16  ;;  %v13623_v27 = vshrl.u32 %v10996_v25, 16  ;;  %v1215_v59 = vor.u32 %v1214_v18, %v11196_v35  ;;  %v449_v25 = vld [vmem:[#allocation2 + $0x80] sm:$0x1] }
 0x111   : > { %v11261_v6 = vrot.slane %v13626_v37, 5  ;;  %v783_v18 = vor.u32 %v13606_v5, %v780_v54  ;;  %v473_v37 = vld [vmem:[#allocation2 + $0x3c] sm:$0x8]  ;;  %472 = vst [vmem:[#allocation2 + $0x34] sm:$0x8] %v471_v2 }
 0x112   : > { %v1174_v39 = vor.u32 %v1173_v56, %v1172_v63  ;;  %v11234_v51 = vrot.slane %v13623_v27, 4  ;;  %v804_v32 = vrot.slane %v13605_v40, 7  ;;  %v13625_v63 = vrot.slane %v10901_v42, 4 }
 0x113   : > { %v784_v27 = vrot.slane %v780_v54, 4  ;;  %v13627_v42 = vrot.slane %v11026_v44, 4  ;;  %v13628_v54 = vrot.slane %v11083_v57, 4  ;;  %v1216_v44 = vrot.slane %v1215_v59, 4 }
 0x114   : > { %961 = vrot.lane.b32.xlu1 %v10998_v19, %s10513_s21  ;;  %v664_v56 = vsel %vm10702_vm12, %v13625_v63, %v11127_v14  ;;  %1275 = vrot.lane.b32.xlu0 %v1207_v60, %s10514_s22  ;;  %v11257_v20 = vrot.slane %v1174_v39, 4  ;;  %v1892_v14 = vand.u32 %v10091_v46, %v11201_v43  ;;  %v497_v60 = vld [vmem:[#allocation2 + $0x7c] sm:$0x8]  ;;  %v10088_v39 = vld [vmem:[#allocation2] sm:$0xff]   ;;  %v807_v63 = vor.u32 %v805_v45, %v804_v32 }
 0x115   : > { %v696_v46 = vsel %vm10702_vm12, %v688_v28, %v11077_v58  ;;  %v680_v40 = vsel %vm10702_vm12, %v13627_v42, %v679_v4  ;;  %v824_v5 = vsel %vm10702_vm12, %v13628_v54, %v823_v7  ;;  %v13629_v19 = vshrl.u32 %v11055_v50, 16  ;;  %v500_v32 = vld [vmem:[#allocation2 + $0x84] sm:$0x8]  ;;  %9723 = vmatprep.mubr.msk.bf16.mxu0 %vm1506_vm11, %v10088_v39 }
 0x116   : > { %9755 = vmatprep.subr.bf16.mxu1 %v1892_v14  ;;  %v13630_v58 = vsel %vm10711_vm13, %v11089_v62, %v11091_v53  ;;  %v792_v57 = vsel %vm10702_vm12, %v784_v27, %v11079_v10  ;;  %v926_v28 = vsel %vm10684_vm8, %v783_v18, %v925_v12  ;;  %v13631_v4 = vshll.u32 %v11055_v50, 16  ;;  %v476_v42 = vld [vmem:[#allocation2 + $0x44] sm:$0x8]  ;;  %v494_v50 = vld [vmem:[#allocation2 + $0x74] sm:$0x8] }
 0x117   : > { %v1199_v0 = vrot.slane %v13629_v19, 4  ;;  %v13632_v19 = vshrl.u32 %v11149_v52, 16  ;;  %927 = vst [vmem:[#allocation2 + $0x68] sm:$0xf] %v926_v28  ;;  %928 = vst.msk [vmem:[#allocation2 + $0x6c] sm:$0xf] %vm873_vm6, %v792_v57  ;;  %9756 = vmatpush3.bf16.msra.mxu1 %v1892_v14  ;;  %v10080_v10 = vunpack.i.h.bf16 %v10913_v31 }
 0x118   : > { %1233 = vrot.lane.b32.xlu1 %v13630_v58, %s10514_s22  ;;  %1003 = vrot.lane.b32.xlu0 %v11149_v52, %s10513_s21  ;;  %v1200_v7 = vrot.slane %v13631_v4, 5  ;;  %v450_v62 = vsel %vm10623_vm2, 0, %v449_v25  ;;  %v468_v12 = vsel %vm10640_vm5, 0, %v467_v47  ;;  %v13633_v59 = vrot.slane %v11022_v9, 4  ;;  %900 = vst.msk [vmem:[#allocation2 + $0x34] sm:$0xf] %vm873_vm6, %v680_v40 }
 0x119   : > { %v836_v54 = vrot.slane %v13632_v19, 7  ;;  %451 = vst [vmem:[#allocation2 + $0x80] sm:$0x1] %v450_v62  ;;  %469 = vst [vmem:[#allocation2 + $0x2c] sm:$0x8] %v468_v12  ;;  %v498_v14 = vsel %vm10640_vm5, 0, %v497_v60  ;;  %v11320_v31 = vpack.c.bf16 %v10080_v10, %v10080_v10 }
 0x11a   : > { %v808_v18 = vsel %vm10702_vm12, %v13633_v59, %v807_v63  ;;  %v1201_v27 = vor.u32 %v1200_v7, %v1199_v0  ;;  %v13634_v25 = vmov 0   ;;  %896 = vst.msk [vmem:[#allocation2 + $0x2c] sm:$0xf] %vm873_vm6, %v664_v56  ;;  %499 = vst [vmem:[#allocation2 + $0x7c] sm:$0x8] %v498_v14  ;;  %v474_v9 = vsel %vm10640_vm5, 0, %v473_v37 }
 0x11b   : > { %3741 = vmatprep.subr.bf16.mxu1 %v13634_v25  ;;  %v501_v0 = vsel %vm10640_vm5, 0, %v500_v32  ;;  %v477_v47 = vsel %vm10640_vm5, 0, %v476_v42  ;;  %936 = vst.msk [vmem:[#allocation2 + $0x7c] sm:$0xf] %vm873_vm6, %v824_v5  ;;  %475 = vst [vmem:[#allocation2 + $0x3c] sm:$0x8] %v474_v9  ;;  %v13635_v5 = vor.u32 %v11114_v15, %v11091_v53  ;;  %v1120_v63 = vor.u32 %v11261_v6, %v11154_v21 }
 0x11c   : > { %963 = vrot.lane.b32.xlu1 %v11093_v36, %s10513_s21  ;;  %1279 = vrot.lane.b32.xlu0 %v1216_v44, %s10514_s22  ;;  %v11332_v60 = vrot.slane %v1201_v27, 4  ;;  %502 = vst [vmem:[#allocation2 + $0x84] sm:$0x8] %v501_v0  ;;  %478 = vst [vmem:[#allocation2 + $0x44] sm:$0x8] %v477_v47  ;;  %v495_v56 = vsel %vm10640_vm5, 0, %v494_v50 }
 0x11d   : > { %v826_v24 = vshrl.u32 %v11320_v31, 16  ;;  %v829_v39 = vshll.u32 %v11320_v31, 16  ;;  %904 = vst.msk [vmem:[#allocation2 + $0x3c] sm:$0xf] %vm873_vm6, %v696_v46  ;;  %908 = vst.msk [vmem:[#allocation2 + $0x44] sm:$0xf] %vm873_vm6, %v11103_v41 }
 0x11e   : > { %496 = vst [vmem:[#allocation2 + $0x74] sm:$0x8] %v495_v56  ;;  %v1117_v40 = vrot.slane %v13635_v5, 4  ;;  %v1204_v16 = vsel %vm10711_vm13, %v11332_v60, %v11143_v49  ;;  %v13636_v37 = vshll.u32 %v11149_v52, 16  ;;  %v1121_v58 = vrot.slane %v1120_v63, 4 }
 0x11f   : > { %932 = vst.msk [vmem:[#allocation2 + $0x74] sm:$0xf] %vm873_vm6, %v808_v18  ;;  %v828_v41 = vrot.slane %v826_v24, 7  ;;  %v1122_v44 = vrot.slane %v677_v23, 5  ;;  %vm1037_vm2 = vcmask 44056   ;;  %v13637_v57 = vshrl.u32 %v11093_v36, 16 }
 0x120   : > { %v839_v46 = vor.u32 %v13636_v37, %v836_v54  ;;  %1235 = vrot.lane.b32.xlu1 %v1117_v40, %s10514_s22  ;;  %v937_v53 = vld [vmem:[#allocation2 + $0x80] sm:$0xf]  ;;  %v13638_v4 = vshrl.u32 %v11057_v38, 16  ;;  %v13639_v7 = vshll.u32 %v11057_v38, 16  ;;  %v10100_v19 = vld [vmem:[%s13584_s1 + $0x10] sm:$0x1f]  }
 0x121   : > { %v831_v15 = vor.u32 %v829_v39, %v828_v41  ;;  %v832_v32 = vrot.slane %v828_v41, 4  ;;  %v1124_v28 = vrot.slane %v13637_v57, 4  ;;  %v1123_v23 = vsel %vm10711_vm13, %v1121_v58, %v1122_v44 }
 0x122   : > { %v1127_v1 = vrot.slane %v13638_v4, 4  ;;  %v1128_v42 = vrot.slane %v13639_v7, 5  ;;  %v2257_v62 = vand.u32 %v10100_v19, %v11201_v43  ;;  %vm1313_vm5 = vcmask 68656  }
 0x123   : > { %v840_v21 = vsel %vm10702_vm12, %v832_v32, %v839_v46  ;;  %v938_v52 = vsel %vm10684_vm8, %v831_v15, %v937_v53  ;;  %v1125_v36 = vor.u32 %v1124_v28, %v1122_v44  ;;  %v13644_v63 = vshrl.u32 %v11216_v3, 16 }
 0x124   : > { %965 = vrot.lane.b32.xlu1 %v11057_v38, %s10513_s21  ;;  %939 = vst [vmem:[#allocation2 + $0x80] sm:$0xf] %v938_v52  ;;  %940 = vst.msk [vmem:[#allocation2 + $0x84] sm:$0xf] %vm873_vm6, %v840_v21  ;;  %v1129_v12 = vor.u32 %v1128_v42, %v1127_v1  ;;  %9789 = vmatprep.subr.bf16.mxu0 %v2257_v62  ;;  %v13645_v46 = vshll.u32 %v11216_v3, 16  ;;  %v13646_v58 = vshrl.u32 %v11181_v11, 16 }
 0x125   : > { %v1126_v50 = vrot.slane %v1125_v36, 4  ;;  %vm11407_vm6 = vmand %vm1313_vm5, %vm1070_vm9  ;;  %v1181_v37 = vrot.slane %v13644_v63, 4  ;;  %vm2508_vm8 = vcmask 516096  }
 0x126   : > { %v942_v6 = vpop.permute.xlu1 %941  ;;  %v1130_v59 = vrot.slane %v1129_v12, 4  ;;  %v1182_v41 = vrot.slane %v13645_v46, 5  ;;  %v1196_v44 = vrot.slane %v13646_v58, 4  ;;  %vm11589_vm15 = vmand %vm2508_vm8, %vm402_vm1  ;;  %vm4989_vm8 = vcmask 1040384  }
 0x127   : > { %1038 = vst.msk [vmem:[#allocation2 + $0x8] sm:$0xf] %vm1037_vm2, %v942_v6 }
 0x128   : > { %1237 = vrot.lane.b32.xlu1 %v1123_v23, %s10514_s22  ;;  %v1132_v43 = vsel %vm10711_vm13, %v1130_v59, %v10941_v8  ;;  %v13640_v8 = vsel %vm10711_vm13, %v11165_v13, %v10795_v48  ;;  %v13643_v48 = vsel %vm10711_vm13, %v11170_v55, %v10984_v17  ;;  %v1183_v55 = vor.u32 %v1182_v41, %v1181_v37 }
 0x129   : > { %v13647_v23 = vsel %vm10711_vm13, %v11257_v20, %v10961_v29  ;;  %v13648_v29 = vor.u32 %v11244_v22, %v11234_v51 }
 0x12a   : > { %v974_v54 = vpop.permute.xlu1 %973  ;;  %v1184_v28 = vrot.slane %v1183_v55, 4 }
 0x12b   : > { %1054 = vst.msk [vmem:[#allocation2 + $0x48] sm:$0xf] %vm1037_vm2, %v974_v54  ;;  %v944_v10 = vpop.permute.xlu0 %943  ;;  %v1193_v20 = vrot.slane %v13648_v29, 4 }
 0x12c   : > { %967 = vrot.lane.b32.xlu1 %v10907_v26, %s10513_s21  ;;  %1039 = vst.msk [vmem:[#allocation2 + $0xc] sm:$0xf] %vm1037_vm2, %v944_v10  ;;  %v1209_v10 = vrot.slane %v829_v39, 5 }
 0x12e   : > { %v976_v38 = vpop.permute.xlu1 %975 }
 0x12f   : > { %1055 = vst.msk [vmem:[#allocation2 + $0x4c] sm:$0xf] %vm1037_vm2, %v976_v38 }
 0x130   : > { %1239 = vrot.lane.b32.xlu1 %v1126_v50, %s10514_s22 }
 0x132   : > { %v946_v18 = vpop.permute.xlu1 %945 }
 0x133   : > { %1040 = vst.msk [vmem:[#allocation2 + $0x10] sm:$0xf] %vm1037_vm2, %v946_v18 }
 0x134   : > { %1241 = vrot.lane.b32.xlu1 %v1132_v43, %s10514_s22 }
 0x136   : > { %v1218_v26 = vpop.permute.xlu1 %1217  ;;  %v1349_v0 = vld [vmem:[#allocation2 + $0x4c] sm:$0xf] }
 0x137   : > { %1314 = vst.msk [vmem:[#allocation2 + $0x8] sm:$0xf] %vm1313_vm5, %v1218_v26 }
 0x138   : > { %971 = vrot.lane.b32.xlu1 %v10953_v61, %s10513_s21  ;;  %v1317_v61 = vld [vmem:[#allocation2 + $0xc] sm:$0xf] }
 0x13a   : > { %v984_v27 = vpop.permute.xlu0 %983  ;;  %v948_v14 = vpop.permute.xlu1 %947 }
 0x13b   : > { %1059 = vst.msk [vmem:[#allocation2 + $0x5c] sm:$0xf] %vm1037_vm2, %v984_v27  ;;  %1041 = vst.msk [vmem:[#allocation2 + $0x14] sm:$0xf] %vm1037_vm2, %v948_v14 }
 0x13c   : > { %1257 = vrot.lane.b32.xlu1 %v13640_v8, %s10514_s22 }
 0x13e   : > { %v1252_v9 = vpop.permute.xlu0 %1251  ;;  %v1220_v47 = vpop.permute.xlu1 %1219 }
 0x13f   : > { %v1350_v56 = vsel %vm11407_vm6, %v1252_v9, %v1349_v0  ;;  %v1318_v5 = vsel %vm11407_vm6, %v1220_v47, %v1317_v61 }
 0x140   : > { %1351 = vst [vmem:[#allocation2 + $0x4c] sm:$0xf] %v1350_v56  ;;  %1319 = vst [vmem:[#allocation2 + $0xc] sm:$0xf] %v1318_v5  ;;  %1245 = vrot.lane.b32.xlu1 %v13643_v48, %s10514_s22 }
 0x142   : > { %v978_v13 = vpop.permute.xlu0 %977  ;;  %v980_v40 = vpop.permute.xlu1 %979  ;;  %v1357_v4 = vld [vmem:[#allocation2 + $0x5c] sm:$0xf]  ;;  %v1321_v19 = vld [vmem:[#allocation2 + $0x14] sm:$0xf] }
 0x143   : > { %1056 = vst.msk [vmem:[#allocation2 + $0x50] sm:$0xf] %vm1037_vm2, %v978_v13  ;;  %1057 = vst.msk [vmem:[#allocation2 + $0x54] sm:$0xf] %vm1037_vm2, %v980_v40 }
 0x144   : > { %995 = vrot.lane.b32.xlu1 %v11181_v11, %s10513_s21  ;;  %v1186_v11 = vsel %vm10711_vm13, %v1184_v28, %v11049_v33 }
 0x146   : > { %v1256_v53 = vpop.permute.xlu0 %1255  ;;  %v950_v15 = vpop.permute.xlu1 %949 }
 0x147   : > { %1042 = vst.msk [vmem:[#allocation2 + $0x18] sm:$0xf] %vm1037_vm2, %v950_v15  ;;  %v10089_v17 = vld [vmem:[#allocation2 + $0x8] sm:$0xff]  }
 0x148   : > { %989 = vrot.lane.b32.xlu1 %v11216_v3, %s10513_s21  ;;  %v10090_v32 = vld [vmem:[#allocation2 + $0x8] sm:$0xff]   ;;  %9724 = vmatmul.mubr.msk.bf16.vlgmr.msra.gmra.mxu0 %vm1506_vm11, %v10089_v17  ;;  %v1194_v3 = vrot.slane %v805_v45, 5 }
 0x149   : > { %9757 = vmatprep.mubr.msk.bf16.mxu1 %vm1506_vm11, %v10090_v32  ;;  %9790 = vmatpush3.bf16.msra.mxu0 %v2257_v62  ;;  %v1208_v62 = vrot.slane %v826_v24, 4 }
 0x14a   : > { %v1353_v21 = vld [vmem:[#allocation2 + $0x54] sm:$0xf]  ;;  %v1222_v52 = vpop.permute.xlu1 %1221  ;;  %v992_v6 = vpop.permute.xlu0 %991  ;;  %4223 = vmatprep.subr.bf16.mxu0 %v13634_v25  ;;  %v1197_v1 = vor.u32 %v1196_v44, %v1194_v3  ;;  %v1195_v51 = vsel %vm10711_vm13, %v1193_v20, %v1194_v3 }
 0x14b   : > { %v1354_v57 = vsel %vm11407_vm6, %v1256_v53, %v1353_v21  ;;  %1320 = vst.msk [vmem:[#allocation2 + $0x10] sm:$0xf] %vm1313_vm5, %v1222_v52  ;;  %v1210_v38 = vor.u32 %v1209_v10, %v1208_v62 }
 0x14c   : > { %1063 = vst.msk [vmem:[#allocation2 + $0x6c] sm:$0xf] %vm1037_vm2, %v992_v6  ;;  %1355 = vst [vmem:[#allocation2 + $0x54] sm:$0xf] %v1354_v57  ;;  %1261 = vrot.lane.b32.xlu1 %v13647_v23, %s10514_s22  ;;  %v1198_v25 = vrot.slane %v1197_v1, 4 }
 0x14d   : > { %v1211_v59 = vrot.slane %v1210_v38, 4 }
 0x14e   : > { %v952_v7 = vpop.permute.xlu1 %951  ;;  %v1260_v42 = vpop.permute.xlu0 %1259 }
 0x14f   : > { %1043 = vst.msk [vmem:[#allocation2 + $0x1c] sm:$0xf] %vm1037_vm2, %v952_v7  ;;  %v1358_v45 = vsel %vm11407_vm6, %v1260_v42, %v1357_v4  ;;  %v1213_v49 = vsel %vm10711_vm13, %v1211_v59, %v11196_v35 }
 0x150   : > { %1265 = vrot.lane.b32.xlu1 %v1186_v11, %s10514_s22  ;;  %1359 = vst [vmem:[#allocation2 + $0x5c] sm:$0xf] %v1358_v45 }
 0x152   : > { %v1224_v54 = vpop.permute.xlu1 %1223 }
 0x153   : > { %v1322_v36 = vsel %vm11407_vm6, %v1224_v54, %v1321_v19  ;;  %v1365_v13 = vld [vmem:[#allocation2 + $0x6c] sm:$0xf] }
 0x154   : > { %1323 = vst [vmem:[#allocation2 + $0x14] sm:$0xf] %v1322_v36  ;;  %1271 = vrot.lane.b32.xlu1 %v1198_v25, %s10514_s22 }
 0x156   : > { %v1250_v33 = vpop.permute.xlu1 %1249  ;;  %v1325_v43 = vld [vmem:[#allocation2 + $0x1c] sm:$0xf] }
 0x157   : > { %1348 = vst.msk [vmem:[#allocation2 + $0x48] sm:$0xf] %vm1313_vm5, %v1250_v33 }
 0x158   : > { %1269 = vrot.lane.b32.xlu1 %v1195_v51, %s10514_s22 }
 0x15a   : > { %v982_v22 = vpop.permute.xlu1 %981 }
 0x15b   : > { %1058 = vst.msk [vmem:[#allocation2 + $0x58] sm:$0xf] %vm1037_vm2, %v982_v22  ;;  %v10092_v12 = vld [vmem:[#allocation2 + $0x10] sm:$0xff]  }
 0x15c   : > { %1273 = vrot.lane.b32.xlu1 %v1204_v16, %s10514_s22  ;;  %v10093_v24 = vld [vmem:[#allocation2 + $0x10] sm:$0xff]   ;;  %9727 = vmatprep.mubr.msk.bf16.mxu0 %vm1506_vm11, %v10092_v12 }
 0x15d   : > { %9758 = vmatmul.mubr.msk.bf16.vlgmr.msra.gmra.mxu1 %vm1506_vm11, %v10093_v24 }
 0x15e   : > { %v954_v39 = vpop.permute.xlu1 %953  ;;  %v970_v50 = vpop.permute.xlu0 %969 }
 0x15f   : > { %1044 = vst.msk [vmem:[#allocation2 + $0x20] sm:$0xf] %vm1037_vm2, %v954_v39  ;;  %1052 = vst.msk [vmem:[#allocation2 + $0x40] sm:$0xf] %vm1037_vm2, %v970_v50 }
 0x160   : > { %1001 = vrot.lane.b32.xlu1 %v11320_v31, %s10513_s21 }
 0x162   : > { %v1226_v18 = vpop.permute.xlu1 %1225  ;;  %v11488_v60 = vpop.permute.xlu0 %1243 }
 0x163   : > { %1324 = vst.msk [vmem:[#allocation2 + $0x18] sm:$0xf] %vm1313_vm5, %v1226_v18 }
 0x164   : > { %1277 = vrot.lane.b32.xlu1 %v1213_v49, %s10514_s22 }
 0x166   : > { %v956_v16 = vpop.permute.xlu1 %955 }
 0x167   : > { %1045 = vst.msk [vmem:[#allocation2 + $0x24] sm:$0xf] %vm1037_vm2, %v956_v16 }
 0x16a   : > { %v11491_v26 = vpop.permute.xlu0 %1247  ;;  %v1228_v27 = vpop.permute.xlu1 %1227 }
 0x16b   : > { %v1326_v31 = vsel %vm11407_vm6, %v1228_v27, %v1325_v43 }
 0x16c   : > { %1327 = vst [vmem:[#allocation2 + $0x1c] sm:$0xf] %v1326_v31  ;;  %v10107_v31 = vld [vmem:[#allocation2 + $0x48] sm:$0xff]  }
 0x16e   : > { %v986_v14 = vpop.permute.xlu0 %985  ;;  %v988_v8 = vpop.permute.xlu1 %987  ;;  %v1329_v46 = vld [vmem:[#allocation2 + $0x24] sm:$0xf] }
 0x16f   : > { %1060 = vst.msk [vmem:[#allocation2 + $0x60] sm:$0xf] %vm1037_vm2, %v986_v14  ;;  %1061 = vst.msk [vmem:[#allocation2 + $0x64] sm:$0xf] %vm1037_vm2, %v988_v8  ;;  %v10108_v14 = vld [vmem:[#allocation2 + $0x48] sm:$0xff]  }
 0x172   : > { %v1264_v35 = vpop.permute.xlu0 %1263  ;;  %v958_v61 = vpop.permute.xlu1 %957 }
 0x173   : > { %1046 = vst.msk [vmem:[#allocation2 + $0x28] sm:$0xf] %vm1037_vm2, %v958_v61  ;;  %v10094_v9 = vld [vmem:[#allocation2 + $0x18] sm:$0xff]  }
 0x174   : > { %v10095_v0 = vld [vmem:[#allocation2 + $0x18] sm:$0xff]   ;;  %9728 = vmatmul.mubr.msk.bf16.gmra.mxu0 %vm1506_vm11, %v10094_v9 }
 0x175   : > { %9761 = vmatprep.mubr.msk.bf16.mxu1 %vm1506_vm11, %v10095_v0 }
 0x176   : > { %v1361_v47 = vld [vmem:[#allocation2 + $0x64] sm:$0xf]  ;;  %v1230_v56 = vpop.permute.xlu1 %1229  ;;  %v1000_v5 = vpop.permute.xlu0 %999 }
 0x177   : > { %v1362_v48 = vsel %vm11407_vm6, %v1264_v35, %v1361_v47  ;;  %1328 = vst.msk [vmem:[#allocation2 + $0x20] sm:$0xf] %vm1313_vm5, %v1230_v56 }
 0x178   : > { %1067 = vst.msk [vmem:[#allocation2 + $0x7c] sm:$0xf] %vm1037_vm2, %v1000_v5  ;;  %1363 = vst [vmem:[#allocation2 + $0x64] sm:$0xf] %v1362_v48 }
 0x17a   : > { %v960_v40 = vpop.permute.xlu1 %959  ;;  %v1268_v63 = vpop.permute.xlu0 %1267 }
 0x17b   : > { %1047 = vst.msk [vmem:[#allocation2 + $0x2c] sm:$0xf] %vm1037_vm2, %v960_v40  ;;  %v1366_v37 = vsel %vm11407_vm6, %v1268_v63, %v1365_v13 }
 0x17c   : > { %1367 = vst [vmem:[#allocation2 + $0x6c] sm:$0xf] %v1366_v37 }
 0x17e   : > { %v1232_v41 = vpop.permute.xlu1 %1231  ;;  %v994_v53 = vpop.permute.xlu0 %993 }
 0x17f   : > { %v1330_v15 = vsel %vm11407_vm6, %v1232_v41, %v1329_v46  ;;  %1064 = vst.msk [vmem:[#allocation2 + $0x70] sm:$0xf] %vm1037_vm2, %v994_v53  ;;  %v1373_v32 = vld [vmem:[#allocation2 + $0x7c] sm:$0xf] }
 0x180   : > { %1331 = vst [vmem:[#allocation2 + $0x24] sm:$0xf] %v1330_v15 }
 0x182   : > { %v1254_v17 = vpop.permute.xlu1 %1253  ;;  %v998_v55 = vpop.permute.xlu0 %997  ;;  %v1333_v4 = vld [vmem:[#allocation2 + $0x2c] sm:$0xf] }
 0x183   : > { %1352 = vst.msk [vmem:[#allocation2 + $0x50] sm:$0xf] %vm1313_vm5, %v1254_v17 }
 0x184   : > { %1066 = vst.msk [vmem:[#allocation2 + $0x78] sm:$0xf] %vm1037_vm2, %v998_v55 }
 0x186   : > { %v962_v58 = vpop.permute.xlu1 %961  ;;  %v1276_v44 = vpop.permute.xlu0 %1275 }
 0x187   : > { %1048 = vst.msk [vmem:[#allocation2 + $0x30] sm:$0xf] %vm1037_vm2, %v962_v58  ;;  %v10096_v21 = vld [vmem:[#allocation2 + $0x20] sm:$0xff]   ;;  %v1374_v52 = vsel %vm11407_vm6, %v1276_v44, %v1373_v32  ;;  %v10121_v32 = vld [vmem:[#allocation2 + $0x10] sm:$0xff]   ;;  %v10123_v58 = vld [vmem:[#allocation2 + $0x18] sm:$0xff]  }
 0x188   : > { %v10097_v6 = vld [vmem:[#allocation2 + $0x20] sm:$0xff]   ;;  %1375 = vst [vmem:[#allocation2 + $0x7c] sm:$0xf] %v1374_v52  ;;  %9731 = vmatprep.mubr.msk.bf16.mxu0 %vm1506_vm11, %v10096_v21 }
 0x189   : > { %9762 = vmatmul.mubr.msk.bf16.gmra.mxu1 %vm1506_vm11, %v10097_v6  ;;  %v10124_v21 = vld [vmem:[#allocation2 + $0x20] sm:$0xff]  }
 0x18a   : > { %v1234_v57 = vpop.permute.xlu1 %1233  ;;  %v1004_v28 = vpop.permute.xlu0 %1003  ;;  %v10109_v8 = vld [vmem:[#allocation2 + $0x50] sm:$0xff]  }
 0x18b   : > { %1332 = vst.msk [vmem:[#allocation2 + $0x28] sm:$0xf] %vm1313_vm5, %v1234_v57  ;;  %v10110_v61 = vld [vmem:[#allocation2 + $0x50] sm:$0xff]  }
 0x18c   : > { %1069 = vst.msk [vmem:[#allocation2 + $0x84] sm:$0xf] %vm1037_vm2, %v1004_v28 }
 0x18e   : > { %v964_v3 = vpop.permute.xlu1 %963  ;;  %v1280_v23 = vpop.permute.xlu0 %1279 }
 0x18f   : > { %1049 = vst.msk [vmem:[#allocation2 + $0x34] sm:$0xf] %vm1037_vm2, %v964_v3  ;;  %v10129_v3 = vld [vmem:[#allocation2 + $0x48] sm:$0xff]  }
 0x192   : > { %v1236_v1 = vpop.permute.xlu1 %1235 }
 0x193   : > { %v1377_v7 = vld [vmem:[#allocation2 + $0x84] sm:$0xf]  ;;  %v1334_v42 = vsel %vm11407_vm6, %v1236_v1, %v1333_v4 }
 0x194   : > { %v1378_v11 = vsel %vm11407_vm6, %v1280_v23, %v1377_v7  ;;  %1335 = vst [vmem:[#allocation2 + $0x2c] sm:$0xf] %v1334_v42  ;;  %v10130_v23 = vld [vmem:[#allocation2 + $0x50] sm:$0xff]  }
 0x195   : > { %1379 = vst [vmem:[#allocation2 + $0x84] sm:$0xf] %v1378_v11 }
 0x196   : > { %v966_v45 = vpop.permute.xlu1 %965  ;;  %v1337_v54 = vld [vmem:[#allocation2 + $0x34] sm:$0xf] }
 0x197   : > { %1050 = vst.msk [vmem:[#allocation2 + $0x38] sm:$0xf] %vm1037_vm2, %v966_v45 }
 0x19a   : > { %v1238_v25 = vpop.permute.xlu1 %1237 }
 0x19b   : > { %1336 = vst.msk [vmem:[#allocation2 + $0x30] sm:$0xf] %vm1313_vm5, %v1238_v25  ;;  %v10098_v29 = vld [vmem:[#allocation2 + $0x28] sm:$0xff]  }
 0x19c   : > { %v10099_v20 = vld [vmem:[#allocation2 + $0x28] sm:$0xff]   ;;  %9732 = vmatmul.mubr.msk.bf16.gmra.mxu0 %vm1506_vm11, %v10098_v29  ;;  %v2513_v29 = vld [vmem:[#allocation3 + $0x20] sm:$0x1] }
 0x19d   : > { %9765 = vmatprep.mubr.msk.bf16.mxu1 %vm1506_vm11, %v10099_v20  ;;  %v10125_v52 = vld [vmem:[#allocation2 + $0x28] sm:$0xff]   ;;  %v11755_v20 = vld [vmem:[%s13585_s2] ss:$0 sm:$0xff] }
 0x19e   : > { %v968_v19 = vpop.permute.xlu1 %967  ;;  %v10137_v25 = vld [vmem:[#allocation2 + $0x88] sm:$0xff]  }
 0x19f   : > { %1051 = vst.msk [vmem:[#allocation2 + $0x3c] sm:$0xf] %vm1037_vm2, %v968_v19  ;;  %v2514_v19 = vsel %vm11589_vm15, 0, %v2513_v29 }
 0x1a0   : > { %2515 = vst [vmem:[#allocation3 + $0x20] sm:$0x1] %v2514_v19 }
 0x1a2   : > { %v1240_v36 = vpop.permute.xlu1 %1239 }
 0x1a3   : > { %v1338_v33 = vsel %vm11407_vm6, %v1240_v36, %v1337_v54  ;;  %v2510_v54 = vld [vmem:[#allocation3 + $0x10] sm:$0x1] }
 0x1a4   : > { %1339 = vst [vmem:[#allocation2 + $0x34] sm:$0xf] %v1338_v33  ;;  %v2511_v36 = vsel %vm11589_vm15, 0, %v2510_v54  ;;  %v2563_v33 = vld [vmem:[#allocation3 + $0x2c] sm:$0x8] }
 0x1a5   : > { %2512 = vst [vmem:[#allocation3 + $0x10] sm:$0x1] %v2511_v36 }
 0x1a6   : > { %v1341_v62 = vld [vmem:[#allocation2 + $0x3c] sm:$0xf]  ;;  %v1242_v10 = vpop.permute.xlu1 %1241 }
 0x1a7   : > { %v1342_v51 = vsel %vm11407_vm6, %v11488_v60, %v1341_v62  ;;  %1340 = vst.msk [vmem:[#allocation2 + $0x38] sm:$0xf] %vm1313_vm5, %v1242_v10  ;;  %v2564_v10 = vsel %vm11598_vm3, 0, %v2563_v33  ;;  %v2540_v33 = vld [vmem:[#allocation3 + $0xb0] sm:$0x1] }
 0x1a8   : > { %1343 = vst [vmem:[#allocation2 + $0x3c] sm:$0xf] %v1342_v51  ;;  %2565 = vst [vmem:[#allocation3 + $0x2c] sm:$0x8] %v2564_v10  ;;  %v2560_v51 = vld [vmem:[#allocation3 + $0x1c] sm:$0x8] }
 0x1a9   : > { %v2593_v10 = vld [vmem:[#allocation3 + $0xcc] sm:$0x8] }
 0x1aa   : > { %v972_v22 = vpop.permute.xlu1 %971 }
 0x1ab   : > { %1053 = vst.msk [vmem:[#allocation2 + $0x44] sm:$0xf] %vm1037_vm2, %v972_v22  ;;  %v10101_v12 = vld [vmem:[#allocation2 + $0x30] sm:$0xff]   ;;  %v2561_v22 = vsel %vm11598_vm3, 0, %v2560_v51  ;;  %v2541_v51 = vsel %vm11589_vm15, 0, %v2540_v33 }
 0x1ac   : > { %v10102_v38 = vld [vmem:[#allocation2 + $0x30] sm:$0xff]   ;;  %9735 = vmatprep.mubr.msk.bf16.mxu0 %vm1506_vm11, %v10101_v12  ;;  %2562 = vst [vmem:[#allocation3 + $0x1c] sm:$0x8] %v2561_v22  ;;  %v2594_v22 = vsel %vm11598_vm3, 0, %v2593_v10  ;;  %2542 = vst [vmem:[#allocation3 + $0xb0] sm:$0x1] %v2541_v51 }
 0x1ad   : > { %9766 = vmatmul.mubr.msk.bf16.gmra.mxu1 %vm1506_vm11, %v10102_v38  ;;  %v10126_v6 = vld [vmem:[#allocation2 + $0x30] sm:$0xff]   ;;  %2595 = vst [vmem:[#allocation3 + $0xcc] sm:$0x8] %v2594_v22 }
 0x1ae   : > { %v1258_v24 = vpop.permute.xlu1 %1257  ;;  %v2519_v12 = vld [vmem:[#allocation3 + $0x40] sm:$0x1] }
 0x1af   : > { %1356 = vst.msk [vmem:[#allocation2 + $0x58] sm:$0xf] %vm1313_vm5, %v1258_v24  ;;  %v10103_v39 = vld [vmem:[#allocation2 + $0x38] sm:$0xff]   ;;  %v2520_v38 = vsel %vm11589_vm15, 0, %v2519_v12  ;;  %v2516_v24 = vld [vmem:[#allocation3 + $0x30] sm:$0x1] }
 0x1b0   : > { %v10104_v50 = vld [vmem:[#allocation2 + $0x38] sm:$0xff]   ;;  %9736 = vmatmul.mubr.msk.bf16.gmra.mxu0 %vm1506_vm11, %v10103_v39  ;;  %2521 = vst [vmem:[#allocation3 + $0x40] sm:$0x1] %v2520_v38  ;;  %v2517_v39 = vsel %vm11589_vm15, 0, %v2516_v24  ;;  %v2590_v24 = vld [vmem:[#allocation3 + $0xbc] sm:$0x8] }
 0x1b1   : > { %9769 = vmatprep.mubr.msk.bf16.mxu1 %vm1506_vm11, %v10104_v50  ;;  %v10127_v57 = vld [vmem:[#allocation2 + $0x38] sm:$0xff]   ;;  %2518 = vst [vmem:[#allocation3 + $0x30] sm:$0x1] %v2517_v39 }
 0x1b2   : > { %v1345_v59 = vld [vmem:[#allocation2 + $0x44] sm:$0xf]  ;;  %v1246_v18 = vpop.permute.xlu1 %1245  ;;  %v2569_v50 = vld [vmem:[#allocation3 + $0x4c] sm:$0x8] }
 0x1b3   : > { %v1346_v49 = vsel %vm11407_vm6, %v11491_v26, %v1345_v59  ;;  %1344 = vst.msk [vmem:[#allocation2 + $0x40] sm:$0xf] %vm1313_vm5, %v1246_v18  ;;  %v2570_v59 = vsel %vm11598_vm3, 0, %v2569_v50  ;;  %v2566_v18 = vld [vmem:[#allocation3 + $0x3c] sm:$0x8] }
 0x1b4   : > { %1347 = vst [vmem:[#allocation2 + $0x44] sm:$0xf] %v1346_v49  ;;  %2571 = vst [vmem:[#allocation3 + $0x4c] sm:$0x8] %v2570_v59  ;;  %v2567_v49 = vsel %vm11598_vm3, 0, %v2566_v18  ;;  %v2591_v59 = vsel %vm11598_vm3, 0, %v2590_v24 }
 0x1b5   : > { %2568 = vst [vmem:[#allocation3 + $0x3c] sm:$0x8] %v2567_v49  ;;  %2592 = vst [vmem:[#allocation3 + $0xbc] sm:$0x8] %v2591_v59  ;;  %v2549_v18 = vld [vmem:[#allocation3 + $0xe0] sm:$0x1] }
 0x1b6   : > { %v996_v60 = vpop.permute.xlu1 %995  ;;  %v10111_v9 = vld [vmem:[#allocation2 + $0x58] sm:$0xff]   ;;  %v2550_v49 = vsel %vm11589_vm15, 0, %v2549_v18 }
 0x1b7   : > { %1065 = vst.msk [vmem:[#allocation2 + $0x74] sm:$0xf] %vm1037_vm2, %v996_v60  ;;  %v10112_v47 = vld [vmem:[#allocation2 + $0x58] sm:$0xff]   ;;  %2551 = vst [vmem:[#allocation3 + $0xe0] sm:$0x1] %v2550_v49 }
 0x1b8   : > { %v10131_v4 = vld [vmem:[#allocation2 + $0x58] sm:$0xff]  }
 0x1b9   : > { %v2605_v24 = vld [vmem:[#allocation3 + $0x10c] sm:$0x8] }
 0x1ba   : > { %v990_v16 = vpop.permute.xlu1 %989  ;;  %v2606_v59 = vsel %vm11598_vm3, 0, %v2605_v24 }
 0x1bb   : > { %1062 = vst.msk [vmem:[#allocation2 + $0x68] sm:$0xf] %vm1037_vm2, %v990_v16  ;;  %v10105_v43 = vld [vmem:[#allocation2 + $0x40] sm:$0xff]   ;;  %v2525_v16 = vld [vmem:[#allocation3 + $0x60] sm:$0x1] }
 0x1bc   : > { %v10106_v27 = vld [vmem:[#allocation2 + $0x40] sm:$0xff]   ;;  %9739 = vmatprep.mubr.msk.bf16.mxu0 %vm1506_vm11, %v10105_v43  ;;  %2607 = vst [vmem:[#allocation3 + $0x10c] sm:$0x8] %v2606_v59 }
 0x1bd   : > { %9770 = vmatmul.mubr.msk.bf16.gmra.mxu1 %vm1506_vm11, %v10106_v27  ;;  %9740 = vmatmul.mubr.msk.bf16.gmra.mxu0 %vm1506_vm11, %v10107_v31  ;;  %v10128_v28 = vld [vmem:[#allocation2 + $0x40] sm:$0xff]   ;;  %v2526_v27 = vsel %vm11589_vm15, 0, %v2525_v16 }
 0x1be   : > { %v1262_v35 = vpop.permute.xlu1 %1261  ;;  %9773 = vmatprep.mubr.msk.bf16.mxu1 %vm1506_vm11, %v10108_v14  ;;  %9743 = vmatprep.mubr.msk.bf16.mxu0 %vm1506_vm11, %v10109_v8  ;;  %v1369_v0 = vld [vmem:[#allocation2 + $0x74] sm:$0xf]  ;;  %v2522_v43 = vld [vmem:[#allocation3 + $0x50] sm:$0x1]  ;;  %v2575_v14 = vld [vmem:[#allocation3 + $0x6c] sm:$0x8] }
 0x1bf   : > { %1360 = vst.msk [vmem:[#allocation2 + $0x60] sm:$0xf] %vm1313_vm5, %v1262_v35  ;;  %v2523_v31 = vsel %vm11589_vm15, 0, %v2522_v43  ;;  %2527 = vst [vmem:[#allocation3 + $0x60] sm:$0x1] %v2526_v27  ;;  %v2576_v8 = vsel %vm11598_vm3, 0, %v2575_v14 }
 0x1c0   : > { %2524 = vst [vmem:[#allocation3 + $0x50] sm:$0x1] %v2523_v31  ;;  %2577 = vst [vmem:[#allocation3 + $0x6c] sm:$0x8] %v2576_v8  ;;  %v2546_v27 = vld [vmem:[#allocation3 + $0xd0] sm:$0x1] }
 0x1c1   : > { %v2547_v8 = vsel %vm11589_vm15, 0, %v2546_v27  ;;  %v2602_v27 = vld [vmem:[#allocation3 + $0xfc] sm:$0x8] }
 0x1c2   : > { %v1266_v26 = vpop.permute.xlu1 %1265  ;;  %2548 = vst [vmem:[#allocation3 + $0xd0] sm:$0x1] %v2547_v8 }
 0x1c3   : > { %1364 = vst.msk [vmem:[#allocation2 + $0x68] sm:$0xf] %vm1313_vm5, %v1266_v26 }
 0x1c5   : > { %9774 = vmatmul.mubr.msk.bf16.gmra.mxu1 %vm1506_vm11, %v10110_v61  ;;  %9744 = vmatmul.mubr.msk.bf16.gmra.mxu0 %vm1506_vm11, %v10111_v9  ;;  %v2572_v61 = vld [vmem:[#allocation3 + $0x5c] sm:$0x8] }
 0x1c6   : > { %v1272_v56 = vpop.permute.xlu1 %1271  ;;  %v10113_v5 = vld [vmem:[#allocation2 + $0x60] sm:$0xff]   ;;  %9777 = vmatprep.mubr.msk.bf16.mxu1 %vm1506_vm11, %v10112_v47  ;;  %v2573_v9 = vsel %vm11598_vm3, 0, %v2572_v61  ;;  %v2599_v61 = vld [vmem:[#allocation3 + $0xec] sm:$0x8] }
 0x1c7   : > { %v1370_v48 = vsel %vm11407_vm6, %v1272_v56, %v1369_v0  ;;  %9747 = vmatprep.mubr.msk.bf16.mxu0 %vm1506_vm11, %v10113_v5  ;;  %v10114_v40 = vld [vmem:[#allocation2 + $0x60] sm:$0xff]   ;;  %2574 = vst [vmem:[#allocation3 + $0x5c] sm:$0x8] %v2573_v9  ;;  %v2531_v5 = vld [vmem:[#allocation3 + $0x80] sm:$0x1]  ;;  %vm3139_vm6 = vcmask 1043968  }
 0x1c8   : > { %1371 = vst [vmem:[#allocation2 + $0x74] sm:$0xf] %v1370_v48  ;;  %v10132_v1 = vld [vmem:[#allocation2 + $0x60] sm:$0xff]  }
 0x1c9   : > { %v2528_v48 = vld [vmem:[#allocation3 + $0x70] sm:$0x1] }
 0x1ca   : > { %v1270_v13 = vpop.permute.xlu1 %1269  ;;  %v10115_v63 = vld [vmem:[#allocation2 + $0x68] sm:$0xff]  }
 0x1cb   : > { %1368 = vst.msk [vmem:[#allocation2 + $0x70] sm:$0xf] %vm1313_vm5, %v1270_v13  ;;  %v10116_v37 = vld [vmem:[#allocation2 + $0x68] sm:$0xff]   ;;  %v2532_v13 = vsel %vm11589_vm15, 0, %v2531_v5 }
 0x1cc   : > { %v10133_v7 = vld [vmem:[#allocation2 + $0x68] sm:$0xff]   ;;  %2533 = vst [vmem:[#allocation3 + $0x80] sm:$0x1] %v2532_v13 }
 0x1cd   : > { %9778 = vmatmul.mubr.msk.bf16.gmra.mxu1 %vm1506_vm11, %v10114_v40  ;;  %9748 = vmatmul.mubr.msk.bf16.gmra.mxu0 %vm1506_vm11, %v10115_v63  ;;  %v2529_v40 = vsel %vm11589_vm15, 0, %v2528_v48  ;;  %v2581_v63 = vld [vmem:[#allocation3 + $0x8c] sm:$0x8]  ;;  %v2600_v48 = vsel %vm11598_vm3, 0, %v2599_v61 }
 0x1ce   : > { %v1274_v46 = vpop.permute.xlu1 %1273  ;;  %9781 = vmatprep.mubr.msk.bf16.mxu1 %vm1506_vm11, %v10116_v37  ;;  %2530 = vst [vmem:[#allocation3 + $0x70] sm:$0x1] %v2529_v40  ;;  %2601 = vst [vmem:[#allocation3 + $0xec] sm:$0x8] %v2600_v48  ;;  %v2603_v48 = vsel %vm11598_vm3, 0, %v2602_v27 }
 0x1cf   : > { %1372 = vst.msk [vmem:[#allocation2 + $0x78] sm:$0xf] %vm1313_vm5, %v1274_v46  ;;  %v2582_v46 = vsel %vm11598_vm3, 0, %v2581_v63  ;;  %2604 = vst [vmem:[#allocation3 + $0xfc] sm:$0x8] %v2603_v48 }
 0x1d0   : > { %2583 = vst [vmem:[#allocation3 + $0x8c] sm:$0x8] %v2582_v46 }
 0x1d2   : > { %v1002_v2 = vpop.permute.xlu1 %1001  ;;  %v10117_v41 = vld [vmem:[#allocation2 + $0x70] sm:$0xff]  }
 0x1d3   : > { %1068 = vst.msk [vmem:[#allocation2 + $0x80] sm:$0xf] %vm1037_vm2, %v1002_v2  ;;  %v10118_v53 = vld [vmem:[#allocation2 + $0x70] sm:$0xff]   ;;  %9751 = vmatprep.mubr.msk.bf16.mxu0 %vm1506_vm11, %v10117_v41 }
 0x1d4   : > { %v10134_v42 = vld [vmem:[#allocation2 + $0x70] sm:$0xff]  }
 0x1d5   : > { %9782 = vmatmul.mubr.msk.bf16.gmra.mxu1 %vm1506_vm11, %v10118_v53 }
 0x1d6   : > { %v1278_v15 = vpop.permute.xlu1 %1277  ;;  %v10119_v17 = vld [vmem:[#allocation2 + $0x78] sm:$0xff]  }
 0x1d7   : > { %1376 = vst.msk [vmem:[#allocation2 + $0x80] sm:$0xf] %vm1313_vm5, %v1278_v15  ;;  %v10120_v55 = vld [vmem:[#allocation2 + $0x78] sm:$0xff]   ;;  %9752 = vmatmul.mubr.msk.bf16.gmra.mxu0 %vm1506_vm11, %v10119_v17  ;;  %v2578_v15 = vld [vmem:[#allocation3 + $0x7c] sm:$0x8] }
 0x1d8   : > { %9785 = vmatprep.mubr.msk.bf16.mxu1 %vm1506_vm11, %v10120_v55  ;;  %9791 = vmatprep.mubr.msk.bf16.mxu0 %vm1506_vm11, %v10121_v32  ;;  %v10135_v11 = vld [vmem:[#allocation2 + $0x78] sm:$0xff]   ;;  %v2579_v17 = vsel %vm11598_vm3, 0, %v2578_v15  ;;  %v2537_v32 = vld [vmem:[#allocation3 + $0xa0] sm:$0x1]  ;;  %v2596_v15 = vld [vmem:[#allocation3 + $0xdc] sm:$0x8] }
 0x1d9   : > { %2580 = vst [vmem:[#allocation3 + $0x7c] sm:$0x8] %v2579_v17  ;;  %v2597_v17 = vsel %vm11598_vm3, 0, %v2596_v15 }
 0x1da   : > { %2598 = vst [vmem:[#allocation3 + $0xdc] sm:$0x8] %v2597_v17 }
 0x1de   : > { %v10122_v44 = vld [vmem:[#allocation2 + $0x80] sm:$0xff]  }
 0x1df   : > { %9786 = vmatmul.mubr.msk.bf16.gmra.mxu1 %vm1506_vm11, %v10122_v44  ;;  %9792 = vmatmul.mubr.msk.bf16.vlgmr.msra.gmra.mxu0 %vm1506_vm11, %v10123_v58  ;;  %v10136_v45 = vld [vmem:[#allocation2 + $0x80] sm:$0xff]   ;;  %v2538_v44 = vsel %vm11589_vm15, 0, %v2537_v32 }
 0x1e0   : > { %9795 = vmatprep.mubr.msk.bf16.mxu0 %vm1506_vm11, %v10124_v21  ;;  %2539 = vst [vmem:[#allocation3 + $0xa0] sm:$0x1] %v2538_v44 }
 0x1e7   : > { %9796 = vmatmul.mubr.msk.bf16.gmra.mxu0 %vm1506_vm11, %v10125_v52  ;;  %v2534_v52 = vld [vmem:[#allocation3 + $0x90] sm:$0x1] }
 0x1e8   : > { %9799 = vmatprep.mubr.msk.bf16.mxu0 %vm1506_vm11, %v10126_v6 }
 0x1ef   : > { %9800 = vmatmul.mubr.msk.bf16.gmra.mxu0 %vm1506_vm11, %v10127_v57  ;;  %v2535_v57 = vsel %vm11589_vm15, 0, %v2534_v52  ;;  %v2555_v52 = vld [vmem:[#allocation3 + $0x100] sm:$0x1] }
 0x1f0   : > { %9803 = vmatprep.mubr.msk.bf16.mxu0 %vm1506_vm11, %v10128_v28  ;;  %v2587_v28 = vld [vmem:[#allocation3 + $0xac] sm:$0x8]  ;;  %2536 = vst [vmem:[#allocation3 + $0x90] sm:$0x1] %v2535_v57  ;;  %v2552_v57 = vld [vmem:[#allocation3 + $0xf0] sm:$0x1] }
 0x1f7   : > { %9804 = vmatmul.mubr.msk.bf16.gmra.mxu0 %vm1506_vm11, %v10129_v3  ;;  %v2588_v3 = vsel %vm11598_vm3, 0, %v2587_v28 }
 0x1f8   : > { %9807 = vmatprep.mubr.msk.bf16.mxu0 %vm1506_vm11, %v10130_v23  ;;  %2589 = vst [vmem:[#allocation3 + $0xac] sm:$0x8] %v2588_v3 }
 0x1ff   : > { %9808 = vmatmul.mubr.msk.bf16.gmra.mxu0 %vm1506_vm11, %v10131_v4 }
 0x200   : > { %9811 = vmatprep.mubr.msk.bf16.mxu0 %vm1506_vm11, %v10132_v1 }
 0x207   : > { %9812 = vmatmul.mubr.msk.bf16.gmra.mxu0 %vm1506_vm11, %v10133_v7  ;;  %v2584_v7 = vld [vmem:[#allocation3 + $0x9c] sm:$0x8] }
 0x208   : > { %9815 = vmatprep.mubr.msk.bf16.mxu0 %vm1506_vm11, %v10134_v42  ;;  %v11614_v60 = vpop.f32.mrf.mxu0 }
 0x209   : > { %v1605_v15 = vadd.f32 %v11614_v60, %v11755_v20  ;;  %v10139_v60 = vld [vmem:[#allocation5 + $0x30] sm:$0xff]  }
 0x20a   : > { %v11622_v35 = vpop.f32.mrf.mxu0 }
 0x20b   : > { %v1597_v17 = vadd.f32 %v11755_v20, %v11622_v35 }
 0x20c   : > { %v11624_v26 = vpop.f32.mrf.mxu0 }
 0x20e   : > { %v11628_v0 = vpop.f32.mrf.mxu0 }
 0x20f   : > { %9816 = vmatmul.mubr.msk.bf16.gmra.mxu0 %vm1506_vm11, %v10135_v11  ;;  %v2585_v11 = vsel %vm11598_vm3, 0, %v2584_v7  ;;  %v2556_v7 = vsel %vm11589_vm15, 0, %v2555_v52  ;;  %v10138_v52 = vld [vmem:[#allocation5 + $0x38] sm:$0xff]   ;;  %v1600_v24 = vadd.f32 %v11755_v20, %v11628_v0 }
 0x210   : > { %9819 = vmatprep.mubr.msk.bf16.mxu0 %vm1506_vm11, %v10136_v45  ;;  %2586 = vst [vmem:[#allocation3 + $0x9c] sm:$0x8] %v2585_v11  ;;  %v2553_v11 = vsel %vm11589_vm15, 0, %v2552_v57  ;;  %2557 = vst [vmem:[#allocation3 + $0x100] sm:$0x1] %v2556_v7  ;;  %v10143_v7 = vld [vmem:[#allocation5 + $0x98] sm:$0xff]   ;;  %3742 = vmatpush1.bf16.msra.mxu1 %v10138_v52 }
 0x211   : > { %2554 = vst [vmem:[#allocation3 + $0xf0] sm:$0x1] %v2553_v11  ;;  %v1608_v11 = vadd.f32 %v11624_v26, %v11755_v20  ;;  %4224 = vmatpush1.bf16.msra.mxu0 %v10143_v7 }
 0x217   : > { %9820 = vmatmul.mubr.msk.bf16.gmra.mxu0 %vm1506_vm11, %v10137_v25  ;;  %v2543_v25 = vld [vmem:[#allocation3 + $0xc0] sm:$0x1]  ;;  %vm2976_vm11 = vcmask 519168  }
 0x218   : > { %v2544_v19 = vsel %vm11589_vm15, 0, %v2543_v25  ;;  %vm11950_vm2 = vmand %vm2976_vm11, %vm874_vm7 }
 0x219   : > { %2545 = vst [vmem:[#allocation3 + $0xc0] sm:$0x1] %v2544_v19  ;;  %vm11981_vm5 = vmand %vm2976_vm11, %vm1070_vm9 }
 0x21a   : > { %vm12636_vm15 = vmand %vm4989_vm8, %vm402_vm1  ;;  %vm5039_vm1 = vcmask 1043459  }
 0x21b   : > { %vm12655_vm0 = vmand %vm5039_vm1, %vm453_vm4 }
 0x21c   : > { %vm12829_vm4 = vmand %vm1555_vm14, %vm874_vm7 }
 0x21d   : > { %v11630_v47 = vpop.f32.mrf.mxu1  ;;  %vm12843_vm7 = vmand %vm1555_vm14, %vm1070_vm9 }
 0x21e   : > { %v11778_v62 = vadd.f32 %v11630_v47, %v1605_v15  ;;  %v11793_v47 = vld [vmem:[#allocation4] sm:$0xff] }
 0x21f   : > { %v11638_v37 = vpop.f32.mrf.mxu1  ;;  %3743 = vmatprep.subr.bf16.mxu1 %v11793_v47  ;;  %4225 = vmatprep.subr.bf16.mxu0 %v11793_v47 }
 0x220   : > { %v11781_v59 = vadd.f32 %v11638_v37, %v1597_v17  ;;  %v10145_v37 = vld [vmem:[#allocation5 + $0x90] sm:$0xff]   ;;  %3744 = vmatpush1.bf16.msra.mxu1 %v10139_v60 }
 0x221   : > { %v11644_v41 = vpop.f32.mrf.mxu1  ;;  %3745 = vmatprep.subr.bf16.mxu1 %v11793_v47  ;;  %4226 = vmatpush1.bf16.msra.mxu0 %v10145_v37 }
 0x222   : > { %v11797_v15 = vadd.f32 %v11644_v41, %v1608_v11  ;;  %4227 = vmatprep.subr.bf16.mxu0 %v11793_v47 }
 0x223   : > { %v11650_v55 = vpop.f32.mrf.mxu1 }
 0x234   : > { %v11632_v56 = vpop.f32.mrf.mxu0 }
 0x235   : > { %v1621_v35 = vadd.f32 %v11632_v56, %v11755_v20  ;;  %v11800_v56 = vadd.f32 %v11650_v55, %v1600_v24 }
 0x236   : > { %v11642_v2 = vpop.f32.mrf.mxu0 }
 0x237   : > { %v1613_v27 = vadd.f32 %v11755_v20, %v11642_v2 }
 0x238   : > { %v11646_v53 = vpop.f32.mrf.mxu0 }
 0x239   : > { %v1624_v26 = vadd.f32 %v11646_v53, %v11755_v20 }
 0x23a   : > { %v11652_v58 = vpop.f32.mrf.mxu0 }
 0x23b   : > { %v1616_v2 = vadd.f32 %v11755_v20, %v11652_v58 }
 0x249   : > { %v11656_v21 = vpop.f32.mrf.mxu1 }
 0x24a   : > { %v11808_v17 = vadd.f32 %v11656_v21, %v1621_v35 }
 0x24b   : > { %v11664_v23 = vpop.f32.mrf.mxu1 }
 0x24c   : > { %v11811_v52 = vadd.f32 %v11664_v23, %v1613_v27 }
 0x24d   : > { %v11668_v1 = vpop.f32.mrf.mxu1 }
 0x24e   : > { %v11814_v41 = vadd.f32 %v11668_v1, %v1624_v26  ;;  %v10140_v1 = vld [vmem:[#allocation5 + $0x28] sm:$0xff]  }
 0x24f   : > { %v11674_v45 = vpop.f32.mrf.mxu1  ;;  %3746 = vmatpush1.bf16.msra.mxu1 %v10140_v1 }
 0x250   : > { %3747 = vmatprep.subr.bf16.mxu1 %v11793_v47 }
 0x25c   : > { %v11658_v6 = vpop.f32.mrf.mxu0 }
 0x25d   : > { %v1637_v53 = vadd.f32 %v11658_v6, %v11755_v20  ;;  %v11823_v6 = vadd.f32 %v11674_v45, %v1616_v2 }
 0x25e   : > { %v11666_v4 = vpop.f32.mrf.mxu0 }
 0x25f   : > { %v1629_v55 = vadd.f32 %v11755_v20, %v11666_v4 }
 0x260   : > { %v11670_v42 = vpop.f32.mrf.mxu0 }
 0x261   : > { %v1640_v21 = vadd.f32 %v11670_v42, %v11755_v20  ;;  %v10147_v42 = vld [vmem:[#allocation5 + $0x88] sm:$0xff]  }
 0x262   : > { %v11676_v29 = vpop.f32.mrf.mxu0  ;;  %4228 = vmatpush1.bf16.msra.mxu0 %v10147_v42 }
 0x263   : > { %v1632_v23 = vadd.f32 %v11755_v20, %v11676_v29  ;;  %4229 = vmatprep.subr.bf16.mxu0 %v11793_v47 }
 0x26d   : > { %v11680_v54 = vpop.f32.mrf.mxu1 }
 0x26e   : > { %v11830_v11 = vadd.f32 %v11680_v54, %v1637_v53 }
 0x26f   : > { %v11688_v12 = vpop.f32.mrf.mxu1 }
 0x270   : > { %v11682_v36 = vpop.f32.mrf.mxu0  ;;  %v11833_v4 = vadd.f32 %v11688_v12, %v1629_v55 }
 0x271   : > { %v11692_v39 = vpop.f32.mrf.mxu1  ;;  %v1653_v24 = vadd.f32 %v11682_v36, %v11755_v20 }
 0x272   : > { %v11690_v38 = vpop.f32.mrf.mxu0  ;;  %v11841_v29 = vadd.f32 %v11692_v39, %v1640_v21 }
 0x273   : > { %v11700_v16 = vpop.f32.mrf.mxu1  ;;  %v1645_v45 = vadd.f32 %v11755_v20, %v11690_v38 }
 0x274   : > { %v11694_v50 = vpop.f32.mrf.mxu0  ;;  %v11844_v54 = vadd.f32 %v11700_v16, %v1632_v23  ;;  %v10160_v16 = vld [vmem:[#allocation3 + $0x4] ss:$8 sps:$4 sm:$0xff]  }
 0x275   : > { %v1656_v12 = vadd.f32 %v11694_v50, %v11755_v20  ;;  %8777 = vmatprep.mubr.msk.bf16.mxu1 %vm3692_vm10, %v10160_v16 }
 0x276   : > { %v11702_v43 = vpop.f32.mrf.mxu0 }
 0x277   : > { %v1648_v36 = vadd.f32 %v11755_v20, %v11702_v43 }
 0x27d   : > { %v11704_v31 = vpop.f32.mrf.mxu1  ;;  %v11706_v14 = vpop.f32.mrf.mxu0 }
 0x27e   : > { %v11852_v38 = vadd.f32 %v11704_v31, %v1653_v24  ;;  %v1669_v60 = vadd.f32 %v11706_v14, %v11755_v20  ;;  %v10141_v14 = vld [vmem:[#allocation5 + $0x20] sm:$0xff]   ;;  %v10142_v24 = vld [vmem:[#allocation5 + $0x18] sm:$0xff]  }
 0x27f   : > { %v11710_v9 = vpop.f32.mrf.mxu1  ;;  %v11712_v5 = vpop.f32.mrf.mxu0  ;;  %3748 = vmatpush1.bf16.msra.mxu1 %v10141_v14  ;;  %v10144_v14 = vld [vmem:[#allocation5 + $0x10] sm:$0xff]  }
 0x280   : > { %v11857_v39 = vadd.f32 %v11710_v9, %v1645_v45  ;;  %v1661_v50 = vadd.f32 %v11755_v20, %v11712_v5  ;;  %3749 = vmatprep.subr.bf16.mxu1 %v11793_v47 }
 0x281   : > { %v11716_v13 = vpop.f32.mrf.mxu1  ;;  %v11718_v40 = vpop.f32.mrf.mxu0 }
 0x282   : > { %v11862_v37 = vadd.f32 %v11716_v13, %v1656_v12  ;;  %v1672_v43 = vadd.f32 %v11718_v40, %v11755_v20  ;;  %v10148_v40 = vld [vmem:[#allocation5 + $0x80] sm:$0xff]  }
 0x283   : > { %v11720_v63 = vpop.f32.mrf.mxu1  ;;  %v11722_v46 = vpop.f32.mrf.mxu0  ;;  %4230 = vmatpush1.bf16.msra.mxu0 %v10148_v40  ;;  %3750 = vmatpush1.bf16.msra.mxu1 %v10142_v24 }
 0x284   : > { %v11867_v31 = vadd.f32 %v11720_v63, %v1648_v36  ;;  %v1664_v9 = vadd.f32 %v11755_v20, %v11722_v46  ;;  %4231 = vmatprep.subr.bf16.mxu0 %v11793_v47  ;;  %3751 = vmatprep.subr.bf16.mxu1 %v11793_v47 }
 0x285   : > { %v11726_v32 = vpop.f32.mrf.mxu1  ;;  %v11728_v44 = vpop.f32.mrf.mxu0 }
 0x286   : > { %v11872_v2 = vadd.f32 %v11726_v32, %v1669_v60  ;;  %v1685_v5 = vadd.f32 %v11728_v44, %v11755_v20 }
 0x287   : > { %v11730_v28 = vpop.f32.mrf.mxu1  ;;  %v11732_v3 = vpop.f32.mrf.mxu0  ;;  %3752 = vmatpush1.bf16.msra.mxu1 %v10144_v14 }
 0x288   : > { %v11878_v63 = vadd.f32 %v11730_v28, %v1661_v50  ;;  %v1677_v55 = vadd.f32 %v11755_v20, %v11732_v3  ;;  %3753 = vmatprep.subr.bf16.mxu1 %v11793_v47 }
 0x289   : > { %v11738_v25 = vpop.f32.mrf.mxu1  ;;  %v11740_v19 = vpop.f32.mrf.mxu0 }
 0x28a   : > { %v11883_v46 = vadd.f32 %v11738_v25, %v1672_v43  ;;  %v1688_v32 = vadd.f32 %v11740_v19, %v11755_v20 }
 0x28b   : > { %v11742_v33 = vpop.f32.mrf.mxu1  ;;  %v11744_v10 = vpop.f32.mrf.mxu0 }
 0x28c   : > { %v11890_v44 = vadd.f32 %v11742_v33, %v1664_v9  ;;  %v1680_v28 = vadd.f32 %v11755_v20, %v11744_v10 }
 0x28d   : > { %v11746_v51 = vpop.f32.mrf.mxu1  ;;  %v11748_v22 = vpop.f32.mrf.mxu0 }
 0x28e   : > { %v11895_v21 = vadd.f32 %v11746_v51, %v1685_v5  ;;  %v1701_v25 = vadd.f32 %v11748_v22, %v11755_v20 }
 0x28f   : > { %v11757_v18 = vpop.f32.mrf.mxu1  ;;  %v11759_v49 = vpop.f32.mrf.mxu0 }
 0x290   : > { %v11900_v1 = vadd.f32 %v11757_v18, %v1677_v55  ;;  %v1693_v19 = vadd.f32 %v11755_v20, %v11759_v49  ;;  %v10150_v18 = vld [vmem:[#allocation5 + $0x78] sm:$0xff]  }
 0x291   : > { %v11761_v8 = vpop.f32.mrf.mxu1  ;;  %v11763_v61 = vpop.f32.mrf.mxu0  ;;  %4232 = vmatpush1.bf16.msra.mxu0 %v10150_v18 }
 0x292   : > { %v11906_v10 = vadd.f32 %v11761_v8, %v1688_v32  ;;  %v1704_v51 = vadd.f32 %v11763_v61, %v11755_v20  ;;  %4233 = vmatprep.subr.bf16.mxu0 %v11793_v47 }
 0x293   : > { %v11771_v57 = vpop.f32.mrf.mxu1  ;;  %v11789_v48 = vpop.f32.mrf.mxu0 }
 0x294   : > { %v11911_v45 = vadd.f32 %v11771_v57, %v1680_v28  ;;  %v1696_v49 = vadd.f32 %v11755_v20, %v11789_v48 }
 0x295   : > { %v11791_v0 = vpop.f32.mrf.mxu1 }
 0x297   : > { %v11818_v7 = vpop.f32.mrf.mxu1  ;;  %v11820_v58 = vpop.f32.mrf.mxu0 }
 0x298   : > { %v11922_v61 = vadd.f32 %v11818_v7, %v1693_v19  ;;  %v1717_v57 = vadd.f32 %v11820_v58, %v11755_v20 }
 0x299   : > { %v9784_v35 = vpop.f32.mrf.mxu1  ;;  %v1708_v27 = vpop.f32.mrf.mxu0 }
 0x29a   : > { %v11926_v36 = vadd.f32 %v9784_v35, %v1704_v51  ;;  %v1709_v60 = vadd.f32 %v11755_v20, %v1708_v27  ;;  %v10152_v27 = vld [vmem:[#allocation5 + $0x70] sm:$0xff]  }
 0x29b   : > { %v9754_v26 = vpop.f32.mrf.mxu0  ;;  %v2027_v53 = vpop.f32.mrf.mxu1  ;;  %v2983_v51 = vld [vmem:[#allocation3 + $0x20] sm:$0xf]  ;;  %4234 = vmatpush1.bf16.msra.mxu0 %v10152_v27 }
 0x29c   : > { %v11929_v50 = vadd.f32 %v2027_v53, %v1696_v49  ;;  %v1720_v7 = vadd.f32 %v9754_v26, %v11755_v20  ;;  %4235 = vmatprep.subr.bf16.mxu0 %v11793_v47 }
 0x29d   : > { %v1711_v13 = vpop.f32.mrf.mxu0 }
 0x29e   : > { %v1712_v9 = vadd.f32 %v11755_v20, %v1711_v13 }
 0x29f   : > { %v9787_v3 = vpop.f32.mrf.mxu1  ;;  %v9793_v23 = vpop.f32.mrf.mxu0 }
 0x2a0   : > { %v2422_v33 = vadd.f32 %v9793_v23, %v11778_v62  ;;  %v11917_v62 = vadd.f32 %v11791_v0, %v1701_v25  ;;  %v11934_v5 = vadd.f32 %v9787_v3, %v1717_v57 }
 0x2a1   : > { %v2040_v22 = vpop.f32.mrf.mxu1  ;;  %v2293_v42 = vpop.f32.mrf.mxu0 }
 0x2a2   : > { %v2454_v8 = vmax.f32 %v2422_v33, 0.0  ;;  %v2420_v12 = vadd.f32 %v2293_v42, %v11781_v59  ;;  %v10146_v33 = vld [vmem:[#allocation5 + $0x8] sm:$0xff]  }
 0x2a3   : > { %v9788_v16 = vpop.f32.mrf.mxu1  ;;  %v9794_v48 = vpop.f32.mrf.mxu0  ;;  %3754 = vmatpush1.bf16.msra.mxu1 %v10146_v33 }
 0x2a4   : > { %v9200_v0 = vpack.c.bf16 %v2454_v8, %v2454_v8  ;;  %v2452_v43 = vmax.f32 %v2420_v12, 0.0  ;;  %v2423_v59 = vadd.f32 %v9794_v48, %v11797_v15  ;;  %v11938_v15 = vadd.f32 %v2040_v22, %v1709_v60  ;;  %v10154_v8 = vld [vmem:[#allocation5 + $0x68] sm:$0xff]   ;;  %v2978_v48 = vld [vmem:[#allocation3 + $0x10] sm:$0xf]  ;;  %3755 = vmatprep.subr.bf16.mxu1 %v11793_v47 }
 0x2a5   : > { %v2043_v58 = vpop.f32.mrf.mxu1  ;;  %v2296_v35 = vpop.f32.mrf.mxu0  ;;  %v11940_v26 = vadd.f32 %v9788_v16, %v1720_v7  ;;  %4236 = vmatpush1.bf16.msra.mxu0 %v10154_v8 }
 0x2a6   : > { %v2705_v53 = vshrl.u32 %v9200_v0, 16  ;;  %v2708_v40 = vshll.u32 %v9200_v0, 16  ;;  %v9198_v55 = vpack.c.bf16 %v2452_v43, %v2452_v43  ;;  %v2455_v32 = vmax.f32 %v2423_v59, 0.0  ;;  %4237 = vmatprep.subr.bf16.mxu0 %v11793_v47 }
 0x2a7   : > { %v11942_v20 = vadd.f32 %v2043_v58, %v1712_v9  ;;  %v2421_v13 = vadd.f32 %v2296_v35, %v11800_v56  ;;  %v9797_v28 = vpop.f32.mrf.mxu0 }
 0x2a8   : > { %v11945_v3 = vrot.slane %v2705_v53, 7  ;;  %v3181_v23 = vrot.slane %v2705_v53, 4  ;;  %v3182_v25 = vrot.slane %v2708_v40, 5  ;;  %v2689_v19 = vshrl.u32 %v9198_v55, 16  ;;  %3043 = vrot.lane.b32.xlu0 %v9198_v55, %s10517_s10  ;;  %v10149_v53 = vld [vmem:[#allocation5] sm:$0xff]  }
 0x2a9   : > { %v2692_v22 = vshll.u32 %v9198_v55, 16  ;;  %v11954_v56 = vpack.c.bf16 %v2455_v32, %v2455_v32  ;;  %v2453_v42 = vmax.f32 %v2421_v13, 0.0  ;;  %v2426_v18 = vadd.f32 %v9797_v28, %v11808_v17  ;;  %v2309_v49 = vpop.f32.mrf.mxu0  ;;  %3756 = vmatpush1.bf16.msra.mxu1 %v10149_v53 }
 0x2aa   : > { %v2710_v12 = vor.u32 %v2708_v40, %v11945_v3  ;;  %v3183_v60 = vor.u32 %v3182_v25, %v3181_v23  ;;  %v11960_v16 = vrot.slane %v2689_v19, 7  ;;  %v3172_v43 = vrot.slane %v2689_v19, 4  ;;  %v10156_v23 = vld [vmem:[#allocation5 + $0x60] sm:$0xff]   ;;  %3765 = vmatprep.subr.bf16.mxu1 %v11793_v47 }
 0x2ab   : > { %v3173_v59 = vrot.slane %v2692_v22, 5  ;;  %v2713_v14 = vshrl.u32 %v11954_v56, 16  ;;  %v2716_v17 = vshll.u32 %v11954_v56, 16  ;;  %v9798_v7 = vpop.f32.mrf.mxu0  ;;  %v9199_v19 = vpack.c.bf16 %v2453_v42, %v2453_v42  ;;  %4238 = vmatpush1.bf16.msra.mxu0 %v10156_v23 }
 0x2ac   : > { %v2984_v9 = vsel %vm11950_vm2, %v2710_v12, %v2983_v51  ;;  %v3184_v58 = vrot.slane %v3183_v60, 4  ;;  %v2694_v35 = vor.u32 %v2692_v22, %v11960_v16  ;;  %3047 = vrot.lane.b32.xlu0 %v9200_v0, %s10517_s10  ;;  %v2458_v51 = vmax.f32 %v2426_v18, 0.0  ;;  %4247 = vmatprep.subr.bf16.mxu0 %v11793_v47 }
 0x2ad   : > { %2985 = vst [vmem:[#allocation3 + $0x20] sm:$0xf] %v2984_v9  ;;  %v3174_v40 = vor.u32 %v3173_v59, %v3172_v43  ;;  %v2715_v55 = vrot.slane %v2713_v14, 7  ;;  %v3185_v32 = vrot.slane %v2716_v17, 5  ;;  %v3187_v13 = vrot.slane %v2713_v14, 4  ;;  %v2312_v28 = vpop.f32.mrf.mxu0  ;;  %3045 = vrot.lane.b32.xlu1 %v9199_v19, %s10517_s10  ;;  %v10151_v59 = vld [vmem:[#allocation5 + $0x58] sm:$0xff]  }
 0x2ae   : > { %v2979_v25 = vsel %vm11950_vm2, %v2694_v35, %v2978_v48  ;;  %v2424_v22 = vadd.f32 %v2309_v49, %v11811_v52  ;;  %v3354_v52 = vld [vmem:[#allocation3 + $0x2c] sm:$0xf]  ;;  %v2697_v42 = vshrl.u32 %v9199_v19, 16  ;;  %v2700_v18 = vshll.u32 %v9199_v19, 16  ;;  %3766 = vmatpush2.bf16.msra.mxu1 %v10151_v59  ;;  %v10162_v59 = vld [vmem:[#allocation5 + $0xb0] sm:$0xff]  }
 0x2af   : > { %v3175_v0 = vrot.slane %v3174_v40, 4  ;;  %2980 = vst [vmem:[#allocation3 + $0x10] sm:$0xf] %v2979_v25  ;;  %v11975_v33 = vor.u32 %v2716_v17, %v2715_v55  ;;  %v3186_v12 = vsel %vm10711_vm13, %v3184_v58, %v3185_v32  ;;  %v3188_v60 = vor.u32 %v3187_v13, %v3185_v32  ;;  %v9801_v43 = vpop.f32.mrf.mxu0  ;;  %v10161_v13 = vld [vmem:[#allocation5 + $0xb8] sm:$0xff]   ;;  %3767 = vmatprep.subr.bf16.mxu1 %v11793_v47 }
 0x2b0   : > { %3353 = vst.msk [vmem:[#allocation3 + $0x24] sm:$0xf] %vm2976_vm11, %v3186_v12  ;;  %v11986_v49 = vpack.c.bf16 %v2458_v51, %v2458_v51  ;;  %v2456_v48 = vmax.f32 %v2424_v22, 0.0  ;;  %v2427_v17 = vadd.f32 %v9798_v7, %v11814_v41  ;;  %v11991_v9 = vadd.f32 %v2312_v28, %v11823_v6  ;;  %v3350_v51 = vld [vmem:[#allocation3 + $0x1c] sm:$0xf]  ;;  %v10153_v12 = vld [vmem:[#allocation5 + $0x50] sm:$0xff]   ;;  %4248 = vmatpush2.bf16.msra.mxu0 %v10161_v13 }
 0x2b1   : > { %v3189_v14 = vrot.slane %v3188_v60, 4  ;;  %v11994_v58 = vadd.f32 %v9801_v43, %v11830_v11  ;;  %v11996_v35 = vpop.f32.mrf.mxu0  ;;  %v2699_v40 = vrot.slane %v2697_v42, 7  ;;  %v3176_v55 = vrot.slane %v2700_v18, 5  ;;  %3049 = vrot.lane.b32.xlu1 %v11954_v56, %s10517_s10  ;;  %v2991_v60 = vld [vmem:[#allocation3 + $0x40] sm:$0xf]  ;;  %4249 = vmatprep.subr.bf16.mxu0 %v11793_v47 }
 0x2b2   : > { %v3178_v32 = vrot.slane %v2697_v42, 4  ;;  %v2737_v53 = vshrl.u32 %v11986_v49, 16  ;;  %v2740_v6 = vshll.u32 %v11986_v49, 16  ;;  %v9202_v11 = vpack.c.bf16 %v2456_v48, %v2456_v48  ;;  %3768 = vmatpush2.bf16.msra.mxu1 %v10153_v12 }
 0x2b3   : > { %v3355_v41 = vsel %vm11981_vm5, %v3189_v14, %v3354_v52  ;;  %v2459_v7 = vmax.f32 %v2427_v17, 0.0  ;;  %v12004_v28 = vpop.f32.mrf.mxu0  ;;  %v12006_v25 = vor.u32 %v2700_v18, %v2699_v40  ;;  %v3177_v23 = vsel %vm10711_vm13, %v3175_v0, %v3176_v55  ;;  %3769 = vmatprep.subr.bf16.mxu1 %v11793_v47 }
 0x2b4   : > { %3356 = vst [vmem:[#allocation3 + $0x2c] sm:$0xf] %v3355_v41  ;;  %v3179_v19 = vor.u32 %v3178_v32, %v3176_v55  ;;  %v12010_v22 = vrot.slane %v2737_v53, 7  ;;  %3348 = vst.msk [vmem:[#allocation3 + $0x14] sm:$0xf] %vm2976_vm11, %v3177_v23  ;;  %v3199_v43 = vrot.slane %v2737_v53, 4  ;;  %3051 = vrot.lane.b32.xlu0 %v9202_v11, %s10517_s10  ;;  %4250 = vmatpush2.bf16.msra.mxu0 %v10162_v59 }
 0x2b5   : > { %v3200_v52 = vrot.slane %v2740_v6, 5  ;;  %v2721_v42 = vshrl.u32 %v9202_v11, 16  ;;  %v2724_v18 = vshll.u32 %v9202_v11, 16  ;;  %v2328_v48 = vpop.f32.mrf.mxu0  ;;  %v12019_v56 = vpack.c.bf16 %v2459_v7, %v2459_v7  ;;  %v2987_v23 = vld [vmem:[#allocation3 + $0x30] sm:$0xf]  ;;  %4251 = vmatprep.subr.bf16.mxu0 %v11793_v47 }
 0x2b6   : > { %v3180_v0 = vrot.slane %v3179_v19, 4  ;;  %v2742_v14 = vor.u32 %v2740_v6, %v12010_v22  ;;  %v10155_v19 = vld [vmem:[#allocation5 + $0x48] sm:$0xff]   ;;  %v2457_v12 = vmax.f32 %v11991_v9, 0.0 }
 0x2b7   : > { %v3201_v40 = vor.u32 %v3200_v52, %v3199_v43  ;;  %v12021_v55 = vrot.slane %v2721_v42, 7  ;;  %v3190_v32 = vrot.slane %v2721_v42, 4  ;;  %v3191_v53 = vrot.slane %v2724_v18, 5  ;;  %v9805_v41 = vpop.f32.mrf.mxu0  ;;  %3770 = vmatpush2.bf16.msra.mxu1 %v10155_v19 }
 0x2b8   : > { %v3351_v11 = vsel %vm11981_vm5, %v3180_v0, %v3350_v51  ;;  %v2992_v6 = vsel %vm11950_vm2, %v2742_v14, %v2991_v60  ;;  %v2745_v7 = vshrl.u32 %v12019_v56, 16  ;;  %v2748_v13 = vshll.u32 %v12019_v56, 16  ;;  %3055 = vrot.lane.b32.xlu0 %v11986_v49, %s10517_s10  ;;  %3771 = vmatprep.subr.bf16.mxu1 %v11793_v47 }
 0x2b9   : > { %3352 = vst [vmem:[#allocation3 + $0x1c] sm:$0xf] %v3351_v11  ;;  %v3202_v43 = vrot.slane %v3201_v40, 4  ;;  %2993 = vst [vmem:[#allocation3 + $0x40] sm:$0xf] %v2992_v6  ;;  %v2726_v52 = vor.u32 %v2724_v18, %v12021_v55  ;;  %v3192_v17 = vor.u32 %v3191_v53, %v3190_v32  ;;  %v12034_v51 = vpop.f32.mrf.mxu0  ;;  %v10164_v40 = vld [vmem:[#allocation5 + $0xa8] sm:$0xff]   ;;  %v2428_v49 = vadd.f32 %v11996_v35, %v11833_v4 }
 0x2ba   : > { %v2747_v60 = vrot.slane %v2745_v7, 7  ;;  %v3203_v0 = vrot.slane %v2748_v13, 5  ;;  %v3205_v14 = vrot.slane %v2745_v7, 4  ;;  %v2462_v32 = vmax.f32 %v11994_v58, 0.0  ;;  %v3362_v58 = vld [vmem:[#allocation3 + $0x4c] sm:$0xf]  ;;  %4252 = vmatpush2.bf16.msra.mxu0 %v10164_v40 }
 0x2bb   : > { %v2988_v18 = vsel %vm11950_vm2, %v2726_v52, %v2987_v23  ;;  %v3193_v11 = vrot.slane %v3192_v17, 4  ;;  %v12043_v53 = vpop.f32.mrf.mxu0  ;;  %v9203_v7 = vpack.c.bf16 %v2457_v12, %v2457_v12  ;;  %v10157_v23 = vld [vmem:[#allocation5 + $0x40] sm:$0xff]   ;;  %v2460_v52 = vmax.f32 %v2428_v49, 0.0  ;;  %4253 = vmatprep.subr.bf16.mxu0 %v11793_v47 }
 0x2bc   : > { %2989 = vst [vmem:[#allocation3 + $0x30] sm:$0xf] %v2988_v18  ;;  %v12046_v6 = vor.u32 %v2748_v13, %v2747_v60  ;;  %v3204_v9 = vsel %vm10711_vm13, %v3202_v43, %v3203_v0  ;;  %v3206_v59 = vor.u32 %v3205_v14, %v3203_v0  ;;  %v9208_v17 = vpack.c.bf16 %v2462_v32, %v2462_v32  ;;  %v10165_v14 = vld [vmem:[#allocation5 + $0xa0] sm:$0xff]  }
 0x2bd   : > { %3361 = vst.msk [vmem:[#allocation3 + $0x44] sm:$0xf] %vm2976_vm11, %v3204_v9  ;;  %v2431_v4 = vadd.f32 %v12004_v28, %v11841_v29  ;;  %v12054_v35 = vadd.f32 %v2328_v48, %v11844_v54  ;;  %v12056_v13 = vpop.f32.mrf.mxu0  ;;  %v2729_v60 = vshrl.u32 %v9203_v7, 16  ;;  %v2732_v0 = vshll.u32 %v9203_v7, 16  ;;  %3053 = vrot.lane.b32.xlu1 %v9203_v7, %s10517_s10  ;;  %v10158_v54 = vld [vmem:[#allocation3] ss:$8 sps:$4 sm:$0xff]   ;;  %3772 = vmatpush2.bf16.msra.mxu1 %v10157_v23 }
 0x2be   : > { %v3207_v43 = vrot.slane %v3206_v59, 4  ;;  %v12061_v19 = vadd.f32 %v9805_v41, %v11852_v38  ;;  %v2769_v12 = vshrl.u32 %v9208_v17, 16  ;;  %v2772_v18 = vshll.u32 %v9208_v17, 16  ;;  %v10163_v38 = vld [vmem:[#allocation5 + $0xf8] sm:$0xff]   ;;  %4738 = vmatprep.subr.bf16.mxu1 %v11793_v47  ;;  %4254 = vmatpush2.bf16.msra.mxu0 %v10165_v14  ;;  %v3358_v23 = vld [vmem:[#allocation3 + $0x3c] sm:$0xf] }
 0x2bf   : > { %v9206_v29 = vpack.c.bf16 %v2460_v52, %v2460_v52  ;;  %v2463_v28 = vmax.f32 %v2431_v4, 0.0  ;;  %v2731_v32 = vrot.slane %v2729_v60, 7  ;;  %v3194_v49 = vrot.slane %v2732_v0, 5  ;;  %v12066_v59 = vpop.f32.mrf.mxu0 }
 0x2c0   : > { %v3363_v48 = vsel %vm11981_vm5, %v3207_v43, %v3362_v58  ;;  %v3196_v9 = vrot.slane %v2729_v60, 4  ;;  %v12068_v41 = vrot.slane %v2769_v12, 7  ;;  %v3217_v40 = vrot.slane %v2769_v12, 4  ;;  %v2999_v60 = vld [vmem:[#allocation3 + $0x60] sm:$0xf]  ;;  %3774 = vmatmul.mubr.bf16.vlgmr.msra.gmra.mxu1 %v10158_v54 }
 0x2c1   : > { %3364 = vst [vmem:[#allocation3 + $0x4c] sm:$0xf] %v3363_v48  ;;  %v3218_v7 = vrot.slane %v2772_v18, 5  ;;  %v2753_v52 = vshrl.u32 %v9206_v29, 16  ;;  %3059 = vrot.lane.b32.xlu0 %v9206_v29, %s10517_s10  ;;  %v12072_v4 = vor.u32 %v2732_v0, %v2731_v32  ;;  %v3195_v58 = vsel %vm10711_vm13, %v3193_v11, %v3194_v49  ;;  %3057 = vrot.lane.b32.xlu1 %v12019_v56, %s10517_s10  ;;  %v2995_v11 = vld [vmem:[#allocation3 + $0x50] sm:$0xf]  ;;  %v12085_v27 = vpop.f32.mrf.mxu0 }
 0x2c2   : > { %v3197_v43 = vor.u32 %v3196_v9, %v3194_v49  ;;  %v2756_v42 = vshll.u32 %v9206_v29, 16  ;;  %3357 = vst.msk [vmem:[#allocation3 + $0x34] sm:$0xf] %vm2976_vm11, %v3195_v58  ;;  %v2774_v12 = vor.u32 %v2772_v18, %v12068_v41  ;;  %v12083_v29 = vpack.c.bf16 %v2463_v28, %v2463_v28  ;;  %4739 = vmatpush1.bf16.msra.mxu1 %v10163_v38  ;;  %v10171_v56 = vld [vmem:[#allocation5 + $0xf0] sm:$0xff]  }
 0x2c3   : > { %v3219_v57 = vor.u32 %v3218_v7, %v3217_v40  ;;  %v12081_v0 = vrot.slane %v2753_v52, 7  ;;  %v3208_v49 = vrot.slane %v2753_v52, 4  ;;  %4740 = vmatprep.subr.bf16.mxu1 %v11793_v47  ;;  %v2466_v52 = vmax.f32 %v12061_v19, 0.0 }
 0x2c4   : > { %v3198_v32 = vrot.slane %v3197_v43, 4  ;;  %v3209_v9 = vrot.slane %v2756_v42, 5  ;;  %v3000_v14 = vsel %vm11950_vm2, %v2774_v12, %v2999_v60  ;;  %v2777_v38 = vshrl.u32 %v12083_v29, 16 }
 0x2c5   : > { %v3220_v18 = vrot.slane %v3219_v57, 4  ;;  %v2758_v58 = vor.u32 %v2756_v42, %v12081_v0  ;;  %v2759_v40 = vrot.slane %v12081_v0, 4  ;;  %3063 = vrot.lane.b32.xlu0 %v9208_v17, %s10517_s10  ;;  %3001 = vst [vmem:[#allocation3 + $0x60] sm:$0xf] %v3000_v14  ;;  %v2780_v7 = vshll.u32 %v12083_v29, 16 }
 0x2c6   : > { %v3359_v28 = vsel %vm11981_vm5, %v3198_v32, %v3358_v23  ;;  %v3210_v54 = vor.u32 %v3209_v9, %v3208_v49  ;;  %v2461_v42 = vmax.f32 %v12054_v35, 0.0  ;;  %v2432_v17 = vadd.f32 %v12034_v51, %v11857_v39  ;;  %v12103_v32 = vpop.f32.mrf.mxu0  ;;  %4741 = vmatpush1.bf16.msra.mxu1 %v10171_v56  ;;  %v10174_v49 = vld [vmem:[#allocation5 + $0xe8] sm:$0xff]   ;;  %v3370_v56 = vld [vmem:[#allocation3 + $0x6c] sm:$0xf] }
 0x2c7   : > { %3360 = vst [vmem:[#allocation3 + $0x3c] sm:$0xf] %v3359_v28  ;;  %v2996_v57 = vsel %vm11950_vm2, %v2758_v58, %v2995_v11  ;;  %v2779_v60 = vrot.slane %v2777_v38, 7  ;;  %v3221_v23 = vrot.slane %v2780_v7, 5  ;;  %v3223_v12 = vrot.slane %v2777_v38, 4  ;;  %4742 = vmatprep.subr.bf16.mxu1 %v11793_v47 }
 0x2c8   : > { %v3211_v43 = vrot.slane %v3210_v54, 4  ;;  %2997 = vst [vmem:[#allocation3 + $0x50] sm:$0xf] %v2996_v57  ;;  %v9207_v9 = vpack.c.bf16 %v2461_v42, %v2461_v42  ;;  %v9212_v14 = vpack.c.bf16 %v2466_v52, %v2466_v52  ;;  %v2464_v28 = vmax.f32 %v2432_v17, 0.0  ;;  %v12116_v52 = vpop.f32.mrf.mxu0 }
 0x2c9   : > { %v2435_v35 = vadd.f32 %v12043_v53, %v11862_v37  ;;  %v12108_v19 = vor.u32 %v2780_v7, %v2779_v60  ;;  %v3222_v39 = vsel %vm10711_vm13, %v3220_v18, %v3221_v23  ;;  %v3224_v51 = vor.u32 %v3223_v12, %v3221_v23  ;;  %v3007_v23 = vld [vmem:[#allocation3 + $0x80] sm:$0xf] }
 0x2ca   : > { %v2433_v11 = vadd.f32 %v12056_v13, %v11867_v31  ;;  %3369 = vst.msk [vmem:[#allocation3 + $0x64] sm:$0xf] %vm2976_vm11, %v3222_v39  ;;  %v2761_v58 = vshrl.u32 %v9207_v9, 16  ;;  %v2764_v54 = vshll.u32 %v9207_v9, 16  ;;  %v2801_v38 = vshrl.u32 %v9212_v14, 16  ;;  %3061 = vrot.lane.b32.xlu1 %v9207_v9, %s10517_s10  ;;  %4743 = vmatpush1.bf16.msra.mxu1 %v10174_v49 }
 0x2cb   : > { %v2804_v57 = vshll.u32 %v9212_v14, 16  ;;  %v3225_v37 = vrot.slane %v3224_v51, 4  ;;  %v9210_v53 = vpack.c.bf16 %v2464_v28, %v2464_v28  ;;  %v2467_v7 = vmax.f32 %v2435_v35, 0.0  ;;  %4744 = vmatprep.subr.bf16.mxu1 %v11793_v47 }
 0x2cc   : > { %v2465_v42 = vmax.f32 %v2433_v11, 0.0  ;;  %v2763_v18 = vrot.slane %v2761_v58, 7  ;;  %v3212_v17 = vrot.slane %v2764_v54, 5  ;;  %v3214_v60 = vrot.slane %v2761_v58, 4  ;;  %v3366_v11 = vld [vmem:[#allocation3 + $0x5c] sm:$0xf] }
 0x2cd   : > { %v12118_v31 = vrot.slane %v2801_v38, 7  ;;  %v3371_v13 = vsel %vm11981_vm5, %v3225_v37, %v3370_v56  ;;  %v3235_v12 = vrot.slane %v2801_v38, 4  ;;  %v3236_v9 = vrot.slane %v2804_v57, 5  ;;  %3067 = vrot.lane.b32.xlu0 %v9210_v53, %s10517_s10 }
 0x2ce   : > { %v2785_v39 = vshrl.u32 %v9210_v53, 16  ;;  %3372 = vst [vmem:[#allocation3 + $0x6c] sm:$0xf] %v3371_v13  ;;  %v12124_v28 = vor.u32 %v2764_v54, %v2763_v18  ;;  %v3213_v49 = vsel %vm10711_vm13, %v3211_v43, %v3212_v17  ;;  %v3215_v35 = vor.u32 %v3214_v60, %v3212_v17  ;;  %3065 = vrot.lane.b32.xlu1 %v12083_v29, %s10517_s10  ;;  %v12135_v54 = vpop.f32.mrf.mxu0  ;;  %v3003_v17 = vld [vmem:[#allocation3 + $0x70] sm:$0xf] }
 0x2cf   : > { %v2806_v51 = vor.u32 %v2804_v57, %v12118_v31  ;;  %3365 = vst.msk [vmem:[#allocation3 + $0x54] sm:$0xf] %vm2976_vm11, %v3213_v49  ;;  %v3237_v58 = vor.u32 %v3236_v9, %v3235_v12  ;;  %v2788_v37 = vshll.u32 %v9210_v53, 16  ;;  %v9213_v60 = vpack.c.bf16 %v2467_v7, %v2467_v7 }
 0x2d0   : > { %v12133_v38 = vrot.slane %v2785_v39, 7  ;;  %v3216_v18 = vrot.slane %v3215_v35, 4  ;;  %v3226_v57 = vrot.slane %v2785_v39, 4  ;;  %v9211_v35 = vpack.c.bf16 %v2465_v42, %v2465_v42 }
 0x2d1   : > { %v3008_v43 = vsel %vm11950_vm2, %v2806_v51, %v3007_v23  ;;  %v3238_v13 = vrot.slane %v3237_v58, 4  ;;  %v3227_v56 = vrot.slane %v2788_v37, 5  ;;  %3071 = vrot.lane.b32.xlu0 %v9212_v14, %s10517_s10  ;;  %v2809_v12 = vshrl.u32 %v9213_v60, 16  ;;  %v12150_v58 = vpop.f32.mrf.mxu0 }
 0x2d2   : > { %3009 = vst [vmem:[#allocation3 + $0x80] sm:$0xf] %v3008_v43  ;;  %v2790_v29 = vor.u32 %v2788_v37, %v12133_v38  ;;  %v3367_v53 = vsel %vm11981_vm5, %v3216_v18, %v3366_v11  ;;  %v2812_v9 = vshll.u32 %v9213_v60, 16  ;;  %v2438_v39 = vadd.f32 %v12066_v59, %v11872_v2  ;;  %3069 = vrot.lane.b32.xlu1 %v9211_v35, %s10517_s10 }
 0x2d3   : > { %3368 = vst [vmem:[#allocation3 + $0x5c] sm:$0xf] %v3367_v53  ;;  %v3228_v7 = vor.u32 %v3227_v56, %v3226_v57  ;;  %v2436_v51 = vadd.f32 %v12085_v27, %v11878_v63  ;;  %v2811_v14 = vrot.slane %v2809_v12, 7  ;;  %v3241_v11 = vrot.slane %v2809_v12, 4  ;;  %v10177_v27 = vld [vmem:[#allocation5 + $0xe0] sm:$0xff]   ;;  %v9814_v48 = vpop.f32.mrf.mxu0 }
 0x2d4   : > { %v3004_v23 = vsel %vm11950_vm2, %v2790_v29, %v3003_v17  ;;  %v3239_v37 = vrot.slane %v2812_v9, 5  ;;  %v2793_v18 = vshrl.u32 %v9211_v35, 16  ;;  %v2796_v43 = vshll.u32 %v9211_v35, 16  ;;  %v3378_v57 = vld [vmem:[#allocation3 + $0x8c] sm:$0xf]  ;;  %4745 = vmatpush1.bf16.msra.mxu1 %v10177_v27 }
 0x2d5   : > { %3005 = vst [vmem:[#allocation3 + $0x70] sm:$0xf] %v3004_v23  ;;  %v3229_v42 = vrot.slane %v3228_v7, 4  ;;  %v2470_v53 = vmax.f32 %v2438_v39, 0.0  ;;  %v2468_v17 = vmax.f32 %v2436_v51, 0.0  ;;  %v12153_v56 = vor.u32 %v2812_v9, %v2811_v14  ;;  %4746 = vmatprep.subr.bf16.mxu1 %v11793_v47 }
 0x2d6   : > { %v3240_v2 = vsel %vm10711_vm13, %v3238_v13, %v3239_v37  ;;  %v3242_v59 = vor.u32 %v3241_v11, %v3239_v37  ;;  %v2795_v63 = vrot.slane %v2793_v18, 7  ;;  %v3230_v29 = vrot.slane %v2796_v43, 5  ;;  %3073 = vrot.lane.b32.xlu1 %v9213_v60, %s10517_s10 }
 0x2d7   : > { %3377 = vst.msk [vmem:[#allocation3 + $0x84] sm:$0xf] %vm2976_vm11, %v3240_v2  ;;  %v3232_v12 = vrot.slane %v2793_v18, 4  ;;  %v9216_v23 = vpack.c.bf16 %v2470_v53, %v2470_v53  ;;  %v9214_v49 = vpack.c.bf16 %v2468_v17, %v2468_v17  ;;  %v2439_v9 = vadd.f32 %v12103_v32, %v11883_v46  ;;  %v3374_v46 = vld [vmem:[#allocation3 + $0x7c] sm:$0xf]  ;;  %v2376_v53 = vpop.f32.mrf.mxu0 }
 0x2d8   : > { %v3243_v7 = vrot.slane %v3242_v59, 4  ;;  %v12158_v35 = vor.u32 %v2796_v43, %v2795_v63  ;;  %v2437_v13 = vadd.f32 %v12116_v52, %v11890_v44  ;;  %v3231_v39 = vsel %vm10711_vm13, %v3229_v42, %v3230_v29  ;;  %v3015_v17 = vld [vmem:[#allocation3 + $0xa0] sm:$0xf] }
 0x2d9   : > { %v3233_v51 = vor.u32 %v3232_v12, %v3230_v29  ;;  %v2833_v14 = vshrl.u32 %v9216_v23, 16  ;;  %v2836_v37 = vshll.u32 %v9216_v23, 16  ;;  %3075 = vrot.lane.b32.xlu0 %v9214_v49, %s10517_s10  ;;  %3373 = vst.msk [vmem:[#allocation3 + $0x74] sm:$0xf] %vm2976_vm11, %v3231_v39  ;;  %v2817_v44 = vshrl.u32 %v9214_v49, 16 }
 0x2da   : > { %v3379_v11 = vsel %vm11981_vm5, %v3243_v7, %v3378_v57  ;;  %v2820_v32 = vshll.u32 %v9214_v49, 16  ;;  %v2471_v52 = vmax.f32 %v2439_v9, 0.0  ;;  %v3011_v12 = vld [vmem:[#allocation3 + $0x90] sm:$0xf]  ;;  %v13662_v0 = vrot.slane %v12133_v38, 4 }
 0x2db   : > { %3380 = vst [vmem:[#allocation3 + $0x8c] sm:$0xf] %v3379_v11  ;;  %v3234_v60 = vrot.slane %v3233_v51, 4  ;;  %v12172_v18 = vrot.slane %v2833_v14, 7  ;;  %v3253_v42 = vrot.slane %v2833_v14, 4  ;;  %v3254_v43 = vrot.slane %v2836_v37, 5 }
 0x2dc   : > { %v12174_v2 = vrot.slane %v2817_v44, 7  ;;  %v3244_v47 = vrot.slane %v2817_v44, 4  ;;  %v3245_v59 = vrot.slane %v2820_v32, 5  ;;  %v9217_v63 = vpack.c.bf16 %v2471_v52, %v2471_v52 }
 0x2dd   : > { %v3375_v27 = vsel %vm11981_vm5, %v3234_v60, %v3374_v46  ;;  %v2838_v57 = vor.u32 %v2836_v37, %v12172_v18  ;;  %v3255_v29 = vor.u32 %v3254_v43, %v3253_v42  ;;  %3079 = vrot.lane.b32.xlu0 %v9216_v23, %s10517_s10  ;;  %v2469_v44 = vmax.f32 %v2437_v13, 0.0  ;;  %v9817_v37 = vpop.f32.mrf.mxu0 }
 0x2de   : > { %3376 = vst [vmem:[#allocation3 + $0x7c] sm:$0xf] %v3375_v27  ;;  %v2822_v7 = vor.u32 %v2820_v32, %v12174_v2  ;;  %v3246_v39 = vor.u32 %v3245_v59, %v3244_v47  ;;  %v2841_v51 = vshrl.u32 %v9217_v63, 16  ;;  %v2844_v46 = vshll.u32 %v9217_v63, 16 }
 0x2df   : > { %v3016_v14 = vsel %vm11950_vm2, %v2838_v57, %v3015_v17  ;;  %v3256_v11 = vrot.slane %v3255_v29, 4  ;;  %v9215_v43 = vpack.c.bf16 %v2469_v44, %v2469_v44  ;;  %v2442_v47 = vadd.f32 %v12135_v54, %v11895_v21  ;;  %v12201_v21 = vpop.f32.mrf.mxu0 }
 0x2e0   : > { %3017 = vst [vmem:[#allocation3 + $0xa0] sm:$0xf] %v3016_v14  ;;  %v3012_v52 = vsel %vm11950_vm2, %v2822_v7, %v3011_v12  ;;  %v3247_v60 = vrot.slane %v3246_v39, 4  ;;  %v2843_v23 = vrot.slane %v2841_v51, 7  ;;  %v3259_v42 = vrot.slane %v2841_v51, 4 }
 0x2e1   : > { %3013 = vst [vmem:[#allocation3 + $0x90] sm:$0xf] %v3012_v52  ;;  %v3257_v32 = vrot.slane %v2844_v46, 5  ;;  %v2440_v17 = vadd.f32 %v12150_v58, %v11900_v1  ;;  %v2443_v13 = vadd.f32 %v9814_v48, %v11906_v10  ;;  %v2441_v27 = vadd.f32 %v2376_v53, %v11911_v45  ;;  %3077 = vrot.lane.b32.xlu1 %v9215_v43, %s10517_s10  ;;  %v3386_v1 = vld [vmem:[#allocation3 + $0xac] sm:$0xf] }
 0x2e2   : > { %v12191_v59 = vor.u32 %v2844_v46, %v2843_v23  ;;  %v12196_v57 = vadd.f32 %v9817_v37, %v11917_v62  ;;  %v2825_v7 = vshrl.u32 %v9215_v43, 16  ;;  %v2828_v39 = vshll.u32 %v9215_v43, 16  ;;  %v3382_v43 = vld [vmem:[#allocation3 + $0x9c] sm:$0xf] }
 0x2e3   : > { %v3258_v29 = vsel %vm10711_vm13, %v3256_v11, %v3257_v32  ;;  %v3260_v12 = vor.u32 %v3259_v42, %v3257_v32  ;;  %v2474_v54 = vmax.f32 %v2442_v47, 0.0  ;;  %v2472_v10 = vmax.f32 %v2440_v17, 0.0  ;;  %v9818_v32 = vpop.f32.mrf.mxu0 }
 0x2e4   : > { %3385 = vst.msk [vmem:[#allocation3 + $0xa4] sm:$0xf] %vm2976_vm11, %v3258_v29  ;;  %v2475_v48 = vmax.f32 %v2443_v13, 0.0  ;;  %v2473_v45 = vmax.f32 %v2441_v27, 0.0  ;;  %v2827_v62 = vrot.slane %v2825_v7, 7  ;;  %v3248_v53 = vrot.slane %v2828_v39, 5 }
 0x2e5   : > { %v3261_v58 = vrot.slane %v3260_v12, 4  ;;  %v3250_v51 = vrot.slane %v2825_v7, 4  ;;  %v9220_v14 = vpack.c.bf16 %v2474_v54, %v2474_v54  ;;  %v9218_v11 = vpack.c.bf16 %v2472_v10, %v2472_v10  ;;  %3081 = vrot.lane.b32.xlu1 %v9217_v63, %s10517_s10  ;;  %v3023_v63 = vld [vmem:[#allocation3 + $0xc0] sm:$0xf] }
 0x2e6   : > { %v9221_v46 = vpack.c.bf16 %v2475_v48, %v2475_v48  ;;  %v12204_v44 = vpack.c.bf16 %v2473_v45, %v2473_v45  ;;  %v12208_v52 = vor.u32 %v2828_v39, %v2827_v62  ;;  %v3249_v23 = vsel %vm10711_vm13, %v3247_v60, %v3248_v53  ;;  %v10182_v60 = vld [vmem:[#allocation5 + $0xd8] sm:$0xff]  }
 0x2e7   : > { %v3387_v37 = vsel %vm11981_vm5, %v3261_v58, %v3386_v1  ;;  %v3251_v42 = vor.u32 %v3250_v51, %v3248_v53  ;;  %3381 = vst.msk [vmem:[#allocation3 + $0x94] sm:$0xf] %vm2976_vm11, %v3249_v23  ;;  %v2865_v47 = vshrl.u32 %v9220_v14, 16  ;;  %v2868_v17 = vshll.u32 %v9220_v14, 16  ;;  %3083 = vrot.lane.b32.xlu0 %v9218_v11, %s10517_s10  ;;  %v3019_v58 = vld [vmem:[#allocation3 + $0xb0] sm:$0xf]  ;;  %4747 = vmatpush1.bf16.msra.mxu1 %v10182_v60 }
 0x2e8   : > { %3388 = vst [vmem:[#allocation3 + $0xac] sm:$0xf] %v3387_v37  ;;  %v2849_v13 = vshrl.u32 %v9218_v11, 16  ;;  %v2852_v27 = vshll.u32 %v9218_v11, 16  ;;  %v2873_v12 = vshrl.u32 %v9221_v46, 16  ;;  %v2876_v7 = vshll.u32 %v9221_v46, 16  ;;  %v2392_v11 = vpop.f32.mrf.mxu0 }
 0x2e9   : > { %v3252_v29 = vrot.slane %v3251_v42, 4  ;;  %v2857_v39 = vshrl.u32 %v12204_v44, 16  ;;  %v12216_v1 = vrot.slane %v2865_v47, 7  ;;  %v3271_v54 = vrot.slane %v2865_v47, 4  ;;  %3085 = vrot.lane.b32.xlu1 %v12204_v44, %s10517_s10 }
 0x2ea   : > { %v3272_v10 = vrot.slane %v2868_v17, 5  ;;  %v12218_v48 = vrot.slane %v2849_v13, 7  ;;  %v3262_v62 = vrot.slane %v2849_v13, 4  ;;  %v3263_v53 = vrot.slane %v2852_v27, 5  ;;  %v9821_v13 = vpop.f32.mrf.mxu0 }
 0x2eb   : > { %v3383_v45 = vsel %vm11981_vm5, %v3252_v29, %v3382_v43  ;;  %v2875_v51 = vrot.slane %v2873_v12, 7  ;;  %v2870_v37 = vor.u32 %v2868_v17, %v12216_v1  ;;  %3087 = vrot.lane.b32.xlu0 %v9220_v14, %s10517_s10  ;;  %v12228_v43 = vld [vmem:[#allocation4] sm:$0xff]  ;;  %v3275_v60 = vrot.slane %v2876_v7, 5 }
 0x2ec   : > { %3384 = vst [vmem:[#allocation3 + $0x9c] sm:$0xf] %v3383_v45  ;;  %v3273_v42 = vor.u32 %v3272_v10, %v3271_v54  ;;  %v2854_v47 = vor.u32 %v2852_v27, %v12218_v48  ;;  %4748 = vmatprep.subr.bf16.mxu1 %v12228_v43  ;;  %v3264_v29 = vor.u32 %v3263_v53, %v3262_v62  ;;  %v3277_v27 = vrot.slane %v2873_v12, 4  ;;  %v3394_v12 = vld [vmem:[#allocation3 + $0xcc] sm:$0xf] }
 0x2ed   : > { %v12232_v49 = vor.u32 %v2876_v7, %v2875_v51  ;;  %v3024_v17 = vsel %vm11950_vm2, %v2870_v37, %v3023_v63  ;;  %v2859_v10 = vrot.slane %v2857_v39, 7  ;;  %v2860_v23 = vshll.u32 %v12204_v44, 16  ;;  %3089 = vrot.lane.b32.xlu1 %v9221_v46, %s10517_s10 }
 0x2ee   : > { %v3274_v45 = vrot.slane %v3273_v42, 4  ;;  %v3020_v54 = vsel %vm11950_vm2, %v2854_v47, %v3019_v58  ;;  %3025 = vst [vmem:[#allocation3 + $0xc0] sm:$0xf] %v3024_v17  ;;  %v3265_v14 = vrot.slane %v3264_v29, 4  ;;  %v3268_v9 = vrot.slane %v2857_v39, 4 }
 0x2ef   : > { %3021 = vst [vmem:[#allocation3 + $0xb0] sm:$0xf] %v3020_v54  ;;  %v3278_v62 = vor.u32 %v3277_v27, %v3275_v60  ;;  %v2478_v63 = vmax.f32 %v12196_v57, 0.0  ;;  %v2444_v58 = vadd.f32 %v12201_v21, %v11922_v61  ;;  %v12246_v53 = vor.u32 %v2860_v23, %v2859_v10 }
 0x2f0   : > { %v3276_v7 = vsel %vm10711_vm13, %v3274_v45, %v3275_v60  ;;  %v3266_v51 = vrot.slane %v2860_v23, 5  ;;  %v2447_v44 = vadd.f32 %v9818_v32, %v11926_v36  ;;  %v2445_v39 = vadd.f32 %v2392_v11, %v11929_v50  ;;  %v3390_v23 = vld [vmem:[#allocation3 + $0xbc] sm:$0xf]  ;;  %v2405_v11 = vpop.f32.mrf.mxu0 }
 0x2f1   : > { %3393 = vst.msk [vmem:[#allocation3 + $0xc4] sm:$0xf] %vm2976_vm11, %v3276_v7  ;;  %v3279_v46 = vrot.slane %v3278_v62, 4  ;;  %v9224_v37 = vpack.c.bf16 %v2478_v63, %v2478_v63  ;;  %v2476_v42 = vmax.f32 %v2444_v58, 0.0  ;;  %v2450_v47 = vadd.f32 %v9821_v13, %v11934_v5  ;;  %v3031_v7 = vld [vmem:[#allocation3 + $0xe0] sm:$0xf] }
 0x2f2   : > { %v3267_v57 = vsel %vm10711_vm13, %v3265_v14, %v3266_v51  ;;  %v3269_v29 = vor.u32 %v3268_v9, %v3266_v51  ;;  %v2479_v61 = vmax.f32 %v2447_v44, 0.0  ;;  %v2477_v21 = vmax.f32 %v2445_v39, 0.0 }
 0x2f3   : > { %v3395_v60 = vsel %vm11981_vm5, %v3279_v46, %v3394_v12  ;;  %3389 = vst.msk [vmem:[#allocation3 + $0xb4] sm:$0xf] %vm2976_vm11, %v3267_v57  ;;  %v2897_v36 = vshrl.u32 %v9224_v37, 16  ;;  %v2900_v32 = vshll.u32 %v9224_v37, 16  ;;  %v9222_v50 = vpack.c.bf16 %v2476_v42, %v2476_v42  ;;  %v9822_v46 = vpop.f32.mrf.mxu0  ;;  %v3027_v42 = vld [vmem:[#allocation3 + $0xd0] sm:$0xf] }
 0x2f4   : > { %3396 = vst [vmem:[#allocation3 + $0xcc] sm:$0xf] %v3395_v60  ;;  %v3270_v17 = vrot.slane %v3269_v29, 4  ;;  %v9225_v45 = vpack.c.bf16 %v2479_v61, %v2479_v61  ;;  %v9223_v5 = vpack.c.bf16 %v2477_v21, %v2477_v21  ;;  %v2482_v13 = vmax.f32 %v2450_v47, 0.0 }
 0x2f5   : > { %v12256_v54 = vrot.slane %v2897_v36, 7  ;;  %v3289_v9 = vrot.slane %v2897_v36, 4  ;;  %v3290_v27 = vrot.slane %v2900_v32, 5  ;;  %v2881_v14 = vshrl.u32 %v9222_v50, 16  ;;  %3091 = vrot.lane.b32.xlu0 %v9222_v50, %s10517_s10 }
 0x2f6   : > { %v3391_v10 = vsel %vm11981_vm5, %v3270_v17, %v3390_v23  ;;  %v2884_v62 = vshll.u32 %v9222_v50, 16  ;;  %v2905_v63 = vshrl.u32 %v9225_v45, 16  ;;  %v2908_v58 = vshll.u32 %v9225_v45, 16  ;;  %3093 = vrot.lane.b32.xlu1 %v9223_v5, %s10517_s10 }
 0x2f7   : > { %3392 = vst [vmem:[#allocation3 + $0xbc] sm:$0xf] %v3391_v10  ;;  %v2902_v12 = vor.u32 %v2900_v32, %v12256_v54  ;;  %v2903_v51 = vrot.slane %v12256_v54, 4  ;;  %v3291_v44 = vor.u32 %v3290_v27, %v3289_v9  ;;  %v12264_v39 = vrot.slane %v2881_v14, 7  ;;  %v10214_v54 = vld [vmem:[#allocation5 + $0x100] sm:$0xff]  }
 0x2f8   : > { %v3280_v47 = vrot.slane %v2881_v14, 4  ;;  %v3281_v57 = vrot.slane %v2884_v62, 5  ;;  %v2907_v29 = vrot.slane %v2905_v63, 7  ;;  %v3293_v61 = vrot.slane %v2908_v58, 5 }
 0x2f9   : > { %v3032_v21 = vsel %vm11950_vm2, %v2902_v12, %v3031_v7  ;;  %v3292_v60 = vrot.slane %v3291_v44, 4  ;;  %v2886_v23 = vor.u32 %v2884_v62, %v12264_v39  ;;  %v2887_v36 = vrot.slane %v12264_v39, 4  ;;  %3095 = vrot.lane.b32.xlu0 %v9224_v37, %s10517_s10  ;;  %v2408_v62 = vpop.f32.mrf.mxu0  ;;  %v10185_v12 = vld [vmem:[#allocation5 + $0xd0] sm:$0xff]  }
 0x2fa   : > { %3033 = vst [vmem:[#allocation3 + $0xe0] sm:$0xf] %v3032_v21  ;;  %v3282_v32 = vor.u32 %v3281_v57, %v3280_v47  ;;  %v12271_v50 = vor.u32 %v2908_v58, %v2907_v29  ;;  %v3295_v17 = vrot.slane %v2905_v63, 4  ;;  %v2889_v9 = vshrl.u32 %v9223_v5, 16  ;;  %3097 = vrot.lane.b32.xlu1 %v9225_v45, %s10517_s10  ;;  %v3402_v47 = vld [vmem:[#allocation3 + $0xec] sm:$0xf]  ;;  %4749 = vmatpush1.bf16.msra.mxu1 %v10185_v12 }
 0x2fb   : > { %v3028_v27 = vsel %vm11950_vm2, %v2886_v23, %v3027_v42  ;;  %v3294_v14 = vsel %vm10711_vm13, %v3292_v60, %v3293_v61  ;;  %v2892_v10 = vshll.u32 %v9223_v5, 16  ;;  %v12278_v7 = vpack.c.bf16 %v2482_v13, %v2482_v13  ;;  %v10189_v5 = vld [vmem:[#allocation5 + $0xc8] sm:$0xff]   ;;  %4750 = vmatprep.subr.bf16.mxu1 %v12228_v43 }
 0x2fc   : > { %v3283_v37 = vrot.slane %v3282_v32, 4  ;;  %3029 = vst [vmem:[#allocation3 + $0xd0] sm:$0xf] %v3028_v27  ;;  %v3296_v44 = vor.u32 %v3295_v17, %v3293_v61  ;;  %3401 = vst.msk [vmem:[#allocation3 + $0xe4] sm:$0xf] %vm2976_vm11, %v3294_v14  ;;  %v2891_v63 = vrot.slane %v2889_v9, 7  ;;  %v2448_v29 = vadd.f32 %v2405_v11, %v11938_v15 }
 0x2fd   : > { %v3286_v58 = vrot.slane %v2889_v9, 4  ;;  %v3284_v45 = vrot.slane %v2892_v10, 5  ;;  %v2929_v57 = vshrl.u32 %v12278_v7, 16  ;;  %v2932_v42 = vshll.u32 %v12278_v7, 16  ;;  %v3398_v17 = vld [vmem:[#allocation3 + $0xdc] sm:$0xf] }
 0x2fe   : > { %v3297_v13 = vrot.slane %v3296_v44, 4  ;;  %v12284_v21 = vor.u32 %v2892_v10, %v2891_v63  ;;  %v2451_v60 = vadd.f32 %v9822_v46, %v11940_v26  ;;  %v2449_v61 = vadd.f32 %v2408_v62, %v11942_v20  ;;  %v3039_v11 = vld [vmem:[#allocation3 + $0x100] sm:$0xf]  ;;  %4751 = vmatpush1.bf16.msra.mxu1 %v10189_v5 }
 0x2ff   : > { %v3285_v23 = vsel %vm10711_vm13, %v3283_v37, %v3284_v45  ;;  %v3287_v32 = vor.u32 %v3286_v58, %v3284_v45  ;;  %v12291_v9 = vrot.slane %v2929_v57, 7  ;;  %v3307_v27 = vrot.slane %v2929_v57, 4  ;;  %v10195_v37 = vld [vmem:[#allocation5 + $0xc0] sm:$0xff]   ;;  %4752 = vmatprep.subr.bf16.mxu1 %v12228_v43 }
 0x300   : > { %v3403_v15 = vsel %vm11981_vm5, %v3297_v13, %v3402_v47  ;;  %3397 = vst.msk [vmem:[#allocation3 + $0xd4] sm:$0xf] %vm2976_vm11, %v3285_v23  ;;  %v3308_v14 = vrot.slane %v2932_v42, 5  ;;  %v2480_v26 = vmax.f32 %v2448_v29, 0.0  ;;  %v2483_v46 = vmax.f32 %v2451_v60, 0.0 }
 0x301   : > { %3404 = vst [vmem:[#allocation3 + $0xec] sm:$0xf] %v3403_v15  ;;  %v3288_v20 = vrot.slane %v3287_v32, 4  ;;  %v2934_v10 = vor.u32 %v2932_v42, %v12291_v9  ;;  %v2935_v62 = vrot.slane %v12291_v9, 4  ;;  %v2481_v12 = vmax.f32 %v2449_v61, 0.0 }
 0x302   : > { %v3309_v44 = vor.u32 %v3308_v14, %v3307_v27  ;;  %v9226_v63 = vpack.c.bf16 %v2480_v26, %v2480_v26  ;;  %v9229_v58 = vpack.c.bf16 %v2483_v46, %v2483_v46  ;;  %v13657_v47 = vrot.slane %v11960_v16, 4  ;;  %4753 = vmatpush1.bf16.msra.mxu1 %v10195_v37  ;;  %v10199_v27 = vld [vmem:[#allocation5 + $0x118] sm:$0xff]   ;;  %v3035_v46 = vld [vmem:[#allocation3 + $0xf0] sm:$0xf] }
 0x303   : > { %v3399_v57 = vsel %vm11981_vm5, %v3288_v20, %v3398_v17  ;;  %v3040_v42 = vsel %vm11950_vm2, %v2934_v10, %v3039_v11  ;;  %v9227_v29 = vpack.c.bf16 %v2481_v12, %v2481_v12  ;;  %v13658_v5 = vrot.slane %v11945_v3, 4  ;;  %4762 = vmatprep.subr.bf16.mxu1 %v12228_v43 }
 0x304   : > { %v2703_v45 = vsel %vm10702_vm12, %v13657_v47, %v12006_v25  ;;  %3400 = vst [vmem:[#allocation3 + $0xdc] sm:$0xf] %v3399_v57  ;;  %v3310_v13 = vrot.slane %v3309_v44, 4  ;;  %3041 = vst [vmem:[#allocation3 + $0x100] sm:$0xf] %v3040_v42  ;;  %v2913_v25 = vshrl.u32 %v9226_v63, 16  ;;  %3099 = vrot.lane.b32.xlu0 %v9226_v63, %s10517_s10 }
 0x305   : > { %2982 = vst.msk [vmem:[#allocation3 + $0x18] sm:$0xf] %vm2976_vm11, %v2703_v45  ;;  %v2719_v16 = vsel %vm10702_vm12, %v13658_v5, %v11975_v33  ;;  %v2916_v60 = vshll.u32 %v9226_v63, 16  ;;  %v2937_v61 = vshrl.u32 %v9229_v58, 16  ;;  %v2940_v23 = vshll.u32 %v9229_v58, 16  ;;  %3101 = vrot.lane.b32.xlu1 %v9227_v29, %s10517_s10 }
 0x306   : > { %2986 = vst.msk [vmem:[#allocation3 + $0x28] sm:$0xf] %vm2976_vm11, %v2719_v16  ;;  %v2921_v32 = vshrl.u32 %v9227_v29, 16  ;;  %v2924_v17 = vshll.u32 %v9227_v29, 16  ;;  %v13659_v3 = vrot.slane %v12021_v55, 4  ;;  %v2915_v15 = vrot.slane %v2913_v25, 7  ;;  %4763 = vmatpush2.bf16.msra.mxu1 %v10199_v27 }
 0x307   : > { %v3298_v11 = vrot.slane %v2913_v25, 4  ;;  %v3299_v14 = vrot.slane %v2916_v60, 5  ;;  %v2939_v26 = vrot.slane %v2937_v61, 7  ;;  %v3311_v20 = vrot.slane %v2940_v23, 5  ;;  %v10204_v29 = vld [vmem:[#allocation5 + $0x110] sm:$0xff]   ;;  %4764 = vmatprep.subr.bf16.mxu1 %v12228_v43 }
 0x308   : > { %v2735_v33 = vsel %vm10702_vm12, %v13659_v3, %v12072_v4  ;;  %v3313_v10 = vrot.slane %v2937_v61, 4  ;;  %v2923_v12 = vrot.slane %v2921_v32, 7  ;;  %v3302_v44 = vrot.slane %v2924_v17, 5  ;;  %3103 = vrot.lane.b32.xlu0 %v12278_v7, %s10517_s10  ;;  %v3410_v25 = vld [vmem:[#allocation3 + $0x10c] sm:$0xf] }
 0x309   : > { %2990 = vst.msk [vmem:[#allocation3 + $0x38] sm:$0xf] %vm2976_vm11, %v2735_v33  ;;  %v2918_v63 = vor.u32 %v2916_v60, %v2915_v15  ;;  %v2919_v55 = vrot.slane %v2915_v15, 4  ;;  %v3300_v47 = vor.u32 %v3299_v14, %v3298_v11  ;;  %v2942_v45 = vor.u32 %v2940_v23, %v2939_v26  ;;  %3105 = vrot.lane.b32.xlu1 %v9229_v58, %s10517_s10  ;;  %v3406_v61 = vld [vmem:[#allocation3 + $0xfc] sm:$0xf] }
 0x30a   : > { %v3312_v4 = vsel %vm10711_vm13, %v3310_v13, %v3311_v20  ;;  %v3314_v37 = vor.u32 %v3313_v10, %v3311_v20  ;;  %v2926_v57 = vor.u32 %v2924_v17, %v2923_v12  ;;  %v3304_v42 = vrot.slane %v2921_v32, 4  ;;  %4765 = vmatpush2.bf16.msra.mxu1 %v10204_v29  ;;  %v12438_v10 = vld [vmem:[#allocation3 + $0x34] ss:$8 sps:$4 sm:$0xff]  }
 0x30b   : > { %v3036_v5 = vsel %vm11950_vm2, %v2918_v63, %v3035_v46  ;;  %v3301_v16 = vrot.slane %v3300_v47, 4  ;;  %3409 = vst.msk [vmem:[#allocation3 + $0x104] sm:$0xf] %vm2976_vm11, %v3312_v4  ;;  %v13660_v7 = vrot.slane %v12010_v22, 4  ;;  %v2767_v58 = vsel %vm10702_vm12, %v2759_v40, %v12124_v28  ;;  %4766 = vmatprep.subr.bf16.mxu1 %v12228_v43  ;;  %v12446_v63 = vld [vmem:[#allocation3 + $0x44] ss:$8 sps:$4 sm:$0xff]  }
 0x30c   : > { %3037 = vst [vmem:[#allocation3 + $0xf0] sm:$0xf] %v3036_v5  ;;  %v3315_v24 = vrot.slane %v3314_v37, 4  ;;  %v3305_v60 = vor.u32 %v3304_v42, %v3302_v44  ;;  %2998 = vst.msk [vmem:[#allocation3 + $0x58] sm:$0xf] %vm2976_vm11, %v2767_v58  ;;  %v13661_v22 = vrot.slane %v12068_v41, 4  ;;  %v2799_v40 = vsel %vm10702_vm12, %v13662_v0, %v12158_v35 }
 0x30d   : > { %v2751_v13 = vsel %vm10702_vm12, %v13660_v7, %v12046_v6  ;;  %v3303_v28 = vsel %vm10711_vm13, %v3301_v16, %v3302_v44  ;;  %3006 = vst.msk [vmem:[#allocation3 + $0x78] sm:$0xf] %vm2976_vm11, %v2799_v40  ;;  %v13663_v41 = vrot.slane %v12118_v31, 4  ;;  %v13664_v38 = vrot.slane %v12174_v2, 4  ;;  %v12462_v29 = vld [vmem:[#allocation3 + $0x54] ss:$8 sps:$4 sm:$0xff]  }
 0x30e   : > { %2994 = vst.msk [vmem:[#allocation3 + $0x48] sm:$0xf] %vm2976_vm11, %v2751_v13  ;;  %v2783_v6 = vsel %vm10702_vm12, %v13661_v22, %v12108_v19  ;;  %v13665_v23 = vrot.slane %v12172_v18, 4  ;;  %v3411_v17 = vsel %vm11981_vm5, %v3315_v24, %v3410_v25  ;;  %v3306_v3 = vrot.slane %v3305_v60, 4  ;;  %3405 = vst.msk [vmem:[#allocation3 + $0xf4] sm:$0xf] %vm2976_vm11, %v3303_v28 }
 0x30f   : > { %3002 = vst.msk [vmem:[#allocation3 + $0x68] sm:$0xf] %vm2976_vm11, %v2783_v6  ;;  %v2815_v19 = vsel %vm10702_vm12, %v13663_v41, %v12153_v56  ;;  %v2831_v35 = vsel %vm10702_vm12, %v13664_v38, %v12208_v52  ;;  %v13666_v31 = vrot.slane %v12218_v48, 4  ;;  %v13667_v18 = vrot.slane %v12216_v1, 4  ;;  %3412 = vst [vmem:[#allocation3 + $0x10c] sm:$0xf] %v3411_v17 }
 0x310   : > { %v2847_v32 = vsel %vm10702_vm12, %v13665_v23, %v12191_v59  ;;  %3010 = vst.msk [vmem:[#allocation3 + $0x88] sm:$0xf] %vm2976_vm11, %v2815_v19  ;;  %3014 = vst.msk [vmem:[#allocation3 + $0x98] sm:$0xf] %vm2976_vm11, %v2831_v35  ;;  %v10210_v59 = vld [vmem:[#allocation5 + $0x108] sm:$0xff]   ;;  %v2895_v52 = vsel %vm10702_vm12, %v2887_v36, %v12284_v21  ;;  %v2911_v1 = vsel %vm10702_vm12, %v2903_v51, %v12271_v50 }
 0x311   : > { %3018 = vst.msk [vmem:[#allocation3 + $0xa8] sm:$0xf] %vm2976_vm11, %v2847_v32  ;;  %v2863_v56 = vsel %vm10702_vm12, %v13666_v31, %v12246_v53  ;;  %v2879_v2 = vsel %vm10702_vm12, %v13667_v18, %v12232_v49  ;;  %v2927_v49 = vsel %vm10702_vm12, %v2919_v55, %v2926_v57  ;;  %v2943_v48 = vsel %vm10702_vm12, %v2935_v62, %v2942_v45  ;;  %v10166_v21 = vld [vmem:[#allocation3 + $0x14] ss:$8 sps:$4 sm:$0xff]   ;;  %v12424_v62 = vld [vmem:[#allocation3 + $0x24] ss:$8 sps:$4 sm:$0xff]  }
 0x312   : > { %3022 = vst.msk [vmem:[#allocation3 + $0xb8] sm:$0xf] %vm2976_vm11, %v2863_v56  ;;  %3026 = vst.msk [vmem:[#allocation3 + $0xc8] sm:$0xf] %vm2976_vm11, %v2879_v2  ;;  %v3407_v53 = vsel %vm11981_vm5, %v3306_v3, %v3406_v61  ;;  %4767 = vmatpush2.bf16.msra.mxu1 %v10210_v59  ;;  %8778 = vmatprep.mubr.msk.bf16.mxu1 %vm3692_vm10, %v10166_v21  ;;  %v12472_v24 = vld [vmem:[#allocation3 + $0x64] ss:$8 sps:$4 sm:$0xff]  }
 0x313   : > { %3030 = vst.msk [vmem:[#allocation3 + $0xd8] sm:$0xf] %vm2976_vm11, %v2895_v52  ;;  %3034 = vst.msk [vmem:[#allocation3 + $0xe8] sm:$0xf] %vm2976_vm11, %v2911_v1  ;;  %4768 = vmatprep.subr.bf16.mxu1 %v12228_v43  ;;  %8837 = vmatprep.mubr.msk.bf16.mxu0 %vm3692_vm10, %v10166_v21  ;;  %v12484_v40 = vld [vmem:[#allocation3 + $0x74] ss:$8 sps:$4 sm:$0xff]  }
 0x314   : > { %3038 = vst.msk [vmem:[#allocation3 + $0xf8] sm:$0xf] %vm2976_vm11, %v2927_v49  ;;  %3042 = vst.msk [vmem:[#allocation3 + $0x108] sm:$0xf] %vm2976_vm11, %v2943_v48  ;;  %v12497_v23 = vld [vmem:[#allocation3 + $0x84] ss:$8 sps:$4 sm:$0xff]  }
 0x315   : > { %3408 = vst [vmem:[#allocation3 + $0xfc] sm:$0xf] %v3407_v53  ;;  %v12510_v56 = vld [vmem:[#allocation3 + $0x94] ss:$8 sps:$4 sm:$0xff]   ;;  %v12522_v52 = vld [vmem:[#allocation3 + $0xa4] ss:$8 sps:$4 sm:$0xff]  }
 0x316   : > { %4769 = vmatpush2.bf16.msra.mxu1 %v10214_v54  ;;  %v12534_v53 = vld [vmem:[#allocation3 + $0xb4] ss:$8 sps:$4 sm:$0xff]   ;;  %v12546_v21 = vld [vmem:[#allocation3 + $0xc4] ss:$8 sps:$4 sm:$0xff]  }
 0x31a   : > { %v3044_v51 = vpop.permute.xlu0 %3043 }
 0x31b   : > { %3140 = vst.msk [vmem:[#allocation3 + $0x10] sm:$0xf] %vm3139_vm6, %v3044_v51 }
 0x31e   : > { %v3048_v8 = vpop.permute.xlu0 %3047 }
 0x31f   : > { %3142 = vst.msk [vmem:[#allocation3 + $0x20] sm:$0xf] %vm3139_vm6, %v3048_v8  ;;  %v3046_v39 = vpop.permute.xlu1 %3045  ;;  %v10219_v8 = vld [vmem:[#allocation7 + $0x78] sm:$0xff]  }
 0x320   : > { %3141 = vst.msk [vmem:[#allocation3 + $0x18] sm:$0xf] %vm3139_vm6, %v3046_v39  ;;  %9313 = vmatprep.subr.bf16.mxu0 %v10219_v8  ;;  %v10238_v8 = vld [vmem:[#allocation7 + $0x40] sm:$0xff]  }
 0x323   : > { %v3050_v36 = vpop.permute.xlu1 %3049 }
 0x324   : > { %3143 = vst.msk [vmem:[#allocation3 + $0x28] sm:$0xf] %vm3139_vm6, %v3050_v36  ;;  %v10220_v36 = vld [vmem:[#allocation7 + $0x38] sm:$0xff]  }
 0x326   : > { %v3052_v50 = vpop.permute.xlu0 %3051  ;;  %v3417_v15 = vld [vmem:[#allocation3 + $0x20] sm:$0xff] }
 0x327   : > { %3144 = vst.msk [vmem:[#allocation3 + $0x30] sm:$0xf] %vm3139_vm6, %v3052_v50  ;;  %v10168_v43 = vld [vmem:[#allocation3 + $0x10] ss:$8 sps:$4 sm:$0xff]  }
 0x328   : > { %3782 = vmatmul.mubr.bf16.gmra.mxu1 %v10168_v43  ;;  %4256 = vmatmul.mubr.bf16.vlgmr.msra.gmra.mxu0 %v10168_v43 }
 0x329   : > { %8779 = vmatprep.mubr.msk.bf16.mxu1 %vm3692_vm10, %v12424_v62  ;;  %8838 = vmatprep.mubr.msk.bf16.mxu0 %vm3692_vm10, %v12424_v62 }
 0x32a   : > { %v3056_v9 = vpop.permute.xlu0 %3055  ;;  %9314 = vmatpush3.bf16.msra.mxu0 %v10220_v36  ;;  %v10240_v36 = vld [vmem:[#allocation7 + $0xa8] sm:$0xff]  }
 0x32b   : > { %3146 = vst.msk [vmem:[#allocation3 + $0x40] sm:$0xf] %vm3139_vm6, %v3056_v9  ;;  %v3418_v27 = vld [vmem:[#allocation3 + $0x28] sm:$0xff] }
 0x32c   : > { %v12431_v14 = vcombine.low %v3417_v15, %v3418_v27  ;;  %v12560_v27 = vld [vmem:[#allocation3 + $0xd4] ss:$8 sps:$4 sm:$0xff]  }
 0x32e   : > { %v3419_v12 = vld [vmem:[#allocation3 + $0x30] sm:$0xff] }
 0x32f   : > { %v3054_v33 = vpop.permute.xlu1 %3053 }
 0x330   : > { %3145 = vst.msk [vmem:[#allocation3 + $0x38] sm:$0xf] %vm3139_vm6, %v3054_v33  ;;  %3790 = vmatmul.mubr.bf16.gmra.mxu1 %v12431_v14  ;;  %4264 = vmatmul.mubr.bf16.gmra.mxu0 %v12431_v14 }
 0x331   : > { %8780 = vmatprep.mubr.msk.bf16.mxu1 %vm3692_vm10, %v12438_v10  ;;  %8839 = vmatprep.mubr.msk.bf16.mxu0 %vm3692_vm10, %v12438_v10 }
 0x332   : > { %v3421_v37 = vld [vmem:[#allocation3 + $0x40] sm:$0xff] }
 0x333   : > { %v3060_v11 = vpop.permute.xlu0 %3059  ;;  %v3058_v26 = vpop.permute.xlu1 %3057 }
 0x334   : > { %3148 = vst.msk [vmem:[#allocation3 + $0x50] sm:$0xf] %vm3139_vm6, %v3060_v11  ;;  %3147 = vst.msk [vmem:[#allocation3 + $0x48] sm:$0xf] %vm3139_vm6, %v3058_v26 }
 0x337   : > { %v3064_v46 = vpop.permute.xlu0 %3063  ;;  %v3420_v20 = vld [vmem:[#allocation3 + $0x38] sm:$0xff] }
 0x338   : > { %3150 = vst.msk [vmem:[#allocation3 + $0x60] sm:$0xf] %vm3139_vm6, %v3064_v46  ;;  %v12444_v44 = vcombine.low %v3419_v12, %v3420_v20  ;;  %v10221_v46 = vld [vmem:[#allocation7 + $0x70] sm:$0xff]  }
 0x339   : > { %v10222_v12 = vld [vmem:[#allocation7 + $0x30] sm:$0xff]   ;;  %9315 = vmatprep.subr.bf16.mxu0 %v10221_v46 }
 0x33a   : > { %3798 = vmatmul.mubr.bf16.gmra.mxu1 %v12444_v44  ;;  %4272 = vmatmul.mubr.bf16.gmra.mxu0 %v12444_v44 }
 0x33b   : > { %8781 = vmatprep.mubr.msk.bf16.mxu1 %vm3692_vm10, %v12446_v63  ;;  %8840 = vmatprep.mubr.msk.bf16.mxu0 %vm3692_vm10, %v12446_v63  ;;  %v3422_v45 = vld [vmem:[#allocation3 + $0x48] sm:$0xff]  ;;  %v3423_v25 = vld [vmem:[#allocation3 + $0x50] sm:$0xff] }
 0x33c   : > { %v3062_v55 = vpop.permute.xlu1 %3061  ;;  %v12457_v57 = vcombine.low %v3421_v37, %v3422_v45  ;;  %9316 = vmatpush3.bf16.msra.mxu0 %v10222_v12  ;;  %v12582_v45 = vld [vmem:[#allocation3 + $0xf4] ss:$8 sps:$4 sm:$0xff]  }
 0x33d   : > { %3149 = vst.msk [vmem:[#allocation3 + $0x58] sm:$0xf] %vm3139_vm6, %v3062_v55  ;;  %v12572_v55 = vld [vmem:[#allocation3 + $0xe4] ss:$8 sps:$4 sm:$0xff]  }
 0x33f   : > { %v3068_v47 = vpop.permute.xlu0 %3067  ;;  %v3425_v6 = vld [vmem:[#allocation3 + $0x60] sm:$0xff] }
 0x340   : > { %v3066_v4 = vpop.permute.xlu1 %3065  ;;  %3152 = vst.msk [vmem:[#allocation3 + $0x70] sm:$0xf] %vm3139_vm6, %v3068_v47 }
 0x341   : > { %3151 = vst.msk [vmem:[#allocation3 + $0x68] sm:$0xf] %vm3139_vm6, %v3066_v4  ;;  %v10223_v4 = vld [vmem:[#allocation7 + $0x68] sm:$0xff]  }
 0x342   : > { %3806 = vmatmul.mubr.bf16.gmra.mxu1 %v12457_v57  ;;  %4280 = vmatmul.mubr.bf16.gmra.mxu0 %v12457_v57 }
 0x343   : > { %v3072_v42 = vpop.permute.xlu0 %3071  ;;  %8782 = vmatprep.mubr.msk.bf16.mxu1 %vm3692_vm10, %v12462_v29  ;;  %8841 = vmatprep.mubr.msk.bf16.mxu0 %vm3692_vm10, %v12462_v29 }
 0x344   : > { %3154 = vst.msk [vmem:[#allocation3 + $0x80] sm:$0xf] %vm3139_vm6, %v3072_v42  ;;  %v3070_v5 = vpop.permute.xlu1 %3069  ;;  %v3424_v16 = vld [vmem:[#allocation3 + $0x58] sm:$0xff]  ;;  %9317 = vmatprep.subr.bf16.mxu0 %v10223_v4 }
 0x345   : > { %3153 = vst.msk [vmem:[#allocation3 + $0x78] sm:$0xf] %vm3139_vm6, %v3070_v5  ;;  %v12469_v13 = vcombine.low %v3423_v25, %v3424_v16  ;;  %v10224_v42 = vld [vmem:[#allocation7 + $0x28] sm:$0xff]   ;;  %v12592_v5 = vld [vmem:[#allocation3 + $0x104] ss:$8 sps:$4 sm:$0xff]   ;;  %v10228_v25 = vld [vmem:[#allocation7 + $0x60] sm:$0xff]  }
 0x346   : > { %9318 = vmatpush3.bf16.msra.mxu0 %v10224_v42 }
 0x347   : > { %v3427_v19 = vld [vmem:[#allocation3 + $0x70] sm:$0xff]  ;;  %9319 = vmatprep.subr.bf16.mxu0 %v10228_v25 }
 0x348   : > { %v3074_v7 = vpop.permute.xlu1 %3073  ;;  %v3426_v22 = vld [vmem:[#allocation3 + $0x68] sm:$0xff] }
 0x349   : > { %3155 = vst.msk [vmem:[#allocation3 + $0x88] sm:$0xf] %vm3139_vm6, %v3074_v7  ;;  %v12482_v0 = vcombine.low %v3425_v6, %v3426_v22  ;;  %v10229_v7 = vld [vmem:[#allocation7 + $0x20] sm:$0xff]  }
 0x34a   : > { %3814 = vmatmul.mubr.bf16.gmra.mxu1 %v12469_v13  ;;  %4288 = vmatmul.mubr.bf16.gmra.mxu0 %v12469_v13 }
 0x34b   : > { %v3076_v58 = vpop.permute.xlu0 %3075  ;;  %8783 = vmatprep.mubr.msk.bf16.mxu1 %vm3692_vm10, %v12472_v24  ;;  %8842 = vmatprep.mubr.msk.bf16.mxu0 %vm3692_vm10, %v12472_v24 }
 0x34c   : > { %3156 = vst.msk [vmem:[#allocation3 + $0x90] sm:$0xf] %vm3139_vm6, %v3076_v58  ;;  %v3428_v61 = vld [vmem:[#allocation3 + $0x78] sm:$0xff]  ;;  %9320 = vmatpush3.bf16.msra.mxu0 %v10229_v7  ;;  %v10231_v58 = vld [vmem:[#allocation7 + $0x18] sm:$0xff]  }
 0x34d   : > { %v12494_v35 = vcombine.low %v3427_v19, %v3428_v61 }
 0x34f   : > { %v3080_v60 = vpop.permute.xlu0 %3079 }
 0x350   : > { %3158 = vst.msk [vmem:[#allocation3 + $0xa0] sm:$0xf] %vm3139_vm6, %v3080_v60  ;;  %v12508_v31 = vld [vmem:[#allocation3 + $0x80] ss:$8 sps:$4 sm:$0xff]  }
 0x352   : > { %3822 = vmatmul.mubr.bf16.gmra.mxu1 %v12482_v0  ;;  %4296 = vmatmul.mubr.bf16.gmra.mxu0 %v12482_v0 }
 0x353   : > { %v3078_v28 = vpop.permute.xlu1 %3077  ;;  %8784 = vmatprep.mubr.msk.bf16.mxu1 %vm3692_vm10, %v12484_v40  ;;  %8843 = vmatprep.mubr.msk.bf16.mxu0 %vm3692_vm10, %v12484_v40 }
 0x354   : > { %3157 = vst.msk [vmem:[#allocation3 + $0x98] sm:$0xf] %vm3139_vm6, %v3078_v28 }
 0x357   : > { %v3082_v41 = vpop.permute.xlu1 %3081 }
 0x358   : > { %3159 = vst.msk [vmem:[#allocation3 + $0xa8] sm:$0xf] %vm3139_vm6, %v3082_v41 }
 0x359   : > { %v3084_v38 = vpop.permute.xlu0 %3083 }
 0x35a   : > { %3160 = vst.msk [vmem:[#allocation3 + $0xb0] sm:$0xf] %vm3139_vm6, %v3084_v38  ;;  %3830 = vmatmul.mubr.bf16.gmra.mxu1 %v12494_v35  ;;  %4304 = vmatmul.mubr.bf16.gmra.mxu0 %v12494_v35 }
 0x35b   : > { %v3086_v32 = vpop.permute.xlu1 %3085  ;;  %8785 = vmatprep.mubr.msk.bf16.mxu1 %vm3692_vm10, %v12497_v23  ;;  %8844 = vmatprep.mubr.msk.bf16.mxu0 %vm3692_vm10, %v12497_v23  ;;  %v12520_v59 = vld [vmem:[#allocation3 + $0x90] ss:$8 sps:$4 sm:$0xff]  }
 0x35c   : > { %3161 = vst.msk [vmem:[#allocation3 + $0xb8] sm:$0xf] %vm3139_vm6, %v3086_v32 }
 0x35d   : > { %v3088_v17 = vpop.permute.xlu0 %3087 }
 0x35e   : > { %3162 = vst.msk [vmem:[#allocation3 + $0xc0] sm:$0xf] %vm3139_vm6, %v3088_v17  ;;  %v10237_v17 = vld [vmem:[#allocation7 + $0xb0] sm:$0xff]  }
 0x35f   : > { %v3090_v3 = vpop.permute.xlu1 %3089  ;;  %v12532_v48 = vld [vmem:[#allocation3 + $0xa0] ss:$8 sps:$4 sm:$0xff]  }
 0x360   : > { %3163 = vst.msk [vmem:[#allocation3 + $0xc8] sm:$0xf] %vm3139_vm6, %v3090_v3  ;;  %v5041_v3 = vld [vmem:[#allocation4 + $0x2c] sm:$0x8] }
 0x362   : > { %3838 = vmatmul.mubr.bf16.gmra.mxu1 %v12508_v31  ;;  %4312 = vmatmul.mubr.bf16.gmra.mxu0 %v12508_v31 }
 0x363   : > { %8786 = vmatprep.mubr.msk.bf16.mxu1 %vm3692_vm10, %v12510_v56  ;;  %8845 = vmatprep.mubr.msk.bf16.mxu0 %vm3692_vm10, %v12510_v56  ;;  %v12544_v39 = vld [vmem:[#allocation3 + $0xb0] ss:$8 sps:$4 sm:$0xff]  }
 0x367   : > { %v3092_v18 = vpop.permute.xlu0 %3091  ;;  %v12556_v9 = vld [vmem:[#allocation3 + $0xc0] ss:$8 sps:$4 sm:$0xff]  }
 0x368   : > { %3164 = vst.msk [vmem:[#allocation3 + $0xd0] sm:$0xf] %vm3139_vm6, %v3092_v18  ;;  %v3094_v2 = vpop.permute.xlu1 %3093 }
 0x369   : > { %3165 = vst.msk [vmem:[#allocation3 + $0xd8] sm:$0xf] %vm3139_vm6, %v3094_v2 }
 0x36a   : > { %3846 = vmatmul.mubr.bf16.gmra.mxu1 %v12520_v59  ;;  %4320 = vmatmul.mubr.bf16.gmra.mxu0 %v12520_v59 }
 0x36b   : > { %v3096_v1 = vpop.permute.xlu0 %3095  ;;  %8787 = vmatprep.mubr.msk.bf16.mxu1 %vm3692_vm10, %v12522_v52  ;;  %8846 = vmatprep.mubr.msk.bf16.mxu0 %vm3692_vm10, %v12522_v52 }
 0x36c   : > { %3166 = vst.msk [vmem:[#allocation3 + $0xe0] sm:$0xf] %vm3139_vm6, %v3096_v1  ;;  %v3098_v49 = vpop.permute.xlu1 %3097 }
 0x36d   : > { %3167 = vst.msk [vmem:[#allocation3 + $0xe8] sm:$0xf] %vm3139_vm6, %v3098_v49 }
 0x370   : > { %v12570_v20 = vld [vmem:[#allocation3 + $0xd0] ss:$8 sps:$4 sm:$0xff]  }
 0x372   : > { %3854 = vmatmul.mubr.bf16.gmra.mxu1 %v12532_v48  ;;  %4328 = vmatmul.mubr.bf16.gmra.mxu0 %v12532_v48 }
 0x373   : > { %8788 = vmatprep.mubr.msk.bf16.mxu1 %vm3692_vm10, %v12534_v53  ;;  %8847 = vmatprep.mubr.msk.bf16.mxu0 %vm3692_vm10, %v12534_v53 }
 0x374   : > { %v12580_v47 = vld [vmem:[#allocation3 + $0xe0] ss:$8 sps:$4 sm:$0xff]  }
 0x376   : > { %v3100_v54 = vpop.permute.xlu0 %3099 }
 0x377   : > { %3168 = vst.msk [vmem:[#allocation3 + $0xf0] sm:$0xf] %vm3139_vm6, %v3100_v54  ;;  %v3102_v51 = vpop.permute.xlu1 %3101 }
 0x378   : > { %3169 = vst.msk [vmem:[#allocation3 + $0xf8] sm:$0xf] %vm3139_vm6, %v3102_v51 }
 0x37a   : > { %v3104_v50 = vpop.permute.xlu0 %3103  ;;  %3862 = vmatmul.mubr.bf16.gmra.mxu1 %v12544_v39  ;;  %4336 = vmatmul.mubr.bf16.gmra.mxu0 %v12544_v39 }
 0x37b   : > { %3170 = vst.msk [vmem:[#allocation3 + $0x100] sm:$0xf] %vm3139_vm6, %v3104_v50  ;;  %v3106_v43 = vpop.permute.xlu1 %3105  ;;  %8789 = vmatprep.mubr.msk.bf16.mxu1 %vm3692_vm10, %v12546_v21  ;;  %8848 = vmatprep.mubr.msk.bf16.mxu0 %vm3692_vm10, %v12546_v21 }
 0x37c   : > { %3171 = vst.msk [vmem:[#allocation3 + $0x108] sm:$0xf] %vm3139_vm6, %v3106_v43  ;;  %v4994_v43 = vld [vmem:[#allocation4 + $0x30] sm:$0x1] }
 0x37f   : > { %v12590_v37 = vld [vmem:[#allocation3 + $0xf0] ss:$8 sps:$4 sm:$0xff]  }
 0x380   : > { %v12558_v33 = vpop.f32.mrf.mxu1 }
 0x382   : > { %3870 = vmatmul.mubr.bf16.gmra.mxu1 %v12556_v9  ;;  %4344 = vmatmul.mubr.bf16.gmra.mxu0 %v12556_v9  ;;  %v3777_v15 = vpop.f32.mrf.mxu1 }
 0x383   : > { %8790 = vmatprep.mubr.msk.bf16.mxu1 %vm3692_vm10, %v12560_v27  ;;  %8849 = vmatprep.mubr.msk.bf16.mxu0 %vm3692_vm10, %v12560_v27  ;;  %v12600_v16 = vld [vmem:[#allocation3 + $0x100] ss:$8 sps:$4 sm:$0xff]   ;;  %v5044_v15 = vld [vmem:[#allocation4 + $0x44] sm:$0x8] }
 0x384   : > { %v12568_v11 = vpop.f32.mrf.mxu1  ;;  %v5045_v46 = vsel %vm12655_vm0, 0, %v5044_v15  ;;  %v5003_v15 = vld [vmem:[#allocation4 + $0x78] sm:$0x1] }
 0x385   : > { %5046 = vst [vmem:[#allocation4 + $0x44] sm:$0x8] %v5045_v46 }
 0x386   : > { %v3780_v26 = vpop.f32.mrf.mxu1 }
 0x38a   : > { %3878 = vmatmul.mubr.bf16.gmra.mxu1 %v12570_v20  ;;  %4352 = vmatmul.mubr.bf16.gmra.mxu0 %v12570_v20 }
 0x38b   : > { %8791 = vmatprep.mubr.msk.bf16.mxu1 %vm3692_vm10, %v12572_v55  ;;  %8850 = vmatprep.mubr.msk.bf16.mxu0 %vm3692_vm10, %v12572_v55 }
 0x392   : > { %3886 = vmatmul.mubr.bf16.gmra.mxu1 %v12580_v47  ;;  %4360 = vmatmul.mubr.bf16.gmra.mxu0 %v12580_v47 }
 0x393   : > { %8792 = vmatprep.mubr.msk.bf16.mxu1 %vm3692_vm10, %v12582_v45  ;;  %8851 = vmatprep.mubr.msk.bf16.mxu0 %vm3692_vm10, %v12582_v45 }
 0x39a   : > { %3894 = vmatmul.mubr.bf16.gmra.mxu1 %v12590_v37  ;;  %4368 = vmatmul.mubr.bf16.gmra.mxu0 %v12590_v37 }
 0x39b   : > { %8852 = vmatprep.mubr.msk.bf16.mxu0 %vm3692_vm10, %v12592_v5  ;;  %8897 = vmatprep.mubr.msk.bf16.mxu1 %vm3692_vm10, %v12424_v62  ;;  %v10230_v62 = vld [vmem:[#allocation7 + $0x58] sm:$0xff]  }
 0x39c   : > { %9321 = vmatprep.subr.bf16.mxu0 %v10230_v62 }
 0x39d   : > { %9322 = vmatpush3.bf16.msra.mxu0 %v10231_v58 }
 0x3a2   : > { %4376 = vmatmul.mubr.bf16.gmra.mxu0 %v12600_v16  ;;  %4771 = vmatmul.mubr.bf16.vlgmr.msra.gmra.mxu1 %v12431_v14  ;;  %v10232_v14 = vld [vmem:[#allocation7 + $0x50] sm:$0xff]  }
 0x3a3   : > { %8898 = vmatprep.mubr.msk.bf16.mxu1 %vm3692_vm10, %v12438_v10  ;;  %v10233_v10 = vld [vmem:[#allocation7 + $0x10] sm:$0xff]   ;;  %9323 = vmatprep.subr.bf16.mxu0 %v10232_v14 }
 0x3a4   : > { %9324 = vmatpush3.bf16.msra.mxu0 %v10233_v10  ;;  %v10437_v10 = vld [vmem:[#allocation4] sm:$0xff] }
 0x3aa   : > { %4779 = vmatmul.mubr.bf16.gmra.mxu1 %v12444_v44  ;;  %v10234_v44 = vld [vmem:[#allocation7 + $0xb8] sm:$0xff]  }
 0x3ab   : > { %8899 = vmatprep.mubr.msk.bf16.mxu1 %vm3692_vm10, %v12446_v63  ;;  %9823 = vmatprep.subr.bf16.mxu1 %v10234_v44  ;;  %v10235_v63 = vld [vmem:[#allocation7 + $0x48] sm:$0xff]  }
 0x3ac   : > { %9824 = vmatpush3.bf16.msra.mxu1 %v10234_v44  ;;  %9325 = vmatprep.subr.bf16.mxu0 %v10235_v63  ;;  %v8946_v44 = vcombine.low %v10437_v10, %v10437_v10  ;;  %v8947_v63 = vcombine.high %v10437_v10, %v10437_v10 }
 0x3ad   : > { %9825 = vmatprep.subr.bf16.mxu1 %v10237_v17 }
 0x3ae   : > { %6379 = vmatprep.mubr.bf16.mxu0 %v8947_v63 }
 0x3b0   : > { %9826 = vmatpush3.bf16.msra.mxu1 %v10237_v17 }
 0x3b1   : > { %9827 = vmatprep.subr.bf16.mxu1 %v10240_v36 }
 0x3b2   : > { %4787 = vmatmul.mubr.bf16.gmra.mxu1 %v12457_v57  ;;  %v10236_v57 = vld [vmem:[#allocation7 + $0x8] sm:$0xff]  }
 0x3b3   : > { %8900 = vmatprep.mubr.msk.bf16.mxu1 %vm3692_vm10, %v12462_v29  ;;  %9326 = vmatpush3.bf16.msra.mxu0 %v10236_v57  ;;  %v4991_v29 = vld [vmem:[#allocation4 + $0x18] sm:$0x1]  ;;  %v10242_v57 = vld [vmem:[#allocation7 + $0x98] sm:$0xff]  }
 0x3b4   : > { %v4992_v60 = vsel %vm12636_vm15, 0, %v4991_v29  ;;  %9327 = vmatprep.subr.bf16.mxu0 %v10238_v8  ;;  %9828 = vmatpush3.bf16.msra.mxu1 %v10240_v36  ;;  %v4997_v29 = vld [vmem:[#allocation4 + $0x48] sm:$0x1]  ;;  %v5050_v8 = vld [vmem:[#allocation4 + $0x74] sm:$0x8] }
 0x3b5   : > { %4993 = vst [vmem:[#allocation4 + $0x18] sm:$0x1] %v4992_v60  ;;  %v4998_v60 = vsel %vm12636_vm15, 0, %v4997_v29  ;;  %v5051_v36 = vsel %vm12655_vm0, 0, %v5050_v8 }
 0x3b6   : > { %4999 = vst [vmem:[#allocation4 + $0x48] sm:$0x1] %v4998_v60  ;;  %5052 = vst [vmem:[#allocation4 + $0x74] sm:$0x8] %v5051_v36 }
 0x3ba   : > { %4795 = vmatmul.mubr.bf16.gmra.mxu1 %v12469_v13  ;;  %v12633_v13 = vld [vmem:[%s13587_s4] ss:$0 sm:$0xff] }
 0x3bb   : > { %8901 = vmatprep.mubr.msk.bf16.mxu1 %vm3692_vm10, %v12472_v24  ;;  %v3776_v22 = vadd.f32 %v12633_v13, %v12558_v33  ;;  %v3779_v41 = vadd.f32 %v12633_v13, %v12568_v11  ;;  %v4995_v33 = vsel %vm12636_vm15, 0, %v4994_v43 }
 0x3bc   : > { %4996 = vst [vmem:[#allocation4 + $0x30] sm:$0x1] %v4995_v33  ;;  %v5459_v24 = vld [vmem:[#allocation4 + $0x18] sm:$0xf] }
 0x3c2   : > { %4803 = vmatmul.mubr.bf16.gmra.mxu1 %v12482_v0 }
 0x3c3   : > { %8902 = vmatprep.mubr.msk.bf16.mxu1 %vm3692_vm10, %v12484_v40 }
 0x3ca   : > { %4811 = vmatmul.mubr.bf16.gmra.mxu1 %v12494_v35 }
 0x3cb   : > { %8903 = vmatprep.mubr.msk.bf16.mxu1 %vm3692_vm10, %v12497_v23 }
 0x3d2   : > { %4819 = vmatmul.mubr.bf16.gmra.mxu1 %v12508_v31 }
 0x3d3   : > { %8904 = vmatprep.mubr.msk.bf16.mxu1 %vm3692_vm10, %v12510_v56 }
 0x3da   : > { %4827 = vmatmul.mubr.bf16.gmra.mxu1 %v12520_v59  ;;  %v5042_v59 = vsel %vm12655_vm0, 0, %v5041_v3  ;;  %v10244_v3 = vld [vmem:[#allocation7 + $0x138] sm:$0xff]  }
 0x3db   : > { %8905 = vmatprep.mubr.msk.bf16.mxu1 %vm3692_vm10, %v12522_v52  ;;  %5043 = vst [vmem:[#allocation4 + $0x2c] sm:$0x8] %v5042_v59 }
 0x3e2   : > { %4835 = vmatmul.mubr.bf16.gmra.mxu1 %v12532_v48 }
 0x3e3   : > { %8906 = vmatprep.mubr.msk.bf16.mxu1 %vm3692_vm10, %v12534_v53 }
 0x3e8   : > { %v3783_v6 = vpop.f32.mrf.mxu1  ;;  %v4257_v0 = vpop.f32.mrf.mxu0 }
 0x3e9   : > { %v12645_v40 = vadd.f32 %v4257_v0, %v3776_v22  ;;  %v3784_v31 = vadd.f32 %v12633_v13, %v3783_v6  ;;  %v10243_v22 = vld [vmem:[#allocation7 + $0x90] sm:$0xff]   ;;  %v5047_v6 = vld [vmem:[#allocation4 + $0x5c] sm:$0x8] }
 0x3ea   : > { %4843 = vmatmul.mubr.bf16.gmra.mxu1 %v12544_v39  ;;  %v3785_v28 = vpop.f32.mrf.mxu1  ;;  %v4259_v61 = vpop.f32.mrf.mxu0  ;;  %v10239_v39 = vld [vmem:[#allocation7] sm:$0xff]  }
 0x3eb   : > { %8907 = vmatprep.mubr.msk.bf16.mxu1 %vm3692_vm10, %v12546_v21  ;;  %9328 = vmatpush3.bf16.msra.mxu0 %v10239_v39  ;;  %v5048_v61 = vsel %vm12655_vm0, 0, %v5047_v6  ;;  %v10257_v6 = vld [vmem:[#allocation7 + $0xf0] sm:$0xff]  }
 0x3ec   : > { %v3786_v19 = vpop.f32.mrf.mxu1  ;;  %v4260_v38 = vpop.f32.mrf.mxu0  ;;  %5049 = vst [vmem:[#allocation4 + $0x5c] sm:$0x8] %v5048_v61  ;;  %9449 = vmatprep.subr.bf16.mxu0 %v10244_v3  ;;  %v5056_v61 = vld [vmem:[#allocation4 + $0xa4] sm:$0x8] }
 0x3ed   : > { %v12651_v35 = vadd.f32 %v4260_v38, %v3779_v41  ;;  %v3787_v48 = vadd.f32 %v12633_v13, %v3786_v19 }
 0x3ee   : > { %v3788_v23 = vpop.f32.mrf.mxu1  ;;  %v4262_v32 = vpop.f32.mrf.mxu0  ;;  %6380 = vmatmul.mubr.bf16.vlgmr.msra.gmra.mxu0 %v8946_v44 }
 0x3f0   : > { %v3791_v18 = vpop.f32.mrf.mxu1  ;;  %v4265_v2 = vpop.f32.mrf.mxu0 }
 0x3f1   : > { %v12662_v52 = vadd.f32 %v4265_v2, %v3784_v31  ;;  %v10245_v31 = vld [vmem:[#allocation7 + $0xf8] sm:$0xff]  }
 0x3f2   : > { %4851 = vmatmul.mubr.bf16.gmra.mxu1 %v12556_v9  ;;  %v3793_v1 = vpop.f32.mrf.mxu1  ;;  %v4267_v49 = vpop.f32.mrf.mxu0  ;;  %v3792_v9 = vadd.f32 %v12633_v13, %v3791_v18  ;;  %v10246_v18 = vld [vmem:[#allocation7 + $0x88] sm:$0xff]   ;;  %9450 = vmatpush3.bf16.msra.mxu0 %v10245_v31 }
 0x3f3   : > { %8908 = vmatprep.mubr.msk.bf16.mxu1 %vm3692_vm10, %v12560_v27  ;;  %v10241_v27 = vld [vmem:[#allocation7 + $0xa0] sm:$0xff]  }
 0x3f4   : > { %v3794_v53 = vpop.f32.mrf.mxu1  ;;  %v4268_v54 = vpop.f32.mrf.mxu0  ;;  %9829 = vmatprep.subr.bf16.mxu1 %v10241_v27 }
 0x3f5   : > { %v12667_v51 = vadd.f32 %v4268_v54, %v3787_v48  ;;  %v3795_v25 = vadd.f32 %v12633_v13, %v3794_v53  ;;  %9830 = vmatpush3.bf16.msra.mxu1 %v10241_v27  ;;  %v10247_v54 = vld [vmem:[#allocation7 + $0x80] sm:$0xff]  }
 0x3f6   : > { %v3796_v50 = vpop.f32.mrf.mxu1  ;;  %v4270_v21 = vpop.f32.mrf.mxu0  ;;  %9831 = vmatprep.subr.bf16.mxu1 %v10242_v57  ;;  %v10225_v27 = vld [vmem:[#allocation3 + $0x114] ss:$8 sps:$4 sm:$0xff]  }
 0x3f9   : > { %9832 = vmatpush3.bf16.msra.mxu1 %v10242_v57  ;;  %v10227_v57 = vld [vmem:[#allocation3 + $0x110] ss:$8 sps:$4 sm:$0xff]  }
 0x3fa   : > { %v3799_v11 = vpop.f32.mrf.mxu1  ;;  %v4273_v26 = vpop.f32.mrf.mxu0  ;;  %4859 = vmatmul.mubr.bf16.gmra.mxu1 %v12570_v20  ;;  %9833 = vmatprep.subr.bf16.mxu1 %v10243_v22 }
 0x3fb   : > { %v12675_v12 = vadd.f32 %v4273_v26, %v3792_v9  ;;  %8909 = vmatprep.mubr.msk.bf16.mxu1 %vm3692_vm10, %v12572_v55  ;;  %v3800_v55 = vadd.f32 %v12633_v13, %v3799_v11 }
 0x3fc   : > { %v3801_v4 = vpop.f32.mrf.mxu1  ;;  %v4275_v42 = vpop.f32.mrf.mxu0 }
 0x3fd   : > { %9834 = vmatpush3.bf16.msra.mxu1 %v10243_v22  ;;  %v5053_v4 = vld [vmem:[#allocation4 + $0x8c] sm:$0x8]  ;;  %v10256_v22 = vld [vmem:[#allocation7 + $0x130] sm:$0xff]  }
 0x3fe   : > { %v3802_v7 = vpop.f32.mrf.mxu1  ;;  %v4276_v62 = vpop.f32.mrf.mxu0  ;;  %9835 = vmatprep.subr.bf16.mxu1 %v10246_v18  ;;  %9451 = vmatprep.subr.bf16.mxu0 %v10256_v22 }
 0x3ff   : > { %v12680_v20 = vadd.f32 %v4276_v62, %v3795_v25  ;;  %v3803_v23 = vadd.f32 %v12633_v13, %v3802_v7  ;;  %v5054_v7 = vsel %vm12655_vm0, 0, %v5053_v4  ;;  %9452 = vmatpush3.bf16.msra.mxu0 %v10257_v6  ;;  %v5012_v4 = vld [vmem:[#allocation4 + $0xc0] sm:$0x1] }
 0x400   : > { %v3804_v58 = vpop.f32.mrf.mxu1  ;;  %v4278_v14 = vpop.f32.mrf.mxu0  ;;  %5055 = vst [vmem:[#allocation4 + $0x8c] sm:$0x8] %v5054_v7  ;;  %v5013_v7 = vsel %vm12636_vm15, 0, %v5012_v4 }
 0x401   : > { %9836 = vmatpush3.bf16.msra.mxu1 %v10246_v18  ;;  %5014 = vst [vmem:[#allocation4 + $0xc0] sm:$0x1] %v5013_v7 }
 0x402   : > { %v3807_v0 = vpop.f32.mrf.mxu1  ;;  %v4281_v28 = vpop.f32.mrf.mxu0  ;;  %4867 = vmatmul.mubr.bf16.gmra.mxu1 %v12580_v47  ;;  %9837 = vmatprep.subr.bf16.mxu1 %v10247_v54 }
 0x403   : > { %v12688_v41 = vadd.f32 %v4281_v28, %v3800_v55  ;;  %8910 = vmatprep.mubr.msk.bf16.mxu1 %vm3692_vm10, %v12582_v45  ;;  %v5000_v45 = vld [vmem:[#allocation4 + $0x60] sm:$0x1]  ;;  %v3808_v1 = vadd.f32 %v12633_v13, %v3807_v0  ;;  %v10251_v55 = vld [vmem:[#allocation4 + $0x8] ss:$12 sps:$4 sm:$0xff]   ;;  %v5006_v28 = vld [vmem:[#allocation4 + $0x90] sm:$0x1] }
 0x404   : > { %v3809_v19 = vpop.f32.mrf.mxu1  ;;  %v4283_v38 = vpop.f32.mrf.mxu0  ;;  %v5001_v49 = vsel %vm12636_vm15, 0, %v5000_v45 }
 0x405   : > { %5002 = vst [vmem:[#allocation4 + $0x60] sm:$0x1] %v5001_v49  ;;  %9838 = vmatpush3.bf16.msra.mxu1 %v10247_v54 }
 0x406   : > { %v3810_v47 = vpop.f32.mrf.mxu1  ;;  %v4284_v32 = vpop.f32.mrf.mxu0 }
 0x407   : > { %v12693_v17 = vadd.f32 %v4284_v32, %v3803_v23  ;;  %v3811_v43 = vadd.f32 %v12633_v13, %v3810_v47  ;;  %v5007_v23 = vsel %vm12636_vm15, 0, %v5006_v28  ;;  %v5057_v47 = vsel %vm12655_vm0, 0, %v5056_v61 }
 0x408   : > { %v3812_v2 = vpop.f32.mrf.mxu1  ;;  %v4286_v59 = vpop.f32.mrf.mxu0  ;;  %5008 = vst [vmem:[#allocation4 + $0x90] sm:$0x1] %v5007_v23  ;;  %5058 = vst [vmem:[#allocation4 + $0xa4] sm:$0x8] %v5057_v47 }
 0x40a   : > { %v3815_v48 = vpop.f32.mrf.mxu1  ;;  %v4289_v53 = vpop.f32.mrf.mxu0  ;;  %4875 = vmatmul.mubr.bf16.gmra.mxu1 %v12590_v37 }
 0x40b   : > { %v12699_v39 = vadd.f32 %v4289_v53, %v3808_v1  ;;  %8911 = vmatprep.mubr.msk.bf16.mxu1 %vm3692_vm10, %v12592_v5  ;;  %v5004_v5 = vsel %vm12636_vm15, 0, %v5003_v15  ;;  %v3816_v46 = vadd.f32 %v12633_v13, %v3815_v48  ;;  %v5009_v1 = vld [vmem:[#allocation4 + $0xa8] sm:$0x1] }
 0x40c   : > { %v3817_v50 = vpop.f32.mrf.mxu1  ;;  %v4291_v21 = vpop.f32.mrf.mxu0  ;;  %5005 = vst [vmem:[#allocation4 + $0x78] sm:$0x1] %v5004_v5  ;;  %v5010_v53 = vsel %vm12636_vm15, 0, %v5009_v1  ;;  %v10266_v5 = vld [vmem:[#allocation7 + $0x128] sm:$0xff]  }
 0x40d   : > { %5011 = vst [vmem:[#allocation4 + $0xa8] sm:$0x1] %v5010_v53  ;;  %v5059_v50 = vld [vmem:[#allocation4 + $0xbc] sm:$0x8]  ;;  %9453 = vmatprep.subr.bf16.mxu0 %v10266_v5  ;;  %v5068_v5 = vld [vmem:[#allocation4 + $0x104] sm:$0x8] }
 0x40e   : > { %v3818_v37 = vpop.f32.mrf.mxu1  ;;  %v4292_v9 = vpop.f32.mrf.mxu0  ;;  %v5069_v4 = vsel %vm12655_vm0, 0, %v5068_v5 }
 0x40f   : > { %v12706_v33 = vadd.f32 %v4292_v9, %v3811_v43  ;;  %v3819_v10 = vadd.f32 %v12633_v13, %v3818_v37  ;;  %v5060_v43 = vsel %vm12655_vm0, 0, %v5059_v50  ;;  %v5018_v50 = vld [vmem:[#allocation4 + $0xf0] sm:$0x1]  ;;  %5070 = vst [vmem:[#allocation4 + $0x104] sm:$0x8] %v5069_v4 }
 0x410   : > { %v3820_v11 = vpop.f32.mrf.mxu1  ;;  %v4294_v26 = vpop.f32.mrf.mxu0  ;;  %5061 = vst [vmem:[#allocation4 + $0xbc] sm:$0x8] %v5060_v43 }
 0x412   : > { %v3823_v42 = vpop.f32.mrf.mxu1  ;;  %v4297_v25 = vpop.f32.mrf.mxu0  ;;  %4883 = vmatmul.mubr.bf16.gmra.mxu1 %v12600_v16 }
 0x413   : > { %v12714_v62 = vadd.f32 %v4297_v25, %v3816_v46  ;;  %8912 = vmatprep.mubr.msk.bf16.mxu1 %vm3692_vm10, %v10225_v27  ;;  %v3824_v0 = vadd.f32 %v12633_v13, %v3823_v42  ;;  %v10267_v46 = vld [vmem:[#allocation7 + $0xe8] sm:$0xff]  }
 0x414   : > { %v3825_v58 = vpop.f32.mrf.mxu1  ;;  %v4299_v14 = vpop.f32.mrf.mxu0  ;;  %9454 = vmatpush3.bf16.msra.mxu0 %v10267_v46 }
 0x415   : > { %v5062_v14 = vld [vmem:[#allocation4 + $0xd4] sm:$0x8] }
 0x416   : > { %v3826_v44 = vpop.f32.mrf.mxu1  ;;  %v4300_v63 = vpop.f32.mrf.mxu0 }
 0x417   : > { %v12718_v29 = vadd.f32 %v4300_v63, %v3819_v10  ;;  %v3827_v18 = vadd.f32 %v12633_v13, %v3826_v44  ;;  %v5063_v63 = vsel %vm12655_vm0, 0, %v5062_v14 }
 0x418   : > { %v3828_v60 = vpop.f32.mrf.mxu1  ;;  %v4302_v16 = vpop.f32.mrf.mxu0  ;;  %5064 = vst [vmem:[#allocation4 + $0xd4] sm:$0x8] %v5063_v63 }
 0x41a   : > { %v3831_v19 = vpop.f32.mrf.mxu1  ;;  %v4305_v38 = vpop.f32.mrf.mxu0  ;;  %4891 = vmatmul.mubr.bf16.gmra.mxu1 %v10227_v57 }
 0x41b   : > { %v12725_v32 = vadd.f32 %v4305_v38, %v3824_v0  ;;  %9839 = vmatprep.mubr.bf16.mxu1 %v10251_v55  ;;  %v3832_v54 = vadd.f32 %v12633_v13, %v3831_v19  ;;  %v5015_v19 = vld [vmem:[#allocation4 + $0xd8] sm:$0x1]  ;;  %v5065_v38 = vld [vmem:[#allocation4 + $0xec] sm:$0x8] }
 0x41c   : > { %v3833_v3 = vpop.f32.mrf.mxu1  ;;  %v4307_v31 = vpop.f32.mrf.mxu0  ;;  %v5016_v47 = vsel %vm12636_vm15, 0, %v5015_v19 }
 0x41d   : > { %v5066_v3 = vsel %vm12655_vm0, 0, %v5065_v38  ;;  %5017 = vst [vmem:[#allocation4 + $0xd8] sm:$0x1] %v5016_v47 }
 0x41e   : > { %v3834_v2 = vpop.f32.mrf.mxu1  ;;  %v4308_v59 = vpop.f32.mrf.mxu0  ;;  %5067 = vst [vmem:[#allocation4 + $0xec] sm:$0x8] %v5066_v3 }
 0x41f   : > { %v12728_v45 = vadd.f32 %v4308_v59, %v3827_v18  ;;  %v3835_v27 = vadd.f32 %v12633_v13, %v3834_v2 }
 0x420   : > { %v3836_v49 = vpop.f32.mrf.mxu1  ;;  %v4310_v48 = vpop.f32.mrf.mxu0 }
 0x422   : > { %v3839_v8 = vpop.f32.mrf.mxu1  ;;  %v4313_v36 = vpop.f32.mrf.mxu0 }
 0x423   : > { %v12733_v21 = vadd.f32 %v4313_v36, %v3832_v54  ;;  %v3840_v58 = vadd.f32 %v12633_v13, %v3839_v8  ;;  %v10276_v8 = vld [vmem:[#allocation7 + $0x120] sm:$0xff]  }
 0x424   : > { %v3841_v37 = vpop.f32.mrf.mxu1  ;;  %v4315_v9 = vpop.f32.mrf.mxu0  ;;  %v10277_v36 = vld [vmem:[#allocation7 + $0xe0] sm:$0xff]   ;;  %9455 = vmatprep.subr.bf16.mxu0 %v10276_v8  ;;  %v5024_v8 = vld [vmem:[#allocation4 + $0x120] sm:$0x1] }
 0x425   : > { %v5019_v9 = vsel %vm12636_vm15, 0, %v5018_v50  ;;  %9456 = vmatpush3.bf16.msra.mxu0 %v10277_v36  ;;  %v5074_v36 = vld [vmem:[#allocation4 + $0x134] sm:$0x8] }
 0x426   : > { %v3842_v15 = vpop.f32.mrf.mxu1  ;;  %v4316_v11 = vpop.f32.mrf.mxu0  ;;  %5020 = vst [vmem:[#allocation4 + $0xf0] sm:$0x1] %v5019_v9  ;;  %v5075_v9 = vsel %vm12655_vm0, 0, %v5074_v36  ;;  %v5080_v36 = vld [vmem:[#allocation4 + $0x164] sm:$0x8] }
 0x427   : > { %v12738_v26 = vadd.f32 %v4316_v11, %v3835_v27  ;;  %v3843_v16 = vadd.f32 %v12633_v13, %v3842_v15  ;;  %5076 = vst [vmem:[#allocation4 + $0x134] sm:$0x8] %v5075_v9 }
 0x428   : > { %v3844_v42 = vpop.f32.mrf.mxu1  ;;  %v4318_v25 = vpop.f32.mrf.mxu0 }
 0x42a   : > { %v3847_v10 = vpop.f32.mrf.mxu1  ;;  %v4321_v44 = vpop.f32.mrf.mxu0 }
 0x42b   : > { %v12745_v57 = vadd.f32 %v4321_v44, %v3840_v58  ;;  %v3848_v23 = vadd.f32 %v12633_v13, %v3847_v10  ;;  %v5021_v44 = vld [vmem:[#allocation4 + $0x108] sm:$0x1] }
 0x42c   : > { %v3849_v55 = vpop.f32.mrf.mxu1  ;;  %v4323_v60 = vpop.f32.mrf.mxu0 }
 0x42d   : > { %v5022_v60 = vsel %vm12636_vm15, 0, %v5021_v44 }
 0x42e   : > { %v3850_v22 = vpop.f32.mrf.mxu1  ;;  %v4324_v6 = vpop.f32.mrf.mxu0  ;;  %5023 = vst [vmem:[#allocation4 + $0x108] sm:$0x1] %v5022_v60 }
 0x42f   : > { %v12748_v0 = vadd.f32 %v4324_v6, %v3843_v16  ;;  %v3851_v49 = vadd.f32 %v12633_v13, %v3850_v22  ;;  %v5071_v22 = vld [vmem:[#allocation4 + $0x11c] sm:$0x8] }
 0x430   : > { %v3852_v28 = vpop.f32.mrf.mxu1  ;;  %v4326_v61 = vpop.f32.mrf.mxu0 }
 0x431   : > { %v5072_v61 = vsel %vm12655_vm0, 0, %v5071_v22 }
 0x432   : > { %v3855_v31 = vpop.f32.mrf.mxu1  ;;  %v4329_v18 = vpop.f32.mrf.mxu0  ;;  %5073 = vst [vmem:[#allocation4 + $0x11c] sm:$0x8] %v5072_v61 }
 0x433   : > { %v12755_v2 = vadd.f32 %v4329_v18, %v3848_v23  ;;  %v3856_v27 = vadd.f32 %v12633_v13, %v3855_v31 }
 0x434   : > { %v3857_v59 = vpop.f32.mrf.mxu1  ;;  %v4331_v1 = vpop.f32.mrf.mxu0 }
 0x436   : > { %v3858_v48 = vpop.f32.mrf.mxu1  ;;  %v4332_v53 = vpop.f32.mrf.mxu0 }
 0x437   : > { %v12758_v54 = vadd.f32 %v4332_v53, %v3851_v49  ;;  %v3859_v7 = vadd.f32 %v12633_v13, %v3858_v48  ;;  %v10286_v49 = vld [vmem:[#allocation7 + $0x118] sm:$0xff]  }
 0x438   : > { %v3860_v43 = vpop.f32.mrf.mxu1  ;;  %v4334_v37 = vpop.f32.mrf.mxu0  ;;  %v10287_v48 = vld [vmem:[#allocation7 + $0xd8] sm:$0xff]   ;;  %9457 = vmatprep.subr.bf16.mxu0 %v10286_v49 }
 0x439   : > { %v5025_v37 = vsel %vm12636_vm15, 0, %v5024_v8  ;;  %9458 = vmatpush3.bf16.msra.mxu0 %v10287_v48 }
 0x43a   : > { %v3863_v15 = vpop.f32.mrf.mxu1  ;;  %v4337_v11 = vpop.f32.mrf.mxu0  ;;  %5026 = vst [vmem:[#allocation4 + $0x120] sm:$0x1] %v5025_v37  ;;  %v5081_v37 = vsel %vm12655_vm0, 0, %v5080_v36 }
 0x43b   : > { %v12763_v46 = vadd.f32 %v4337_v11, %v3856_v27  ;;  %v3864_v16 = vadd.f32 %v12633_v13, %v3863_v15  ;;  %5082 = vst [vmem:[#allocation4 + $0x164] sm:$0x8] %v5081_v37  ;;  %v5036_v37 = vld [vmem:[#allocation4 + $0x180] sm:$0x1] }
 0x43c   : > { %v3865_v42 = vpop.f32.mrf.mxu1  ;;  %v4339_v25 = vpop.f32.mrf.mxu0 }
 0x43e   : > { %v3866_v58 = vpop.f32.mrf.mxu1  ;;  %v4340_v14 = vpop.f32.mrf.mxu0 }
 0x43f   : > { %v12768_v10 = vadd.f32 %v4340_v14, %v3859_v7  ;;  %v3867_v47 = vadd.f32 %v12633_v13, %v3866_v58  ;;  %v5027_v7 = vld [vmem:[#allocation4 + $0x138] sm:$0x1] }
 0x440   : > { %v3868_v63 = vpop.f32.mrf.mxu1  ;;  %v4342_v55 = vpop.f32.mrf.mxu0  ;;  %v5028_v44 = vsel %vm12636_vm15, 0, %v5027_v7 }
 0x441   : > { %5029 = vst [vmem:[#allocation4 + $0x138] sm:$0x1] %v5028_v44  ;;  %v5033_v44 = vld [vmem:[#allocation4 + $0x168] sm:$0x1] }
 0x442   : > { %v3871_v6 = vpop.f32.mrf.mxu1  ;;  %v4345_v28 = vpop.f32.mrf.mxu0 }
 0x443   : > { %v12775_v19 = vadd.f32 %v4345_v28, %v3864_v16  ;;  %v3872_v53 = vadd.f32 %v12633_v13, %v3871_v6  ;;  %v5077_v16 = vld [vmem:[#allocation4 + $0x14c] sm:$0x8] }
 0x444   : > { %v3873_v38 = vpop.f32.mrf.mxu1  ;;  %v4347_v23 = vpop.f32.mrf.mxu0  ;;  %v5078_v6 = vsel %vm12655_vm0, 0, %v5077_v16  ;;  %v5083_v16 = vld [vmem:[#allocation4 + $0x17c] sm:$0x8] }
 0x445   : > { %5079 = vst [vmem:[#allocation4 + $0x14c] sm:$0x8] %v5078_v6 }
 0x446   : > { %v3874_v3 = vpop.f32.mrf.mxu1  ;;  %v4348_v31 = vpop.f32.mrf.mxu0 }
 0x447   : > { %v12778_v18 = vadd.f32 %v4348_v31, %v3867_v47  ;;  %v3875_v5 = vadd.f32 %v12633_v13, %v3874_v3  ;;  %v10296_v31 = vld [vmem:[#allocation7 + $0x110] sm:$0xff]  }
 0x448   : > { %v3876_v59 = vpop.f32.mrf.mxu1  ;;  %v4350_v1 = vpop.f32.mrf.mxu0  ;;  %9459 = vmatprep.subr.bf16.mxu0 %v10296_v31 }
 0x449   : > { %v10297_v59 = vld [vmem:[#allocation7 + $0xd0] sm:$0xff]   ;;  %v5030_v1 = vld [vmem:[#allocation4 + $0x150] sm:$0x1] }
 0x44a   : > { %v3879_v50 = vpop.f32.mrf.mxu1  ;;  %v4353_v43 = vpop.f32.mrf.mxu0  ;;  %9460 = vmatpush3.bf16.msra.mxu0 %v10297_v59 }
 0x44b   : > { %v12785_v27 = vadd.f32 %v4353_v43, %v3872_v53  ;;  %v3880_v63 = vadd.f32 %v12633_v13, %v3879_v50  ;;  %v5031_v53 = vsel %vm12636_vm15, 0, %v5030_v1 }
 0x44c   : > { %v3881_v15 = vpop.f32.mrf.mxu1  ;;  %v4355_v11 = vpop.f32.mrf.mxu0  ;;  %5032 = vst [vmem:[#allocation4 + $0x150] sm:$0x1] %v5031_v53 }
 0x44e   : > { %v3882_v4 = vpop.f32.mrf.mxu1  ;;  %v4356_v42 = vpop.f32.mrf.mxu0 }
 0x44f   : > { %v12788_v25 = vadd.f32 %v4356_v42, %v3875_v5  ;;  %v3883_v38 = vadd.f32 %v12633_v13, %v3882_v4 }
 0x450   : > { %v3884_v58 = vpop.f32.mrf.mxu1  ;;  %v4358_v14 = vpop.f32.mrf.mxu0 }
 0x452   : > { %v3887_v55 = vpop.f32.mrf.mxu1  ;;  %v4361_v60 = vpop.f32.mrf.mxu0 }
 0x453   : > { %v12793_v22 = vadd.f32 %v4361_v60, %v3880_v63  ;;  %v3888_v8 = vadd.f32 %v12633_v13, %v3887_v55  ;;  %v12810_v63 = vld [vmem:[#allocation7 + $0x178] sm:$0xff]   ;;  %v5034_v60 = vsel %vm12636_vm15, 0, %v5033_v44 }
 0x454   : > { %v3889_v28 = vpop.f32.mrf.mxu1  ;;  %v4363_v61 = vpop.f32.mrf.mxu0  ;;  %5035 = vst [vmem:[#allocation4 + $0x168] sm:$0x1] %v5034_v60  ;;  %9871 = vmatprep.subr.bf16.mxu1 %v12810_v63 }
 0x455   : > { %v5084_v61 = vsel %vm12655_vm0, 0, %v5083_v16 }
 0x456   : > { %v3890_v23 = vpop.f32.mrf.mxu1  ;;  %v4364_v47 = vpop.f32.mrf.mxu0  ;;  %5085 = vst [vmem:[#allocation4 + $0x17c] sm:$0x8] %v5084_v61 }
 0x457   : > { %v12798_v3 = vadd.f32 %v4364_v47, %v3883_v38  ;;  %v3891_v5 = vadd.f32 %v12633_v13, %v3890_v23 }
 0x458   : > { %v3892_v49 = vpop.f32.mrf.mxu1  ;;  %v4366_v48 = vpop.f32.mrf.mxu0 }
 0x45a   : > { %v3895_v50 = vpop.f32.mrf.mxu1  ;;  %v4369_v43 = vpop.f32.mrf.mxu0 }
 0x45b   : > { %v12805_v9 = vadd.f32 %v4369_v43, %v3888_v8  ;;  %v3896_v55 = vadd.f32 %v12633_v13, %v3895_v50  ;;  %v10307_v50 = vld [vmem:[#allocation7 + $0x108] sm:$0xff]  }
 0x45c   : > { %v3897_v15 = vpop.f32.mrf.mxu1  ;;  %v4371_v11 = vpop.f32.mrf.mxu0  ;;  %v10308_v43 = vld [vmem:[#allocation7 + $0xc8] sm:$0xff]   ;;  %9461 = vmatprep.subr.bf16.mxu0 %v10307_v50  ;;  %v10320_v50 = vld [vmem:[#allocation7 + $0x100] sm:$0xff]  }
 0x45d   : > { %9462 = vmatpush3.bf16.msra.mxu0 %v10308_v43 }
 0x45e   : > { %v3898_v4 = vpop.f32.mrf.mxu1  ;;  %v4372_v42 = vpop.f32.mrf.mxu0  ;;  %9463 = vmatprep.subr.bf16.mxu0 %v10320_v50 }
 0x45f   : > { %v12808_v7 = vadd.f32 %v4372_v42, %v3891_v5  ;;  %v3899_v59 = vadd.f32 %v12633_v13, %v3898_v4 }
 0x460   : > { %v3900_v58 = vpop.f32.mrf.mxu1  ;;  %v4374_v14 = vpop.f32.mrf.mxu0 }
 0x461   : > { %v5086_v58 = vld [vmem:[#allocation4 + $0x194] sm:$0x8] }
 0x462   : > { %v4377_v6 = vpop.f32.mrf.mxu0  ;;  %v4772_v28 = vpop.f32.mrf.mxu1 }
 0x463   : > { %v12818_v38 = vadd.f32 %v4377_v6, %v3896_v55  ;;  %v4899_v23 = vadd.f32 %v4772_v28, %v12645_v40  ;;  %v5037_v40 = vsel %vm12636_vm15, 0, %v5036_v37  ;;  %v5087_v28 = vsel %vm12655_vm0, 0, %v5086_v58 }
 0x464   : > { %v4379_v47 = vpop.f32.mrf.mxu0  ;;  %v4774_v31 = vpop.f32.mrf.mxu1  ;;  %5038 = vst [vmem:[#allocation4 + $0x180] sm:$0x1] %v5037_v40  ;;  %5088 = vst [vmem:[#allocation4 + $0x194] sm:$0x8] %v5087_v28 }
 0x465   : > { %v4931_v1 = vmax.f32 %v4899_v23, 0.0 }
 0x466   : > { %v4380_v49 = vpop.f32.mrf.mxu0  ;;  %v4775_v48 = vpop.f32.mrf.mxu1 }
 0x467   : > { %v9230_v53 = vpack.c.bf16 %v4931_v1, %v4931_v1  ;;  %v12822_v8 = vadd.f32 %v4380_v49, %v3899_v59  ;;  %v4900_v36 = vadd.f32 %v4775_v48, %v12651_v35 }
 0x468   : > { %v4382_v15 = vpop.f32.mrf.mxu0  ;;  %v4777_v11 = vpop.f32.mrf.mxu1 }
 0x469   : > { %v5170_v5 = vshrl.u32 %v9230_v53, 16  ;;  %v5173_v42 = vshll.u32 %v9230_v53, 16  ;;  %5555 = vst [vmem:[#allocation4 + $0x1c] sm:$0xf] %v9230_v53  ;;  %v4932_v13 = vmax.f32 %v4900_v36, 0.0  ;;  %v10321_v15 = vld [vmem:[#allocation7 + $0xc0] sm:$0xff]  }
 0x46a   : > { %v4780_v4 = vpop.f32.mrf.mxu1  ;;  %9464 = vmatpush3.bf16.msra.mxu0 %v10321_v15 }
 0x46b   : > { %v5172_v14 = vrot.slane %v5170_v5, 7  ;;  %v5587_v44 = vrot.slane %v5170_v5, 4  ;;  %v5588_v35 = vrot.slane %v5173_v42, 5  ;;  %v9231_v55 = vpack.c.bf16 %v4932_v13, %v4932_v13 }
 0x46c   : > { %v4901_v16 = vadd.f32 %v4780_v4, %v12662_v52  ;;  %v4782_v6 = vpop.f32.mrf.mxu1 }
 0x46d   : > { %v5175_v61 = vor.u32 %v5173_v42, %v5172_v14  ;;  %v5589_v23 = vor.u32 %v5588_v35, %v5587_v44  ;;  %v5178_v47 = vshrl.u32 %v9231_v55, 16  ;;  %5556 = vst [vmem:[#allocation4 + $0x28] sm:$0xf] %v9231_v55  ;;  %v5181_v31 = vshll.u32 %v9231_v55, 16  ;;  %v10335_v44 = vld [vmem:[#allocation7 + $0x238] sm:$0xff]   ;;  %v10365_v35 = vld [vmem:[#allocation7 + $0x1f0] sm:$0xff]  }
 0x46e   : > { %v4933_v59 = vmax.f32 %v4901_v16, 0.0  ;;  %v4783_v1 = vpop.f32.mrf.mxu1  ;;  %v5176_v11 = vrot.slane %v5172_v14, 4  ;;  %v5765_v14 = vld [vmem:[#allocation4 + $0x2c] sm:$0xf]  ;;  %9919 = vmatprep.subr.bf16.mxu0 %v10335_v44 }
 0x46f   : > { %v5460_v49 = vsel %vm12829_vm4, %v5175_v61, %v5459_v24  ;;  %v5590_v48 = vrot.slane %v5589_v23, 4  ;;  %v5180_v53 = vrot.slane %v5178_v47, 7  ;;  %v5593_v36 = vrot.slane %v5178_v47, 4  ;;  %v5463_v47 = vld [vmem:[#allocation4 + $0x30] sm:$0xf] }
 0x470   : > { %5461 = vst [vmem:[#allocation4 + $0x18] sm:$0xf] %v5460_v49  ;;  %v5591_v52 = vrot.slane %v5181_v31, 5  ;;  %v9232_v43 = vpack.c.bf16 %v4933_v59, %v4933_v59  ;;  %v4902_v56 = vadd.f32 %v4783_v1, %v12667_v51  ;;  %v4785_v37 = vpop.f32.mrf.mxu1 }
 0x471   : > { %v5183_v40 = vor.u32 %v5181_v31, %v5180_v53 }
 0x472   : > { %v5592_v5 = vsel %vm10711_vm13, %v5590_v48, %v5591_v52  ;;  %v5594_v42 = vor.u32 %v5593_v36, %v5591_v52  ;;  %v5186_v13 = vshrl.u32 %v9232_v43, 16  ;;  %v5189_v4 = vshll.u32 %v9232_v43, 16  ;;  %5557 = vst [vmem:[#allocation4 + $0x34] sm:$0xf] %v9232_v43  ;;  %v4788_v58 = vpop.f32.mrf.mxu1 }
 0x473   : > { %v5184_v51 = vsel %vm10702_vm12, %v5176_v11, %v5183_v40  ;;  %5763 = vst [vmem:[#allocation4 + $0x20] sm:$0xf] %v5592_v5  ;;  %v4934_v55 = vmax.f32 %v4902_v56, 0.0  ;;  %v4903_v24 = vadd.f32 %v4788_v58, %v12675_v12 }
 0x474   : > { %5462 = vst [vmem:[#allocation4 + $0x24] sm:$0xf] %v5184_v51  ;;  %v5595_v16 = vrot.slane %v5594_v42, 4  ;;  %v5188_v6 = vrot.slane %v5186_v13, 7  ;;  %v5596_v28 = vrot.slane %v5186_v13, 4  ;;  %v5597_v61 = vrot.slane %v5189_v4, 5  ;;  %v4790_v23 = vpop.f32.mrf.mxu1 }
 0x475   : > { %v9233_v31 = vpack.c.bf16 %v4934_v55, %v4934_v55  ;;  %v4935_v59 = vmax.f32 %v4903_v24, 0.0  ;;  %v5769_v13 = vld [vmem:[#allocation4 + $0x44] sm:$0xf] }
 0x476   : > { %v5766_v1 = vsel %vm12843_vm7, %v5595_v16, %v5765_v14  ;;  %v5191_v49 = vor.u32 %v5189_v4, %v5188_v6  ;;  %v5598_v48 = vor.u32 %v5597_v61, %v5596_v28  ;;  %v4791_v53 = vpop.f32.mrf.mxu1  ;;  %v5192_v43 = vrot.slane %v5188_v6, 4  ;;  %v10250_v16 = vld [vmem:[#allocation4 + $0x1c] ss:$12 sps:$4 sm:$0xff]  }
 0x477   : > { %5767 = vst [vmem:[#allocation4 + $0x2c] sm:$0xf] %v5766_v1  ;;  %v5194_v36 = vshrl.u32 %v9233_v31, 16  ;;  %v5197_v50 = vshll.u32 %v9233_v31, 16  ;;  %5558 = vst [vmem:[#allocation4 + $0x40] sm:$0xf] %v9233_v31  ;;  %v9234_v12 = vpack.c.bf16 %v4935_v59, %v4935_v59  ;;  %v4904_v52 = vadd.f32 %v4791_v53, %v12680_v20  ;;  %6387 = vmatprep.mubr.bf16.mxu0 %v10250_v16 }
 0x478   : > { %v5464_v56 = vsel %vm12829_vm4, %v5191_v49, %v5463_v47  ;;  %v5599_v37 = vrot.slane %v5598_v48, 4  ;;  %v4793_v15 = vpop.f32.mrf.mxu1  ;;  %v5467_v6 = vld [vmem:[#allocation4 + $0x48] sm:$0xf] }
 0x479   : > { %5465 = vst [vmem:[#allocation4 + $0x30] sm:$0xf] %v5464_v56  ;;  %v5196_v11 = vrot.slane %v5194_v36, 7  ;;  %v5600_v40 = vrot.slane %v5197_v50, 5  ;;  %v5602_v5 = vrot.slane %v5194_v36, 4  ;;  %v5202_v42 = vshrl.u32 %v9234_v12, 16 }
 0x47a   : > { %5559 = vst [vmem:[#allocation4 + $0x4c] sm:$0xf] %v9234_v12  ;;  %v5205_v4 = vshll.u32 %v9234_v12, 16  ;;  %v4936_v58 = vmax.f32 %v4904_v52, 0.0  ;;  %v4796_v44 = vpop.f32.mrf.mxu1 }
 0x47b   : > { %v5199_v51 = vor.u32 %v5197_v50, %v5196_v11  ;;  %v5601_v20 = vsel %vm10711_vm13, %v5599_v37, %v5600_v40  ;;  %v5603_v14 = vor.u32 %v5602_v5, %v5600_v40  ;;  %v5204_v55 = vrot.slane %v5202_v42, 7  ;;  %v10248_v24 = vld [vmem:[#allocation4 + $0x18] ss:$12 sps:$4 sm:$0xff]  }
 0x47c   : > { %5768 = vst [vmem:[#allocation4 + $0x38] sm:$0xf] %v5601_v20  ;;  %v5605_v28 = vrot.slane %v5202_v42, 4  ;;  %v5606_v61 = vrot.slane %v5205_v4, 5  ;;  %v9235_v23 = vpack.c.bf16 %v4936_v58, %v4936_v58  ;;  %v4905_v47 = vadd.f32 %v4796_v44, %v12688_v41  ;;  %v4798_v31 = vpop.f32.mrf.mxu1  ;;  %6388 = vmatmul.mubr.bf16.gmra.mxu0 %v10248_v24  ;;  %v10310_v37 = vld [vmem:[#allocation7 + $0x170] sm:$0xff]   ;;  %v10315_v24 = vld [vmem:[#allocation7 + $0x168] sm:$0xff]  }
 0x47d   : > { %v5200_v59 = vsel %vm10702_vm12, %v5192_v43, %v5199_v51  ;;  %v5604_v1 = vrot.slane %v5603_v14, 4  ;;  %v5207_v49 = vor.u32 %v5205_v4, %v5204_v55  ;;  %v5208_v44 = vrot.slane %v5204_v55, 4  ;;  %v5773_v14 = vld [vmem:[#allocation4 + $0x5c] sm:$0xf]  ;;  %v10329_v34 = vld [vmem:[#allocation4 + $0x18] ss:$12 sps:$4 sm:$0xff]  }
 0x47e   : > { %5466 = vst [vmem:[#allocation4 + $0x3c] sm:$0xf] %v5200_v59  ;;  %v5607_v48 = vor.u32 %v5606_v61, %v5605_v28  ;;  %v5210_v53 = vshrl.u32 %v9235_v23, 16  ;;  %v5213_v36 = vshll.u32 %v9235_v23, 16  ;;  %5560 = vst [vmem:[#allocation4 + $0x58] sm:$0xf] %v9235_v23  ;;  %v4799_v12 = vpop.f32.mrf.mxu1 }
 0x47f   : > { %v4937_v50 = vmax.f32 %v4905_v47, 0.0  ;;  %v5770_v52 = vsel %vm12843_vm7, %v5604_v1, %v5769_v13  ;;  %v5468_v41 = vsel %vm12829_vm4, %v5207_v49, %v5467_v6  ;;  %v4906_v56 = vadd.f32 %v4799_v12, %v12693_v17  ;;  %v10252_v43 = vld [vmem:[#allocation4 + $0x20] ss:$12 sps:$4 sm:$0xff]  }
 0x480   : > { %5771 = vst [vmem:[#allocation4 + $0x44] sm:$0xf] %v5770_v52  ;;  %5469 = vst [vmem:[#allocation4 + $0x48] sm:$0xf] %v5468_v41  ;;  %v5608_v15 = vrot.slane %v5607_v48, 4  ;;  %v5212_v11 = vrot.slane %v5210_v53, 7  ;;  %v4801_v42 = vpop.f32.mrf.mxu1  ;;  %9840 = vmatmul.mubr.bf16.vlgmr.msra.gmra.mxu1 %v10252_v43 }
 0x481   : > { %v5609_v40 = vrot.slane %v5213_v36, 5  ;;  %v5611_v5 = vrot.slane %v5210_v53, 4  ;;  %v9236_v4 = vpack.c.bf16 %v4937_v50, %v4937_v50  ;;  %v4938_v58 = vmax.f32 %v4906_v56, 0.0  ;;  %9872 = vmatpush3.bf16.msra.mxu1 %v12810_v63  ;;  %v5471_v47 = vld [vmem:[#allocation4 + $0x60] sm:$0xf] }
 0x482   : > { %v5215_v51 = vor.u32 %v5213_v36, %v5212_v11  ;;  %v4804_v17 = vpop.f32.mrf.mxu1  ;;  %9873 = vmatprep.subr.bf16.mxu1 %v10310_v37  ;;  %v10255_v12 = vld [vmem:[#allocation4 + $0x34] ss:$12 sps:$4 sm:$0xff]  }
 0x483   : > { %v5610_v13 = vsel %vm10711_vm13, %v5608_v15, %v5609_v40  ;;  %v5612_v20 = vor.u32 %v5611_v5, %v5609_v40  ;;  %v5218_v16 = vshrl.u32 %v9236_v4, 16  ;;  %v5221_v6 = vshll.u32 %v9236_v4, 16  ;;  %5561 = vst [vmem:[#allocation4 + $0x64] sm:$0xf] %v9236_v4  ;;  %v10316_v15 = vld [vmem:[#allocation7 + $0x160] sm:$0xff]   ;;  %6395 = vmatprep.mubr.bf16.mxu0 %v10255_v12 }
 0x484   : > { %5772 = vst [vmem:[#allocation4 + $0x50] sm:$0xf] %v5610_v13  ;;  %v9237_v28 = vpack.c.bf16 %v4938_v58, %v4938_v58  ;;  %v4907_v61 = vadd.f32 %v4804_v17, %v12699_v39  ;;  %v5216_v55 = vsel %vm10702_vm12, %v5208_v44, %v5215_v51  ;;  %v4806_v31 = vpop.f32.mrf.mxu1  ;;  %v5777_v13 = vld [vmem:[#allocation4 + $0x74] sm:$0xf]  ;;  %v10333_v30 = vld [vmem:[#allocation4 + $0x20] ss:$12 sps:$4 sm:$0xff]  }
 0x485   : > { %v5613_v23 = vrot.slane %v5612_v20, 4  ;;  %5470 = vst [vmem:[#allocation4 + $0x54] sm:$0xf] %v5216_v55  ;;  %v5220_v59 = vrot.slane %v5218_v16, 7  ;;  %v5614_v1 = vrot.slane %v5218_v16, 4  ;;  %v5615_v49 = vrot.slane %v5221_v6, 5  ;;  %9874 = vmatpush3.bf16.msra.mxu1 %v10310_v37 }
 0x486   : > { %v5226_v63 = vshrl.u32 %v9237_v28, 16  ;;  %5562 = vst [vmem:[#allocation4 + $0x70] sm:$0xf] %v9237_v28  ;;  %v5229_v53 = vshll.u32 %v9237_v28, 16  ;;  %v4939_v36 = vmax.f32 %v4907_v61, 0.0  ;;  %v4807_v50 = vpop.f32.mrf.mxu1  ;;  %9875 = vmatprep.subr.bf16.mxu1 %v10315_v24 }
 0x487   : > { %v5774_v48 = vsel %vm12843_vm7, %v5613_v23, %v5773_v14  ;;  %v10253_v39 = vld [vmem:[#allocation4 + $0x30] ss:$12 sps:$4 sm:$0xff]   ;;  %v5223_v52 = vor.u32 %v5221_v6, %v5220_v59  ;;  %v5616_v41 = vor.u32 %v5615_v49, %v5614_v1  ;;  %v10258_v43 = vld [vmem:[#allocation4 + $0x38] ss:$12 sps:$4 sm:$0xff]   ;;  %v4908_v42 = vadd.f32 %v4807_v50, %v12706_v33  ;;  %v10323_v23 = vld [vmem:[#allocation7 + $0x158] sm:$0xff]  }
 0x488   : > { %5775 = vst [vmem:[#allocation4 + $0x5c] sm:$0xf] %v5774_v48  ;;  %v5228_v56 = vrot.slane %v5226_v63, 7  ;;  %v5618_v11 = vrot.slane %v5229_v53, 5  ;;  %v5620_v40 = vrot.slane %v5226_v63, 4  ;;  %v9238_v5 = vpack.c.bf16 %v4939_v36, %v4939_v36  ;;  %v4809_v4 = vpop.f32.mrf.mxu1  ;;  %6396 = vmatmul.mubr.bf16.gmra.mxu0 %v10253_v39  ;;  %9843 = vmatprep.mubr.bf16.mxu1 %v10258_v43 }
 0x489   : > { %v5224_v58 = vrot.slane %v5220_v59, 4  ;;  %v5472_v44 = vsel %vm12829_vm4, %v5223_v52, %v5471_v47  ;;  %v5617_v51 = vrot.slane %v5616_v41, 4  ;;  %v4940_v16 = vmax.f32 %v4908_v42, 0.0  ;;  %9876 = vmatpush3.bf16.msra.mxu1 %v10315_v24  ;;  %v5475_v61 = vld [vmem:[#allocation4 + $0x78] sm:$0xf] }
 0x48a   : > { %v5231_v37 = vor.u32 %v5229_v53, %v5228_v56  ;;  %5473 = vst [vmem:[#allocation4 + $0x60] sm:$0xf] %v5472_v44  ;;  %v5621_v20 = vor.u32 %v5620_v40, %v5618_v11  ;;  %v5234_v14 = vshrl.u32 %v9238_v5, 16  ;;  %v5237_v17 = vshll.u32 %v9238_v5, 16  ;;  %5563 = vst [vmem:[#allocation4 + $0x7c] sm:$0xf] %v9238_v5  ;;  %v4812_v6 = vpop.f32.mrf.mxu1  ;;  %9877 = vmatprep.subr.bf16.mxu1 %v10316_v15 }
 0x48b   : > { %v5619_v28 = vsel %vm10711_vm13, %v5617_v51, %v5618_v11  ;;  %v4909_v55 = vadd.f32 %v4812_v6, %v12714_v62  ;;  %v9239_v63 = vpack.c.bf16 %v4940_v16, %v4940_v16  ;;  %v10261_v53 = vld [vmem:[#allocation4 + $0x4c] ss:$12 sps:$4 sm:$0xff]   ;;  %v10324_v11 = vld [vmem:[#allocation7 + $0x150] sm:$0xff]  }
 0x48c   : > { %v5232_v33 = vsel %vm10702_vm12, %v5224_v58, %v5231_v37  ;;  %v5622_v47 = vrot.slane %v5621_v20, 4  ;;  %5776 = vst [vmem:[#allocation4 + $0x68] sm:$0xf] %v5619_v28  ;;  %v5236_v31 = vrot.slane %v5234_v14, 7  ;;  %v5623_v59 = vrot.slane %v5234_v14, 4  ;;  %v4814_v49 = vpop.f32.mrf.mxu1  ;;  %6403 = vmatprep.mubr.bf16.mxu0 %v10261_v53 }
 0x48d   : > { %5474 = vst [vmem:[#allocation4 + $0x6c] sm:$0xf] %v5232_v33  ;;  %v5624_v1 = vrot.slane %v5237_v17, 5  ;;  %v4941_v24 = vmax.f32 %v4909_v55, 0.0  ;;  %v10259_v48 = vld [vmem:[#allocation4 + $0x48] ss:$12 sps:$4 sm:$0xff]   ;;  %9878 = vmatpush3.bf16.msra.mxu1 %v10316_v15 }
 0x48e   : > { %v5778_v36 = vsel %vm12843_vm7, %v5622_v47, %v5777_v13  ;;  %v5239_v50 = vor.u32 %v5237_v17, %v5236_v31  ;;  %v4815_v12 = vpop.f32.mrf.mxu1  ;;  %v5242_v52 = vshrl.u32 %v9239_v63, 16  ;;  %v5245_v41 = vshll.u32 %v9239_v63, 16  ;;  %5564 = vst [vmem:[#allocation4 + $0x88] sm:$0xf] %v9239_v63  ;;  %9879 = vmatprep.subr.bf16.mxu1 %v10323_v23  ;;  %v5781_v37 = vld [vmem:[#allocation4 + $0x8c] sm:$0xf] }
 0x48f   : > { %v5625_v39 = vor.u32 %v5624_v1, %v5623_v59  ;;  %v10262_v62 = vld [vmem:[#allocation4 + $0x50] ss:$12 sps:$4 sm:$0xff]   ;;  %5779 = vst [vmem:[#allocation4 + $0x74] sm:$0xf] %v5778_v36  ;;  %v9240_v56 = vpack.c.bf16 %v4941_v24, %v4941_v24  ;;  %v4910_v43 = vadd.f32 %v4815_v12, %v12718_v29  ;;  %v5240_v51 = vrot.slane %v5236_v31, 4 }
 0x490   : > { %v5476_v40 = vsel %vm12829_vm4, %v5239_v50, %v5475_v61  ;;  %v4817_v42 = vpop.f32.mrf.mxu1  ;;  %9844 = vmatmul.mubr.bf16.gmra.mxu1 %v10262_v62  ;;  %v5244_v4 = vrot.slane %v5242_v52, 7  ;;  %v5627_v58 = vrot.slane %v5245_v41, 5  ;;  %v5629_v15 = vrot.slane %v5242_v52, 4  ;;  %6404 = vmatmul.mubr.bf16.gmra.mxu0 %v10259_v48  ;;  %v5479_v29 = vld [vmem:[#allocation4 + $0x90] sm:$0xf]  ;;  %v10332_v61 = vld [vmem:[#allocation7 + $0x148] sm:$0xff]  }
 0x491   : > { %v5626_v5 = vrot.slane %v5625_v39, 4  ;;  %5477 = vst [vmem:[#allocation4 + $0x78] sm:$0xf] %v5476_v40  ;;  %v5250_v44 = vshrl.u32 %v9240_v56, 16  ;;  %5565 = vst [vmem:[#allocation4 + $0x94] sm:$0xf] %v9240_v56  ;;  %9880 = vmatpush3.bf16.msra.mxu1 %v10323_v23 }
 0x492   : > { %v5253_v13 = vshll.u32 %v9240_v56, 16  ;;  %v4942_v20 = vmax.f32 %v4910_v43, 0.0  ;;  %v4820_v14 = vpop.f32.mrf.mxu1  ;;  %v5247_v17 = vor.u32 %v5245_v41, %v5244_v4  ;;  %v5630_v6 = vor.u32 %v5629_v15, %v5627_v58  ;;  %v10265_v28 = vld [vmem:[#allocation4 + $0x64] ss:$12 sps:$4 sm:$0xff]   ;;  %9881 = vmatprep.subr.bf16.mxu1 %v10324_v11 }
 0x493   : > { %v5628_v16 = vsel %vm10711_vm13, %v5626_v5, %v5627_v58  ;;  %v5252_v33 = vrot.slane %v5250_v44, 7  ;;  %v5632_v55 = vrot.slane %v5250_v44, 4  ;;  %v4911_v31 = vadd.f32 %v4820_v14, %v12725_v32  ;;  %6411 = vmatprep.mubr.bf16.mxu0 %v10265_v28  ;;  %v10334_v41 = vld [vmem:[#allocation7 + $0x140] sm:$0xff]  }
 0x494   : > { %5780 = vst [vmem:[#allocation4 + $0x80] sm:$0xf] %v5628_v16  ;;  %v5633_v47 = vrot.slane %v5253_v13, 5  ;;  %v9241_v59 = vpack.c.bf16 %v4942_v20, %v4942_v20  ;;  %v4822_v1 = vpop.f32.mrf.mxu1  ;;  %v5248_v49 = vsel %vm10702_vm12, %v5240_v51, %v5247_v17  ;;  %v5631_v23 = vrot.slane %v5630_v6, 4  ;;  %v10263_v24 = vld [vmem:[#allocation4 + $0x60] ss:$12 sps:$4 sm:$0xff]  }
 0x495   : > { %v5255_v63 = vor.u32 %v5253_v13, %v5252_v33  ;;  %5478 = vst [vmem:[#allocation4 + $0x84] sm:$0xf] %v5248_v49  ;;  %v4943_v50 = vmax.f32 %v4911_v31, 0.0  ;;  %9882 = vmatpush3.bf16.msra.mxu1 %v10324_v11  ;;  %v5256_v58 = vrot.slane %v5252_v33, 4  ;;  %v5785_v51 = vld [vmem:[#allocation4 + $0xa4] sm:$0xf] }
 0x496   : > { %v5634_v48 = vor.u32 %v5633_v47, %v5632_v55  ;;  %v5258_v53 = vshrl.u32 %v9241_v59, 16  ;;  %v5261_v36 = vshll.u32 %v9241_v59, 16  ;;  %5566 = vst [vmem:[#allocation4 + $0xa0] sm:$0xf] %v9241_v59  ;;  %v4823_v39 = vpop.f32.mrf.mxu1  ;;  %v5782_v12 = vsel %vm12843_vm7, %v5631_v23, %v5781_v37  ;;  %v10268_v52 = vld [vmem:[#allocation4 + $0x68] ss:$12 sps:$4 sm:$0xff]   ;;  %9883 = vmatprep.subr.bf16.mxu1 %v10332_v61 }
 0x497   : > { %v5480_v32 = vsel %vm12829_vm4, %v5255_v63, %v5479_v29  ;;  %v4912_v62 = vadd.f32 %v4823_v39, %v12728_v45  ;;  %5783 = vst [vmem:[#allocation4 + $0x8c] sm:$0xf] %v5782_v12  ;;  %v9242_v4 = vpack.c.bf16 %v4943_v50, %v4943_v50  ;;  %9847 = vmatprep.mubr.bf16.mxu1 %v10268_v52  ;;  %v10357_v13 = vld [vmem:[#allocation7 + $0x1f8] sm:$0xff]  }
 0x498   : > { %5481 = vst [vmem:[#allocation4 + $0x90] sm:$0xf] %v5480_v32  ;;  %v5635_v56 = vrot.slane %v5634_v48, 4  ;;  %v5260_v43 = vrot.slane %v5258_v53, 7  ;;  %v5636_v40 = vrot.slane %v5261_v36, 5  ;;  %v5638_v5 = vrot.slane %v5258_v53, 4  ;;  %v4825_v42 = vpop.f32.mrf.mxu1  ;;  %6412 = vmatmul.mubr.bf16.gmra.mxu0 %v10263_v24 }
 0x499   : > { %v4944_v11 = vmax.f32 %v4912_v62, 0.0  ;;  %9884 = vmatpush3.bf16.msra.mxu1 %v10332_v61  ;;  %v5266_v29 = vshrl.u32 %v9242_v4, 16  ;;  %v5269_v20 = vshll.u32 %v9242_v4, 16  ;;  %5567 = vst [vmem:[#allocation4 + $0xac] sm:$0xf] %v9242_v4 }
 0x49a   : > { %v5263_v15 = vor.u32 %v5261_v36, %v5260_v43  ;;  %v5637_v44 = vsel %vm10711_vm13, %v5635_v56, %v5636_v40  ;;  %v5639_v45 = vor.u32 %v5638_v5, %v5636_v40  ;;  %v4828_v37 = vpop.f32.mrf.mxu1  ;;  %9885 = vmatprep.subr.bf16.mxu1 %v10334_v41  ;;  %v5483_v33 = vld [vmem:[#allocation4 + $0xa8] sm:$0xf] }
 0x49b   : > { %5784 = vst [vmem:[#allocation4 + $0x98] sm:$0xf] %v5637_v44  ;;  %v9243_v14 = vpack.c.bf16 %v4944_v11, %v4944_v11  ;;  %v4913_v17 = vadd.f32 %v4828_v37, %v12733_v21  ;;  %v5268_v55 = vrot.slane %v5266_v29, 7  ;;  %v5641_v47 = vrot.slane %v5266_v29, 4  ;;  %v10271_v63 = vld [vmem:[#allocation4 + $0x7c] ss:$12 sps:$4 sm:$0xff]  }
 0x49c   : > { %v5264_v16 = vsel %vm10702_vm12, %v5256_v58, %v5263_v15  ;;  %v5640_v6 = vrot.slane %v5639_v45, 4  ;;  %v4830_v28 = vpop.f32.mrf.mxu1  ;;  %v5642_v59 = vrot.slane %v5269_v20, 5  ;;  %v10269_v21 = vld [vmem:[#allocation4 + $0x78] ss:$12 sps:$4 sm:$0xff]   ;;  %6419 = vmatprep.mubr.bf16.mxu0 %v10271_v63  ;;  %v5789_v15 = vld [vmem:[#allocation4 + $0xbc] sm:$0xf] }
 0x49d   : > { %5482 = vst [vmem:[#allocation4 + $0x9c] sm:$0xf] %v5264_v16  ;;  %v5274_v61 = vshrl.u32 %v9243_v14, 16  ;;  %5568 = vst [vmem:[#allocation4 + $0xb8] sm:$0xf] %v9243_v14  ;;  %v5277_v1 = vshll.u32 %v9243_v14, 16  ;;  %9886 = vmatpush3.bf16.msra.mxu1 %v10334_v41  ;;  %v5271_v24 = vor.u32 %v5269_v20, %v5268_v55 }
 0x49e   : > { %v5786_v31 = vsel %vm12843_vm7, %v5640_v6, %v5785_v51  ;;  %v4945_v49 = vmax.f32 %v4913_v17, 0.0  ;;  %v4831_v23 = vpop.f32.mrf.mxu1  ;;  %v5643_v48 = vor.u32 %v5642_v59, %v5641_v47  ;;  %v10272_v36 = vld [vmem:[#allocation4 + $0x80] ss:$12 sps:$4 sm:$0xff]   ;;  %9585 = vmatprep.subr.bf16.mxu1 %v10357_v13  ;;  %v5272_v52 = vrot.slane %v5268_v55, 4 }
 0x49f   : > { %5787 = vst [vmem:[#allocation4 + $0xa4] sm:$0xf] %v5786_v31  ;;  %v5276_v53 = vrot.slane %v5274_v61, 7  ;;  %v5645_v50 = vrot.slane %v5277_v1, 5  ;;  %v5647_v39 = vrot.slane %v5274_v61, 4  ;;  %v4914_v32 = vadd.f32 %v4831_v23, %v12738_v26  ;;  %9848 = vmatmul.mubr.bf16.gmra.mxu1 %v10272_v36 }
 0x4a0   : > { %v9244_v12 = vpack.c.bf16 %v4945_v49, %v4945_v49  ;;  %v4833_v62 = vpop.f32.mrf.mxu1  ;;  %v5484_v56 = vsel %vm12829_vm4, %v5271_v24, %v5483_v33  ;;  %v5644_v43 = vrot.slane %v5643_v48, 4  ;;  %6420 = vmatmul.mubr.bf16.gmra.mxu0 %v10269_v21  ;;  %v5487_v44 = vld [vmem:[#allocation4 + $0xc0] sm:$0xf] }
 0x4a1   : > { %v5279_v40 = vor.u32 %v5277_v1, %v5276_v53  ;;  %5485 = vst [vmem:[#allocation4 + $0xa8] sm:$0xf] %v5484_v56  ;;  %v5648_v41 = vor.u32 %v5647_v39, %v5645_v50  ;;  %v4946_v4 = vmax.f32 %v4914_v32, 0.0  ;;  %v10275_v6 = vld [vmem:[#allocation4 + $0x94] ss:$12 sps:$4 sm:$0xff]  }
 0x4a2   : > { %v5282_v5 = vshrl.u32 %v9244_v12, 16  ;;  %v5285_v42 = vshll.u32 %v9244_v12, 16  ;;  %5569 = vst [vmem:[#allocation4 + $0xc4] sm:$0xf] %v9244_v12  ;;  %v4836_v11 = vpop.f32.mrf.mxu1  ;;  %v5646_v58 = vsel %vm10711_vm13, %v5644_v43, %v5645_v50  ;;  %6427 = vmatprep.mubr.bf16.mxu0 %v10275_v6  ;;  %v5793_v50 = vld [vmem:[#allocation4 + $0xd4] sm:$0xf] }
 0x4a3   : > { %v5280_v26 = vsel %vm10702_vm12, %v5272_v52, %v5279_v40  ;;  %v4915_v45 = vadd.f32 %v4836_v11, %v12745_v57  ;;  %v5649_v51 = vrot.slane %v5648_v41, 4  ;;  %5788 = vst [vmem:[#allocation4 + $0xb0] sm:$0xf] %v5646_v58  ;;  %v9245_v14 = vpack.c.bf16 %v4946_v4, %v4946_v4  ;;  %v5491_v43 = vld [vmem:[#allocation4 + $0xd8] sm:$0xf] }
 0x4a4   : > { %5486 = vst [vmem:[#allocation4 + $0xb4] sm:$0xf] %v5280_v26  ;;  %v5284_v37 = vrot.slane %v5282_v5, 7  ;;  %v5650_v13 = vrot.slane %v5282_v5, 4  ;;  %v5651_v29 = vrot.slane %v5285_v42, 5  ;;  %v4838_v20 = vpop.f32.mrf.mxu1 }
 0x4a5   : > { %v4947_v17 = vmax.f32 %v4915_v45, 0.0  ;;  %v10273_v16 = vld [vmem:[#allocation4 + $0x90] ss:$12 sps:$4 sm:$0xff]   ;;  %v5790_v33 = vsel %vm12843_vm7, %v5649_v51, %v5789_v15  ;;  %v5290_v57 = vshrl.u32 %v9245_v14, 16  ;;  %v5293_v61 = vshll.u32 %v9245_v14, 16 }
 0x4a6   : > { %v5287_v28 = vor.u32 %v5285_v42, %v5284_v37  ;;  %v5652_v55 = vor.u32 %v5651_v29, %v5650_v13  ;;  %v4839_v47 = vpop.f32.mrf.mxu1  ;;  %v10278_v59 = vld [vmem:[#allocation4 + $0x98] ss:$12 sps:$4 sm:$0xff]   ;;  %5791 = vst [vmem:[#allocation4 + $0xbc] sm:$0xf] %v5790_v33  ;;  %5570 = vst [vmem:[#allocation4 + $0xd0] sm:$0xf] %v9245_v14 }
 0x4a7   : > { %v9246_v31 = vpack.c.bf16 %v4947_v17, %v4947_v17  ;;  %v4916_v1 = vadd.f32 %v4839_v47, %v12748_v0  ;;  %9851 = vmatprep.mubr.bf16.mxu1 %v10278_v59  ;;  %v5292_v63 = vrot.slane %v5290_v57, 7  ;;  %v5654_v24 = vrot.slane %v5293_v61, 5  ;;  %v10281_v40 = vld [vmem:[#allocation4 + $0xac] ss:$12 sps:$4 sm:$0xff]  }
 0x4a8   : > { %v5488_v49 = vsel %vm12829_vm4, %v5287_v28, %v5487_v44  ;;  %v5653_v23 = vrot.slane %v5652_v55, 4  ;;  %v4841_v21 = vpop.f32.mrf.mxu1  ;;  %v5656_v48 = vrot.slane %v5290_v57, 4  ;;  %6428 = vmatmul.mubr.bf16.gmra.mxu0 %v10273_v16  ;;  %v5288_v36 = vrot.slane %v5284_v37, 4 }
 0x4a9   : > { %5489 = vst [vmem:[#allocation4 + $0xc0] sm:$0xf] %v5488_v49  ;;  %v5298_v53 = vshrl.u32 %v9246_v31, 16  ;;  %5571 = vst [vmem:[#allocation4 + $0xdc] sm:$0xf] %v9246_v31  ;;  %v5301_v39 = vshll.u32 %v9246_v31, 16  ;;  %v5295_v0 = vor.u32 %v5293_v61, %v5292_v63  ;;  %6435 = vmatprep.mubr.bf16.mxu0 %v10281_v40 }
 0x4aa   : > { %v4948_v12 = vmax.f32 %v4916_v1, 0.0  ;;  %v4844_v32 = vpop.f32.mrf.mxu1  ;;  %v5655_v62 = vsel %vm10711_vm13, %v5653_v23, %v5654_v24  ;;  %v5657_v52 = vor.u32 %v5656_v48, %v5654_v24  ;;  %v5797_v49 = vld [vmem:[#allocation4 + $0xec] sm:$0xf] }
 0x4ab   : > { %v5300_v56 = vrot.slane %v5298_v53, 7  ;;  %5792 = vst [vmem:[#allocation4 + $0xc8] sm:$0xf] %v5655_v62  ;;  %v5659_v41 = vrot.slane %v5298_v53, 4  ;;  %v5660_v5 = vrot.slane %v5301_v39, 5  ;;  %v4917_v4 = vadd.f32 %v4844_v32, %v12755_v2 }
 0x4ac   : > { %v9247_v42 = vpack.c.bf16 %v4948_v12, %v4948_v12  ;;  %v4846_v11 = vpop.f32.mrf.mxu1  ;;  %v5296_v26 = vsel %vm10702_vm12, %v5288_v36, %v5295_v0  ;;  %v5658_v58 = vrot.slane %v5657_v52, 4  ;;  %v10279_v44 = vld [vmem:[#allocation4 + $0xa8] ss:$12 sps:$4 sm:$0xff]   ;;  %v5495_v36 = vld [vmem:[#allocation4 + $0xf0] sm:$0xf] }
 0x4ad   : > { %v5303_v15 = vor.u32 %v5301_v39, %v5300_v56  ;;  %5490 = vst [vmem:[#allocation4 + $0xcc] sm:$0xf] %v5296_v26  ;;  %v5661_v45 = vor.u32 %v5660_v5, %v5659_v41  ;;  %v4949_v13 = vmax.f32 %v4917_v4, 0.0  ;;  %v10282_v17 = vld [vmem:[#allocation4 + $0xb0] ss:$12 sps:$4 sm:$0xff]   ;;  %v5304_v57 = vrot.slane %v5300_v56, 4 }
 0x4ae   : > { %v5306_v51 = vshrl.u32 %v9247_v42, 16  ;;  %v5309_v37 = vshll.u32 %v9247_v42, 16  ;;  %5572 = vst [vmem:[#allocation4 + $0xe8] sm:$0xf] %v9247_v42  ;;  %v4847_v29 = vpop.f32.mrf.mxu1  ;;  %v5794_v20 = vsel %vm12843_vm7, %v5658_v58, %v5793_v50  ;;  %9852 = vmatmul.mubr.bf16.gmra.mxu1 %v10282_v17 }
 0x4af   : > { %v5492_v2 = vsel %vm12829_vm4, %v5303_v15, %v5491_v43  ;;  %v4918_v14 = vadd.f32 %v4847_v29, %v12758_v54  ;;  %5795 = vst [vmem:[#allocation4 + $0xd4] sm:$0xf] %v5794_v20  ;;  %v5662_v16 = vrot.slane %v5661_v45, 4  ;;  %v9248_v47 = vpack.c.bf16 %v4949_v13, %v4949_v13 }
 0x4b0   : > { %5493 = vst [vmem:[#allocation4 + $0xd8] sm:$0xf] %v5492_v2  ;;  %v5308_v6 = vrot.slane %v5306_v51, 7  ;;  %v5663_v33 = vrot.slane %v5309_v37, 5  ;;  %v5665_v28 = vrot.slane %v5306_v51, 4  ;;  %v4849_v55 = vpop.f32.mrf.mxu1  ;;  %6436 = vmatmul.mubr.bf16.gmra.mxu0 %v10279_v44 }
 0x4b1   : > { %v4950_v59 = vmax.f32 %v4918_v14, 0.0  ;;  %v5314_v23 = vshrl.u32 %v9248_v47, 16  ;;  %v5317_v21 = vshll.u32 %v9248_v47, 16  ;;  %5573 = vst [vmem:[#allocation4 + $0xf4] sm:$0xf] %v9248_v47 }
 0x4b2   : > { %v5311_v61 = vor.u32 %v5309_v37, %v5308_v6  ;;  %v5664_v31 = vsel %vm10711_vm13, %v5662_v16, %v5663_v33  ;;  %v5666_v1 = vor.u32 %v5665_v28, %v5663_v33  ;;  %v4852_v54 = vpop.f32.mrf.mxu1  ;;  %v5801_v6 = vld [vmem:[#allocation4 + $0x104] sm:$0xf]  ;;  %v5499_v33 = vld [vmem:[#allocation4 + $0x108] sm:$0xf] }
 0x4b3   : > { %5796 = vst [vmem:[#allocation4 + $0xe0] sm:$0xf] %v5664_v31  ;;  %v9249_v63 = vpack.c.bf16 %v4950_v59, %v4950_v59  ;;  %v4919_v24 = vadd.f32 %v4852_v54, %v12763_v46  ;;  %v5316_v39 = vrot.slane %v5314_v23, 7  ;;  %v5668_v12 = vrot.slane %v5314_v23, 4  ;;  %v10285_v46 = vld [vmem:[#allocation4 + $0xc4] ss:$12 sps:$4 sm:$0xff]  }
 0x4b4   : > { %v5312_v48 = vsel %vm10702_vm12, %v5304_v57, %v5311_v61  ;;  %v5667_v53 = vrot.slane %v5666_v1, 4  ;;  %v4854_v50 = vpop.f32.mrf.mxu1  ;;  %v5669_v32 = vrot.slane %v5317_v21, 5  ;;  %v10283_v40 = vld [vmem:[#allocation4 + $0xc0] ss:$12 sps:$4 sm:$0xff]   ;;  %6443 = vmatprep.mubr.bf16.mxu0 %v10285_v46 }
 0x4b5   : > { %5494 = vst [vmem:[#allocation4 + $0xe4] sm:$0xf] %v5312_v48  ;;  %v5322_v0 = vshrl.u32 %v9249_v63, 16  ;;  %5574 = vst [vmem:[#allocation4 + $0x100] sm:$0xf] %v9249_v63  ;;  %v5325_v52 = vshll.u32 %v9249_v63, 16  ;;  %v5319_v41 = vor.u32 %v5317_v21, %v5316_v39 }
 0x4b6   : > { %v5798_v62 = vsel %vm12843_vm7, %v5667_v53, %v5797_v49  ;;  %v4951_v56 = vmax.f32 %v4919_v24, 0.0  ;;  %v4855_v43 = vpop.f32.mrf.mxu1  ;;  %v5670_v5 = vor.u32 %v5669_v32, %v5668_v12  ;;  %v10288_v4 = vld [vmem:[#allocation4 + $0xc8] ss:$12 sps:$4 sm:$0xff]   ;;  %v5320_v45 = vrot.slane %v5316_v39, 4 }
 0x4b7   : > { %5799 = vst [vmem:[#allocation4 + $0xec] sm:$0xf] %v5798_v62  ;;  %v5324_v42 = vrot.slane %v5322_v0, 7  ;;  %v5672_v11 = vrot.slane %v5325_v52, 5  ;;  %v5674_v26 = vrot.slane %v5322_v0, 4  ;;  %v4920_v15 = vadd.f32 %v4855_v43, %v12768_v10  ;;  %9855 = vmatprep.mubr.bf16.mxu1 %v10288_v4 }
 0x4b8   : > { %v9250_v58 = vpack.c.bf16 %v4951_v56, %v4951_v56  ;;  %v4857_v44 = vpop.f32.mrf.mxu1  ;;  %v5496_v51 = vsel %vm12829_vm4, %v5319_v41, %v5495_v36  ;;  %v5671_v37 = vrot.slane %v5670_v5, 4  ;;  %6444 = vmatmul.mubr.bf16.gmra.mxu0 %v10283_v40  ;;  %v12943_v54 = vld [vmem:[#allocation4 + $0xdc] ss:$12 sps:$4 sm:$0xff]  }
 0x4b9   : > { %v5327_v13 = vor.u32 %v5325_v52, %v5324_v42  ;;  %5497 = vst [vmem:[#allocation4 + $0xf0] sm:$0xf] %v5496_v51  ;;  %v5675_v29 = vor.u32 %v5674_v26, %v5672_v11  ;;  %v4952_v14 = vmax.f32 %v4920_v15, 0.0  ;;  %6451 = vmatprep.mubr.bf16.mxu0 %v12943_v54  ;;  %v5805_v40 = vld [vmem:[#allocation4 + $0x11c] sm:$0xf] }
 0x4ba   : > { %v5330_v20 = vshrl.u32 %v9250_v58, 16  ;;  %v5333_v2 = vshll.u32 %v9250_v58, 16  ;;  %5575 = vst [vmem:[#allocation4 + $0x10c] sm:$0xf] %v9250_v58  ;;  %v4860_v17 = vpop.f32.mrf.mxu1  ;;  %v5673_v16 = vsel %vm10711_vm13, %v5671_v37, %v5672_v11  ;;  %v5503_v26 = vld [vmem:[#allocation4 + $0x120] sm:$0xf] }
 0x4bb   : > { %v5328_v10 = vsel %vm10702_vm12, %v5320_v45, %v5327_v13  ;;  %v4921_v28 = vadd.f32 %v4860_v17, %v12775_v19  ;;  %v5676_v55 = vrot.slane %v5675_v29, 4  ;;  %5800 = vst [vmem:[#allocation4 + $0xf8] sm:$0xf] %v5673_v16  ;;  %v9251_v31 = vpack.c.bf16 %v4952_v14, %v4952_v14  ;;  %v9329_v13 = vpop.f32.mrf.mxu0 }
 0x4bc   : > { %5498 = vst [vmem:[#allocation4 + $0xfc] sm:$0xf] %v5328_v10  ;;  %v5332_v47 = vrot.slane %v5330_v20, 7  ;;  %v5677_v59 = vrot.slane %v5330_v20, 4  ;;  %v5678_v57 = vrot.slane %v5333_v2, 5  ;;  %v4862_v61 = vpop.f32.mrf.mxu1 }
 0x4bd   : > { %v4953_v1 = vmax.f32 %v4921_v28, 0.0  ;;  %v12941_v49 = vld [vmem:[#allocation4 + $0xd8] ss:$12 sps:$4 sm:$0xff]   ;;  %v5802_v23 = vsel %vm12843_vm7, %v5676_v55, %v5801_v6  ;;  %v5338_v48 = vshrl.u32 %v9251_v31, 16  ;;  %v5341_v53 = vshll.u32 %v9251_v31, 16  ;;  %v9330_v28 = vpop.f32.mrf.mxu0 }
 0x4be   : > { %v5335_v21 = vor.u32 %v5333_v2, %v5332_v47  ;;  %v5679_v63 = vor.u32 %v5678_v57, %v5677_v59  ;;  %v4863_v24 = vpop.f32.mrf.mxu1  ;;  %v10292_v19 = vld [vmem:[#allocation4 + $0xe0] ss:$12 sps:$4 sm:$0xff]   ;;  %5803 = vst [vmem:[#allocation4 + $0x104] sm:$0xf] %v5802_v23  ;;  %5576 = vst [vmem:[#allocation4 + $0x118] sm:$0xf] %v9251_v31  ;;  %v12967_v57 = vadd.f32 %v9330_v28, %v9329_v13 }
 0x4bf   : > { %v9252_v36 = vpack.c.bf16 %v4953_v1, %v4953_v1  ;;  %v4922_v50 = vadd.f32 %v4863_v24, %v12778_v18  ;;  %9856 = vmatmul.mubr.bf16.gmra.mxu1 %v10292_v19  ;;  %v5340_v0 = vrot.slane %v5338_v48, 7  ;;  %v5681_v62 = vrot.slane %v5341_v53, 5  ;;  %v12954_v58 = vld [vmem:[#allocation4 + $0xf4] ss:$12 sps:$4 sm:$0xff]  }
 0x4c0   : > { %v5500_v39 = vsel %vm12829_vm4, %v5335_v21, %v5499_v33  ;;  %v5680_v12 = vrot.slane %v5679_v63, 4  ;;  %v4865_v32 = vpop.f32.mrf.mxu1  ;;  %v5683_v52 = vrot.slane %v5338_v48, 4  ;;  %6452 = vmatmul.mubr.bf16.gmra.mxu0 %v12941_v49  ;;  %v5336_v43 = vrot.slane %v5332_v47, 4  ;;  %v5809_v63 = vld [vmem:[#allocation4 + $0x134] sm:$0xf] }
 0x4c1   : > { %5501 = vst [vmem:[#allocation4 + $0x108] sm:$0xf] %v5500_v39  ;;  %v5346_v56 = vshrl.u32 %v9252_v36, 16  ;;  %5577 = vst [vmem:[#allocation4 + $0x124] sm:$0xf] %v9252_v36  ;;  %v5349_v46 = vshll.u32 %v9252_v36, 16  ;;  %v5343_v5 = vor.u32 %v5341_v53, %v5340_v0  ;;  %6459 = vmatprep.mubr.bf16.mxu0 %v12954_v58 }
 0x4c2   : > { %v4954_v18 = vmax.f32 %v4922_v50, 0.0  ;;  %v4868_v41 = vpop.f32.mrf.mxu1  ;;  %v5682_v42 = vsel %vm10711_vm13, %v5680_v12, %v5681_v62  ;;  %v5684_v4 = vor.u32 %v5683_v52, %v5681_v62 }
 0x4c3   : > { %v5348_v11 = vrot.slane %v5346_v56, 7  ;;  %5804 = vst [vmem:[#allocation4 + $0x110] sm:$0xf] %v5682_v42  ;;  %v5686_v15 = vrot.slane %v5346_v56, 4  ;;  %v5687_v44 = vrot.slane %v5349_v46, 5  ;;  %v4923_v51 = vadd.f32 %v4868_v41, %v12785_v27 }
 0x4c4   : > { %v9253_v45 = vpack.c.bf16 %v4954_v18, %v4954_v18  ;;  %v4870_v37 = vpop.f32.mrf.mxu1  ;;  %v5344_v29 = vsel %vm10702_vm12, %v5336_v43, %v5343_v5  ;;  %v5685_v20 = vrot.slane %v5684_v4, 4  ;;  %v12959_v14 = vld [vmem:[#allocation4 + $0xf0] ss:$12 sps:$4 sm:$0xff]   ;;  %v5507_v56 = vld [vmem:[#allocation4 + $0x138] sm:$0xf] }
 0x4c5   : > { %v5351_v2 = vor.u32 %v5349_v46, %v5348_v11  ;;  %5502 = vst [vmem:[#allocation4 + $0x114] sm:$0xf] %v5344_v29  ;;  %v5688_v17 = vor.u32 %v5687_v44, %v5686_v15  ;;  %v4955_v6 = vmax.f32 %v4923_v51, 0.0  ;;  %v10298_v59 = vld [vmem:[#allocation4 + $0xf8] ss:$12 sps:$4 sm:$0xff]   ;;  %v5352_v48 = vrot.slane %v5348_v11, 4 }
 0x4c6   : > { %v5354_v10 = vshrl.u32 %v9253_v45, 16  ;;  %v5357_v16 = vshll.u32 %v9253_v45, 16  ;;  %5578 = vst [vmem:[#allocation4 + $0x130] sm:$0xf] %v9253_v45  ;;  %v4871_v33 = vpop.f32.mrf.mxu1  ;;  %v5806_v27 = vsel %vm12843_vm7, %v5685_v20, %v5805_v40  ;;  %9859 = vmatprep.mubr.bf16.mxu1 %v10298_v59 }
 0x4c7   : > { %v5504_v55 = vsel %vm12829_vm4, %v5351_v2, %v5503_v26  ;;  %v4924_v47 = vadd.f32 %v4871_v33, %v12788_v25  ;;  %5807 = vst [vmem:[#allocation4 + $0x11c] sm:$0xf] %v5806_v27  ;;  %v5689_v61 = vrot.slane %v5688_v17, 4  ;;  %v9254_v24 = vpack.c.bf16 %v4955_v6, %v4955_v6  ;;  %v5813_v33 = vld [vmem:[#allocation4 + $0x14c] sm:$0xf] }
 0x4c8   : > { %5505 = vst [vmem:[#allocation4 + $0x120] sm:$0xf] %v5504_v55  ;;  %v5356_v31 = vrot.slane %v5354_v10, 7  ;;  %v5690_v1 = vrot.slane %v5357_v16, 5  ;;  %v5692_v23 = vrot.slane %v5354_v10, 4  ;;  %v4873_v21 = vpop.f32.mrf.mxu1  ;;  %6460 = vmatmul.mubr.bf16.gmra.mxu0 %v12959_v14 }
 0x4c9   : > { %v4956_v19 = vmax.f32 %v4924_v47, 0.0  ;;  %v5362_v39 = vshrl.u32 %v9254_v24, 16  ;;  %v5365_v12 = vshll.u32 %v9254_v24, 16  ;;  %5579 = vst [vmem:[#allocation4 + $0x13c] sm:$0xf] %v9254_v24 }
 0x4ca   : > { %v5359_v53 = vor.u32 %v5357_v16, %v5356_v31  ;;  %v5691_v25 = vsel %vm10711_vm13, %v5689_v61, %v5690_v1  ;;  %v5693_v36 = vor.u32 %v5692_v23, %v5690_v1  ;;  %v4876_v50 = vpop.f32.mrf.mxu1  ;;  %v5511_v31 = vld [vmem:[#allocation4 + $0x150] sm:$0xf] }
 0x4cb   : > { %5808 = vst [vmem:[#allocation4 + $0x128] sm:$0xf] %v5691_v25  ;;  %v9255_v32 = vpack.c.bf16 %v4956_v19, %v4956_v19  ;;  %v4925_v0 = vadd.f32 %v4876_v50, %v12793_v22  ;;  %v5364_v40 = vrot.slane %v5362_v39, 7  ;;  %v5695_v46 = vrot.slane %v5362_v39, 4  ;;  %v12979_v22 = vld [vmem:[#allocation4 + $0x10c] ss:$12 sps:$4 sm:$0xff]  }
 0x4cc   : > { %v5360_v62 = vsel %vm10702_vm12, %v5352_v48, %v5359_v53  ;;  %v5694_v52 = vrot.slane %v5693_v36, 4  ;;  %v4878_v43 = vpop.f32.mrf.mxu1  ;;  %v5696_v18 = vrot.slane %v5365_v12, 5  ;;  %v12977_v26 = vld [vmem:[#allocation4 + $0x108] ss:$12 sps:$4 sm:$0xff]   ;;  %6467 = vmatprep.mubr.bf16.mxu0 %v12979_v22 }
 0x4cd   : > { %5506 = vst [vmem:[#allocation4 + $0x12c] sm:$0xf] %v5360_v62  ;;  %v5370_v41 = vshrl.u32 %v9255_v32, 16  ;;  %5580 = vst [vmem:[#allocation4 + $0x148] sm:$0xf] %v9255_v32  ;;  %v5373_v42 = vshll.u32 %v9255_v32, 16  ;;  %v5367_v15 = vor.u32 %v5365_v12, %v5364_v40 }
 0x4ce   : > { %v5810_v5 = vsel %vm12843_vm7, %v5694_v52, %v5809_v63  ;;  %v4957_v4 = vmax.f32 %v4925_v0, 0.0  ;;  %v4879_v11 = vpop.f32.mrf.mxu1  ;;  %v5697_v44 = vor.u32 %v5696_v18, %v5695_v46  ;;  %v10302_v51 = vld [vmem:[#allocation4 + $0x110] ss:$12 sps:$4 sm:$0xff]   ;;  %v5368_v17 = vrot.slane %v5364_v40, 4 }
 0x4cf   : > { %5811 = vst [vmem:[#allocation4 + $0x134] sm:$0xf] %v5810_v5  ;;  %v5372_v45 = vrot.slane %v5370_v41, 7  ;;  %v5699_v37 = vrot.slane %v5373_v42, 5  ;;  %v5701_v13 = vrot.slane %v5370_v41, 4  ;;  %v4926_v20 = vadd.f32 %v4879_v11, %v12798_v3  ;;  %9860 = vmatmul.mubr.bf16.gmra.mxu1 %v10302_v51 }
 0x4d0   : > { %v9256_v29 = vpack.c.bf16 %v4957_v4, %v4957_v4  ;;  %v4881_v2 = vpop.f32.mrf.mxu1  ;;  %v5508_v10 = vsel %vm12829_vm4, %v5367_v15, %v5507_v56  ;;  %v5698_v16 = vrot.slane %v5697_v44, 4  ;;  %6468 = vmatmul.mubr.bf16.gmra.mxu0 %v12977_v26  ;;  %v12993_v36 = vld [vmem:[#allocation4 + $0x124] ss:$12 sps:$4 sm:$0xff]  }
 0x4d1   : > { %v5375_v6 = vor.u32 %v5373_v42, %v5372_v45  ;;  %5509 = vst [vmem:[#allocation4 + $0x138] sm:$0xf] %v5508_v10  ;;  %v5702_v28 = vor.u32 %v5701_v13, %v5699_v37  ;;  %v4958_v47 = vmax.f32 %v4926_v20, 0.0  ;;  %6475 = vmatprep.mubr.bf16.mxu0 %v12993_v36  ;;  %v5817_v11 = vld [vmem:[#allocation4 + $0x164] sm:$0xf] }
 0x4d2   : > { %v5378_v27 = vshrl.u32 %v9256_v29, 16  ;;  %v5381_v55 = vshll.u32 %v9256_v29, 16  ;;  %5581 = vst [vmem:[#allocation4 + $0x154] sm:$0xf] %v9256_v29  ;;  %v4884_v3 = vpop.f32.mrf.mxu1  ;;  %v5700_v61 = vsel %vm10711_vm13, %v5698_v16, %v5699_v37  ;;  %v5515_v29 = vld [vmem:[#allocation4 + $0x168] sm:$0xf] }
 0x4d3   : > { %v5376_v59 = vsel %vm10702_vm12, %v5368_v17, %v5375_v6  ;;  %v4927_v1 = vadd.f32 %v4884_v3, %v12805_v9  ;;  %v5703_v23 = vrot.slane %v5702_v28, 4  ;;  %5812 = vst [vmem:[#allocation4 + $0x140] sm:$0xf] %v5700_v61  ;;  %v9257_v48 = vpack.c.bf16 %v4958_v47, %v4958_v47 }
 0x4d4   : > { %5510 = vst [vmem:[#allocation4 + $0x144] sm:$0xf] %v5376_v59  ;;  %v5380_v21 = vrot.slane %v5378_v27, 7  ;;  %v5704_v63 = vrot.slane %v5378_v27, 4  ;;  %v5705_v24 = vrot.slane %v5381_v55, 5  ;;  %v4886_v19 = vpop.f32.mrf.mxu1 }
 0x4d5   : > { %v4959_v53 = vmax.f32 %v4927_v1, 0.0  ;;  %v12991_v25 = vld [vmem:[#allocation4 + $0x120] ss:$12 sps:$4 sm:$0xff]   ;;  %v5814_v50 = vsel %vm12843_vm7, %v5703_v23, %v5813_v33  ;;  %v5386_v0 = vshrl.u32 %v9257_v48, 16  ;;  %v5389_v62 = vshll.u32 %v9257_v48, 16 }
 0x4d6   : > { %v5383_v39 = vor.u32 %v5381_v55, %v5380_v21  ;;  %v5706_v12 = vor.u32 %v5705_v24, %v5704_v63  ;;  %v4887_v32 = vpop.f32.mrf.mxu1  ;;  %v10309_v9 = vld [vmem:[#allocation4 + $0x128] ss:$12 sps:$4 sm:$0xff]   ;;  %5815 = vst [vmem:[#allocation4 + $0x14c] sm:$0xf] %v5814_v50  ;;  %5582 = vst [vmem:[#allocation4 + $0x160] sm:$0xf] %v9257_v48 }
 0x4d7   : > { %v9258_v52 = vpack.c.bf16 %v4959_v53, %v4959_v53  ;;  %v4928_v56 = vadd.f32 %v4887_v32, %v12808_v7  ;;  %9863 = vmatprep.mubr.bf16.mxu1 %v10309_v9  ;;  %v5388_v18 = vrot.slane %v5386_v0, 7  ;;  %v5708_v41 = vrot.slane %v5389_v62, 5  ;;  %v13004_v20 = vld [vmem:[#allocation4 + $0x13c] ss:$12 sps:$4 sm:$0xff]  }
 0x4d8   : > { %v5512_v43 = vsel %vm12829_vm4, %v5383_v39, %v5511_v31  ;;  %v5707_v40 = vrot.slane %v5706_v12, 4  ;;  %v4889_v46 = vpop.f32.mrf.mxu1  ;;  %v5710_v5 = vrot.slane %v5386_v0, 4  ;;  %6476 = vmatmul.mubr.bf16.gmra.mxu0 %v12991_v25  ;;  %v5384_v4 = vrot.slane %v5380_v21, 4  ;;  %v5821_v50 = vld [vmem:[#allocation4 + $0x17c] sm:$0xf] }
 0x4d9   : > { %5513 = vst [vmem:[#allocation4 + $0x150] sm:$0xf] %v5512_v43  ;;  %v5394_v42 = vshrl.u32 %v9258_v52, 16  ;;  %5583 = vst [vmem:[#allocation4 + $0x16c] sm:$0xf] %v9258_v52  ;;  %v5397_v15 = vshll.u32 %v9258_v52, 16  ;;  %v5391_v45 = vor.u32 %v5389_v62, %v5388_v18  ;;  %6483 = vmatprep.mubr.bf16.mxu0 %v13004_v20 }
 0x4da   : > { %v4960_v7 = vmax.f32 %v4928_v56, 0.0  ;;  %v4892_v44 = vpop.f32.mrf.mxu1  ;;  %v5709_v51 = vsel %vm10711_vm13, %v5707_v40, %v5708_v41  ;;  %v5711_v37 = vor.u32 %v5710_v5, %v5708_v41  ;;  %v5519_v46 = vld [vmem:[#allocation4 + $0x180] sm:$0xf] }
 0x4db   : > { %v5396_v13 = vrot.slane %v5394_v42, 7  ;;  %5816 = vst [vmem:[#allocation4 + $0x158] sm:$0xf] %v5709_v51  ;;  %v5713_v2 = vrot.slane %v5394_v42, 4  ;;  %v5714_v17 = vrot.slane %v5397_v15, 5  ;;  %v4929_v16 = vadd.f32 %v4892_v44, %v12818_v38 }
 0x4dc   : > { %v9259_v10 = vpack.c.bf16 %v4960_v7, %v4960_v7  ;;  %v4894_v6 = vpop.f32.mrf.mxu1  ;;  %v5392_v33 = vsel %vm10702_vm12, %v5384_v4, %v5391_v45  ;;  %v5712_v28 = vrot.slane %v5711_v37, 4  ;;  %v13009_v55 = vld [vmem:[#allocation4 + $0x138] ss:$12 sps:$4 sm:$0xff]  }
 0x4dd   : > { %v5399_v27 = vor.u32 %v5397_v15, %v5396_v13  ;;  %5514 = vst [vmem:[#allocation4 + $0x15c] sm:$0xf] %v5392_v33  ;;  %v5715_v47 = vor.u32 %v5714_v17, %v5713_v2  ;;  %v4961_v61 = vmax.f32 %v4929_v16, 0.0  ;;  %v10314_v21 = vld [vmem:[#allocation4 + $0x140] ss:$12 sps:$4 sm:$0xff]   ;;  %v5400_v32 = vrot.slane %v5396_v13, 4 }
 0x4de   : > { %v5402_v3 = vshrl.u32 %v9259_v10, 16  ;;  %v5405_v59 = vshll.u32 %v9259_v10, 16  ;;  %5584 = vst [vmem:[#allocation4 + $0x178] sm:$0xf] %v9259_v10  ;;  %v4895_v31 = vpop.f32.mrf.mxu1  ;;  %v5818_v38 = vsel %vm12843_vm7, %v5712_v28, %v5817_v11  ;;  %9864 = vmatmul.mubr.bf16.gmra.mxu1 %v10314_v21  ;;  %v13026_v7 = vld [vmem:[#allocation4 + $0x154] ss:$12 sps:$4 sm:$0xff]  }
 0x4df   : > { %v5516_v1 = vsel %vm12829_vm4, %v5399_v27, %v5515_v29  ;;  %v4930_v23 = vadd.f32 %v4895_v31, %v12822_v8  ;;  %5819 = vst [vmem:[#allocation4 + $0x164] sm:$0xf] %v5818_v38  ;;  %v5716_v63 = vrot.slane %v5715_v47, 4  ;;  %v9260_v39 = vpack.c.bf16 %v4961_v61, %v4961_v61  ;;  %v5825_v27 = vld [vmem:[#allocation4 + $0x194] sm:$0xf]  ;;  %v10346_v38 = vld [vmem:[#allocation7 + $0x230] sm:$0xff]  }
 0x4e0   : > { %5517 = vst [vmem:[#allocation4 + $0x168] sm:$0xf] %v5516_v1  ;;  %v5404_v24 = vrot.slane %v5402_v3, 7  ;;  %v5717_v19 = vrot.slane %v5405_v59, 5  ;;  %v5719_v48 = vrot.slane %v5402_v3, 4  ;;  %v4897_v53 = vpop.f32.mrf.mxu1  ;;  %6484 = vmatmul.mubr.bf16.gmra.mxu0 %v13009_v55  ;;  %v10358_v21 = vld [vmem:[#allocation7 + $0x1b8] sm:$0xff]  }
 0x4e1   : > { %v4962_v12 = vmax.f32 %v4930_v23, 0.0  ;;  %v5410_v62 = vshrl.u32 %v9260_v39, 16  ;;  %v5413_v52 = vshll.u32 %v9260_v39, 16  ;;  %5585 = vst [vmem:[#allocation4 + $0x184] sm:$0xf] %v9260_v39  ;;  %6491 = vmatprep.mubr.bf16.mxu0 %v13026_v7  ;;  %v10371_v53 = vld [vmem:[#allocation7 + $0x1e8] sm:$0xff]  }
 0x4e2   : > { %v5407_v9 = vor.u32 %v5405_v59, %v5404_v24  ;;  %v5718_v0 = vsel %vm10711_vm13, %v5716_v63, %v5717_v19  ;;  %v5720_v8 = vor.u32 %v5719_v48, %v5717_v19  ;;  %v10331_v31 = vld [vmem:[#allocation4 + $0x1c] ss:$12 sps:$4 sm:$0xff]   ;;  %v10339_v1 = vld [vmem:[#allocation4 + $0x38] ss:$12 sps:$4 sm:$0xff]   ;;  %v13044_v63 = vld [vmem:[#allocation4 + $0x34] ss:$12 sps:$4 sm:$0xff]  }
 0x4e3   : > { %5820 = vst [vmem:[#allocation4 + $0x170] sm:$0xf] %v5718_v0  ;;  %v9261_v56 = vpack.c.bf16 %v4962_v12, %v4962_v12  ;;  %v5412_v18 = vrot.slane %v5410_v62, 7  ;;  %v5722_v41 = vrot.slane %v5410_v62, 4  ;;  %v5723_v5 = vrot.slane %v5413_v52, 5  ;;  %v10438_v24 = vld [vmem:[#allocation7 + $0x238] sm:$0xff]  }
 0x4e4   : > { %v5408_v43 = vsel %vm10702_vm12, %v5400_v32, %v5407_v9  ;;  %v5721_v40 = vrot.slane %v5720_v8, 4  ;;  %v13024_v15 = vld [vmem:[#allocation4 + $0x150] ss:$12 sps:$4 sm:$0xff]   ;;  %v10366_v48 = vld [vmem:[#allocation7 + $0x1b0] sm:$0xff]   ;;  %v10344_v39 = vld [vmem:[#allocation4 + $0x68] ss:$12 sps:$4 sm:$0xff]  }
 0x4e5   : > { %5518 = vst [vmem:[#allocation4 + $0x174] sm:$0xf] %v5408_v43  ;;  %v5418_v42 = vshrl.u32 %v9261_v56, 16  ;;  %5586 = vst [vmem:[#allocation4 + $0x190] sm:$0xf] %v9261_v56  ;;  %v5421_v11 = vshll.u32 %v9261_v56, 16  ;;  %v5415_v44 = vor.u32 %v5413_v52, %v5412_v18  ;;  %v5724_v45 = vor.u32 %v5723_v5, %v5722_v41 }
 0x4e6   : > { %v5822_v4 = vsel %vm12843_vm7, %v5721_v40, %v5821_v50  ;;  %v10322_v37 = vld [vmem:[#allocation4 + $0x158] ss:$12 sps:$4 sm:$0xff]   ;;  %v5416_v2 = vrot.slane %v5412_v18, 4  ;;  %v10340_v23 = vld [vmem:[#allocation4 + $0x50] ss:$12 sps:$4 sm:$0xff]   ;;  %v10391_v52 = vld [vmem:[#allocation7 + $0x218] sm:$0xff]  }
 0x4e7   : > { %5823 = vst [vmem:[#allocation4 + $0x17c] sm:$0xf] %v5822_v4  ;;  %v5420_v51 = vrot.slane %v5418_v42, 7  ;;  %v5726_v13 = vrot.slane %v5421_v11, 5  ;;  %v5728_v29 = vrot.slane %v5418_v42, 4  ;;  %v5520_v17 = vsel %vm12829_vm4, %v5415_v44, %v5519_v46  ;;  %9867 = vmatprep.mubr.bf16.mxu1 %v10322_v37  ;;  %v10359_v19 = vld [vmem:[#allocation7 + $0x228] sm:$0xff]  }
 0x4e8   : > { %v5725_v10 = vrot.slane %v5724_v45, 4  ;;  %6492 = vmatmul.mubr.bf16.gmra.mxu0 %v13024_v15  ;;  %5521 = vst [vmem:[#allocation4 + $0x180] sm:$0xf] %v5520_v17  ;;  %v13036_v3 = vld [vmem:[#allocation4 + $0x16c] ss:$12 sps:$4 sm:$0xff]   ;;  %v10376_v9 = vld [vmem:[#allocation7 + $0x220] sm:$0xff]  }
 0x4e9   : > { %v5423_v16 = vor.u32 %v5421_v11, %v5420_v51  ;;  %v5729_v6 = vor.u32 %v5728_v29, %v5726_v13  ;;  %6499 = vmatprep.mubr.bf16.mxu0 %v13036_v3  ;;  %v13047_v50 = vld [vmem:[#allocation4 + $0x30] ss:$12 sps:$4 sm:$0xff]   ;;  %v10345_v12 = vld [vmem:[#allocation4 + $0x80] ss:$12 sps:$4 sm:$0xff]   ;;  %v13053_v43 = vld [vmem:[#allocation4 + $0x48] ss:$12 sps:$4 sm:$0xff]  }
 0x4ea   : > { %v5727_v28 = vsel %vm10711_vm13, %v5725_v10, %v5726_v13  ;;  %v10373_v32 = vld [vmem:[#allocation7 + $0x1a8] sm:$0xff]   ;;  %v10374_v8 = vld [vmem:[#allocation7 + $0x1e0] sm:$0xff]   ;;  %v10381_v56 = vld [vmem:[#allocation7 + $0x1d8] sm:$0xff]  }
 0x4eb   : > { %v5424_v33 = vsel %vm10702_vm12, %v5416_v2, %v5423_v16  ;;  %v5730_v47 = vrot.slane %v5729_v6, 4  ;;  %5824 = vst [vmem:[#allocation4 + $0x188] sm:$0xf] %v5727_v28  ;;  %v13049_v0 = vld [vmem:[#allocation4 + $0x4c] ss:$12 sps:$4 sm:$0xff]   ;;  %v10375_v62 = vld [vmem:[#allocation7 + $0x1a0] sm:$0xff]  }
 0x4ec   : > { %5522 = vst [vmem:[#allocation4 + $0x18c] sm:$0xf] %v5424_v33  ;;  %v13038_v60 = vld [vmem:[#allocation4 + $0x168] ss:$12 sps:$4 sm:$0xff]   ;;  %v10350_v40 = vld [vmem:[#allocation4 + $0x98] ss:$12 sps:$4 sm:$0xff]  }
 0x4ed   : > { %v5826_v59 = vsel %vm12843_vm7, %v5730_v47, %v5825_v27  ;;  %v10351_v46 = vld [vmem:[#allocation4 + $0xb0] ss:$12 sps:$4 sm:$0xff]   ;;  %v10383_v18 = vld [vmem:[#allocation7 + $0x198] sm:$0xff]   ;;  %v10392_v41 = vld [vmem:[#allocation7 + $0x210] sm:$0xff]  }
 0x4ee   : > { %v10328_v61 = vld [vmem:[#allocation4 + $0x170] ss:$12 sps:$4 sm:$0xff]   ;;  %5827 = vst [vmem:[#allocation4 + $0x194] sm:$0xf] %v5826_v59  ;;  %v10384_v42 = vld [vmem:[#allocation7 + $0x1d0] sm:$0xff]  }
 0x4ef   : > { %9868 = vmatmul.mubr.bf16.gmra.mxu1 %v10328_v61  ;;  %v13055_v5 = vld [vmem:[#allocation4 + $0x64] ss:$12 sps:$4 sm:$0xff]   ;;  %v10393_v11 = vld [vmem:[#allocation7 + $0x208] sm:$0xff]   ;;  %v13059_v45 = vld [vmem:[#allocation4 + $0x60] ss:$12 sps:$4 sm:$0xff]  }
 0x4f0   : > { %6500 = vmatmul.mubr.bf16.gmra.mxu0 %v13038_v60  ;;  %9887 = vmatprep.mubr.bf16.mxu1 %v10333_v30  ;;  %v10385_v4 = vld [vmem:[#allocation7 + $0x190] sm:$0xff]   ;;  %v10387_v44 = vld [vmem:[#allocation7 + $0x1c8] sm:$0xff]   ;;  %v10355_v51 = vld [vmem:[#allocation4 + $0xc8] ss:$12 sps:$4 sm:$0xff]  }
 0x4f1   : > { %7214 = vmatprep.mubr.bf16.mxu0 %v10331_v31  ;;  %v10356_v37 = vld [vmem:[#allocation4 + $0xe0] ss:$12 sps:$4 sm:$0xff]   ;;  %v10388_v13 = vld [vmem:[#allocation7 + $0x188] sm:$0xff]   ;;  %v10394_v29 = vld [vmem:[#allocation7 + $0x200] sm:$0xff]  }
 0x4f2   : > { %v13061_v2 = vld [vmem:[#allocation4 + $0x7c] ss:$12 sps:$4 sm:$0xff]   ;;  %v10389_v17 = vld [vmem:[#allocation7 + $0x1c0] sm:$0xff]   ;;  %v10363_v16 = vld [vmem:[#allocation4 + $0xf8] ss:$12 sps:$4 sm:$0xff]  }
 0x4f3   : > { %v10390_v10 = vld [vmem:[#allocation7 + $0x180] sm:$0xff]   ;;  %v13065_v6 = vld [vmem:[#allocation4 + $0x78] ss:$12 sps:$4 sm:$0xff]   ;;  %v10372_v59 = vld [vmem:[#allocation4 + $0x140] ss:$12 sps:$4 sm:$0xff]  }
 0x4f4   : > { %v10364_v33 = vld [vmem:[#allocation4 + $0x110] ss:$12 sps:$4 sm:$0xff]   ;;  %v13067_v28 = vld [vmem:[#allocation4 + $0x94] ss:$12 sps:$4 sm:$0xff]   ;;  %v13073_v61 = vld [vmem:[#allocation4 + $0xac] ss:$12 sps:$4 sm:$0xff]  }
 0x4f5   : > { %v10370_v27 = vld [vmem:[#allocation4 + $0x128] ss:$12 sps:$4 sm:$0xff]   ;;  %v13071_v47 = vld [vmem:[#allocation4 + $0x90] ss:$12 sps:$4 sm:$0xff]   ;;  %v10380_v30 = vld [vmem:[#allocation4 + $0x158] ss:$12 sps:$4 sm:$0xff]  }
 0x4f6   : > { %v13077_v31 = vld [vmem:[#allocation4 + $0xa8] ss:$12 sps:$4 sm:$0xff]  }
 0x4f7   : > { %9888 = vmatmul.mubr.bf16.vlgmr.msra.gmra.mxu1 %v10339_v1  ;;  %v10386_v1 = vld [vmem:[#allocation4 + $0x188] ss:$12 sps:$4 sm:$0xff]  }
 0x4f8   : > { %7215 = vmatmul.mubr.bf16.vlgmr.msra.gmra.mxu0 %v10329_v34  ;;  %9891 = vmatprep.mubr.bf16.mxu1 %v10340_v23  ;;  %v10382_v34 = vld [vmem:[#allocation4 + $0x170] ss:$12 sps:$4 sm:$0xff]   ;;  %v13083_v23 = vld [vmem:[#allocation4 + $0xc0] ss:$12 sps:$4 sm:$0xff]  }
 0x4f9   : > { %9920 = vmatpush3.bf16.msra.mxu0 %v10438_v24  ;;  %7222 = vmatprep.mubr.bf16.mxu0 %v13044_v63 }
 0x4fa   : > { %9921 = vmatprep.subr.bf16.mxu0 %v10346_v38  ;;  %9586 = vmatpush3.bf16.msra.mxu1 %v10358_v21  ;;  %v13088_v21 = vpop.f32.mrf.mxu0 }
 0x4fb   : > { %9587 = vmatprep.subr.bf16.mxu1 %v10365_v35 }
 0x4fc   : > { %v13094_v35 = vpop.f32.mrf.mxu0 }
 0x4fd   : > { %9922 = vmatpush3.bf16.msra.mxu0 %v10346_v38  ;;  %v13079_v38 = vld [vmem:[#allocation4 + $0xc4] ss:$12 sps:$4 sm:$0xff]  }
 0x4fe   : > { %9923 = vmatprep.subr.bf16.mxu0 %v10359_v19  ;;  %9588 = vmatpush3.bf16.msra.mxu1 %v10366_v48 }
 0x4ff   : > { %9892 = vmatmul.mubr.bf16.gmra.mxu1 %v10344_v39  ;;  %9589 = vmatprep.subr.bf16.mxu1 %v10371_v53 }
 0x500   : > { %7223 = vmatmul.mubr.bf16.gmra.mxu0 %v13047_v50  ;;  %9895 = vmatprep.mubr.bf16.mxu1 %v10345_v12 }
 0x501   : > { %7230 = vmatprep.mubr.bf16.mxu0 %v13049_v0  ;;  %9924 = vmatpush3.bf16.msra.mxu0 %v10359_v19  ;;  %v13099_v19 = vld [vmem:[%s13589_s6] ss:$0 sm:$0xff] }
 0x502   : > { %9590 = vmatpush3.bf16.msra.mxu1 %v10373_v32  ;;  %9925 = vmatprep.subr.bf16.mxu0 %v10376_v9 }
 0x503   : > { %9591 = vmatprep.subr.bf16.mxu1 %v10374_v8 }
 0x505   : > { %9926 = vmatpush3.bf16.msra.mxu0 %v10376_v9 }
 0x506   : > { %9592 = vmatpush3.bf16.msra.mxu1 %v10375_v62  ;;  %9927 = vmatprep.subr.bf16.mxu0 %v10391_v52 }
 0x507   : > { %9896 = vmatmul.mubr.bf16.gmra.mxu1 %v10350_v40  ;;  %9593 = vmatprep.subr.bf16.mxu1 %v10381_v56 }
 0x508   : > { %7231 = vmatmul.mubr.bf16.gmra.mxu0 %v13053_v43  ;;  %9899 = vmatprep.mubr.bf16.mxu1 %v10351_v46 }
 0x509   : > { %7238 = vmatprep.mubr.bf16.mxu0 %v13055_v5  ;;  %9928 = vmatpush3.bf16.msra.mxu0 %v10391_v52 }
 0x50a   : > { %9594 = vmatpush3.bf16.msra.mxu1 %v10383_v18  ;;  %9929 = vmatprep.subr.bf16.mxu0 %v10392_v41 }
 0x50b   : > { %9595 = vmatprep.subr.bf16.mxu1 %v10384_v42 }
 0x50d   : > { %9930 = vmatpush3.bf16.msra.mxu0 %v10392_v41 }
 0x50e   : > { %9596 = vmatpush3.bf16.msra.mxu1 %v10385_v4  ;;  %9931 = vmatprep.subr.bf16.mxu0 %v10393_v11 }
 0x50f   : > { %9900 = vmatmul.mubr.bf16.gmra.mxu1 %v10355_v51  ;;  %9597 = vmatprep.subr.bf16.mxu1 %v10387_v44 }
 0x510   : > { %7239 = vmatmul.mubr.bf16.gmra.mxu0 %v13059_v45  ;;  %9903 = vmatprep.mubr.bf16.mxu1 %v10356_v37 }
 0x511   : > { %7246 = vmatprep.mubr.bf16.mxu0 %v13061_v2  ;;  %9932 = vmatpush3.bf16.msra.mxu0 %v10393_v11 }
 0x512   : > { %9598 = vmatpush3.bf16.msra.mxu1 %v10388_v13  ;;  %9933 = vmatprep.subr.bf16.mxu0 %v10394_v29 }
 0x513   : > { %9599 = vmatprep.subr.bf16.mxu1 %v10389_v17 }
 0x515   : > { %9934 = vmatpush3.bf16.msra.mxu0 %v10394_v29 }
 0x516   : > { %9600 = vmatpush3.bf16.msra.mxu1 %v10390_v10 }
 0x517   : > { %9904 = vmatmul.mubr.bf16.gmra.mxu1 %v10363_v16 }
 0x518   : > { %7247 = vmatmul.mubr.bf16.gmra.mxu0 %v13065_v6  ;;  %9907 = vmatprep.mubr.bf16.mxu1 %v10364_v33 }
 0x519   : > { %7254 = vmatprep.mubr.bf16.mxu0 %v13067_v28 }
 0x51f   : > { %9908 = vmatmul.mubr.bf16.gmra.mxu1 %v10370_v27 }
 0x520   : > { %7255 = vmatmul.mubr.bf16.gmra.mxu0 %v13071_v47  ;;  %9911 = vmatprep.mubr.bf16.mxu1 %v10372_v59 }
 0x521   : > { %7262 = vmatprep.mubr.bf16.mxu0 %v13073_v61 }
 0x527   : > { %9912 = vmatmul.mubr.bf16.gmra.mxu1 %v10380_v30 }
 0x528   : > { %7263 = vmatmul.mubr.bf16.gmra.mxu0 %v13077_v31  ;;  %9915 = vmatprep.mubr.bf16.mxu1 %v10382_v34 }
 0x529   : > { %7270 = vmatprep.mubr.bf16.mxu0 %v13079_v38 }
 0x52f   : > { %9916 = vmatmul.mubr.bf16.gmra.mxu1 %v10386_v1 }
 0x530   : > { %7271 = vmatmul.mubr.bf16.gmra.mxu0 %v13083_v23  ;;  %8082 = vmatprep.mubr.bf16.mxu1 %v13044_v63 }
 0x531   : > { %7278 = vmatprep.mubr.bf16.mxu0 %v12943_v54 }
 0x537   : > { %8083 = vmatmul.mubr.bf16.vlgmr.msra.gmra.mxu1 %v13047_v50 }
 0x538   : > { %7279 = vmatmul.mubr.bf16.gmra.mxu0 %v12941_v49  ;;  %8090 = vmatprep.mubr.bf16.mxu1 %v13049_v0  ;;  %v6382_v49 = vadd.f32 %v12967_v57, %v13099_v19 }
 0x539   : > { %7286 = vmatprep.mubr.bf16.mxu0 %v12954_v58 }
 0x53c   : > { %v9335_v24 = vpop.f32.mrf.mxu0 }
 0x53e   : > { %v9336_v54 = vpop.f32.mrf.mxu0 }
 0x53f   : > { %8091 = vmatmul.mubr.bf16.gmra.mxu1 %v13053_v43  ;;  %v9337_v48 = vadd.f32 %v9336_v54, %v9335_v24  ;;  %v10400_v24 = vld [vmem:[#allocation4 + $0xdc] ss:$12 sps:$4 sm:$0xff]  }
 0x540   : > { %7287 = vmatmul.mubr.bf16.gmra.mxu0 %v12959_v14  ;;  %v9841_v63 = vpop.f32.mrf.mxu1  ;;  %8098 = vmatprep.mubr.bf16.mxu1 %v13055_v5  ;;  %v9338_v58 = vpop.f32.mrf.mxu0 }
 0x541   : > { %7294 = vmatprep.mubr.bf16.mxu0 %v12979_v22  ;;  %v6390_v53 = vadd.f32 %v9337_v48, %v13099_v19 }
 0x542   : > { %v6542_v50 = vpop.f32.mrf.mxu1  ;;  %v9339_v12 = vpop.f32.mrf.mxu0 }
 0x543   : > { %v13108_v39 = vadd.f32 %v6542_v50, %v6382_v49  ;;  %v13110_v32 = vadd.f32 %v9841_v63, %v6390_v53  ;;  %v9340_v9 = vadd.f32 %v9339_v12, %v9338_v58  ;;  %v13155_v63 = vld [vmem:[#allocation4 + $0x184] ss:$12 sps:$4 sm:$0xff]  }
 0x544   : > { %v9842_v0 = vpop.f32.mrf.mxu1 }
 0x545   : > { %v6393_v14 = vadd.f32 %v9340_v9, %v13099_v19  ;;  %v10398_v9 = vld [vmem:[#allocation4 + $0xd8] ss:$12 sps:$4 sm:$0xff]  }
 0x546   : > { %v13119_v56 = vpop.f32.mrf.mxu1 }
 0x547   : > { %8099 = vmatmul.mubr.bf16.gmra.mxu1 %v13059_v45  ;;  %v13114_v8 = vadd.f32 %v9842_v0, %v6393_v14  ;;  %v13163_v14 = vld [vmem:[#allocation4 + $0x180] ss:$12 sps:$4 sm:$0xff]  }
 0x548   : > { %v9341_v22 = vpop.f32.mrf.mxu0  ;;  %7295 = vmatmul.mubr.bf16.gmra.mxu0 %v12977_v26  ;;  %8106 = vmatprep.mubr.bf16.mxu1 %v13061_v2 }
 0x549   : > { %7302 = vmatprep.mubr.bf16.mxu0 %v12993_v36 }
 0x54a   : > { %v9342_v57 = vpop.f32.mrf.mxu0 }
 0x54b   : > { %v9343_v62 = vadd.f32 %v9342_v57, %v9341_v22  ;;  %v10404_v22 = vld [vmem:[#allocation4 + $0xf4] ss:$12 sps:$4 sm:$0xff]  }
 0x54c   : > { %v9344_v52 = vpop.f32.mrf.mxu0 }
 0x54d   : > { %v6398_v26 = vadd.f32 %v9343_v62, %v13099_v19 }
 0x54e   : > { %v9345_v43 = vpop.f32.mrf.mxu0 }
 0x54f   : > { %v13121_v40 = vadd.f32 %v9345_v43, %v9344_v52  ;;  %8107 = vmatmul.mubr.bf16.gmra.mxu1 %v13065_v6 }
 0x550   : > { %v9845_v46 = vpop.f32.mrf.mxu1  ;;  %v9347_v18 = vpop.f32.mrf.mxu0  ;;  %7303 = vmatmul.mubr.bf16.gmra.mxu0 %v12991_v25  ;;  %8114 = vmatprep.mubr.bf16.mxu1 %v13067_v28 }
 0x551   : > { %7310 = vmatprep.mubr.bf16.mxu0 %v13004_v20 }
 0x552   : > { %v6558_v36 = vpop.f32.mrf.mxu1  ;;  %v9348_v41 = vpop.f32.mrf.mxu0 }
 0x553   : > { %v13128_v5 = vadd.f32 %v6558_v36, %v6398_v26  ;;  %v9349_v42 = vadd.f32 %v9348_v41, %v9347_v18 }
 0x554   : > { %v9350_v4 = vpop.f32.mrf.mxu0  ;;  %v9846_v37 = vpop.f32.mrf.mxu1 }
 0x555   : > { %v6406_v11 = vadd.f32 %v9349_v42, %v13099_v19 }
 0x556   : > { %v9351_v44 = vpop.f32.mrf.mxu0  ;;  %v13140_v10 = vpop.f32.mrf.mxu1 }
 0x557   : > { %v13131_v45 = vadd.f32 %v9845_v46, %v6406_v11  ;;  %v9352_v51 = vadd.f32 %v9351_v44, %v9350_v4  ;;  %8115 = vmatmul.mubr.bf16.gmra.mxu1 %v13071_v47  ;;  %v10402_v4 = vld [vmem:[#allocation4 + $0xf0] ss:$12 sps:$4 sm:$0xff]  }
 0x558   : > { %v9353_v25 = vpop.f32.mrf.mxu0  ;;  %7311 = vmatmul.mubr.bf16.gmra.mxu0 %v13009_v55  ;;  %8122 = vmatprep.mubr.bf16.mxu1 %v13073_v61 }
 0x559   : > { %v6409_v20 = vadd.f32 %v9352_v51, %v13099_v19  ;;  %7318 = vmatprep.mubr.bf16.mxu0 %v13026_v7 }
 0x55a   : > { %v9354_v13 = vpop.f32.mrf.mxu0 }
 0x55b   : > { %v13138_v29 = vadd.f32 %v9846_v37, %v6409_v20  ;;  %v9355_v2 = vadd.f32 %v9354_v13, %v9353_v25  ;;  %v10405_v25 = vld [vmem:[#allocation4 + $0x50] ss:$12 sps:$4 sm:$0xff]   ;;  %v10409_v20 = vld [vmem:[#allocation4 + $0x10c] ss:$12 sps:$4 sm:$0xff]  }
 0x55c   : > { %v9356_v17 = vpop.f32.mrf.mxu0 }
 0x55d   : > { %v6414_v7 = vadd.f32 %v9355_v2, %v13099_v19 }
 0x55e   : > { %v9357_v16 = vpop.f32.mrf.mxu0 }
 0x55f   : > { %v9358_v6 = vadd.f32 %v9357_v16, %v9356_v17  ;;  %8123 = vmatmul.mubr.bf16.gmra.mxu1 %v13077_v31  ;;  %v9849_v55 = vpop.f32.mrf.mxu1  ;;  %v10406_v17 = vld [vmem:[#allocation4 + $0x68] ss:$12 sps:$4 sm:$0xff]  }
 0x560   : > { %v9359_v33 = vpop.f32.mrf.mxu0  ;;  %7319 = vmatmul.mubr.bf16.gmra.mxu0 %v13024_v15  ;;  %8130 = vmatprep.mubr.bf16.mxu1 %v13079_v38 }
 0x561   : > { %7326 = vmatprep.mubr.bf16.mxu0 %v13036_v3  ;;  %v6574_v27 = vpop.f32.mrf.mxu1  ;;  %v6417_v31 = vadd.f32 %v9358_v6, %v13099_v19 }
 0x562   : > { %v9360_v28 = vpop.f32.mrf.mxu0  ;;  %v13147_v59 = vadd.f32 %v6574_v27, %v6414_v7  ;;  %v10407_v27 = vld [vmem:[#allocation4 + $0x108] ss:$12 sps:$4 sm:$0xff]  }
 0x563   : > { %v9361_v47 = vadd.f32 %v9360_v28, %v9359_v33  ;;  %v9850_v30 = vpop.f32.mrf.mxu1 }
 0x564   : > { %v9362_v61 = vpop.f32.mrf.mxu0 }
 0x565   : > { %v6422_v34 = vadd.f32 %v9361_v47, %v13099_v19  ;;  %v6577_v15 = vpop.f32.mrf.mxu1 }
 0x566   : > { %v9363_v1 = vpop.f32.mrf.mxu0  ;;  %v13153_v3 = vadd.f32 %v6577_v15, %v6417_v31 }
 0x567   : > { %v13151_v54 = vadd.f32 %v9849_v55, %v6422_v34  ;;  %v9364_v38 = vadd.f32 %v9363_v1, %v9362_v61  ;;  %8131 = vmatmul.mubr.bf16.gmra.mxu1 %v13083_v23  ;;  %v10401_v23 = vld [vmem:[#allocation4 + $0x38] ss:$12 sps:$4 sm:$0xff]   ;;  %v10410_v61 = vld [vmem:[#allocation4 + $0x80] ss:$12 sps:$4 sm:$0xff]  }
 0x568   : > { %v9365_v48 = vpop.f32.mrf.mxu0  ;;  %7327 = vmatmul.mubr.bf16.gmra.mxu0 %v13038_v60  ;;  %8138 = vmatprep.mubr.bf16.mxu1 %v10400_v24  ;;  %v10411_v1 = vld [vmem:[#allocation4 + $0x98] ss:$12 sps:$4 sm:$0xff]  }
 0x569   : > { %v6425_v49 = vadd.f32 %v9364_v38, %v13099_v19  ;;  %7334 = vmatprep.mubr.bf16.mxu0 %v13155_v63 }
 0x56a   : > { %v9366_v58 = vpop.f32.mrf.mxu0 }
 0x56b   : > { %v13161_v53 = vadd.f32 %v9850_v30, %v6425_v49  ;;  %v9367_v50 = vadd.f32 %v9366_v58, %v9365_v48  ;;  %v10414_v30 = vld [vmem:[#allocation4 + $0x124] ss:$12 sps:$4 sm:$0xff]  }
 0x56c   : > { %v9368_v12 = vpop.f32.mrf.mxu0 }
 0x56d   : > { %v6430_v52 = vadd.f32 %v9367_v50, %v13099_v19 }
 0x56e   : > { %v9369_v0 = vpop.f32.mrf.mxu0  ;;  %v9853_v60 = vpop.f32.mrf.mxu1 }
 0x56f   : > { %v9370_v57 = vadd.f32 %v9369_v0, %v9368_v12  ;;  %8139 = vmatmul.mubr.bf16.gmra.mxu1 %v10398_v9 }
 0x570   : > { %v9371_v62 = vpop.f32.mrf.mxu0  ;;  %7335 = vmatmul.mubr.bf16.gmra.mxu0 %v13163_v14  ;;  %8146 = vmatprep.mubr.bf16.mxu1 %v10404_v22  ;;  %v6590_v46 = vpop.f32.mrf.mxu1  ;;  %v10412_v22 = vld [vmem:[#allocation4 + $0x120] ss:$12 sps:$4 sm:$0xff]  }
 0x571   : > { %9935 = vmatprep.mubr.bf16.mxu0 %v10401_v23  ;;  %v13167_v26 = vadd.f32 %v6590_v46, %v6430_v52  ;;  %v6433_v11 = vadd.f32 %v9370_v57, %v13099_v19  ;;  %v10419_v52 = vld [vmem:[#allocation4 + $0x13c] ss:$12 sps:$4 sm:$0xff]  }
 0x572   : > { %v9372_v43 = vpop.f32.mrf.mxu0  ;;  %v9854_v41 = vpop.f32.mrf.mxu1 }
 0x573   : > { %v9373_v18 = vadd.f32 %v9372_v43, %v9371_v62 }
 0x574   : > { %v9374_v36 = vpop.f32.mrf.mxu0  ;;  %v6593_v51 = vpop.f32.mrf.mxu1 }
 0x575   : > { %v6438_v42 = vadd.f32 %v9373_v18, %v13099_v19  ;;  %v13173_v2 = vadd.f32 %v6593_v51, %v6433_v11  ;;  %v10416_v18 = vld [vmem:[#allocation4 + $0xc8] ss:$12 sps:$4 sm:$0xff]   ;;  %v10417_v51 = vld [vmem:[#allocation4 + $0x138] ss:$12 sps:$4 sm:$0xff]  }
 0x576   : > { %v9375_v44 = vpop.f32.mrf.mxu0 }
 0x577   : > { %v13171_v37 = vadd.f32 %v9853_v60, %v6438_v42  ;;  %v9376_v13 = vadd.f32 %v9375_v44, %v9374_v36  ;;  %8147 = vmatmul.mubr.bf16.gmra.mxu1 %v10402_v4  ;;  %v10415_v60 = vld [vmem:[#allocation4 + $0xb0] ss:$12 sps:$4 sm:$0xff]  }
 0x578   : > { %v9377_v16 = vpop.f32.mrf.mxu0  ;;  %9936 = vmatmul.mubr.bf16.vlgmr.msra.gmra.mxu0 %v10405_v25  ;;  %8154 = vmatprep.mubr.bf16.mxu1 %v10409_v20  ;;  %v10420_v20 = vld [vmem:[#allocation4 + $0xe0] ss:$12 sps:$4 sm:$0xff]  }
 0x579   : > { %v6441_v6 = vadd.f32 %v9376_v13, %v13099_v19  ;;  %9939 = vmatprep.mubr.bf16.mxu0 %v10406_v17  ;;  %v10424_v13 = vld [vmem:[#allocation4 + $0x154] ss:$12 sps:$4 sm:$0xff]  }
 0x57a   : > { %v9378_v33 = vpop.f32.mrf.mxu0 }
 0x57b   : > { %v13176_v55 = vadd.f32 %v9854_v41, %v6441_v6  ;;  %v9379_v7 = vadd.f32 %v9378_v33, %v9377_v16  ;;  %v10421_v16 = vld [vmem:[#allocation4 + $0xf8] ss:$12 sps:$4 sm:$0xff]  }
 0x57c   : > { %v9380_v28 = vpop.f32.mrf.mxu0 }
 0x57d   : > { %v6446_v24 = vadd.f32 %v9379_v7, %v13099_v19 }
 0x57e   : > { %v9381_v47 = vpop.f32.mrf.mxu0 }
 0x57f   : > { %v9382_v34 = vadd.f32 %v9381_v47, %v9380_v28  ;;  %v9857_v31 = vpop.f32.mrf.mxu1  ;;  %8155 = vmatmul.mubr.bf16.gmra.mxu1 %v10407_v27 }
 0x580   : > { %v9383_v15 = vpop.f32.mrf.mxu0  ;;  %9940 = vmatmul.mubr.bf16.gmra.mxu0 %v10410_v61  ;;  %8162 = vmatprep.mubr.bf16.mxu1 %v10414_v30 }
 0x581   : > { %9943 = vmatprep.mubr.bf16.mxu0 %v10411_v1  ;;  %v6606_v38 = vpop.f32.mrf.mxu1  ;;  %v6449_v9 = vadd.f32 %v9382_v34, %v13099_v19  ;;  %v10422_v1 = vld [vmem:[#allocation4 + $0x150] ss:$12 sps:$4 sm:$0xff]  }
 0x582   : > { %v9384_v48 = vpop.f32.mrf.mxu0  ;;  %v13179_v49 = vadd.f32 %v6606_v38, %v6446_v24 }
 0x583   : > { %v9385_v58 = vadd.f32 %v9384_v48, %v9383_v15  ;;  %v9858_v50 = vpop.f32.mrf.mxu1  ;;  %v10425_v48 = vld [vmem:[#allocation4 + $0x110] ss:$12 sps:$4 sm:$0xff]  }
 0x584   : > { %v9386_v12 = vpop.f32.mrf.mxu0 }
 0x585   : > { %v6454_v0 = vadd.f32 %v9385_v58, %v13099_v19  ;;  %v6609_v57 = vpop.f32.mrf.mxu1  ;;  %v10429_v58 = vld [vmem:[#allocation4 + $0x16c] ss:$12 sps:$4 sm:$0xff]  }
 0x586   : > { %v9387_v23 = vpop.f32.mrf.mxu0  ;;  %v13183_v62 = vadd.f32 %v6609_v57, %v6449_v9 }
 0x587   : > { %v13185_v43 = vadd.f32 %v9857_v31, %v6454_v0  ;;  %v9388_v46 = vadd.f32 %v9387_v23, %v9386_v12  ;;  %8163 = vmatmul.mubr.bf16.gmra.mxu1 %v10412_v22  ;;  %v10426_v0 = vld [vmem:[#allocation4 + $0x128] ss:$12 sps:$4 sm:$0xff]  }
 0x588   : > { %v9389_v36 = vpop.f32.mrf.mxu0  ;;  %9944 = vmatmul.mubr.bf16.gmra.mxu0 %v10415_v60  ;;  %8170 = vmatprep.mubr.bf16.mxu1 %v10419_v52 }
 0x589   : > { %v6457_v41 = vadd.f32 %v9388_v46, %v13099_v19  ;;  %9947 = vmatprep.mubr.bf16.mxu0 %v10416_v18  ;;  %v10427_v18 = vld [vmem:[#allocation4 + $0x168] ss:$12 sps:$4 sm:$0xff]  }
 0x58a   : > { %v9390_v42 = vpop.f32.mrf.mxu0 }
 0x58b   : > { %v13188_v4 = vadd.f32 %v9858_v50, %v6457_v41  ;;  %v9391_v11 = vadd.f32 %v9390_v42, %v9389_v36  ;;  %v10430_v41 = vld [vmem:[#allocation4 + $0x140] ss:$12 sps:$4 sm:$0xff]  }
 0x58c   : > { %v9392_v44 = vpop.f32.mrf.mxu0 }
 0x58d   : > { %v6462_v7 = vadd.f32 %v9391_v11, %v13099_v19  ;;  %v10431_v11 = vld [vmem:[#allocation4 + $0x158] ss:$12 sps:$4 sm:$0xff]  }
 0x58e   : > { %v9393_v25 = vpop.f32.mrf.mxu0 }
 0x58f   : > { %v9394_v17 = vadd.f32 %v9393_v25, %v9392_v44  ;;  %8171 = vmatmul.mubr.bf16.gmra.mxu1 %v10417_v51  ;;  %v9861_v33 = vpop.f32.mrf.mxu1 }
 0x590   : > { %v9395_v6 = vpop.f32.mrf.mxu0  ;;  %9948 = vmatmul.mubr.bf16.gmra.mxu0 %v10420_v20  ;;  %8178 = vmatprep.mubr.bf16.mxu1 %v10424_v13 }
 0x591   : > { %9951 = vmatprep.mubr.bf16.mxu0 %v10421_v16  ;;  %v6622_v27 = vpop.f32.mrf.mxu1  ;;  %v6465_v15 = vadd.f32 %v9394_v17, %v13099_v19 }
 0x592   : > { %v9396_v28 = vpop.f32.mrf.mxu0  ;;  %v13191_v61 = vadd.f32 %v6622_v27, %v6462_v7  ;;  %v10439_v7 = vld [vmem:[#allocation4] sm:$0xff] }
 0x593   : > { %v9397_v47 = vadd.f32 %v9396_v28, %v9395_v6  ;;  %v9862_v34 = vpop.f32.mrf.mxu1  ;;  %v9136_v28 = vcombine.high %v10439_v7, %v10439_v7 }
 0x594   : > { %v9398_v30 = vpop.f32.mrf.mxu0 }
 0x595   : > { %v6470_v31 = vadd.f32 %v9397_v47, %v13099_v19  ;;  %v6625_v38 = vpop.f32.mrf.mxu1 }
 0x596   : > { %v9399_v24 = vpop.f32.mrf.mxu0  ;;  %v13197_v9 = vadd.f32 %v6625_v38, %v6465_v15 }
 0x597   : > { %v13195_v50 = vadd.f32 %v9861_v33, %v6470_v31  ;;  %v9400_v12 = vadd.f32 %v9399_v24, %v9398_v30  ;;  %8179 = vmatmul.mubr.bf16.gmra.mxu1 %v10422_v1  ;;  %v10432_v31 = vld [vmem:[#allocation4 + $0x170] ss:$12 sps:$4 sm:$0xff]   ;;  %v10433_v24 = vld [vmem:[#allocation4 + $0x188] ss:$12 sps:$4 sm:$0xff]  }
 0x598   : > { %v9401_v22 = vpop.f32.mrf.mxu0  ;;  %9952 = vmatmul.mubr.bf16.gmra.mxu0 %v10425_v48  ;;  %8186 = vmatprep.mubr.bf16.mxu1 %v10429_v58 }
 0x599   : > { %v6473_v57 = vadd.f32 %v9400_v12, %v13099_v19  ;;  %9955 = vmatprep.mubr.bf16.mxu0 %v10426_v0 }
 0x59a   : > { %v9402_v23 = vpop.f32.mrf.mxu0 }
 0x59b   : > { %v13200_v60 = vadd.f32 %v9862_v34, %v6473_v57  ;;  %v9403_v52 = vadd.f32 %v9402_v23, %v9401_v22  ;;  %v9135_v22 = vcombine.low %v10439_v7, %v10439_v7  ;;  %v10434_v23 = vld [vmem:[#allocation4 + $0x1a0] ss:$12 sps:$4 sm:$0xff]  }
 0x59c   : > { %v9404_v46 = vpop.f32.mrf.mxu0 }
 0x59d   : > { %v6478_v25 = vadd.f32 %v9403_v52, %v13099_v19 }
 0x59e   : > { %v9405_v36 = vpop.f32.mrf.mxu0  ;;  %v9865_v51 = vpop.f32.mrf.mxu1 }
 0x59f   : > { %v9406_v42 = vadd.f32 %v9405_v36, %v9404_v46  ;;  %8187 = vmatmul.mubr.bf16.gmra.mxu1 %v10427_v18 }
 0x5a0   : > { %v9407_v44 = vpop.f32.mrf.mxu0  ;;  %9956 = vmatmul.mubr.bf16.gmra.mxu0 %v10430_v41  ;;  %8194 = vmatprep.mubr.bf16.mxu1 %v13155_v63  ;;  %v6638_v13 = vpop.f32.mrf.mxu1 }
 0x5a1   : > { %9959 = vmatprep.mubr.bf16.mxu0 %v10431_v11  ;;  %v13204_v16 = vadd.f32 %v6638_v13, %v6478_v25  ;;  %v6481_v47 = vadd.f32 %v9406_v42, %v13099_v19 }
 0x5a2   : > { %v9408_v20 = vpop.f32.mrf.mxu0  ;;  %v9866_v33 = vpop.f32.mrf.mxu1 }
 0x5a3   : > { %v9409_v17 = vadd.f32 %v9408_v20, %v9407_v44 }
 0x5a4   : > { %v9410_v6 = vpop.f32.mrf.mxu0  ;;  %v6641_v34 = vpop.f32.mrf.mxu1 }
 0x5a5   : > { %v6486_v27 = vadd.f32 %v9409_v17, %v13099_v19  ;;  %v13210_v15 = vadd.f32 %v6641_v34, %v6481_v47 }
 0x5a6   : > { %v9411_v30 = vpop.f32.mrf.mxu0 }
 0x5a7   : > { %v13208_v63 = vadd.f32 %v9865_v51, %v6486_v27  ;;  %v9412_v1 = vadd.f32 %v9411_v30, %v9410_v6  ;;  %8195 = vmatmul.mubr.bf16.gmra.mxu1 %v13163_v14 }
 0x5a8   : > { %v9413_v38 = vpop.f32.mrf.mxu0  ;;  %9960 = vmatmul.mubr.bf16.gmra.mxu0 %v10432_v31  ;;  %8202 = vmatprep.mubr.bf16.mxu1 %v9136_v28 }
 0x5a9   : > { %v6489_v48 = vadd.f32 %v9412_v1, %v13099_v19  ;;  %9963 = vmatprep.mubr.bf16.mxu0 %v10433_v24  ;;  %v9334_v1 = vadd.f32 %v13094_v35, %v13088_v21 }
 0x5aa   : > { %v9414_v58 = vpop.f32.mrf.mxu0 }
 0x5ab   : > { %v13214_v12 = vadd.f32 %v9866_v33, %v6489_v48  ;;  %v9415_v0 = vadd.f32 %v9414_v58, %v9413_v38 }
 0x5ac   : > { %v9416_v57 = vpop.f32.mrf.mxu0 }
 0x5ad   : > { %v6494_v14 = vadd.f32 %v9415_v0, %v13099_v19 }
 0x5ae   : > { %v9417_v52 = vpop.f32.mrf.mxu0 }
 0x5af   : > { %v9418_v46 = vadd.f32 %v9417_v52, %v9416_v57  ;;  %v9869_v18 = vpop.f32.mrf.mxu1  ;;  %8203 = vmatmul.mubr.bf16.gmra.mxu1 %v9135_v22 }
 0x5b0   : > { %v9419_v36 = vpop.f32.mrf.mxu0  ;;  %9964 = vmatmul.mubr.bf16.gmra.mxu0 %v10434_v23  ;;  %v6385_v23 = vadd.f32 %v9334_v1, %v13099_v19 }
 0x5b1   : > { %v6654_v41 = vpop.f32.mrf.mxu1  ;;  %v6497_v20 = vadd.f32 %v9418_v46, %v13099_v19 }
 0x5b2   : > { %v9420_v42 = vpop.f32.mrf.mxu0  ;;  %v13217_v11 = vadd.f32 %v6654_v41, %v6494_v14  ;;  %v6546_v14 = vadd.f32 %v13119_v56, %v6385_v23 }
 0x5b3   : > { %v9421_v44 = vadd.f32 %v9420_v42, %v9419_v36  ;;  %v9870_v51 = vpop.f32.mrf.mxu1 }
 0x5b4   : > { %v9422_v25 = vpop.f32.mrf.mxu0 }
 0x5b5   : > { %v6502_v13 = vadd.f32 %v9421_v44, %v13099_v19  ;;  %v6657_v17 = vpop.f32.mrf.mxu1 }
 0x5b6   : > { %v9423_v6 = vpop.f32.mrf.mxu0  ;;  %v13221_v33 = vadd.f32 %v6657_v17, %v6497_v20 }
 0x5b7   : > { %v13223_v7 = vadd.f32 %v9869_v18, %v6502_v13  ;;  %v9424_v28 = vadd.f32 %v9423_v6, %v9422_v25  ;;  %v9889_v27 = vpop.f32.mrf.mxu1 }
 0x5b8   : > { %v9465_v47 = vpop.f32.mrf.mxu0 }
 0x5b9   : > { %v6505_v30 = vadd.f32 %v9424_v28, %v13099_v19  ;;  %v7377_v34 = vpop.f32.mrf.mxu1 }
 0x5ba   : > { %v9466_v31 = vpop.f32.mrf.mxu0 }
 0x5bb   : > { %v13228_v24 = vadd.f32 %v9870_v51, %v6505_v30  ;;  %v9467_v38 = vadd.f32 %v9466_v31, %v9465_v47  ;;  %v9890_v48 = vpop.f32.mrf.mxu1 }
 0x5bc   : > { %v9468_v58 = vpop.f32.mrf.mxu0 }
 0x5bd   : > { %v7378_v0 = vadd.f32 %v9467_v38, %v7377_v34  ;;  %v7380_v22 = vpop.f32.mrf.mxu1 }
 0x5be   : > { %v9469_v57 = vpop.f32.mrf.mxu0 }
 0x5bf   : > { %v13232_v52 = vadd.f32 %v7378_v0, %v13108_v39  ;;  %v9470_v46 = vadd.f32 %v9469_v57, %v9468_v58  ;;  %v9893_v18 = vpop.f32.mrf.mxu1  ;;  %v6401_v57 = vadd.f32 %v13121_v40, %v13099_v19 }
 0x5c0   : > { %v9471_v36 = vpop.f32.mrf.mxu0 }
 0x5c1   : > { %v7381_v41 = vadd.f32 %v9470_v46, %v7380_v22  ;;  %v7393_v21 = vpop.f32.mrf.mxu1 }
 0x5c2   : > { %v9472_v35 = vpop.f32.mrf.mxu0 }
 0x5c3   : > { %v13235_v42 = vadd.f32 %v7381_v41, %v6546_v14  ;;  %v9473_v44 = vadd.f32 %v9472_v35, %v9471_v36  ;;  %v9894_v51 = vpop.f32.mrf.mxu1  ;;  %v6562_v36 = vadd.f32 %v13140_v10, %v6401_v57 }
 0x5c4   : > { %v9474_v25 = vpop.f32.mrf.mxu0 }
 0x5c5   : > { %v7386_v20 = vadd.f32 %v9889_v27, %v9473_v44  ;;  %v7396_v13 = vpop.f32.mrf.mxu1 }
 0x5c6   : > { %v9475_v17 = vpop.f32.mrf.mxu0 }
 0x5c7   : > { %v9476_v6 = vadd.f32 %v9475_v17, %v9474_v25  ;;  %v9897_v28 = vpop.f32.mrf.mxu1  ;;  %v13238_v39 = vadd.f32 %v7386_v20, %v13110_v32 }
 0x5c8   : > { %v9477_v47 = vpop.f32.mrf.mxu0 }
 0x5c9   : > { %v7389_v30 = vadd.f32 %v9890_v48, %v9476_v6  ;;  %v7409_v34 = vpop.f32.mrf.mxu1 }
 0x5ca   : > { %v9478_v56 = vpop.f32.mrf.mxu0 }
 0x5cb   : > { %v9479_v31 = vadd.f32 %v9478_v56, %v9477_v47  ;;  %v9898_v1 = vpop.f32.mrf.mxu1  ;;  %v13241_v38 = vadd.f32 %v7389_v30, %v13114_v8 }
 0x5cc   : > { %v9480_v58 = vpop.f32.mrf.mxu0 }
 0x5cd   : > { %v7394_v0 = vadd.f32 %v9479_v31, %v7393_v21  ;;  %v7412_v22 = vpop.f32.mrf.mxu1 }
 0x5ce   : > { %v9481_v27 = vpop.f32.mrf.mxu0 }
 0x5cf   : > { %v9482_v23 = vadd.f32 %v9481_v27, %v9480_v58  ;;  %v13245_v46 = vpop.f32.mrf.mxu1  ;;  %v13248_v32 = vadd.f32 %v7394_v0, %v13128_v5 }
 0x5d0   : > { %v9483_v48 = vpop.f32.mrf.mxu0 }
 0x5d1   : > { %v7397_v14 = vadd.f32 %v9482_v23, %v7396_v13  ;;  %v7425_v41 = vpop.f32.mrf.mxu1 }
 0x5d2   : > { %v9484_v8 = vpop.f32.mrf.mxu0 }
 0x5d3   : > { %v9485_v35 = vadd.f32 %v9484_v8, %v9483_v48  ;;  %v13251_v44 = vpop.f32.mrf.mxu1  ;;  %v13253_v21 = vadd.f32 %v7397_v14, %v6562_v36 }
 0x5d4   : > { %v9486_v25 = vpop.f32.mrf.mxu0 }
 0x5d5   : > { %v7402_v20 = vadd.f32 %v9893_v18, %v9485_v35  ;;  %v7428_v19 = vpop.f32.mrf.mxu1 }
 0x5d6   : > { %v9487_v40 = vpop.f32.mrf.mxu0 }
 0x5d7   : > { %v9488_v17 = vadd.f32 %v9487_v40, %v9486_v25  ;;  %v13255_v6 = vpop.f32.mrf.mxu1  ;;  %v13258_v5 = vadd.f32 %v7402_v20, %v13131_v45 }
 0x5d8   : > { %v9489_v47 = vpop.f32.mrf.mxu0 }
 0x5d9   : > { %v7405_v10 = vadd.f32 %v9894_v51, %v9488_v17  ;;  %v7441_v13 = vpop.f32.mrf.mxu1 }
 0x5da   : > { %v9490_v30 = vpop.f32.mrf.mxu0 }
 0x5db   : > { %v9491_v56 = vadd.f32 %v9490_v30, %v9489_v47  ;;  %v13260_v31 = vpop.f32.mrf.mxu1  ;;  %v13263_v58 = vadd.f32 %v7405_v10, %v13138_v29 }
 0x5dc   : > { %v9492_v0 = vpop.f32.mrf.mxu0 }
 0x5dd   : > { %v7410_v18 = vadd.f32 %v9491_v56, %v7409_v34  ;;  %v7444_v27 = vpop.f32.mrf.mxu1 }
 0x5de   : > { %v9493_v57 = vpop.f32.mrf.mxu0 }
 0x5df   : > { %v9494_v23 = vadd.f32 %v9493_v57, %v9492_v0  ;;  %v13265_v48 = vpop.f32.mrf.mxu1  ;;  %v13268_v45 = vadd.f32 %v7410_v18, %v13147_v59 }
 0x5e0   : > { %v9495_v36 = vpop.f32.mrf.mxu0 }
 0x5e1   : > { %v7413_v51 = vadd.f32 %v9494_v23, %v7412_v22  ;;  %v13270_v14 = vpop.f32.mrf.mxu1 }
 0x5e2   : > { %v9496_v8 = vpop.f32.mrf.mxu0 }
 0x5e3   : > { %v9497_v35 = vadd.f32 %v9496_v8, %v9495_v36  ;;  %v13272_v25 = vpop.f32.mrf.mxu1  ;;  %v13275_v29 = vadd.f32 %v7413_v51, %v13153_v3 }
 0x5e4   : > { %v9498_v34 = vpop.f32.mrf.mxu0 }
 0x5e5   : > { %v7418_v20 = vadd.f32 %v9897_v28, %v9497_v35  ;;  %v13277_v40 = vpop.f32.mrf.mxu1 }
 0x5e6   : > { %v9499_v17 = vpop.f32.mrf.mxu0 }
 0x5e7   : > { %v9500_v47 = vadd.f32 %v9499_v17, %v9498_v34  ;;  %v13279_v10 = vpop.f32.mrf.mxu1  ;;  %v13282_v59 = vadd.f32 %v7418_v20, %v13151_v54 }
 0x5e8   : > { %v9501_v22 = vpop.f32.mrf.mxu0 }
 0x5e9   : > { %v7421_v30 = vadd.f32 %v9898_v1, %v9500_v47  ;;  %v13284_v56 = vpop.f32.mrf.mxu1 }
 0x5ea   : > { %v9502_v0 = vpop.f32.mrf.mxu0 }
 0x5eb   : > { %v9503_v18 = vadd.f32 %v9502_v0, %v9501_v22  ;;  %v13286_v57 = vpop.f32.mrf.mxu1  ;;  %v13289_v3 = vadd.f32 %v7421_v30, %v13161_v53 }
 0x5ec   : > { %v9504_v28 = vpop.f32.mrf.mxu0 }
 0x5ed   : > { %13676 = vst [vmem:[#allocation11_spill] sm:$0xff] %v13289_v3  ;;  %v7426_v23 = vadd.f32 %v9503_v18, %v7425_v41  ;;  %v13291_v36 = vpop.f32.mrf.mxu1 }
 0x5ee   : > { %v9505_v51 = vpop.f32.mrf.mxu0 }
 0x5ef   : > { %v9506_v8 = vadd.f32 %v9505_v51, %v9504_v28  ;;  %v13293_v35 = vpop.f32.mrf.mxu1  ;;  %v13296_v54 = vadd.f32 %v7426_v23, %v13167_v26 }
 0x5f0   : > { %v9507_v1 = vpop.f32.mrf.mxu0 }
 0x5f1   : > { %13677 = vst [vmem:[#allocation12_spill] sm:$0xff] %v13296_v54  ;;  %v7429_v34 = vadd.f32 %v9506_v8, %v7428_v19  ;;  %v13298_v20 = vpop.f32.mrf.mxu1 }
 0x5f2   : > { %v9508_v17 = vpop.f32.mrf.mxu0 }
 0x5f3   : > { %v9509_v47 = vadd.f32 %v9508_v17, %v9507_v1  ;;  %v13300_v22 = vpop.f32.mrf.mxu1  ;;  %v13303_v53 = vadd.f32 %v7429_v34, %v13173_v2 }
 0x5f4   : > { %v9510_v41 = vpop.f32.mrf.mxu0 }
 0x5f5   : > { %13678 = vst [vmem:[#allocation13_spill] sm:$0xff] %v13303_v53  ;;  %v7434_v30 = vadd.f32 %v13245_v46, %v9509_v47  ;;  %v13306_v0 = vpop.f32.mrf.mxu1 }
 0x5f6   : > { %v9511_v18 = vpop.f32.mrf.mxu0 }
 0x5f7   : > { %v9512_v28 = vadd.f32 %v9511_v18, %v9510_v41  ;;  %v13308_v26 = vpop.f32.mrf.mxu1  ;;  %v13311_v19 = vadd.f32 %v7434_v30, %v13171_v37 }
 0x5f8   : > { %v9513_v23 = vpop.f32.mrf.mxu0 }
 0x5f9   : > { %13679 = vst [vmem:[#allocation14_spill] sm:$0xff] %v13311_v19  ;;  %v7437_v51 = vadd.f32 %v13251_v44, %v9512_v28  ;;  %v13314_v8 = vpop.f32.mrf.mxu1 }
 0x5fa   : > { %v9514_v1 = vpop.f32.mrf.mxu0 }
 0x5fb   : > { %v9515_v2 = vadd.f32 %v9514_v1, %v9513_v23  ;;  %v13316_v34 = vpop.f32.mrf.mxu1  ;;  %v13319_v46 = vadd.f32 %v7437_v51, %v13176_v55 }
 0x5fc   : > { %v9516_v17 = vpop.f32.mrf.mxu0 }
 0x5fd   : > { %13680 = vst [vmem:[#allocation15_spill] sm:$0xff] %v13319_v46  ;;  %v7442_v47 = vadd.f32 %v9515_v2, %v7441_v13  ;;  %v13321_v41 = vpop.f32.mrf.mxu1 }
 0x5fe   : > { %v9517_v18 = vpop.f32.mrf.mxu0 }
 0x5ff   : > { %v9518_v53 = vadd.f32 %v9517_v18, %v9516_v17  ;;  %v13323_v37 = vpop.f32.mrf.mxu1  ;;  %v13326_v30 = vadd.f32 %v7442_v47, %v13179_v49 }
 0x600   : > { %v9519_v44 = vpop.f32.mrf.mxu0 }
 0x601   : > { %v7445_v28 = vadd.f32 %v9518_v53, %v7444_v27  ;;  %v13328_v19 = vpop.f32.mrf.mxu1 }
 0x602   : > { %v9520_v23 = vpop.f32.mrf.mxu0 }
 0x603   : > { %v9521_v1 = vadd.f32 %v9520_v23, %v9519_v44  ;;  %v13330_v54 = vpop.f32.mrf.mxu1  ;;  %v13333_v55 = vadd.f32 %v7445_v28, %v13183_v62 }
 0x604   : > { %v9522_v13 = vpop.f32.mrf.mxu0 }
 0x605   : > { %v7450_v51 = vadd.f32 %v13255_v6, %v9521_v1  ;;  %v13336_v2 = vpop.f32.mrf.mxu1 }
 0x606   : > { %v9523_v17 = vpop.f32.mrf.mxu0 }
 0x607   : > { %v9524_v18 = vadd.f32 %v9523_v17, %v9522_v13  ;;  %v13338_v49 = vpop.f32.mrf.mxu1  ;;  %v13341_v27 = vadd.f32 %v7450_v51, %v13185_v43 }
 0x608   : > { %v9525_v53 = vpop.f32.mrf.mxu0 }
 0x609   : > { %v7453_v47 = vadd.f32 %v13260_v31, %v9524_v18  ;;  %v13344_v44 = vpop.f32.mrf.mxu1 }
 0x60a   : > { %v9526_v23 = vpop.f32.mrf.mxu0 }
 0x60b   : > { %v9527_v62 = vadd.f32 %v9526_v23, %v9525_v53  ;;  %v13346_v28 = vpop.f32.mrf.mxu1  ;;  %v13349_v6 = vadd.f32 %v7453_v47, %v13188_v4 }
 0x60c   : > { %v9528_v1 = vpop.f32.mrf.mxu0 }
 0x60d   : > { %13681 = vst [vmem:[#allocation16_spill] sm:$0xff] %v13349_v6  ;;  %v7458_v13 = vadd.f32 %v9527_v62, %v13270_v14  ;;  %v13352_v17 = vpop.f32.mrf.mxu1 }
 0x60e   : > { %v9529_v46 = vpop.f32.mrf.mxu0 }
 0x60f   : > { %v9530_v43 = vadd.f32 %v9529_v46, %v9528_v1  ;;  %v13354_v51 = vpop.f32.mrf.mxu1  ;;  %v13357_v31 = vadd.f32 %v7458_v13, %v13191_v61 }
 0x610   : > { %v9531_v18 = vpop.f32.mrf.mxu0 }
 0x611   : > { %13682 = vst [vmem:[#allocation17_spill] sm:$0xff] %v13357_v31  ;;  %v7461_v53 = vadd.f32 %v9530_v43, %v13277_v40  ;;  %v13360_v23 = vpop.f32.mrf.mxu1 }
 0x612   : > { %v9532_v3 = vpop.f32.mrf.mxu0 }
 0x613   : > { %v9533_v4 = vadd.f32 %v9532_v3, %v9531_v18  ;;  %v13362_v47 = vpop.f32.mrf.mxu1  ;;  %v13365_v14 = vadd.f32 %v7461_v53, %v13197_v9 }
 0x614   : > { %v9534_v62 = vpop.f32.mrf.mxu0 }
 0x615   : > { %13683 = vst [vmem:[#allocation18_spill] sm:$0xff] %v13365_v14  ;;  %v7466_v46 = vadd.f32 %v13265_v48, %v9533_v4  ;;  %v13368_v1 = vpop.f32.mrf.mxu1 }
 0x616   : > { %v9535_v6 = vpop.f32.mrf.mxu0 }
 0x617   : > { %v9536_v61 = vadd.f32 %v9535_v6, %v9534_v62  ;;  %v13370_v13 = vpop.f32.mrf.mxu1  ;;  %v13373_v40 = vadd.f32 %v7466_v46, %v13195_v50 }
 0x618   : > { %v9537_v43 = vpop.f32.mrf.mxu0 }
 0x619   : > { %13684 = vst [vmem:[#allocation19_spill] sm:$0xff] %v13373_v40  ;;  %v7469_v3 = vadd.f32 %v13272_v25, %v9536_v61  ;;  %v13376_v18 = vpop.f32.mrf.mxu1 }
 0x61a   : > { %v9538_v31 = vpop.f32.mrf.mxu0 }
 0x61b   : > { %v9539_v9 = vadd.f32 %v9538_v31, %v9537_v43  ;;  %v13378_v53 = vpop.f32.mrf.mxu1  ;;  %v13381_v48 = vadd.f32 %v7469_v3, %v13200_v60 }
 0x61c   : > { %v9540_v4 = vpop.f32.mrf.mxu0 }
 0x61d   : > { %13685 = vst [vmem:[#allocation20_spill] sm:$0xff] %v13381_v48  ;;  %v7474_v6 = vadd.f32 %v9539_v9, %v13284_v56  ;;  %v13384_v62 = vpop.f32.mrf.mxu1 }
 0x61e   : > { %v9541_v14 = vpop.f32.mrf.mxu0 }
 0x61f   : > { %v9542_v50 = vadd.f32 %v9541_v14, %v9540_v4  ;;  %v13386_v46 = vpop.f32.mrf.mxu1  ;;  %v13389_v25 = vadd.f32 %v7474_v6, %v13204_v16 }
 0x620   : > { %v9543_v61 = vpop.f32.mrf.mxu0 }
 0x621   : > { %13686 = vst [vmem:[#allocation21_spill] sm:$0xff] %v13389_v25  ;;  %v7477_v31 = vadd.f32 %v9542_v50, %v13291_v36  ;;  %v13392_v43 = vpop.f32.mrf.mxu1 }
 0x622   : > { %v9544_v40 = vpop.f32.mrf.mxu0 }
 0x623   : > { %v9545_v60 = vadd.f32 %v9544_v40, %v9543_v61  ;;  %v13394_v3 = vpop.f32.mrf.mxu1  ;;  %v13397_v56 = vadd.f32 %v7477_v31, %v13210_v15 }
 0x624   : > { %v9546_v9 = vpop.f32.mrf.mxu0 }
 0x625   : > { %13687 = vst [vmem:[#allocation22_spill] sm:$0xff] %v13397_v56  ;;  %v7482_v14 = vadd.f32 %v13279_v10, %v9545_v60  ;;  %v13400_v4 = vpop.f32.mrf.mxu1 }
 0x626   : > { %v9547_v48 = vpop.f32.mrf.mxu0 }
 0x627   : > { %v9548_v16 = vadd.f32 %v9547_v48, %v9546_v9  ;;  %v13402_v6 = vpop.f32.mrf.mxu1  ;;  %v13405_v36 = vadd.f32 %v7482_v14, %v13208_v63 }
 0x628   : > { %v9549_v50 = vpop.f32.mrf.mxu0 }
 0x629   : > { %13688 = vst [vmem:[#allocation23_spill] sm:$0xff] %v13405_v36  ;;  %v7485_v40 = vadd.f32 %v13286_v57, %v9548_v16  ;;  %v13408_v61 = vpop.f32.mrf.mxu1 }
 0x62a   : > { %v9550_v25 = vpop.f32.mrf.mxu0 }
 0x62b   : > { %v9551_v15 = vadd.f32 %v9550_v25, %v9549_v50  ;;  %v13410_v31 = vpop.f32.mrf.mxu1  ;;  %v13413_v10 = vadd.f32 %v7485_v40, %v13214_v12 }
 0x62c   : > { %v9552_v60 = vpop.f32.mrf.mxu0 }
 0x62d   : > { %13689 = vst [vmem:[#allocation24_spill] sm:$0xff] %v13413_v10  ;;  %v7490_v48 = vadd.f32 %v9551_v15, %v13298_v20  ;;  %v13416_v9 = vpop.f32.mrf.mxu1 }
 0x62e   : > { %v9553_v56 = vpop.f32.mrf.mxu0 }
 0x62f   : > { %v9554_v63 = vadd.f32 %v9553_v56, %v9552_v60  ;;  %v13418_v14 = vpop.f32.mrf.mxu1  ;;  %v13421_v57 = vadd.f32 %v7490_v48, %v13217_v11 }
 0x630   : > { %v9555_v16 = vpop.f32.mrf.mxu0 }
 0x631   : > { %v7493_v25 = vadd.f32 %v9554_v63, %v13306_v0  ;;  %v13424_v50 = vpop.f32.mrf.mxu1 }
 0x632   : > { %v9556_v36 = vpop.f32.mrf.mxu0 }
 0x633   : > { %v9557_v12 = vadd.f32 %v9556_v36, %v9555_v16  ;;  %v13426_v40 = vpop.f32.mrf.mxu1  ;;  %v13429_v20 = vadd.f32 %v7493_v25, %v13221_v33  ;;  %v9603_v36 = vadd.f32 %v13314_v8, %v13308_v26 }
 0x634   : > { %v9558_v15 = vpop.f32.mrf.mxu0 }
 0x635   : > { %13690 = vst [vmem:[#allocation25_spill] sm:$0xff] %v13429_v20  ;;  %v7498_v56 = vadd.f32 %v13293_v35, %v9557_v12  ;;  %v13432_v60 = vpop.f32.mrf.mxu1 }
 0x636   : > { %v9559_v10 = vpop.f32.mrf.mxu0 }
 0x637   : > { %v13435_v11 = vadd.f32 %v7498_v56, %v13223_v7  ;;  %v9560_v48 = vadd.f32 %v9559_v10, %v9558_v15  ;;  %v13437_v0 = vpop.f32.mrf.mxu1  ;;  %v9606_v10 = vadd.f32 %v13321_v41, %v13316_v34 }
 0x638   : > { %v9937_v63 = vpop.f32.mrf.mxu0 }
 0x639   : > { %v7501_v16 = vadd.f32 %v13300_v22, %v9560_v48  ;;  %v13442_v33 = vpop.f32.mrf.mxu1  ;;  %v9609_v22 = vadd.f32 %v13328_v19, %v13323_v37 }
 0x63a   : > { %v8245_v25 = vpop.f32.mrf.mxu0 }
 0x63b   : > { %v13445_v35 = vadd.f32 %v7501_v16, %v13228_v24  ;;  %v8246_v12 = vadd.f32 %v9603_v36, %v8245_v25  ;;  %v13447_v20 = vpop.f32.mrf.mxu1  ;;  %v8254_v36 = vadd.f32 %v9937_v63, %v9609_v22  ;;  %v9615_v63 = vadd.f32 %v13344_v44, %v13338_v49 }
 0x63c   : > { %v9938_v7 = vpop.f32.mrf.mxu0 }
 0x63d   : > { %13691 = vst [vmem:[#allocation26_spill] sm:$0xff] %v13445_v35  ;;  %v8372_v15 = vadd.f32 %v8246_v12, %v13232_v52  ;;  %v13452_v56 = vpop.f32.mrf.mxu1  ;;  %v9612_v52 = vadd.f32 %v13336_v2, %v13330_v54  ;;  %v8374_v19 = vadd.f32 %v8254_v36, %v13238_v39  ;;  %v9618_v39 = vadd.f32 %v13352_v17, %v13346_v28 }
 0x63e   : > { %v8248_v26 = vpop.f32.mrf.mxu0 }
 0x63f   : > { %v8249_v8 = vadd.f32 %v9606_v10, %v8248_v26  ;;  %8404 = vxpose.xlu0.b32.start [1/16] (narrow) %v8372_v15, 8  ;;  %v13456_v48 = vpop.f32.mrf.mxu1  ;;  %v8257_v37 = vadd.f32 %v9938_v7, %v9612_v52 }
 0x640   : > { %v9941_v24 = vpop.f32.mrf.mxu0 }
 0x641   : > { %v8373_v16 = vadd.f32 %v8249_v8, %v13235_v42  ;;  %v13459_v25 = vpop.f32.mrf.mxu1  ;;  %v8375_v26 = vadd.f32 %v8257_v37, %v13241_v38  ;;  %v9621_v38 = vadd.f32 %v13360_v23, %v13354_v51 }
 0x642   : > { %v8261_v35 = vpop.f32.mrf.mxu0 }
 0x643   : > { %8405 = vxpose.xlu0.b32.cont [2/16] (narrow) %v8373_v16, 8  ;;  %v13463_v34 = vpop.f32.mrf.mxu1  ;;  %v8262_v54 = vadd.f32 %v9615_v63, %v8261_v35 }
 0x644   : > { %v9942_v41 = vpop.f32.mrf.mxu0 }
 0x645   : > { %v13466_v12 = vpop.f32.mrf.mxu1  ;;  %v8376_v36 = vadd.f32 %v8262_v54, %v13248_v32  ;;  %v9624_v32 = vadd.f32 %v13368_v1, %v13362_v47  ;;  %v9651_v47 = vadd.f32 %v13442_v33, %v13437_v0 }
 0x646   : > { %v8264_v10 = vpop.f32.mrf.mxu0 }
 0x647   : > { %8406 = vxpose.xlu0.b32.cont [3/16] (narrow) %v8374_v19, 8  ;;  %v13470_v42 = vpop.f32.mrf.mxu1  ;;  %v8265_v49 = vadd.f32 %v9618_v39, %v8264_v10  ;;  %v8270_v19 = vadd.f32 %v9941_v24, %v9621_v38  ;;  %v8273_v23 = vadd.f32 %v9942_v41, %v9624_v32  ;;  %v9630_v41 = vadd.f32 %v13384_v62, %v13378_v53 }
 0x648   : > { %v9945_v15 = vpop.f32.mrf.mxu0  ;;  %v9633_v32 = vadd.f32 %v13392_v43, %v13386_v46  ;;  %v9657_v53 = vadd.f32 %v13459_v25, %v13456_v48  ;;  %v9660_v46 = vadd.f32 %v13466_v12, %v13463_v34  ;;  %v13693_v12 = vld [vmem:[#allocation16_spill] sm:$0xff] }
 0x649   : > { %v13473_v2 = vpop.f32.mrf.mxu1  ;;  %v8377_v28 = vadd.f32 %v8265_v49, %v13253_v21  ;;  %v8378_v51 = vadd.f32 %v8270_v19, %v13258_v5  ;;  %v9627_v21 = vadd.f32 %v13376_v18, %v13370_v13  ;;  %v8379_v1 = vadd.f32 %v8273_v23, %v13263_v58 }
 0x64a   : > { %v8277_v22 = vpop.f32.mrf.mxu0  ;;  %v9654_v18 = vadd.f32 %v13452_v56, %v13447_v20  ;;  %v8286_v23 = vadd.f32 %v9945_v15, %v9633_v32  ;;  %v9648_v32 = vadd.f32 %v13432_v60, %v13426_v40  ;;  %v13700_v40 = vld [vmem:[#allocation15_spill] sm:$0xff] }
 0x64b   : > { %8407 = vxpose.xlu0.b32.cont [4/16] (narrow) %v8375_v26, 8  ;;  %v13477_v7 = vpop.f32.mrf.mxu1 }
 0x64c   : > { %v9946_v8 = vpop.f32.mrf.mxu0  ;;  %v8382_v43 = vadd.f32 %v8286_v23, %v13282_v59 }
 0x64d   : > { %v13480_v44 = vpop.f32.mrf.mxu1 }
 0x64e   : > { %v8280_v16 = vpop.f32.mrf.mxu0 }
 0x64f   : > { %8408 = vxpose.xlu0.b32.cont [5/16] (narrow) %v8376_v36, 8  ;;  %v13484_v35 = vpop.f32.mrf.mxu1  ;;  %v8278_v36 = vadd.f32 %v9627_v21, %v8277_v22  ;;  %v8281_v0 = vadd.f32 %v9630_v41, %v8280_v16  ;;  %v9636_v21 = vadd.f32 %v13400_v4, %v13394_v3  ;;  %v13692_v3 = vld [vmem:[#allocation11_spill] sm:$0xff] }
 0x650   : > { %v13486_v52 = vpop.f32.mrf.mxu0 }
 0x651   : > { %v13489_v17 = vpop.f32.mrf.mxu1  ;;  %v8381_v20 = vadd.f32 %v8281_v0, %v13275_v29  ;;  %v8289_v48 = vadd.f32 %v9946_v8, %v9636_v21  ;;  %v13697_v0 = vld [vmem:[#allocation18_spill] sm:$0xff]  ;;  %v13702_v21 = vld [vmem:[#allocation21_spill] sm:$0xff] }
 0x652   : > { %v8293_v37 = vpop.f32.mrf.mxu0 }
 0x653   : > { %8409 = vxpose.xlu0.b32.cont [6/16] (narrow) %v8377_v28, 8  ;;  %v13493_v10 = vpop.f32.mrf.mxu1  ;;  %v8380_v28 = vadd.f32 %v8278_v36, %v13268_v45  ;;  %v8383_v4 = vadd.f32 %v8289_v48, %v13692_v3 }
 0x654   : > { %v13495_v63 = vpop.f32.mrf.mxu0 }
 0x655   : > { %v13498_v26 = vpop.f32.mrf.mxu1 }
 0x656   : > { %v8296_v54 = vpop.f32.mrf.mxu0 }
 0x657   : > { %8410 = vxpose.xlu0.b32.cont [7/16] (narrow) %v8378_v51, 8  ;;  %v13502_v24 = vpop.f32.mrf.mxu1 }
 0x658   : > { %v9953_v39 = vpop.f32.mrf.mxu0 }
 0x659   : > { %v13507_v49 = vpop.f32.mrf.mxu1  ;;  %v8318_v45 = vadd.f32 %v9953_v39, %v9657_v53 }
 0x65a   : > { %v8309_v5 = vpop.f32.mrf.mxu0 }
 0x65b   : > { %v8310_v38 = vadd.f32 %v9651_v47, %v8309_v5  ;;  %8411 = vxpose.xlu0.b32.cont [8/16] (narrow) %v8379_v1, 8  ;;  %v13511_v19 = vpop.f32.mrf.mxu1  ;;  %v8390_v25 = vadd.f32 %v8318_v45, %v13341_v27  ;;  %v9663_v47 = vadd.f32 %v13473_v2, %v13470_v42  ;;  %v9642_v27 = vadd.f32 %v13416_v9, %v13410_v31  ;;  %v13695_v2 = vld [vmem:[#allocation17_spill] sm:$0xff]  ;;  %v13701_v45 = vld [vmem:[#allocation20_spill] sm:$0xff] }
 0x65c   : > { %v9954_v13 = vpop.f32.mrf.mxu0  ;;  %v9666_v5 = vadd.f32 %v13480_v44, %v13477_v7  ;;  %v13696_v9 = vld [vmem:[#allocation13_spill] sm:$0xff] }
 0x65d   : > { %v8388_v58 = vadd.f32 %v8310_v38, %v13326_v30  ;;  %v13517_v22 = vpop.f32.mrf.mxu1  ;;  %v8321_v29 = vadd.f32 %v9954_v13, %v9660_v46  ;;  %v8297_v42 = vadd.f32 %v9642_v27, %v8296_v54 }
 0x65e   : > { %v8312_v33 = vpop.f32.mrf.mxu0 }
 0x65f   : > { %v8313_v62 = vadd.f32 %v9654_v18, %v8312_v33  ;;  %8436 = vxpose.xlu1.b32.start [1/16] (narrow) %v8388_v58, 8  ;;  %8412 = vxpose.xlu0.b32.cont [9/16] (narrow) %v8380_v28, 8  ;;  %v13525_v30 = vpop.f32.mrf.mxu1  ;;  %v8391_v1 = vadd.f32 %v8321_v29, %v13693_v12  ;;  %v9645_v18 = vadd.f32 %v13424_v50, %v13418_v14  ;;  %v13698_v50 = vld [vmem:[#allocation14_spill] sm:$0xff] }
 0x660   : > { %v9957_v51 = vpop.f32.mrf.mxu0  ;;  %v9669_v28 = vadd.f32 %v13489_v17, %v13484_v35  ;;  %v8385_v7 = vadd.f32 %v8297_v42, %v13696_v9  ;;  %v9672_v14 = vadd.f32 %v13498_v26, %v13493_v10  ;;  %v8305_v17 = vadd.f32 %v13495_v63, %v9648_v32  ;;  %v13703_v29 = vld [vmem:[#allocation22_spill] sm:$0xff] }
 0x661   : > { %v8389_v56 = vadd.f32 %v8313_v62, %v13333_v55  ;;  %v9680_v15 = vpop.f32.mrf.mxu1  ;;  %v9639_v55 = vadd.f32 %v13408_v61, %v13402_v6  ;;  %v13694_v6 = vld [vmem:[#allocation12_spill] sm:$0xff]  ;;  %v8302_v31 = vadd.f32 %v13486_v52, %v9645_v18  ;;  %v13699_v52 = vld [vmem:[#allocation19_spill] sm:$0xff]  ;;  %v9678_v63 = vadd.f32 %v13517_v22, %v13511_v19 }
 0x662   : > { %v8325_v16 = vpop.f32.mrf.mxu0  ;;  %v8334_v44 = vadd.f32 %v9957_v51, %v9669_v28  ;;  %v8387_v60 = vadd.f32 %v8305_v17, %v13700_v40  ;;  %v13707_v28 = vld [vmem:[#allocation26_spill] sm:$0xff] }
 0x663   : > { %8437 = vxpose.xlu1.b32.cont [2/16] (narrow) %v8389_v56, 8  ;;  %8413 = vxpose.xlu0.b32.cont [10/16] (narrow) %v8381_v20, 8  ;;  %v8294_v34 = vadd.f32 %v9639_v55, %v8293_v37  ;;  %v8326_v59 = vadd.f32 %v9663_v47, %v8325_v16  ;;  %v9682_v8 = vpop.f32.mrf.mxu1  ;;  %v8386_v35 = vadd.f32 %v8302_v31, %v13698_v50 }
 0x664   : > { %v9958_v39 = vpop.f32.mrf.mxu0  ;;  %v8394_v53 = vadd.f32 %v8334_v44, %v13699_v52  ;;  %v9675_v20 = vadd.f32 %v13507_v49, %v13502_v24  ;;  %v9681_v24 = vadd.f32 %v9680_v15, %v13525_v30  ;;  %v10440_v44 = vld [vmem:[%s10619_s20] sm:$0x77] }
 0x665   : > { %v8384_v61 = vadd.f32 %v8294_v34, %v13694_v6  ;;  %v8392_v41 = vadd.f32 %v8326_v59, %v13695_v2  ;;  %v9683_v37 = vpop.f32.mrf.mxu1  ;;  %v8337_v62 = vadd.f32 %v9958_v39, %v9672_v14  ;;  %v13705_v59 = vld [vmem:[#allocation24_spill] sm:$0xff] }
 0x666   : > { %v8328_v36 = vpop.f32.mrf.mxu0  ;;  %v9684_v3 = vadd.f32 %v9683_v37, %v9682_v8 }
 0x667   : > { %8438 = vxpose.xlu1.b32.cont [3/16] (narrow) %v8390_v25, 8  ;;  %8414 = vxpose.xlu0.b32.cont [11/16] (narrow) %v8382_v43, 8  ;;  %v8329_v38 = vadd.f32 %v9666_v5, %v8328_v36  ;;  %v9685_v58 = vpop.f32.mrf.mxu1  ;;  %v8395_v10 = vadd.f32 %v8337_v62, %v13701_v45 }
 0x668   : > { %v9961_v13 = vpop.f32.mrf.mxu0 }
 0x669   : > { %v8393_v54 = vadd.f32 %v8329_v38, %v13697_v0  ;;  %v9686_v51 = vpop.f32.mrf.mxu1  ;;  %v8350_v49 = vadd.f32 %v9961_v13, %v9681_v24 }
 0x66a   : > { %v8341_v33 = vpop.f32.mrf.mxu0 }
 0x66b   : > { %8439 = vxpose.xlu1.b32.cont [4/16] (narrow) %v8391_v1, 8  ;;  %8415 = vxpose.xlu0.b32.cont [12/16] (narrow) %v8383_v4, 8  ;;  %v8342_v26 = vadd.f32 %v9675_v20, %v8341_v33  ;;  %v9688_v56 = vpop.f32.mrf.mxu1  ;;  %v13704_v4 = vld [vmem:[#allocation23_spill] sm:$0xff]  ;;  %v9687_v1 = vadd.f32 %v9686_v51, %v9685_v58 }
 0x66c   : > { %v9962_v23 = vpop.f32.mrf.mxu0  ;;  %v8398_v34 = vadd.f32 %v8350_v49, %v13704_v4 }
 0x66d   : > { %v8396_v46 = vadd.f32 %v8342_v26, %v13702_v21  ;;  %v9689_v48 = vpop.f32.mrf.mxu1  ;;  %v8353_v19 = vadd.f32 %v9962_v23, %v9684_v3 }
 0x66e   : > { %v8344_v16 = vpop.f32.mrf.mxu0  ;;  %v9690_v15 = vadd.f32 %v9689_v48, %v9688_v56 }
 0x66f   : > { %8440 = vxpose.xlu1.b32.cont [5/16] (narrow) %v8392_v41, 8  ;;  %8416 = vxpose.xlu0.b32.cont [13/16] (narrow) %v8384_v61, 8  ;;  %v8345_v43 = vadd.f32 %v9678_v63, %v8344_v16  ;;  %v9691_v55 = vpop.f32.mrf.mxu1  ;;  %v8399_v36 = vadd.f32 %v8353_v19, %v13705_v59  ;;  %v13706_v41 = vld [vmem:[#allocation25_spill] sm:$0xff] }
 0x670   : > { %v9965_v25 = vpop.f32.mrf.mxu0 }
 0x671   : > { %v8397_v39 = vadd.f32 %v8345_v43, %v13703_v29  ;;  %v9692_v22 = vpop.f32.mrf.mxu1 }
 0x672   : > { %v8357_v47 = vpop.f32.mrf.mxu0  ;;  %v9693_v61 = vadd.f32 %v9692_v22, %v9691_v55 }
 0x673   : > { %8441 = vxpose.xlu1.b32.cont [6/16] (narrow) %v8393_v54, 8  ;;  %8417 = vxpose.xlu0.b32.cont [14/16] (narrow) %v8385_v7, 8  ;;  %v8358_v27 = vadd.f32 %v9687_v1, %v8357_v47  ;;  %v9694_v5 = vpop.f32.mrf.mxu1 }
 0x674   : > { %v9966_v12 = vpop.f32.mrf.mxu0  ;;  %v8366_v2 = vadd.f32 %v9965_v25, %v9693_v61 }
 0x675   : > { %v8400_v6 = vadd.f32 %v8358_v27, %v13421_v57  ;;  %v9695_v42 = vpop.f32.mrf.mxu1 }
 0x676   : > { %v8360_v30 = vpop.f32.mrf.mxu0  ;;  %v9696_v37 = vadd.f32 %v9695_v42, %v9694_v5  ;;  %v8402_v18 = vadd.f32 %v8366_v2, %v13435_v11 }
 0x677   : > { %8442 = vxpose.xlu1.b32.cont [7/16] (narrow) %v8394_v53, 8  ;;  %8418 = vxpose.xlu0.b32.cont [15/16] (narrow) %v8386_v35, 8  ;;  %v8361_v8 = vadd.f32 %v9690_v15, %v8360_v30 }
 0x678   : > { %v8369_v13 = vadd.f32 %v9966_v12, %v9696_v37 }
 0x679   : > { %v8401_v38 = vadd.f32 %v8361_v8, %v13706_v41 }
 0x67a   : > { %v8403_v31 = vadd.f32 %v8369_v13, %v13707_v28 }
 0x67b   : > { %8443 = vxpose.xlu1.b32.cont [8/16] (narrow) %v8395_v10, 8  ;;  %8419 = vxpose.xlu0.b32.end [16/16] (narrow) %v8387_v60, 8 }
 0x67f   : > { %8444 = vxpose.xlu1.b32.cont [9/16] (narrow) %v8396_v46, 8 }
 0x683   : > { %8445 = vxpose.xlu1.b32.cont [10/16] (narrow) %v8397_v39, 8 }
 0x687   : > { %8446 = vxpose.xlu1.b32.cont [11/16] (narrow) %v8398_v34, 8 }
 0x68b   : > { %8447 = vxpose.xlu1.b32.cont [12/16] (narrow) %v8399_v36, 8 }
 0x68f   : > { %8448 = vxpose.xlu1.b32.cont [13/16] (narrow) %v8400_v6, 8 }
 0x693   : > { %8449 = vxpose.xlu1.b32.cont [14/16] (narrow) %v8401_v38, 8 }
 0x697   : > { %8450 = vxpose.xlu1.b32.cont [15/16] (narrow) %v8402_v18, 8 }
 0x69b   : > { %8451 = vxpose.xlu1.b32.end [16/16] (narrow) %v8403_v31, 8 }
 0x6bb   : > { %v8420_v9 = vpop.trf.xlu0 }
 0x6db   : > { %v8452_v57 = vpop.trf.xlu1 }
 0x6dc   : > { %v8470_v7 = vcombine.low %v8420_v9, %v8452_v57 }
 0x6de   : > { %v8472_v0 = vsub.f32 %v10440_v44, %v8470_v7 }
 0x6e0   : > { %8473 = vst [vmem:[%s308_s18] sm:$0x77] %v8472_v0 }
 0x6e1 PF: > { %s19_s24 = sadd.s32 1, %s10507_s24  }
 0x6e2   : > { %p16_p2 = scmp.ge.s32.totalorder %s19_s24, 4  }
 0x6e4   :  { %18 = sbr.rel (!%p16_p2) target bundleno = 2 (0x2), region = 102 }
 0x6e9   :  { %8495 = vsyncpa [#allocation6], 1 }
 0x6ea   :  { %8497 = vsyncpa [#allocation6 + $0x1], 1 }
 0x6eb   :  { %8498 = vsyncpa [#allocation8], 1 }

</bundles_post_ra>
